<compile_context>
chip_gen: v7x
topology: tpu7x:2x2x1
jax: 0.10.0
libtpu: 0.0.40
codegen_flags: <defaults>
</compile_context>

<pallas_src>
import functools

import jax
import jax.numpy as jnp
from jax.experimental import pallas as pl
from jax.experimental.pallas import tpu as pltpu

NEG_SLOPE = 0.01   # MONAI Act['LEAKYRELU'] default (torch nn.LeakyReLU default)
BN_EPS = 1e-5      # torch nn.BatchNorm2d default
KSIZE = 4
PAD = 1
_LANE = 128        # lane width; Cout=1 head is padded to this for dense stores


def _leaky_relu(x):
    # max(x, 0.01*x) == LeakyReLU(0.01) since 0 < slope < 1
    return jnp.maximum(x, NEG_SLOPE * x)


# ----------------------------- Pallas kernels ------------------------------

def _conv_bias_act_kernel(p_ref, w_ref, b_ref, o_ref, *, apply_act):
    """im2col conv tile: (tm, K)bf16 @ (K, Cout)bf16 -> f32, + bias [+ LeakyReLU]."""
    acc = jnp.dot(p_ref[...], w_ref[...], preferred_element_type=jnp.float32)
    acc = acc + b_ref[...]                      # (1, Cout) broadcast, f32
    if apply_act:
        acc = _leaky_relu(acc)
    o_ref[...] = acc.astype(o_ref.dtype)


def _conv_bn_act_kernel(p_ref, w_ref, g_ref, be_ref, o_ref):
    """Fused conv + training-mode BatchNorm (batch stats over M) + LeakyReLU.

    The kernel owns the full M (= N*Ho*Wo), so the batch statistics are
    computed in the matmul epilogue on the f32 accumulator while it is still
    in VMEM, then applied as a per-channel scale/shift (one mul + one add
    over the (M, Cout) tile).
    """
    acc = jnp.dot(p_ref[...], w_ref[...], preferred_element_type=jnp.float32)
    mean = jnp.mean(acc, axis=0, keepdims=True)          # (1, Cout)
    centered = acc - mean
    var = jnp.mean(jnp.square(centered), axis=0, keepdims=True)  # biased var
    scale = jax.lax.rsqrt(var + BN_EPS) * g_ref[...]     # (1, Cout)
    y = centered * scale + be_ref[...]
    o_ref[...] = _leaky_relu(y).astype(o_ref.dtype)


# ------------------------------ Pallas wrappers -----------------------------

def _pick_tile_m(m):
    for tm in (256, 128, 512):
        if m % tm == 0:
            return tm
    return m


def _conv_bias_act(patches, w, b, *, apply_act, out_dtype):
    """No-norm conv layer: M-tiled grid, weight/bias resident across M tiles."""
    M, K = patches.shape
    Cout = w.shape[1]
    tm = _pick_tile_m(M)
    return pl.pallas_call(
        functools.partial(_conv_bias_act_kernel, apply_act=apply_act),
        out_shape=jax.ShapeDtypeStruct((M, Cout), out_dtype),
        grid=(M // tm,),
        in_specs=[
            pl.BlockSpec((tm, K), lambda i: (i, 0)),
            pl.BlockSpec((K, Cout), lambda i: (0, 0)),   # weight resident
            pl.BlockSpec((1, Cout), lambda i: (0, 0)),   # bias resident
        ],
        out_specs=pl.BlockSpec((tm, Cout), lambda i: (i, 0)),
        compiler_params=pltpu.CompilerParams(
            dimension_semantics=("parallel",)),
    )(patches, w, b)


def _conv_bn_act(patches, w, gamma, beta, *, out_dtype):
    """BN conv layer: single block owning the full M (needed for batch stats)."""
    M, K = patches.shape
    Cout = w.shape[1]
    return pl.pallas_call(
        _conv_bn_act_kernel,
        out_shape=jax.ShapeDtypeStruct((M, Cout), out_dtype),
        grid=(1,),
        in_specs=[
            pl.BlockSpec((M, K), lambda i: (0, 0)),
            pl.BlockSpec((K, Cout), lambda i: (0, 0)),
            pl.BlockSpec((1, Cout), lambda i: (0, 0)),
            pl.BlockSpec((1, Cout), lambda i: (0, 0)),
        ],
        out_specs=pl.BlockSpec((M, Cout), lambda i: (0, 0)),
        compiler_params=pltpu.CompilerParams(
            dimension_semantics=("arbitrary",)),
    )(patches, w, gamma, beta)


# -------------------------------- glue (JAX) --------------------------------

def _im2col(x_nhwc, k, stride, pad):
    """x: (N,H,W,C) -> patches (N*Ho*Wo, k*k*C) with (kh, kw, Cin) ordering."""
    n, h, w, c = x_nhwc.shape
    xp = jnp.pad(x_nhwc, ((0, 0), (pad, pad), (pad, pad), (0, 0)))
    ho = (h + 2 * pad - k) // stride + 1
    wo = (w + 2 * pad - k) // stride + 1
    cols = []
    for dy in range(k):
        for dx in range(k):
            cols.append(xp[:, dy:dy + stride * ho:stride,
                           dx:dx + stride * wo:stride, :])
    # concat along channel axis gives [tap0 C, tap1 C, ...] == (kh, kw, Cin)
    patches = jnp.concatenate(cols, axis=-1)     # (N, Ho, Wo, k*k*C)
    return patches.reshape(n * ho * wo, k * k * c), (n, ho, wo)


# --------------------------- parameters / forward ---------------------------

_LAYER_CFG = (
    # cin, cout, stride, bias, bn,   act
    (1,   64,  2, True,  False, True),
    (64,  128, 2, False, True,  True),
    (128, 256, 2, False, True,  True),
    (256, 512, 1, False, True,  True),
    (512, 1,   1, True,  False, False),
)


def init_params(key):
    """Mirrors weights_init: conv W ~ N(0, 0.02); BN gamma ~ N(1, 0.02),
    beta = 0.  Conv bias = 0 is a deterministic stand-in for torch's default
    uniform bias init (which weights_init leaves alone).  Conv weights are
    stored in bf16 (MXU-native); the Cout=1 head is zero-padded to 128 output
    lanes so its matmul / store stay lane-dense."""
    params = []
    n_layers = len(_LAYER_CFG)
    for li, (cin, cout, _s, has_bias, has_bn, _a) in enumerate(_LAYER_CFG):
        key, kw, kg = jax.random.split(key, 3)
        w = 0.02 * jax.random.normal(kw, (KSIZE, KSIZE, cin, cout), jnp.float32)
        w = w.reshape(KSIZE * KSIZE * cin, cout)
        cpad = _LANE if (li == n_layers - 1 and cout < _LANE) else cout
        if cpad != cout:
            w = jnp.pad(w, ((0, 0), (0, cpad - cout)))
        layer = {"w": w.astype(jnp.bfloat16)}
        if has_bias:
            layer["b"] = jnp.zeros((1, cpad), jnp.float32)
        if has_bn:
            layer["gamma"] = 1.0 + 0.02 * jax.random.normal(
                kg, (1, cout), jnp.float32)
            layer["beta"] = jnp.zeros((1, cout), jnp.float32)
        params.append(layer)
    return params


@jax.jit
def taming_discriminator_forward(x_nchw, params):
    # NCHW -> NHWC; activations travel between layers in bf16 (halved HBM traffic)
    x = jnp.transpose(x_nchw, (0, 2, 3, 1)).astype(jnp.bfloat16)
    n_layers = len(_LAYER_CFG)
    for li, (cfg, p) in enumerate(zip(_LAYER_CFG, params)):
        cin, cout, stride, has_bias, has_bn, has_act = cfg
        patches, (n, ho, wo) = _im2col(x, KSIZE, stride, PAD)
        last = li == n_layers - 1
        out_dtype = jnp.float32 if last else jnp.bfloat16
        if has_bn:
            # dropout=0.0 -> identity; ADN ordering: Norm -> Dropout -> Act
            y = _conv_bn_act(patches, p["w"], p["gamma"], p["beta"],
                             out_dtype=out_dtype)
        else:
            y = _conv_bias_act(patches, p["w"], p["b"],
                               apply_act=has_act, out_dtype=out_dtype)
        y = y[:, :cout]                      # strip lane padding (final layer)
        x = y.reshape(n, ho, wo, cout)
    return jnp.transpose(x, (0, 3, 1, 2))    # back to NCHW, like PyTorch


# ----------------------------------- main -----------------------------------

if __name__ == "__main__":
    key = jax.random.PRNGKey(0)
    kx, kp = jax.random.split(key)
    # matches PyTorch default module signature: in_channels=1, NCHW input
    x = jax.random.normal(kx, (2, 1, 32, 32), jnp.float32)
    params = init_params(kp)

    out = taming_discriminator_forward(x, params)
    out = jax.block_until_ready(out)

    # expected PatchGAN logit map: 32 -> 16 -> 8 -> 4 -> 3 -> 2
    assert out.shape == (2, 1, 2, 2), out.shape
    assert out.dtype == jnp.float32
    assert bool(jnp.all(jnp.isfinite(out)))
    print("KERNEL_OK")
</pallas_src>

<mosaic_0001>
module attributes {stable_mosaic.version = 11 : i64} {
  func.func @_conv_bias_act_kernel(%arg0: i32, %arg1: memref<256x16xbf16, #tpu.memory_space<vmem>>, %arg2: memref<16x64xbf16, #tpu.memory_space<vmem>>, %arg3: memref<1x64xf32, #tpu.memory_space<vmem>>, %arg4: memref<256x64xbf16, #tpu.memory_space<vmem>>) attributes {dimension_semantics = [#tpu.dimension_semantics<parallel>], iteration_bounds = array<i64: 2>, scalar_prefetch = 0 : i64, scratch_operands = 0 : i64, tpu.core_type = #tpu.core_type<tc>, window_params = [{transform_indices = @transform_0, window_bounds = array<i64: 256, 16>}, {pipeline_mode = #tpu.pipeline_mode<synchronous>, transform_indices = @transform_1, window_bounds = array<i64: 16, 64>}, {pipeline_mode = #tpu.pipeline_mode<synchronous>, transform_indices = @transform_2, window_bounds = array<i64: 1, 64>}, {transform_indices = @transform_3, window_bounds = array<i64: 256, 64>}]} {
    %c0 = arith.constant 0 : index
    %c0_0 = arith.constant 0 : index
    %0 = vector.load %arg1[%c0, %c0_0] : memref<256x16xbf16, #tpu.memory_space<vmem>>, vector<256x16xbf16>
    %c0_1 = arith.constant 0 : index
    %c0_2 = arith.constant 0 : index
    %1 = vector.load %arg2[%c0_1, %c0_2] : memref<16x64xbf16, #tpu.memory_space<vmem>>, vector<16x64xbf16>
    %cst = arith.constant dense<0.000000e+00> : vector<256x64xf32>
    %2 = tpu.matmul %0, %1, %cst {dimension_numbers = #tpu.dot_dimension_numbers<[1], [0], [0], [1], [0, 0, 1, 1], [], []>} : vector<256x16xbf16>, vector<16x64xbf16>, vector<256x64xf32> -> vector<256x64xf32>
    %c0_3 = arith.constant 0 : index
    %c0_4 = arith.constant 0 : index
    %3 = vector.load %arg3[%c0_3, %c0_4] : memref<1x64xf32, #tpu.memory_space<vmem>>, vector<1x64xf32>
    %4 = vector.broadcast %3 : vector<1x64xf32> to vector<256x64xf32>
    %5 = arith.addf %2, %4 : vector<256x64xf32>
    %cst_5 = arith.constant 0.00999999977 : f32
    %6 = vector.broadcast %cst_5 : f32 to vector<256x64xf32>
    %7 = arith.mulf %6, %5 : vector<256x64xf32>
    %8 = arith.maximumf %5, %7 : vector<256x64xf32>
    %9 = arith.truncf %8 : vector<256x64xf32> to vector<256x64xbf16>
    %c0_6 = arith.constant 0 : index
    %c0_7 = arith.constant 0 : index
    %10 = vector.load %arg4[%c0_6, %c0_7] : memref<256x64xbf16, #tpu.memory_space<vmem>>, vector<256x64xbf16>
    tpu.vector_store %arg4[%c0_6, %c0_7], %9 {strides = array<i32>} : memref<256x64xbf16, #tpu.memory_space<vmem>>, vector<256x64xbf16>,
    return
  }
  func.func @transform_0(%arg0: i32) -> (i32, i32) {
    %c0_i32 = arith.constant 0 : i32
    %c0_i32_0 = arith.constant 0 : i32
    return %arg0, %c0_i32 : i32, i32
  }
  func.func @transform_1(%arg0: i32) -> (i32, i32) {
    %c0_i32 = arith.constant 0 : i32
    %c0_i32_0 = arith.constant 0 : i32
    %c0_i32_1 = arith.constant 0 : i32
    return %c0_i32, %c0_i32_0 : i32, i32
  }
  func.func @transform_2(%arg0: i32) -> (i32, i32) {
    %c0_i32 = arith.constant 0 : i32
    %c0_i32_0 = arith.constant 0 : i32
    %c0_i32_1 = arith.constant 0 : i32
    return %c0_i32, %c0_i32_0 : i32, i32
  }
  func.func @transform_3(%arg0: i32) -> (i32, i32) {
    %c0_i32 = arith.constant 0 : i32
    %c0_i32_0 = arith.constant 0 : i32
    return %arg0, %c0_i32 : i32, i32
  }
}

module attributes {stable_mosaic.version = 11 : i64} {
  func.func @_conv_bn_act_kernel(%arg0: i32, %arg1: memref<128x1024xbf16, #tpu.memory_space<vmem>>, %arg2: memref<1024x128xbf16, #tpu.memory_space<vmem>>, %arg3: memref<1x128xf32, #tpu.memory_space<vmem>>, %arg4: memref<1x128xf32, #tpu.memory_space<vmem>>, %arg5: memref<128x128xbf16, #tpu.memory_space<vmem>>) attributes {dimension_semantics = [#tpu.dimension_semantics<arbitrary>], iteration_bounds = array<i64: 1>, scalar_prefetch = 0 : i64, scratch_operands = 0 : i64, tpu.core_type = #tpu.core_type<tc>, window_params = [{pipeline_mode = #tpu.pipeline_mode<synchronous>, transform_indices = @transform_0, window_bounds = array<i64: 128, 1024>}, {pipeline_mode = #tpu.pipeline_mode<synchronous>, transform_indices = @transform_1, window_bounds = array<i64: 1024, 128>}, {pipeline_mode = #tpu.pipeline_mode<synchronous>, transform_indices = @transform_2, window_bounds = array<i64: 1, 128>}, {pipeline_mode = #tpu.pipeline_mode<synchronous>, transform_indices = @transform_3, window_bounds = array<i64: 1, 128>}, {pipeline_mode = #tpu.pipeline_mode<synchronous>, transform_indices = @transform_4, window_bounds = array<i64: 128, 128>}]} {
    %c0 = arith.constant 0 : index
    %c0_0 = arith.constant 0 : index
    %0 = vector.load %arg1[%c0, %c0_0] : memref<128x1024xbf16, #tpu.memory_space<vmem>>, vector<128x1024xbf16>
    %c0_1 = arith.constant 0 : index
    %c0_2 = arith.constant 0 : index
    %1 = vector.load %arg2[%c0_1, %c0_2] : memref<1024x128xbf16, #tpu.memory_space<vmem>>, vector<1024x128xbf16>
    %cst = arith.constant dense<0.000000e+00> : vector<128x128xf32>
    %2 = tpu.matmul %0, %1, %cst {dimension_numbers = #tpu.dot_dimension_numbers<[1], [0], [0], [1], [0, 0, 1, 1], [], []>} : vector<128x1024xbf16>, vector<1024x128xbf16>, vector<128x128xf32> -> vector<128x128xf32>
    %cst_3 = arith.constant dense<0.000000e+00> : vector<128xf32>
    %3 = vector.multi_reduction <add>, %2, %cst_3 [0] : vector<128x128xf32> to vector<128xf32>
    %4 = vector.shape_cast %3 : vector<128xf32> to vector<1x128xf32>
    %cst_4 = arith.constant 1.280000e+02 : f32
    %5 = vector.broadcast %cst_4 : f32 to vector<1x128xf32>
    %6 = arith.divf %4, %5 : vector<1x128xf32>
    %7 = vector.broadcast %6 : vector<1x128xf32> to vector<128x128xf32>
    %8 = arith.subf %2, %7 : vector<128x128xf32>
    %9 = arith.mulf %8, %8 : vector<128x128xf32>
    %cst_5 = arith.constant dense<0.000000e+00> : vector<128xf32>
    %10 = vector.multi_reduction <add>, %9, %cst_5 [0] : vector<128x128xf32> to vector<128xf32>
    %11 = vector.shape_cast %10 : vector<128xf32> to vector<1x128xf32>
    %cst_6 = arith.constant 1.280000e+02 : f32
    %12 = vector.broadcast %cst_6 : f32 to vector<1x128xf32>
    %13 = arith.divf %11, %12 : vector<1x128xf32>
    %cst_7 = arith.constant 9.99999974E-6 : f32
    %14 = vector.broadcast %cst_7 : f32 to vector<1x128xf32>
    %15 = arith.addf %13, %14 : vector<1x128xf32>
    %16 = math.rsqrt %15 : vector<1x128xf32>
    %c0_8 = arith.constant 0 : index
    %c0_9 = arith.constant 0 : index
    %17 = vector.load %arg3[%c0_8, %c0_9] : memref<1x128xf32, #tpu.memory_space<vmem>>, vector<1x128xf32>
    %18 = arith.mulf %16, %17 : vector<1x128xf32>
    %19 = vector.broadcast %18 : vector<1x128xf32> to vector<128x128xf32>
    %20 = arith.mulf %8, %19 : vector<128x128xf32>
    %c0_10 = arith.constant 0 : index
    %c0_11 = arith.constant 0 : index
    %21 = vector.load %arg4[%c0_10, %c0_11] : memref<1x128xf32, #tpu.memory_space<vmem>>, vector<1x128xf32>
    %22 = vector.broadcast %21 : vector<1x128xf32> to vector<128x128xf32>
    %23 = arith.addf %20, %22 : vector<128x128xf32>
    %cst_12 = arith.constant 0.00999999977 : f32
    %24 = vector.broadcast %cst_12 : f32 to vector<128x128xf32>
    %25 = arith.mulf %24, %23 : vector<128x128xf32>
    %26 = arith.maximumf %23, %25 : vector<128x128xf32>
    %27 = arith.truncf %26 : vector<128x128xf32> to vector<128x128xbf16>
    %c0_13 = arith.constant 0 : index
    %c0_14 = arith.constant 0 : index
    %28 = vector.load %arg5[%c0_13, %c0_14] : memref<128x128xbf16, #tpu.memory_space<vmem>>, vector<128x128xbf16>
    tpu.vector_store %arg5[%c0_13, %c0_14], %27 {strides = array<i32>} : memref<128x128xbf16, #tpu.memory_space<vmem>>, vector<128x128xbf16>,
    return
  }
  func.func @transform_0(%arg0: i32) -> (i32, i32) {
    %c0_i32 = arith.constant 0 : i32
    %c0_i32_0 = arith.constant 0 : i32
    %c0_i32_1 = arith.constant 0 : i32
    return %c0_i32, %c0_i32_0 : i32, i32
  }
  func.func @transform_1(%arg0: i32) -> (i32, i32) {
    %c0_i32 = arith.constant 0 : i32
    %c0_i32_0 = arith.constant 0 : i32
    %c0_i32_1 = arith.constant 0 : i32
    return %c0_i32, %c0_i32_0 : i32, i32
  }
  func.func @transform_2(%arg0: i32) -> (i32, i32) {
    %c0_i32 = arith.constant 0 : i32
    %c0_i32_0 = arith.constant 0 : i32
    %c0_i32_1 = arith.constant 0 : i32
    return %c0_i32, %c0_i32_0 : i32, i32
  }
  func.func @transform_3(%arg0: i32) -> (i32, i32) {
    %c0_i32 = arith.constant 0 : i32
    %c0_i32_0 = arith.constant 0 : i32
    %c0_i32_1 = arith.constant 0 : i32
    return %c0_i32, %c0_i32_0 : i32, i32
  }
  func.func @transform_4(%arg0: i32) -> (i32, i32) {
    %c0_i32 = arith.constant 0 : i32
    %c0_i32_0 = arith.constant 0 : i32
    %c0_i32_1 = arith.constant 0 : i32
    return %c0_i32, %c0_i32_0 : i32, i32
  }
}

module attributes {stable_mosaic.version = 11 : i64} {
  func.func @_conv_bn_act_kernel(%arg0: i32, %arg1: memref<32x2048xbf16, #tpu.memory_space<vmem>>, %arg2: memref<2048x256xbf16, #tpu.memory_space<vmem>>, %arg3: memref<1x256xf32, #tpu.memory_space<vmem>>, %arg4: memref<1x256xf32, #tpu.memory_space<vmem>>, %arg5: memref<32x256xbf16, #tpu.memory_space<vmem>>) attributes {dimension_semantics = [#tpu.dimension_semantics<arbitrary>], iteration_bounds = array<i64: 1>, scalar_prefetch = 0 : i64, scratch_operands = 0 : i64, tpu.core_type = #tpu.core_type<tc>, window_params = [{pipeline_mode = #tpu.pipeline_mode<synchronous>, transform_indices = @transform_0, window_bounds = array<i64: 32, 2048>}, {pipeline_mode = #tpu.pipeline_mode<synchronous>, transform_indices = @transform_1, window_bounds = array<i64: 2048, 256>}, {pipeline_mode = #tpu.pipeline_mode<synchronous>, transform_indices = @transform_2, window_bounds = array<i64: 1, 256>}, {pipeline_mode = #tpu.pipeline_mode<synchronous>, transform_indices = @transform_3, window_bounds = array<i64: 1, 256>}, {pipeline_mode = #tpu.pipeline_mode<synchronous>, transform_indices = @transform_4, window_bounds = array<i64: 32, 256>}]} {
    %c0 = arith.constant 0 : index
    %c0_0 = arith.constant 0 : index
    %0 = vector.load %arg1[%c0, %c0_0] : memref<32x2048xbf16, #tpu.memory_space<vmem>>, vector<32x2048xbf16>
    %c0_1 = arith.constant 0 : index
    %c0_2 = arith.constant 0 : index
    %1 = vector.load %arg2[%c0_1, %c0_2] : memref<2048x256xbf16, #tpu.memory_space<vmem>>, vector<2048x256xbf16>
    %cst = arith.constant dense<0.000000e+00> : vector<32x256xf32>
    %2 = tpu.matmul %0, %1, %cst {dimension_numbers = #tpu.dot_dimension_numbers<[1], [0], [0], [1], [0, 0, 1, 1], [], []>} : vector<32x2048xbf16>, vector<2048x256xbf16>, vector<32x256xf32> -> vector<32x256xf32>
    %cst_3 = arith.constant dense<0.000000e+00> : vector<256xf32>
    %3 = vector.multi_reduction <add>, %2, %cst_3 [0] : vector<32x256xf32> to vector<256xf32>
    %4 = vector.shape_cast %3 : vector<256xf32> to vector<1x256xf32>
    %cst_4 = arith.constant 3.200000e+01 : f32
    %5 = vector.broadcast %cst_4 : f32 to vector<1x256xf32>
    %6 = arith.divf %4, %5 : vector<1x256xf32>
    %7 = vector.broadcast %6 : vector<1x256xf32> to vector<32x256xf32>
    %8 = arith.subf %2, %7 : vector<32x256xf32>
    %9 = arith.mulf %8, %8 : vector<32x256xf32>
    %cst_5 = arith.constant dense<0.000000e+00> : vector<256xf32>
    %10 = vector.multi_reduction <add>, %9, %cst_5 [0] : vector<32x256xf32> to vector<256xf32>
    %11 = vector.shape_cast %10 : vector<256xf32> to vector<1x256xf32>
    %cst_6 = arith.constant 3.200000e+01 : f32
    %12 = vector.broadcast %cst_6 : f32 to vector<1x256xf32>
    %13 = arith.divf %11, %12 : vector<1x256xf32>
    %cst_7 = arith.constant 9.99999974E-6 : f32
    %14 = vector.broadcast %cst_7 : f32 to vector<1x256xf32>
    %15 = arith.addf %13, %14 : vector<1x256xf32>
    %16 = math.rsqrt %15 : vector<1x256xf32>
    %c0_8 = arith.constant 0 : index
    %c0_9 = arith.constant 0 : index
    %17 = vector.load %arg3[%c0_8, %c0_9] : memref<1x256xf32, #tpu.memory_space<vmem>>, vector<1x256xf32>
    %18 = arith.mulf %16, %17 : vector<1x256xf32>
    %19 = vector.broadcast %18 : vector<1x256xf32> to vector<32x256xf32>
    %20 = arith.mulf %8, %19 : vector<32x256xf32>
    %c0_10 = arith.constant 0 : index
    %c0_11 = arith.constant 0 : index
    %21 = vector.load %arg4[%c0_10, %c0_11] : memref<1x256xf32, #tpu.memory_space<vmem>>, vector<1x256xf32>
    %22 = vector.broadcast %21 : vector<1x256xf32> to vector<32x256xf32>
    %23 = arith.addf %20, %22 : vector<32x256xf32>
    %cst_12 = arith.constant 0.00999999977 : f32
    %24 = vector.broadcast %cst_12 : f32 to vector<32x256xf32>
    %25 = arith.mulf %24, %23 : vector<32x256xf32>
    %26 = arith.maximumf %23, %25 : vector<32x256xf32>
    %27 = arith.truncf %26 : vector<32x256xf32> to vector<32x256xbf16>
    %c0_13 = arith.constant 0 : index
    %c0_14 = arith.constant 0 : index
    %28 = vector.load %arg5[%c0_13, %c0_14] : memref<32x256xbf16, #tpu.memory_space<vmem>>, vector<32x256xbf16>
    tpu.vector_store %arg5[%c0_13, %c0_14], %27 {strides = array<i32>} : memref<32x256xbf16, #tpu.memory_space<vmem>>, vector<32x256xbf16>,
    return
  }
  func.func @transform_0(%arg0: i32) -> (i32, i32) {
    %c0_i32 = arith.constant 0 : i32
    %c0_i32_0 = arith.constant 0 : i32
    %c0_i32_1 = arith.constant 0 : i32
    return %c0_i32, %c0_i32_0 : i32, i32
  }
  func.func @transform_1(%arg0: i32) -> (i32, i32) {
    %c0_i32 = arith.constant 0 : i32
    %c0_i32_0 = arith.constant 0 : i32
    %c0_i32_1 = arith.constant 0 : i32
    return %c0_i32, %c0_i32_0 : i32, i32
  }
  func.func @transform_2(%arg0: i32) -> (i32, i32) {
    %c0_i32 = arith.constant 0 : i32
    %c0_i32_0 = arith.constant 0 : i32
    %c0_i32_1 = arith.constant 0 : i32
    return %c0_i32, %c0_i32_0 : i32, i32
  }
  func.func @transform_3(%arg0: i32) -> (i32, i32) {
    %c0_i32 = arith.constant 0 : i32
    %c0_i32_0 = arith.constant 0 : i32
    %c0_i32_1 = arith.constant 0 : i32
    return %c0_i32, %c0_i32_0 : i32, i32
  }
  func.func @transform_4(%arg0: i32) -> (i32, i32) {
    %c0_i32 = arith.constant 0 : i32
    %c0_i32_0 = arith.constant 0 : i32
    %c0_i32_1 = arith.constant 0 : i32
    return %c0_i32, %c0_i32_0 : i32, i32
  }
}

module attributes {stable_mosaic.version = 11 : i64} {
  func.func @_conv_bn_act_kernel(%arg0: i32, %arg1: memref<18x4096xbf16, #tpu.memory_space<vmem>>, %arg2: memref<4096x512xbf16, #tpu.memory_space<vmem>>, %arg3: memref<1x512xf32, #tpu.memory_space<vmem>>, %arg4: memref<1x512xf32, #tpu.memory_space<vmem>>, %arg5: memref<18x512xbf16, #tpu.memory_space<vmem>>) attributes {dimension_semantics = [#tpu.dimension_semantics<arbitrary>], iteration_bounds = array<i64: 1>, scalar_prefetch = 0 : i64, scratch_operands = 0 : i64, tpu.core_type = #tpu.core_type<tc>, window_params = [{pipeline_mode = #tpu.pipeline_mode<synchronous>, transform_indices = @transform_0, window_bounds = array<i64: 18, 4096>}, {pipeline_mode = #tpu.pipeline_mode<synchronous>, transform_indices = @transform_1, window_bounds = array<i64: 4096, 512>}, {pipeline_mode = #tpu.pipeline_mode<synchronous>, transform_indices = @transform_2, window_bounds = array<i64: 1, 512>}, {pipeline_mode = #tpu.pipeline_mode<synchronous>, transform_indices = @transform_3, window_bounds = array<i64: 1, 512>}, {pipeline_mode = #tpu.pipeline_mode<synchronous>, transform_indices = @transform_4, window_bounds = array<i64: 18, 512>}]} {
    %c0 = arith.constant 0 : index
    %c0_0 = arith.constant 0 : index
    %0 = vector.load %arg1[%c0, %c0_0] : memref<18x4096xbf16, #tpu.memory_space<vmem>>, vector<18x4096xbf16>
    %c0_1 = arith.constant 0 : index
    %c0_2 = arith.constant 0 : index
    %1 = vector.load %arg2[%c0_1, %c0_2] : memref<4096x512xbf16, #tpu.memory_space<vmem>>, vector<4096x512xbf16>
    %cst = arith.constant dense<0.000000e+00> : vector<18x512xf32>
    %2 = tpu.matmul %0, %1, %cst {dimension_numbers = #tpu.dot_dimension_numbers<[1], [0], [0], [1], [0, 0, 1, 1], [], []>} : vector<18x4096xbf16>, vector<4096x512xbf16>, vector<18x512xf32> -> vector<18x512xf32>
    %cst_3 = arith.constant dense<0.000000e+00> : vector<512xf32>
    %3 = vector.multi_reduction <add>, %2, %cst_3 [0] : vector<18x512xf32> to vector<512xf32>
    %4 = vector.shape_cast %3 : vector<512xf32> to vector<1x512xf32>
    %cst_4 = arith.constant 1.800000e+01 : f32
    %5 = vector.broadcast %cst_4 : f32 to vector<1x512xf32>
    %6 = arith.divf %4, %5 : vector<1x512xf32>
    %7 = vector.broadcast %6 : vector<1x512xf32> to vector<18x512xf32>
    %8 = arith.subf %2, %7 : vector<18x512xf32>
    %9 = arith.mulf %8, %8 : vector<18x512xf32>
    %cst_5 = arith.constant dense<0.000000e+00> : vector<512xf32>
    %10 = vector.multi_reduction <add>, %9, %cst_5 [0] : vector<18x512xf32> to vector<512xf32>
    %11 = vector.shape_cast %10 : vector<512xf32> to vector<1x512xf32>
    %cst_6 = arith.constant 1.800000e+01 : f32
    %12 = vector.broadcast %cst_6 : f32 to vector<1x512xf32>
    %13 = arith.divf %11, %12 : vector<1x512xf32>
    %cst_7 = arith.constant 9.99999974E-6 : f32
    %14 = vector.broadcast %cst_7 : f32 to vector<1x512xf32>
    %15 = arith.addf %13, %14 : vector<1x512xf32>
    %16 = math.rsqrt %15 : vector<1x512xf32>
    %c0_8 = arith.constant 0 : index
    %c0_9 = arith.constant 0 : index
    %17 = vector.load %arg3[%c0_8, %c0_9] : memref<1x512xf32, #tpu.memory_space<vmem>>, vector<1x512xf32>
    %18 = arith.mulf %16, %17 : vector<1x512xf32>
    %19 = vector.broadcast %18 : vector<1x512xf32> to vector<18x512xf32>
    %20 = arith.mulf %8, %19 : vector<18x512xf32>
    %c0_10 = arith.constant 0 : index
    %c0_11 = arith.constant 0 : index
    %21 = vector.load %arg4[%c0_10, %c0_11] : memref<1x512xf32, #tpu.memory_space<vmem>>, vector<1x512xf32>
    %22 = vector.broadcast %21 : vector<1x512xf32> to vector<18x512xf32>
    %23 = arith.addf %20, %22 : vector<18x512xf32>
    %cst_12 = arith.constant 0.00999999977 : f32
    %24 = vector.broadcast %cst_12 : f32 to vector<18x512xf32>
    %25 = arith.mulf %24, %23 : vector<18x512xf32>
    %26 = arith.maximumf %23, %25 : vector<18x512xf32>
    %27 = arith.truncf %26 : vector<18x512xf32> to vector<18x512xbf16>
    %c0_13 = arith.constant 0 : index
    %c0_14 = arith.constant 0 : index
    %28 = vector.load %arg5[%c0_13, %c0_14] : memref<18x512xbf16, #tpu.memory_space<vmem>>, vector<18x512xbf16>
    tpu.vector_store %arg5[%c0_13, %c0_14], %27 {strides = array<i32>} : memref<18x512xbf16, #tpu.memory_space<vmem>>, vector<18x512xbf16>,
    return
  }
  func.func @transform_0(%arg0: i32) -> (i32, i32) {
    %c0_i32 = arith.constant 0 : i32
    %c0_i32_0 = arith.constant 0 : i32
    %c0_i32_1 = arith.constant 0 : i32
    return %c0_i32, %c0_i32_0 : i32, i32
  }
  func.func @transform_1(%arg0: i32) -> (i32, i32) {
    %c0_i32 = arith.constant 0 : i32
    %c0_i32_0 = arith.constant 0 : i32
    %c0_i32_1 = arith.constant 0 : i32
    return %c0_i32, %c0_i32_0 : i32, i32
  }
  func.func @transform_2(%arg0: i32) -> (i32, i32) {
    %c0_i32 = arith.constant 0 : i32
    %c0_i32_0 = arith.constant 0 : i32
    %c0_i32_1 = arith.constant 0 : i32
    return %c0_i32, %c0_i32_0 : i32, i32
  }
  func.func @transform_3(%arg0: i32) -> (i32, i32) {
    %c0_i32 = arith.constant 0 : i32
    %c0_i32_0 = arith.constant 0 : i32
    %c0_i32_1 = arith.constant 0 : i32
    return %c0_i32, %c0_i32_0 : i32, i32
  }
  func.func @transform_4(%arg0: i32) -> (i32, i32) {
    %c0_i32 = arith.constant 0 : i32
    %c0_i32_0 = arith.constant 0 : i32
    %c0_i32_1 = arith.constant 0 : i32
    return %c0_i32, %c0_i32_0 : i32, i32
  }
}

module attributes {stable_mosaic.version = 11 : i64} {
  func.func @_conv_bias_act_kernel(%arg0: i32, %arg1: memref<8x8192xbf16, #tpu.memory_space<vmem>>, %arg2: memref<8192x128xbf16, #tpu.memory_space<vmem>>, %arg3: memref<1x128xf32, #tpu.memory_space<vmem>>, %arg4: memref<8x128xf32, #tpu.memory_space<vmem>>) attributes {dimension_semantics = [#tpu.dimension_semantics<parallel>], iteration_bounds = array<i64: 1>, scalar_prefetch = 0 : i64, scratch_operands = 0 : i64, tpu.core_type = #tpu.core_type<tc>, window_params = [{transform_indices = @transform_0, window_bounds = array<i64: 8, 8192>}, {pipeline_mode = #tpu.pipeline_mode<synchronous>, transform_indices = @transform_1, window_bounds = array<i64: 8192, 128>}, {pipeline_mode = #tpu.pipeline_mode<synchronous>, transform_indices = @transform_2, window_bounds = array<i64: 1, 128>}, {transform_indices = @transform_3, window_bounds = array<i64: 8, 128>}]} {
    %c0 = arith.constant 0 : index
    %c0_0 = arith.constant 0 : index
    %0 = vector.load %arg1[%c0, %c0_0] : memref<8x8192xbf16, #tpu.memory_space<vmem>>, vector<8x8192xbf16>
    %c0_1 = arith.constant 0 : index
    %c0_2 = arith.constant 0 : index
    %1 = vector.load %arg2[%c0_1, %c0_2] : memref<8192x128xbf16, #tpu.memory_space<vmem>>, vector<8192x128xbf16>
    %cst = arith.constant dense<0.000000e+00> : vector<8x128xf32>
    %2 = tpu.matmul %0, %1, %cst {dimension_numbers = #tpu.dot_dimension_numbers<[1], [0], [0], [1], [0, 0, 1, 1], [], []>} : vector<8x8192xbf16>, vector<8192x128xbf16>, vector<8x128xf32> -> vector<8x128xf32>
    %c0_3 = arith.constant 0 : index
    %c0_4 = arith.constant 0 : index
    %3 = vector.load %arg3[%c0_3, %c0_4] : memref<1x128xf32, #tpu.memory_space<vmem>>, vector<1x128xf32>
    %4 = vector.broadcast %3 : vector<1x128xf32> to vector<8x128xf32>
    %5 = arith.addf %2, %4 : vector<8x128xf32>
    %c0_5 = arith.constant 0 : index
    %c0_6 = arith.constant 0 : index
    %6 = vector.load %arg4[%c0_5, %c0_6] : memref<8x128xf32, #tpu.memory_space<vmem>>, vector<8x128xf32>
    tpu.vector_store %arg4[%c0_5, %c0_6], %5 {strides = array<i32>} : memref<8x128xf32, #tpu.memory_space<vmem>>, vector<8x128xf32>,
    return
  }
  func.func @transform_0(%arg0: i32) -> (i32, i32) {
    %c0_i32 = arith.constant 0 : i32
    %c0_i32_0 = arith.constant 0 : i32
    return %arg0, %c0_i32 : i32, i32
  }
  func.func @transform_1(%arg0: i32) -> (i32, i32) {
    %c0_i32 = arith.constant 0 : i32
    %c0_i32_0 = arith.constant 0 : i32
    %c0_i32_1 = arith.constant 0 : i32
    return %c0_i32, %c0_i32_0 : i32, i32
  }
  func.func @transform_2(%arg0: i32) -> (i32, i32) {
    %c0_i32 = arith.constant 0 : i32
    %c0_i32_0 = arith.constant 0 : i32
    %c0_i32_1 = arith.constant 0 : i32
    return %c0_i32, %c0_i32_0 : i32, i32
  }
  func.func @transform_3(%arg0: i32) -> (i32, i32) {
    %c0_i32 = arith.constant 0 : i32
    %c0_i32_0 = arith.constant 0 : i32
    return %arg0, %c0_i32 : i32, i32
  }
}

</mosaic_0001>

<bundles_post_ra>
// kernel: taming_discriminator_forward.5
= control target key start
LH: loop header
LB: loop body
LE: loop exit
PB: predicated region body
PF: predicated region fallthrough
CT: control target
= control target key end

     0   :  { %8 = vsyncpa [#allocation3], 0  ;;  %s1391_s0 = inlined_call_operand.vmem [shape: bf16[512,16], index: 0, kind: input, shape index: {}]   ;;  %s1392_s1 = inlined_call_operand.hbm [shape: bf16[16,64], index: 1, kind: input, shape index: {}]   ;;  %s1393_s2 = inlined_call_operand.hbm [shape: f32[1,64], index: 2, kind: input, shape index: {}]   ;;  %s1394_s3 = inlined_call_operand.vmem [shape: bf16[512,64], index: 3, kind: output, shape index: {}]  }
   0x1   :  { %9 = vsyncpa [#allocation5], 0  ;;  %s1153_s12 = smov 0  }
   0x2 LB: > { %s843_s13 = sadd.s32 4294967295, %s1127_s12   ;;  %p845_p0 = scmp.ge.s32.totalorder %s1127_s12, 1  ;;  %s1127_s12 = sphi %s1153_s12, %s15_s12  }
   0x3   : > { %p114_p1 = scmp.lt.s32.totalorder %s1127_s12, 3  ;;  %s1129_s14 = smov [#allocation2]  }
   0x4   : > { %s126_s15 = sshll.u32 %s1129_s14, 4  ;;  %p1167_p3 = scmp.eq.s32.totalorder %s843_s13, 0  ;;  %s127_s15 = int_to_ptr.vmem [resolvable:$true] %s126_s15 }
   0x5   : > { %p1161_p2 = pnand %p845_p0, %p114_p1  ;;  %s1130_s18 = smov [#allocation4]  }
   0x6   : > { %s1399_s17 = scalar_select %p1167_p3, 1, 0 }
   0x7   : > { %s1398_s16 = scalar_select %p1161_p2, 1, 0 }
   0x8   : > { %p1017_p4 = pneg %p1161_p2  ;;  %s140_s19 = sshll.u32 %s1130_s18, 4  ;;  %s1179_s19 = int_to_ptr.vmem [resolvable:$true] %s140_s19 }
   0x9   : > { %s1057_s23 = scalar_lea.hbm %s1392_s1, 128 }
   0xa   : > { %p1175_p5 = pnand %p1167_p3, %p1017_p4  ;;  %p1058_p6 = scmp.ne.s32.totalorder %s1392_s1, %s1057_s23 }
   0xb   : > { %p1064_p10 = scmp.lt.u32.totalorder %s1057_s23, %s1392_s1 }
   0xc   : > { %p1059_p7 = pneg %p1175_p5 }
   0xe   : > { %p1060_p8 = pnand %p1059_p7, %p1058_p6 }
  0x10   : > { %p1061_p9 = pneg %p1060_p8 }
  0x12   : > { %p1066_p11 = pnand %p1064_p10, %p1061_p9 }
  0x14   : > { %1069 = shalt.err (!%p1066_p11)
}
  0x15   : > { %s1070_s28 = scalar_lea.vmem %s127_s15, 128  ;;  %p1078_p1 = scmp.lt.s32.totalorder %s127_s15, %s127_s15 }
  0x16   : > { %p1071_p12 = scmp.ne.s32.totalorder %s127_s15, %s1070_s28  ;;  %p1079_p4 = scmp.lt.s32.totalorder %s1070_s28, %s1070_s28 }
  0x18   : > { %p1073_p13 = pnand %p1071_p12, %p1059_p7  ;;  %p1080_p3 = por %p1079_p4, %p1078_p1 }
  0x1a   : > { %p1074_p0 = pneg %p1073_p13 }
  0x1c   : > { %p1081_p2 = pnand %p1080_p3, %p1074_p0 }
  0x1e   : > { %1084 = shalt.err (!%p1081_p2)
}
  0x1f   : > { %s1131_s29 = smov 64   ;;  %s1132_s30 = smov 4  }
  0x20   : > { %1020 = dma.hbm_to_vmem [thread:$0]  (!%p1175_p5), %s1392_s1, 128, %s127_s15, [#allocation3], %s1131_s29, %s1131_s29, %s1132_s30  }
  0x21   : > { %s1085_s8 = scalar_lea.hbm %s1393_s2, 16 }
  0x22   : > { %p1086_p6 = scmp.ne.s32.totalorder %s1393_s2, %s1085_s8  ;;  %p1092_p8 = scmp.lt.u32.totalorder %s1085_s8, %s1393_s2 }
  0x24   : > { %p1088_p2 = pnand %p1086_p6, %p1059_p7 }
  0x26   : > { %p1089_p3 = pneg %p1088_p2 }
  0x28   : > { %p1094_p9 = pnand %p1092_p8, %p1089_p3 }
  0x2a   : > { %1097 = shalt.err (!%p1094_p9)
}
  0x2b   : > { %s1098_s15 = scalar_lea.vmem %s1179_s19, 16  ;;  %s1105_s18 = scalar_lea.vmem %s1179_s19, 32 }
  0x2c   : > { %p1099_p10 = scmp.ne.s32.totalorder %s1179_s19, %s1098_s15  ;;  %p1106_p13 = scmp.lt.s32.totalorder %s1179_s19, %s1179_s19 }
  0x2d   : > { %p1107_p0 = scmp.lt.s32.totalorder %s1105_s18, %s1098_s15 }
  0x2e   : > { %p1101_p11 = pnand %p1099_p10, %p1059_p7 }
  0x2f   : > { %p1108_p1 = por %p1107_p0, %p1106_p13 }
  0x30   : > { %p1102_p12 = pneg %p1101_p11 }
  0x32   : > { %p1109_p4 = pnand %p1108_p1, %p1102_p12 }
  0x34   : > { %1112 = shalt.err (!%p1109_p4)
}
  0x35   : > { %1023 = dma.hbm_to_vmem [thread:$0]  (!%p1175_p5), %s1393_s2, 16, %s1179_s19, [#allocation5]  }
  0x36   : > { %p1401_p6 = scmp.ne.s32.totalorder %s1398_s16, 0 }
  0x37   : > { %p1402_p7 = scmp.ne.s32.totalorder (!%p1401_p6), %s1399_s17, 0 }
  0x38   : > { %162 = sbr.rel (%p1401_p6) target bundleno = 326 (0x146), region = 32 }
  0x3f   : > { %1118 = dma.done.wait (%p1402_p7), [#allocation3], 128  }
  0x40   : > { %1120 = vsyncadd (%p1402_p7), [#allocation3], 4294967168 }
  0x41   : > { %1122 = dma.done.wait (%p1402_p7), [#allocation5], 16  }
  0x42   : > { %1124 = vsyncadd (%p1402_p7), [#allocation5], 4294967280  ;;  %s852_s20 = sshll.u32 %s843_s13, 5  ;;  %v1040_v0 = vld [vmem:[#allocation2] sm:$0xff]   ;;  %vm330_vm0 = vcmask 130048   ;;  %vm732_vm1 = vcmask 519168  }
  0x43   : > { %p191_p2 = scmp.lt.s32.totalorder %s852_s20, 63  ;;  %973 = vmatprep.subr.bf16.mxu0 %v1040_v0  ;;  %1007 = vmatprep.subr.bf16.mxu1 %v1040_v0  ;;  %v1283_v17 = vld [vmem:[#allocation4] ss:$0 sm:$0xff] }
  0x44   : > { %974 = vmatpush3.bf16.msra.mxu0 %v1040_v0  ;;  %1008 = vmatpush3.bf16.msra.mxu1 %v1040_v0 }
  0x45   : > { %s1404_s20 = smov (!%p191_p2, %s852_s20), 63 }
  0x46   : > { %s853_s16 = sshll.u32 %s1404_s20, 2 }
  0x47   : > { %s1249_s24 = scalar_lea.vmem %s1391_s0, %s853_s16  ;;  %s1298_s25 = scalar_lea.vmem %s1394_s3, %s853_s16 }
  0x48   : > { %v1041_v1 = vld [vmem:[%s1249_s24] sm:$0xff]   ;;  %v1043_v3 = vld [vmem:[%s1249_s24 + $0x8] sm:$0xff]   ;;  %v1045_v5 = vld [vmem:[%s1249_s24 + $0x10] sm:$0xff]  }
  0x49   : > { %v1042_v2 = vld [vmem:[%s1249_s24 + $0x40] sm:$0xff]   ;;  %975 = vmatprep.mubr.msk.bf16.mxu0 %vm330_vm0, %v1041_v1  ;;  %v1044_v4 = vld [vmem:[%s1249_s24 + $0x48] sm:$0xff]   ;;  %v1046_v6 = vld [vmem:[%s1249_s24 + $0x50] sm:$0xff]  }
  0x4a   : > { %991 = vmatprep.mubr.msk.bf16.mxu1 %vm330_vm0, %v1042_v2  ;;  %976 = vmatmul.mubr.msk.bf16.vlgmr.msra.gmra.mrb[0].mxu0 %vm330_vm0, %v1043_v3  ;;  %v1047_v7 = vld [vmem:[%s1249_s24 + $0x18] sm:$0xff]   ;;  %v1049_v9 = vld [vmem:[%s1249_s24 + $0x20] sm:$0xff]   ;;  %v1051_v11 = vld [vmem:[%s1249_s24 + $0x28] sm:$0xff]  }
  0x4b   : > { %992 = vmatmul.mubr.msk.bf16.vlgmr.msra.gmra.mrb[0].mxu1 %vm330_vm0, %v1044_v4  ;;  %979 = vmatprep.mubr.msk.bf16.mxu0 %vm330_vm0, %v1045_v5  ;;  %v1048_v8 = vld [vmem:[%s1249_s24 + $0x58] sm:$0xff]   ;;  %v1050_v10 = vld [vmem:[%s1249_s24 + $0x60] sm:$0xff]   ;;  %v1052_v12 = vld [vmem:[%s1249_s24 + $0x68] sm:$0xff]  }
  0x4c   : > { %995 = vmatprep.mubr.msk.bf16.mxu1 %vm330_vm0, %v1046_v6  ;;  %v1053_v13 = vld [vmem:[%s1249_s24 + $0x30] sm:$0xff]   ;;  %v1055_v15 = vld [vmem:[%s1249_s24 + $0x38] sm:$0xff]  }
  0x4d   : > { %v1054_v14 = vld [vmem:[%s1249_s24 + $0x70] sm:$0xff]   ;;  %v1056_v16 = vld [vmem:[%s1249_s24 + $0x78] sm:$0xff]  }
  0x52   : > { %980 = vmatmul.mubr.msk.bf16.gmra.mrb[4].mxu0 %vm330_vm0, %v1047_v7 }
  0x53   : > { %996 = vmatmul.mubr.msk.bf16.gmra.mrb[4].mxu1 %vm330_vm0, %v1048_v8  ;;  %983 = vmatprep.mubr.msk.bf16.mxu0 %vm330_vm0, %v1049_v9 }
  0x54   : > { %999 = vmatprep.mubr.msk.bf16.mxu1 %vm330_vm0, %v1050_v10 }
  0x5a   : > { %984 = vmatmul.mubr.msk.bf16.gmra.mrb[8].mxu0 %vm330_vm0, %v1051_v11 }
  0x5b   : > { %1000 = vmatmul.mubr.msk.bf16.gmra.mrb[8].mxu1 %vm330_vm0, %v1052_v12  ;;  %987 = vmatprep.mubr.msk.bf16.mxu0 %vm330_vm0, %v1053_v13 }
  0x5c   : > { %1003 = vmatprep.mubr.msk.bf16.mxu1 %vm330_vm0, %v1054_v14 }
  0x62   : > { %988 = vmatmul.mubr.msk.bf16.gmra.mrb[12].mxu0 %vm330_vm0, %v1055_v15 }
  0x63   : > { %1004 = vmatmul.mubr.msk.bf16.gmra.mrb[12].mxu1 %vm330_vm0, %v1056_v16 }
 0x11d   : > { %v977_v18 = vpop.f32.mrb[0].mxu0 }
 0x11e   : > { %v993_v19 = vpop.f32.mrb[0].mxu1  ;;  %v422_v20 = vadd.f32 %v977_v18, %v1283_v17  ;;  %v413_v22 = vpop.f32.mrb[1].mxu0 }
 0x11f   : > { %v486_v21 = vadd.f32 %v993_v19, %v1283_v17  ;;  %v477_v23 = vpop.f32.mrb[1].mxu1  ;;  %v414_v24 = vadd.f32 %v1283_v17, %v413_v22  ;;  %v978_v26 = vpop.f32.mrb[2].mxu0 }
 0x120   : > { %v478_v25 = vadd.f32 %v1283_v17, %v477_v23  ;;  %v994_v27 = vpop.f32.mrb[2].mxu1  ;;  %v542_v28 = vmul.f32 0.01, %v422_v20  ;;  %v425_v30 = vadd.f32 %v978_v26, %v1283_v17  ;;  %v416_v32 = vpop.f32.mrb[3].mxu0 }
 0x121   : > { %v558_v29 = vmul.f32 0.01, %v486_v21  ;;  %v489_v31 = vadd.f32 %v994_v27, %v1283_v17  ;;  %v480_v33 = vpop.f32.mrb[3].mxu1  ;;  %v540_v34 = vmul.f32 0.01, %v414_v24  ;;  %v417_v36 = vadd.f32 %v1283_v17, %v416_v32 }
 0x122   : > { %v556_v35 = vmul.f32 0.01, %v478_v25  ;;  %v481_v37 = vadd.f32 %v1283_v17, %v480_v33  ;;  %v574_v38 = vmax.f32 %v422_v20, %v542_v28  ;;  %v543_v40 = vmul.f32 0.01, %v425_v30 }
 0x123   : > { %v590_v39 = vmax.f32 %v486_v21, %v558_v29  ;;  %v559_v41 = vmul.f32 0.01, %v489_v31  ;;  %v572_v42 = vmax.f32 %v414_v24, %v540_v34  ;;  %v541_v44 = vmul.f32 0.01, %v417_v36 }
 0x124   : > { %v588_v43 = vmax.f32 %v478_v25, %v556_v35  ;;  %v557_v45 = vmul.f32 0.01, %v481_v37  ;;  %v926_v46 = vpack.c.bf16 %v574_v38, %v574_v38  ;;  %v575_v48 = vmax.f32 %v425_v30, %v543_v40 }
 0x125   : > { %v942_v47 = vpack.c.bf16 %v590_v39, %v590_v39  ;;  %v591_v49 = vmax.f32 %v489_v31, %v559_v41  ;;  %v924_v50 = vpack.c.bf16 %v572_v42, %v572_v42  ;;  %v573_v52 = vmax.f32 %v417_v36, %v541_v44  ;;  %v981_v54 = vpop.f32.mrb[4].mxu0 }
 0x126   : > { %v940_v51 = vpack.c.bf16 %v588_v43, %v588_v43  ;;  %v589_v53 = vmax.f32 %v481_v37, %v557_v45  ;;  %v997_v55 = vpop.f32.mrb[4].mxu1  ;;  %735 = vst.msk [vmem:[%s1298_s25 + $0x8] sm:$0xf] %vm732_vm1, %v926_v46  ;;  %v927_v56 = vpack.c.bf16 %v575_v48, %v575_v48  ;;  %v438_v58 = vadd.f32 %v981_v54, %v1283_v17  ;;  %v429_v60 = vpop.f32.mrb[5].mxu0 }
 0x127   : > { %751 = vst.msk [vmem:[%s1298_s25 + $0x48] sm:$0xf] %vm732_vm1, %v942_v47  ;;  %v943_v57 = vpack.c.bf16 %v591_v49, %v591_v49  ;;  %v502_v59 = vadd.f32 %v997_v55, %v1283_v17  ;;  %v493_v61 = vpop.f32.mrb[5].mxu1  ;;  %733 = vst.msk [vmem:[%s1298_s25] sm:$0xf] %vm732_vm1, %v924_v50  ;;  %v925_v62 = vpack.c.bf16 %v573_v52, %v573_v52  ;;  %v982_v2 = vpop.f32.mrb[6].mxu0 }
 0x128   : > { %749 = vst.msk [vmem:[%s1298_s25 + $0x40] sm:$0xf] %vm732_vm1, %v940_v51  ;;  %v941_v63 = vpack.c.bf16 %v589_v53, %v589_v53  ;;  %v430_v0 = vadd.f32 %v1283_v17, %v429_v60  ;;  %v494_v1 = vadd.f32 %v1283_v17, %v493_v61  ;;  %v998_v3 = vpop.f32.mrb[6].mxu1  ;;  %736 = vst.msk [vmem:[%s1298_s25 + $0xc] sm:$0xf] %vm732_vm1, %v927_v56  ;;  %v432_v8 = vpop.f32.mrb[7].mxu0 }
 0x129   : > { %752 = vst.msk [vmem:[%s1298_s25 + $0x4c] sm:$0xf] %vm732_vm1, %v943_v57  ;;  %v546_v4 = vmul.f32 0.01, %v438_v58  ;;  %v562_v5 = vmul.f32 0.01, %v502_v59  ;;  %v441_v6 = vadd.f32 %v982_v2, %v1283_v17  ;;  %v505_v7 = vadd.f32 %v998_v3, %v1283_v17 }
 0x12a   : > { %v496_v9 = vpop.f32.mrb[7].mxu1  ;;  %734 = vst.msk [vmem:[%s1298_s25 + $0x4] sm:$0xf] %vm732_vm1, %v925_v62  ;;  %750 = vst.msk [vmem:[%s1298_s25 + $0x44] sm:$0xf] %vm732_vm1, %v941_v63  ;;  %v433_v12 = vadd.f32 %v1283_v17, %v432_v8 }
 0x12b   : > { %v544_v10 = vmul.f32 0.01, %v430_v0  ;;  %v560_v11 = vmul.f32 0.01, %v494_v1  ;;  %v497_v13 = vadd.f32 %v1283_v17, %v496_v9  ;;  %v578_v14 = vmax.f32 %v438_v58, %v546_v4 }
 0x12c   : > { %v594_v15 = vmax.f32 %v502_v59, %v562_v5  ;;  %v547_v16 = vmul.f32 0.01, %v441_v6  ;;  %v563_v18 = vmul.f32 0.01, %v505_v7  ;;  %v545_v21 = vmul.f32 0.01, %v433_v12 }
 0x12d   : > { %v576_v19 = vmax.f32 %v430_v0, %v544_v10  ;;  %v592_v20 = vmax.f32 %v494_v1, %v560_v11  ;;  %v561_v22 = vmul.f32 0.01, %v497_v13  ;;  %v930_v23 = vpack.c.bf16 %v578_v14, %v578_v14  ;;  %v985_v31 = vpop.f32.mrb[8].mxu0 }
 0x12e   : > { %v946_v24 = vpack.c.bf16 %v594_v15, %v594_v15  ;;  %v579_v25 = vmax.f32 %v441_v6, %v547_v16  ;;  %v595_v26 = vmax.f32 %v505_v7, %v563_v18  ;;  %v577_v29 = vmax.f32 %v433_v12, %v545_v21  ;;  %v1001_v32 = vpop.f32.mrb[8].mxu1  ;;  %v445_v37 = vpop.f32.mrb[9].mxu0 }
 0x12f   : > { %v928_v27 = vpack.c.bf16 %v576_v19, %v576_v19  ;;  %v944_v28 = vpack.c.bf16 %v592_v20, %v592_v20  ;;  %v593_v30 = vmax.f32 %v497_v13, %v561_v22  ;;  %739 = vst.msk [vmem:[%s1298_s25 + $0x18] sm:$0xf] %vm732_vm1, %v930_v23  ;;  %v454_v35 = vadd.f32 %v985_v31, %v1283_v17  ;;  %v509_v38 = vpop.f32.mrb[9].mxu1  ;;  %v986_v43 = vpop.f32.mrb[10].mxu0 }
 0x130   : > { %755 = vst.msk [vmem:[%s1298_s25 + $0x58] sm:$0xf] %vm732_vm1, %v946_v24  ;;  %v931_v33 = vpack.c.bf16 %v579_v25, %v579_v25  ;;  %v947_v34 = vpack.c.bf16 %v595_v26, %v595_v26  ;;  %v518_v36 = vadd.f32 %v1001_v32, %v1283_v17  ;;  %v929_v39 = vpack.c.bf16 %v577_v29, %v577_v29  ;;  %v1002_v44 = vpop.f32.mrb[10].mxu1  ;;  %v448_v49 = vpop.f32.mrb[11].mxu0 }
 0x131   : > { %737 = vst.msk [vmem:[%s1298_s25 + $0x10] sm:$0xf] %vm732_vm1, %v928_v27  ;;  %753 = vst.msk [vmem:[%s1298_s25 + $0x50] sm:$0xf] %vm732_vm1, %v944_v28  ;;  %v945_v40 = vpack.c.bf16 %v593_v30, %v593_v30  ;;  %v446_v41 = vadd.f32 %v1283_v17, %v445_v37  ;;  %v510_v42 = vadd.f32 %v1283_v17, %v509_v38  ;;  %v550_v45 = vmul.f32 0.01, %v454_v35 }
 0x132   : > { %740 = vst.msk [vmem:[%s1298_s25 + $0x1c] sm:$0xf] %vm732_vm1, %v931_v33  ;;  %756 = vst.msk [vmem:[%s1298_s25 + $0x5c] sm:$0xf] %vm732_vm1, %v947_v34  ;;  %v566_v46 = vmul.f32 0.01, %v518_v36  ;;  %v457_v47 = vadd.f32 %v986_v43, %v1283_v17  ;;  %v521_v48 = vadd.f32 %v1002_v44, %v1283_v17  ;;  %v449_v53 = vadd.f32 %v1283_v17, %v448_v49 }
 0x133   : > { %v512_v50 = vpop.f32.mrb[11].mxu1  ;;  %738 = vst.msk [vmem:[%s1298_s25 + $0x14] sm:$0xf] %vm732_vm1, %v929_v39  ;;  %754 = vst.msk [vmem:[%s1298_s25 + $0x54] sm:$0xf] %vm732_vm1, %v945_v40  ;;  %v582_v55 = vmax.f32 %v454_v35, %v550_v45 }
 0x134   : > { %v548_v51 = vmul.f32 0.01, %v446_v41  ;;  %v564_v52 = vmul.f32 0.01, %v510_v42  ;;  %v513_v54 = vadd.f32 %v1283_v17, %v512_v50  ;;  %v598_v56 = vmax.f32 %v518_v36, %v566_v46 }
 0x135   : > { %v551_v57 = vmul.f32 0.01, %v457_v47  ;;  %v567_v58 = vmul.f32 0.01, %v521_v48  ;;  %v549_v61 = vmul.f32 0.01, %v449_v53  ;;  %v934_v63 = vpack.c.bf16 %v582_v55, %v582_v55 }
 0x136   : > { %v580_v59 = vmax.f32 %v446_v41, %v548_v51  ;;  %v596_v60 = vmax.f32 %v510_v42, %v564_v52  ;;  %v565_v62 = vmul.f32 0.01, %v513_v54  ;;  %v950_v0 = vpack.c.bf16 %v598_v56, %v598_v56  ;;  %v989_v7 = vpop.f32.mrb[12].mxu0  ;;  %v1005_v8 = vpop.f32.mrb[12].mxu1 }
 0x137   : > { %v583_v1 = vmax.f32 %v457_v47, %v551_v57  ;;  %v599_v2 = vmax.f32 %v521_v48, %v567_v58  ;;  %v581_v5 = vmax.f32 %v449_v53, %v549_v61  ;;  %743 = vst.msk [vmem:[%s1298_s25 + $0x28] sm:$0xf] %vm732_vm1, %v934_v63  ;;  %v470_v11 = vadd.f32 %v989_v7, %v1283_v17  ;;  %v461_v13 = vpop.f32.mrb[13].mxu0  ;;  %v525_v14 = vpop.f32.mrb[13].mxu1 }
 0x138   : > { %v932_v3 = vpack.c.bf16 %v580_v59, %v580_v59  ;;  %v948_v4 = vpack.c.bf16 %v596_v60, %v596_v60  ;;  %v597_v6 = vmax.f32 %v513_v54, %v565_v62  ;;  %759 = vst.msk [vmem:[%s1298_s25 + $0x68] sm:$0xf] %vm732_vm1, %v950_v0  ;;  %v534_v12 = vadd.f32 %v1005_v8, %v1283_v17  ;;  %v990_v20 = vpop.f32.mrb[14].mxu0  ;;  %v1006_v21 = vpop.f32.mrb[14].mxu1 }
 0x139   : > { %v935_v9 = vpack.c.bf16 %v583_v1, %v583_v1  ;;  %v951_v10 = vpack.c.bf16 %v599_v2, %v599_v2  ;;  %v933_v15 = vpack.c.bf16 %v581_v5, %v581_v5  ;;  %v462_v18 = vadd.f32 %v1283_v17, %v461_v13  ;;  %v464_v26 = vpop.f32.mrb[15].mxu0  ;;  %v528_v27 = vpop.f32.mrb[15].mxu1 }
 0x13a   : > { %741 = vst.msk [vmem:[%s1298_s25 + $0x20] sm:$0xf] %vm732_vm1, %v932_v3  ;;  %757 = vst.msk [vmem:[%s1298_s25 + $0x60] sm:$0xf] %vm732_vm1, %v948_v4  ;;  %v949_v16 = vpack.c.bf16 %v597_v6, %v597_v6  ;;  %v526_v19 = vadd.f32 %v1283_v17, %v525_v14  ;;  %v554_v22 = vmul.f32 0.01, %v470_v11  ;;  %v473_v24 = vadd.f32 %v990_v20, %v1283_v17 }
 0x13b   : > { %744 = vst.msk [vmem:[%s1298_s25 + $0x2c] sm:$0xf] %vm732_vm1, %v935_v9  ;;  %760 = vst.msk [vmem:[%s1298_s25 + $0x6c] sm:$0xf] %vm732_vm1, %v951_v10  ;;  %v570_v23 = vmul.f32 0.01, %v534_v12  ;;  %v537_v25 = vadd.f32 %v1006_v21, %v1283_v17  ;;  %v465_v30 = vadd.f32 %v1283_v17, %v464_v26  ;;  %v529_v31 = vadd.f32 %v1283_v17, %v528_v27 }
 0x13c   : > { %742 = vst.msk [vmem:[%s1298_s25 + $0x24] sm:$0xf] %vm732_vm1, %v933_v15  ;;  %758 = vst.msk [vmem:[%s1298_s25 + $0x64] sm:$0xf] %vm732_vm1, %v949_v16  ;;  %v552_v28 = vmul.f32 0.01, %v462_v18  ;;  %v586_v32 = vmax.f32 %v470_v11, %v554_v22 }
 0x13d   : > { %v568_v29 = vmul.f32 0.01, %v526_v19  ;;  %v602_v33 = vmax.f32 %v534_v12, %v570_v23  ;;  %v555_v34 = vmul.f32 0.01, %v473_v24  ;;  %v571_v35 = vmul.f32 0.01, %v537_v25 }
 0x13e   : > { %v584_v36 = vmax.f32 %v462_v18, %v552_v28  ;;  %v553_v38 = vmul.f32 0.01, %v465_v30  ;;  %v569_v39 = vmul.f32 0.01, %v529_v31  ;;  %v938_v40 = vpack.c.bf16 %v586_v32, %v586_v32 }
 0x13f   : > { %v600_v37 = vmax.f32 %v526_v19, %v568_v29  ;;  %v954_v41 = vpack.c.bf16 %v602_v33, %v602_v33  ;;  %v587_v42 = vmax.f32 %v473_v24, %v555_v34  ;;  %v603_v43 = vmax.f32 %v537_v25, %v571_v35 }
 0x140   : > { %v936_v17 = vpack.c.bf16 %v584_v36, %v584_v36  ;;  %v585_v45 = vmax.f32 %v465_v30, %v553_v38  ;;  %v601_v46 = vmax.f32 %v529_v31, %v569_v39  ;;  %747 = vst.msk [vmem:[%s1298_s25 + $0x38] sm:$0xf] %vm732_vm1, %v938_v40 }
 0x141   : > { %v952_v44 = vpack.c.bf16 %v600_v37, %v600_v37  ;;  %763 = vst.msk [vmem:[%s1298_s25 + $0x78] sm:$0xf] %vm732_vm1, %v954_v41  ;;  %v939_v47 = vpack.c.bf16 %v587_v42, %v587_v42  ;;  %v955_v48 = vpack.c.bf16 %v603_v43, %v603_v43 }
 0x142   : > { %745 = vst.msk [vmem:[%s1298_s25 + $0x30] sm:$0xf] %vm732_vm1, %v936_v17  ;;  %v937_v49 = vpack.c.bf16 %v585_v45, %v585_v45  ;;  %v953_v50 = vpack.c.bf16 %v601_v46, %v601_v46 }
 0x143   : > { %761 = vst.msk [vmem:[%s1298_s25 + $0x70] sm:$0xf] %vm732_vm1, %v952_v44  ;;  %748 = vst.msk [vmem:[%s1298_s25 + $0x3c] sm:$0xf] %vm732_vm1, %v939_v47 }
 0x144   : > { %764 = vst.msk [vmem:[%s1298_s25 + $0x7c] sm:$0xf] %vm732_vm1, %v955_v48  ;;  %746 = vst.msk [vmem:[%s1298_s25 + $0x34] sm:$0xf] %vm732_vm1, %v937_v49 }
 0x145   : > { %762 = vst.msk [vmem:[%s1298_s25 + $0x74] sm:$0xf] %vm732_vm1, %v953_v50 }
 0x146 PF: > { %s15_s12 = sadd.s32 1, %s1127_s12  }
 0x147   : > { %p12_p5 = scmp.ge.s32.totalorder %s15_s12, 4  }
 0x149   :  { %14 = sbr.rel (!%p12_p5) target bundleno = 2 (0x2), region = 71 }
 0x150   :  { %787 = vsyncpa [#allocation3], 1 }
 0x151   :  { %789 = vsyncpa [#allocation3 + $0x1], 1 }
 0x152   :  { %790 = vsyncpa [#allocation5], 1 }

// kernel: taming_discriminator_forward.6
= control target key start
LH: loop header
LB: loop body
LE: loop exit
PB: predicated region body
PF: predicated region fallthrough
CT: control target
= control target key end

     0   :  { %9 = vsyncpa [#allocation3], 0  ;;  %s2643_s0 = inlined_call_operand.vmem [shape: bf16[128,1024], index: 0, kind: input, shape index: {}]   ;;  %s2644_s1 = inlined_call_operand.hbm [shape: bf16[1024,128], index: 1, kind: input, shape index: {}]   ;;  %s2645_s2 = inlined_call_operand.hbm [shape: f32[1,128], index: 2, kind: input, shape index: {}]   ;;  %s2646_s3 = inlined_call_operand.hbm [shape: f32[1,128], index: 3, kind: input, shape index: {}]   ;;  %s2647_s4 = inlined_call_operand.vmem [shape: bf16[128,128], index: 4, kind: output, shape index: {}]  }
   0x1   :  { %10 = vsyncpa [#allocation5], 0  ;;  %s2186_s15 = smov [#allocation4]   ;;  %s2187_s17 = smov [#allocation2]  }
   0x2   :  { %s31_s16 = sshll.u32 %s2186_s15, 4  ;;  %s18_s18 = sshll.u32 %s2187_s17, 4  ;;  %s32_s16 = int_to_ptr.vmem [resolvable:$true] %s31_s16  ;;  %s2216_s18 = int_to_ptr.vmem [resolvable:$true] %s18_s18 }
   0x3   :  { %s2116_s21 = scalar_lea.hbm %s2645_s2, 16 }
   0x4   :  { %p2117_p0 = scmp.ne.s32.totalorder %s2645_s2, %s2116_s21  ;;  %p2120_p1 = scmp.lt.u32.totalorder %s2116_s21, %s2645_s2 }
   0x6   :  { %p2122_p2 = pnand %p2120_p1, %p2117_p0 }
   0x8   :  { %2125 = shalt.err (!%p2122_p2)
}
   0x9   :  { %s2126_s26 = scalar_lea.vmem %s32_s16, 16  ;;  %s2130_s27 = scalar_lea.vmem %s32_s16, 32 }
   0xa   :  { %p2127_p3 = scmp.ne.s32.totalorder %s32_s16, %s2126_s26  ;;  %p2131_p4 = scmp.lt.s32.totalorder %s32_s16, %s32_s16 }
   0xb   :  { %p2132_p5 = scmp.lt.s32.totalorder %s2130_s27, %s2126_s26 }
   0xd   :  { %p2133_p6 = por %p2132_p5, %p2131_p4 }
   0xf   :  { %p2134_p7 = pnand %p2133_p6, %p2127_p3 }
  0x11   :  { %2137 = shalt.err (!%p2134_p7)
}
  0x12   :  { %34 = dma.hbm_to_vmem [thread:$0]  %s2645_s2, 16, %s32_s16, [#allocation5]  }
  0x13   :  { %s2138_s6 = scalar_lea.hbm %s2644_s1, 8192 }
  0x14   :  { %p2139_p8 = scmp.ne.s32.totalorder %s2644_s1, %s2138_s6  ;;  %p2142_p9 = scmp.lt.u32.totalorder %s2138_s6, %s2644_s1 }
  0x16   :  { %p2144_p10 = pnand %p2142_p9, %p2139_p8 }
  0x18   :  { %2147 = shalt.err (!%p2144_p10)
}
  0x19   :  { %s2148_s11 = scalar_lea.vmem %s2216_s18, 8192  ;;  %p2153_p12 = scmp.lt.s32.totalorder %s2216_s18, %s2216_s18 }
  0x1a   :  { %p2149_p11 = scmp.ne.s32.totalorder %s2216_s18, %s2148_s11  ;;  %p2154_p13 = scmp.lt.s32.totalorder %s2148_s11, %s2148_s11 }
  0x1c   :  { %p2155_p0 = por %p2154_p13, %p2153_p12 }
  0x1e   :  { %p2156_p1 = pnand %p2155_p0, %p2149_p11 }
  0x20   :  { %2159 = shalt.err (!%p2156_p1)
}
  0x21   :  { %s2188_s2 = smov 64   ;;  %s2189_s12 = smov 4  }
  0x22   :  { %24 = dma.hbm_to_vmem [thread:$0]  %s2644_s1, 8192, %s2216_s18, [#allocation3], %s2188_s2, %s2188_s2, %s2189_s12  }
  0x23   :  { %s2190_s15 = smov [#allocation6]   ;;  %s2160_s20 = scalar_lea.hbm %s2646_s3, 16 }
  0x24   :  { %s41_s16 = sshll.u32 %s2190_s15, 4  ;;  %p2161_p2 = scmp.ne.s32.totalorder %s2646_s3, %s2160_s20  ;;  %s42_s16 = int_to_ptr.vmem [resolvable:$true] %s41_s16 }
  0x25   :  { %p2164_p3 = scmp.lt.u32.totalorder %s2160_s20, %s2646_s3 }
  0x27   :  { %p2166_p4 = pnand %p2164_p3, %p2161_p2 }
  0x29   :  { %2169 = shalt.err (!%p2166_p4)
}
  0x2a   :  { %s2170_s25 = scalar_lea.vmem %s42_s16, 16  ;;  %s2174_s1 = scalar_lea.vmem %s42_s16, 32 }
  0x2b   :  { %p2171_p5 = scmp.ne.s32.totalorder %s42_s16, %s2170_s25  ;;  %p2175_p6 = scmp.lt.s32.totalorder %s42_s16, %s42_s16 }
  0x2c   :  { %p2176_p7 = scmp.lt.s32.totalorder %s2174_s1, %s2170_s25 }
  0x2e   :  { %p2177_p8 = por %p2176_p7, %p2175_p6 }
  0x30   :  { %p2178_p9 = pnand %p2177_p8, %p2171_p5 }
  0x32   :  { %2181 = shalt.err (!%p2178_p9)
}
  0x33   :  { %44 = dma.hbm_to_vmem [thread:$0]  %s2646_s3, 16, %s42_s16, [#allocation5]  }
  0x34   :  { %2182 = dma.done.wait [#allocation3], 8192  }
  0x35   :  { %2183 = vsyncadd [#allocation3], 4294959104 }
  0x36   :  { %2184 = dma.done.wait [#allocation5], 32  }
  0x37   :  { %2185 = vsyncadd [#allocation5], 4294967264  ;;  %v2050_v0 = vld [vmem:[#allocation2 + $0x40] sm:$0xff]   ;;  %v2054_v4 = vld [vmem:[#allocation2 + $0x48] sm:$0xff]  }
  0x38   :  { %v2051_v1 = vld [vmem:[#allocation2 + $0xc0] sm:$0xff]   ;;  %1789 = vmatprep.subr.bf16.mxu0 %v2050_v0  ;;  %v2055_v5 = vld [vmem:[#allocation2 + $0xc8] sm:$0xff]   ;;  %v2058_v8 = vld [vmem:[#allocation2 + $0x50] sm:$0xff]  }
  0x39   :  { %v2052_v2 = vld [vmem:[#allocation2] sm:$0xff]   ;;  %1853 = vmatprep.subr.bf16.mxu1 %v2051_v1  ;;  %v2056_v6 = vld [vmem:[#allocation2 + $0x8] sm:$0xff]   ;;  %v2059_v9 = vld [vmem:[#allocation2 + $0xd0] sm:$0xff]  }
  0x3a   :  { %v2053_v3 = vld [vmem:[#allocation2 + $0x80] sm:$0xff]   ;;  %1790 = vmatpush3.bf16.msra.mxu0 %v2052_v2  ;;  %v2057_v7 = vld [vmem:[#allocation2 + $0x88] sm:$0xff]   ;;  %v2060_v10 = vld [vmem:[#allocation2 + $0x10] sm:$0xff]  }
  0x3b   :  { %1854 = vmatpush3.bf16.msra.mxu1 %v2053_v3  ;;  %1791 = vmatprep.subr.bf16.mxu0 %v2054_v4  ;;  %v2061_v11 = vld [vmem:[#allocation2 + $0x90] sm:$0xff]   ;;  %v2062_v12 = vld [vmem:[#allocation2 + $0x58] sm:$0xff]   ;;  %v2066_v16 = vld [vmem:[#allocation2 + $0x60] sm:$0xff]  }
  0x3c   :  { %1855 = vmatprep.subr.bf16.mxu1 %v2055_v5  ;;  %v2063_v13 = vld [vmem:[#allocation2 + $0xd8] sm:$0xff]   ;;  %v2067_v17 = vld [vmem:[#allocation2 + $0xe0] sm:$0xff]   ;;  %v2070_v20 = vld [vmem:[#allocation2 + $0x68] sm:$0xff]  }
  0x3d   :  { %v2064_v14 = vld [vmem:[#allocation2 + $0x18] sm:$0xff]   ;;  %v2068_v18 = vld [vmem:[#allocation2 + $0x20] sm:$0xff]   ;;  %v2071_v21 = vld [vmem:[#allocation2 + $0xe8] sm:$0xff]  }
  0x3e   :  { %1792 = vmatpush3.bf16.msra.mxu0 %v2056_v6  ;;  %v2065_v15 = vld [vmem:[#allocation2 + $0x98] sm:$0xff]   ;;  %v2069_v19 = vld [vmem:[#allocation2 + $0xa0] sm:$0xff]   ;;  %v2072_v22 = vld [vmem:[#allocation2 + $0x28] sm:$0xff]  }
  0x3f   :  { %1856 = vmatpush3.bf16.msra.mxu1 %v2057_v7  ;;  %1793 = vmatprep.subr.bf16.mxu0 %v2058_v8  ;;  %v2073_v23 = vld [vmem:[#allocation2 + $0xa8] sm:$0xff]   ;;  %v2074_v24 = vld [vmem:[#allocation2 + $0x70] sm:$0xff]   ;;  %v2078_v28 = vld [vmem:[#allocation2 + $0x78] sm:$0xff]  }
  0x40   :  { %1857 = vmatprep.subr.bf16.mxu1 %v2059_v9  ;;  %v2075_v25 = vld [vmem:[#allocation2 + $0xf0] sm:$0xff]   ;;  %v2079_v29 = vld [vmem:[#allocation2 + $0xf8] sm:$0xff]   ;;  %v55_v32 = vld [vmem:[%s2643_s0] sm:$0xff] }
  0x41   :  { %v2076_v26 = vld [vmem:[#allocation2 + $0x30] sm:$0xff]   ;;  %v2080_v30 = vld [vmem:[#allocation2 + $0x38] sm:$0xff]   ;;  %v59_v33 = vld [vmem:[%s2643_s0 + $0x20] sm:$0xff] }
  0x42   :  { %1794 = vmatpush3.bf16.msra.mxu0 %v2060_v10  ;;  %v2077_v27 = vld [vmem:[#allocation2 + $0xb0] sm:$0xff]   ;;  %v2081_v31 = vld [vmem:[#allocation2 + $0xb8] sm:$0xff]   ;;  %v56_v34 = vld [vmem:[%s2643_s0 + $0x8] sm:$0xff]  ;;  %v1581_v35 = vcombine.low %v55_v32, %v59_v33  ;;  %v1582_v36 = vcombine.high %v55_v32, %v59_v33 }
  0x43   :  { %1858 = vmatpush3.bf16.msra.mxu1 %v2061_v11  ;;  %1795 = vmatprep.subr.bf16.mxu0 %v2062_v12  ;;  %v60_v37 = vld [vmem:[%s2643_s0 + $0x28] sm:$0xff]  ;;  %v2082_v40 = vld [vmem:[#allocation2 + $0x140] sm:$0xff]   ;;  %v2090_v62 = vld [vmem:[#allocation2 + $0x150] sm:$0xff]  }
  0x44   :  { %1859 = vmatprep.subr.bf16.mxu1 %v2063_v13  ;;  %v1583_v38 = vcombine.low %v56_v34, %v60_v37  ;;  %v1584_v39 = vcombine.high %v56_v34, %v60_v37  ;;  %983 = vmatprep.mubr.bf16.mxu0 %v1582_v36  ;;  %v2083_v41 = vld [vmem:[#allocation2 + $0x100] sm:$0xff]   ;;  %v64_v47 = vld [vmem:[%s2643_s0 + $0x48] sm:$0xff]  ;;  %v2091_v63 = vld [vmem:[#allocation2 + $0x110] sm:$0xff]  }
  0x45   :  { %v2084_v42 = vld [vmem:[#allocation2 + $0x1c0] sm:$0xff]   ;;  %v68_v48 = vld [vmem:[%s2643_s0 + $0x68] sm:$0xff]  ;;  %v2092_v0 = vld [vmem:[#allocation2 + $0x1d0] sm:$0xff]  }
  0x46   :  { %1796 = vmatpush3.bf16.msra.mxu0 %v2064_v14  ;;  %1080 = vmatprep.mubr.bf16.mxu1 %v1584_v39  ;;  %v2085_v43 = vld [vmem:[#allocation2 + $0x180] sm:$0xff]   ;;  %v1592_v49 = vcombine.high %v64_v47, %v68_v48  ;;  %v2086_v50 = vld [vmem:[#allocation2 + $0x148] sm:$0xff]   ;;  %v1591_v53 = vcombine.low %v64_v47, %v68_v48  ;;  %v2093_v1 = vld [vmem:[#allocation2 + $0x190] sm:$0xff]  }
  0x47   :  { %1860 = vmatpush3.bf16.msra.mxu1 %v2065_v15  ;;  %1797 = vmatprep.subr.bf16.mxu0 %v2066_v16  ;;  %v63_v44 = vld [vmem:[%s2643_s0 + $0x40] sm:$0xff]  ;;  %v2087_v52 = vld [vmem:[#allocation2 + $0x108] sm:$0xff]   ;;  %v2094_v10 = vld [vmem:[#allocation2 + $0x158] sm:$0xff]  }
  0x48   :  { %1861 = vmatprep.subr.bf16.mxu1 %v2067_v17  ;;  %v67_v45 = vld [vmem:[%s2643_s0 + $0x60] sm:$0xff]  ;;  %v2088_v54 = vld [vmem:[#allocation2 + $0x1c8] sm:$0xff]   ;;  %v2095_v11 = vld [vmem:[#allocation2 + $0x118] sm:$0xff]  }
  0x49   :  { %v1590_v46 = vcombine.high %v63_v44, %v67_v45  ;;  %v1589_v51 = vcombine.low %v63_v44, %v67_v45  ;;  %v2089_v55 = vld [vmem:[#allocation2 + $0x188] sm:$0xff]   ;;  %v71_v56 = vld [vmem:[%s2643_s0 + $0x80] sm:$0xff]  ;;  %v2096_v12 = vld [vmem:[#allocation2 + $0x1d8] sm:$0xff]  }
  0x4a   :  { %1798 = vmatpush3.bf16.msra.mxu0 %v2068_v18  ;;  %v75_v57 = vld [vmem:[%s2643_s0 + $0xa0] sm:$0xff]  ;;  %v72_v58 = vld [vmem:[%s2643_s0 + $0x88] sm:$0xff]  ;;  %v2097_v13 = vld [vmem:[#allocation2 + $0x198] sm:$0xff]  }
  0x4b   :  { %1862 = vmatpush3.bf16.msra.mxu1 %v2069_v19  ;;  %1799 = vmatprep.subr.bf16.mxu0 %v2070_v20  ;;  %v76_v59 = vld [vmem:[%s2643_s0 + $0xa8] sm:$0xff]  ;;  %v1598_v60 = vcombine.high %v71_v56, %v75_v57  ;;  %v1597_v2 = vcombine.low %v71_v56, %v75_v57  ;;  %v79_v3 = vld [vmem:[%s2643_s0 + $0xc0] sm:$0xff]  ;;  %v2107_v39 = vld [vmem:[#allocation2 + $0x130] sm:$0xff]  }
  0x4c   :  { %1863 = vmatprep.subr.bf16.mxu1 %v2071_v21  ;;  %v1600_v61 = vcombine.high %v72_v58, %v76_v59  ;;  %v83_v4 = vld [vmem:[%s2643_s0 + $0xe0] sm:$0xff]  ;;  %v80_v5 = vld [vmem:[%s2643_s0 + $0xc8] sm:$0xff]  ;;  %v1599_v6 = vcombine.low %v72_v58, %v76_v59  ;;  %v2111_v48 = vld [vmem:[#allocation2 + $0x138] sm:$0xff]  }
  0x4d   :  { %v1606_v7 = vcombine.high %v79_v3, %v83_v4  ;;  %v84_v8 = vld [vmem:[%s2643_s0 + $0xe8] sm:$0xff]  ;;  %v87_v14 = vld [vmem:[%s2643_s0 + $0x100] sm:$0xff]  ;;  %v1605_v19 = vcombine.low %v79_v3, %v83_v4 }
  0x4e   :  { %1800 = vmatpush3.bf16.msra.mxu0 %v2072_v22  ;;  %v1608_v9 = vcombine.high %v80_v5, %v84_v8  ;;  %v91_v15 = vld [vmem:[%s2643_s0 + $0x120] sm:$0xff]  ;;  %v88_v16 = vld [vmem:[%s2643_s0 + $0x108] sm:$0xff]  ;;  %v1607_v21 = vcombine.low %v80_v5, %v84_v8  ;;  %v66_v8 = vld [vmem:[%s2643_s0 + $0x58] sm:$0xff] }
  0x4f   :  { %1864 = vmatpush3.bf16.msra.mxu1 %v2073_v23  ;;  %1801 = vmatprep.subr.bf16.mxu0 %v2074_v24  ;;  %v92_v17 = vld [vmem:[%s2643_s0 + $0x128] sm:$0xff]  ;;  %v2098_v18 = vld [vmem:[#allocation2 + $0x160] sm:$0xff]   ;;  %v1614_v22 = vcombine.high %v87_v14, %v91_v15  ;;  %v1613_v34 = vcombine.low %v87_v14, %v91_v15  ;;  %v73_v14 = vld [vmem:[%s2643_s0 + $0x90] sm:$0xff] }
  0x50   :  { %1865 = vmatprep.subr.bf16.mxu1 %v2075_v25  ;;  %v2099_v20 = vld [vmem:[#allocation2 + $0x120] sm:$0xff]   ;;  %v1616_v24 = vcombine.high %v88_v16, %v92_v17  ;;  %v2104_v32 = vld [vmem:[#allocation2 + $0x1e8] sm:$0xff]   ;;  %v77_v15 = vld [vmem:[%s2643_s0 + $0xb0] sm:$0xff] }
  0x51   :  { %v2100_v23 = vld [vmem:[#allocation2 + $0x1e0] sm:$0xff]   ;;  %v2105_v33 = vld [vmem:[#allocation2 + $0x1a8] sm:$0xff]  }
  0x52   :  { %1802 = vmatpush3.bf16.msra.mxu0 %v2076_v26  ;;  %v2101_v25 = vld [vmem:[#allocation2 + $0x1a0] sm:$0xff]   ;;  %v104_v44 = vld [vmem:[%s2643_s0 + $0x188] sm:$0xff] }
  0x53   :  { %1866 = vmatpush3.bf16.msra.mxu1 %v2077_v27  ;;  %1803 = vmatprep.subr.bf16.mxu0 %v2078_v28  ;;  %v95_v26 = vld [vmem:[%s2643_s0 + $0x140] sm:$0xff]  ;;  %v2102_v28 = vld [vmem:[#allocation2 + $0x168] sm:$0xff]  }
  0x54   :  { %1867 = vmatprep.subr.bf16.mxu1 %v2079_v29  ;;  %v99_v27 = vld [vmem:[%s2643_s0 + $0x160] sm:$0xff]  ;;  %v96_v29 = vld [vmem:[%s2643_s0 + $0x148] sm:$0xff] }
  0x55   :  { %v1622_v36 = vcombine.high %v95_v26, %v99_v27  ;;  %v108_v45 = vld [vmem:[%s2643_s0 + $0x1a8] sm:$0xff]  ;;  %v1621_v47 = vcombine.low %v95_v26, %v99_v27  ;;  %v1601_v26 = vcombine.low %v73_v14, %v77_v15 }
  0x56   :  { %1804 = vmatpush3.bf16.msra.mxu0 %v2080_v30  ;;  %v100_v30 = vld [vmem:[%s2643_s0 + $0x168] sm:$0xff]  ;;  %v1631_v59 = vcombine.low %v104_v44, %v108_v45 }
  0x57   :  { %1868 = vmatpush3.bf16.msra.mxu1 %v2081_v31  ;;  %1917 = vmatprep.subr.bf16.mxu0 %v2082_v40  ;;  %v2103_v31 = vld [vmem:[#allocation2 + $0x128] sm:$0xff]   ;;  %v1624_v37 = vcombine.high %v96_v29, %v100_v30  ;;  %v2108_v40 = vld [vmem:[#allocation2 + $0x1f0] sm:$0xff]  }
  0x58   :  { %1981 = vmatprep.subr.bf16.mxu1 %v2084_v42  ;;  %v107_v42 = vld [vmem:[%s2643_s0 + $0x1a0] sm:$0xff]  ;;  %v112_v56 = vld [vmem:[%s2643_s0 + $0x1c8] sm:$0xff] }
  0x59   :  { %984 = vmatmul.mubr.bf16.vlgmr.msra.gmra.mrb[0].mxu0 %v1581_v35  ;;  %v1615_v35 = vcombine.low %v88_v16, %v92_v17  ;;  %v116_v57 = vld [vmem:[%s2643_s0 + $0x1e8] sm:$0xff]  ;;  %v74_v16 = vld [vmem:[%s2643_s0 + $0x98] sm:$0xff] }
  0x5a   :  { %1081 = vmatmul.mubr.bf16.vlgmr.msra.gmra.mrb[0].mxu1 %v1583_v38  ;;  %1918 = vmatpush3.bf16.msra.mxu0 %v2083_v41  ;;  %v2106_v38 = vld [vmem:[#allocation2 + $0x170] sm:$0xff]   ;;  %v103_v41 = vld [vmem:[%s2643_s0 + $0x180] sm:$0xff]  ;;  %v1639_v3 = vcombine.low %v112_v56, %v116_v57  ;;  %v78_v17 = vld [vmem:[%s2643_s0 + $0xb8] sm:$0xff] }
  0x5b   :  { %1982 = vmatpush3.bf16.msra.mxu1 %v2085_v43  ;;  %991 = vmatprep.mubr.bf16.mxu0 %v1590_v46  ;;  %v2109_v43 = vld [vmem:[#allocation2 + $0x1b0] sm:$0xff]   ;;  %v2110_v46 = vld [vmem:[#allocation2 + $0x178] sm:$0xff]   ;;  %v1629_v58 = vcombine.low %v103_v41, %v107_v42  ;;  %v1603_v27 = vcombine.low %v74_v16, %v78_v17 }
  0x5c   :  { %1088 = vmatprep.mubr.bf16.mxu1 %v1592_v49  ;;  %1919 = vmatprep.subr.bf16.mxu0 %v2086_v50  ;;  %v1623_v49 = vcombine.low %v96_v29, %v100_v30  ;;  %v1630_v50 = vcombine.high %v103_v41, %v107_v42  ;;  %v89_v30 = vld [vmem:[%s2643_s0 + $0x110] sm:$0xff]  ;;  %v102_v41 = vld [vmem:[%s2643_s0 + $0x178] sm:$0xff] }
  0x5d   :  { %1983 = vmatprep.subr.bf16.mxu1 %v2088_v54  ;;  %v111_v54 = vld [vmem:[%s2643_s0 + $0x1c0] sm:$0xff] }
  0x5e   :  { %1920 = vmatpush3.bf16.msra.mxu0 %v2087_v52  ;;  %v1632_v52 = vcombine.high %v104_v44, %v108_v45 }
  0x5f   :  { %1984 = vmatpush3.bf16.msra.mxu1 %v2089_v55  ;;  %1921 = vmatprep.subr.bf16.mxu0 %v2090_v62  ;;  %v115_v55 = vld [vmem:[%s2643_s0 + $0x1e0] sm:$0xff]  ;;  %v57_v62 = vld [vmem:[%s2643_s0 + $0x10] sm:$0xff] }
  0x60   :  { %1985 = vmatprep.subr.bf16.mxu1 %v2092_v0  ;;  %v58_v0 = vld [vmem:[%s2643_s0 + $0x18] sm:$0xff] }
  0x61   :  { %992 = vmatmul.mubr.bf16.gmra.mrb[4].mxu0 %v1589_v51  ;;  %v2112_v51 = vld [vmem:[#allocation2 + $0x1f8] sm:$0xff]  }
  0x62   :  { %1089 = vmatmul.mubr.bf16.gmra.mrb[4].mxu1 %v1591_v53  ;;  %999 = vmatprep.mubr.bf16.mxu0 %v1598_v60  ;;  %v2113_v53 = vld [vmem:[#allocation2 + $0x1b8] sm:$0xff]   ;;  %v1638_v60 = vcombine.high %v111_v54, %v115_v55 }
  0x63   :  { %1096 = vmatprep.mubr.bf16.mxu1 %v1600_v61  ;;  %1922 = vmatpush3.bf16.msra.mxu0 %v2091_v63  ;;  %v1640_v61 = vcombine.high %v112_v56, %v116_v57  ;;  %v61_v63 = vld [vmem:[%s2643_s0 + $0x30] sm:$0xff]  ;;  %v114_v56 = vld [vmem:[%s2643_s0 + $0x1d8] sm:$0xff] }
  0x64   :  { %1986 = vmatpush3.bf16.msra.mxu1 %v2093_v1  ;;  %1923 = vmatprep.subr.bf16.mxu0 %v2094_v10  ;;  %v62_v1 = vld [vmem:[%s2643_s0 + $0x38] sm:$0xff]  ;;  %v1586_v4 = vcombine.high %v57_v62, %v61_v63  ;;  %v1585_v10 = vcombine.low %v57_v62, %v61_v63 }
  0x65   :  { %1987 = vmatprep.subr.bf16.mxu1 %v2096_v12  ;;  %v1588_v5 = vcombine.high %v58_v0, %v62_v1  ;;  %v118_v57 = vld [vmem:[%s2643_s0 + $0x1f8] sm:$0xff] }
  0x66   :  { %v1643_v63 = vcombine.low %v114_v56, %v118_v57 }
  0x67   :  { %1924 = vmatpush3.bf16.msra.mxu0 %v2095_v11  ;;  %v1587_v11 = vcombine.low %v58_v0, %v62_v1 }
  0x68   :  { %1988 = vmatpush3.bf16.msra.mxu1 %v2097_v13  ;;  %1925 = vmatprep.subr.bf16.mxu0 %v2098_v18 }
  0x69   :  { %1000 = vmatmul.mubr.bf16.gmra.mrb[8].mxu0 %v1597_v2  ;;  %1989 = vmatprep.subr.bf16.mxu1 %v2100_v23  ;;  %v1637_v2 = vcombine.low %v111_v54, %v115_v55  ;;  %v85_v23 = vld [vmem:[%s2643_s0 + $0xf0] sm:$0xff] }
  0x6a   :  { %1097 = vmatmul.mubr.bf16.gmra.mrb[8].mxu1 %v1599_v6  ;;  %1007 = vmatprep.mubr.bf16.mxu0 %v1606_v7  ;;  %v65_v6 = vld [vmem:[%s2643_s0 + $0x50] sm:$0xff] }
  0x6b   :  { %1104 = vmatprep.mubr.bf16.mxu1 %v1608_v9  ;;  %1926 = vmatpush3.bf16.msra.mxu0 %v2099_v20  ;;  %v69_v7 = vld [vmem:[%s2643_s0 + $0x70] sm:$0xff]  ;;  %v70_v9 = vld [vmem:[%s2643_s0 + $0x78] sm:$0xff]  ;;  %v1602_v20 = vcombine.high %v73_v14, %v77_v15 }
  0x6c   :  { %1990 = vmatpush3.bf16.msra.mxu1 %v2101_v25  ;;  %1927 = vmatprep.subr.bf16.mxu0 %v2102_v28  ;;  %v1594_v12 = vcombine.high %v65_v6, %v69_v7  ;;  %v1596_v13 = vcombine.high %v66_v8, %v70_v9  ;;  %v1593_v18 = vcombine.low %v65_v6, %v69_v7  ;;  %v86_v25 = vld [vmem:[%s2643_s0 + $0xf8] sm:$0xff]  ;;  %v113_v54 = vld [vmem:[%s2643_s0 + $0x1d0] sm:$0xff] }
  0x6d   :  { %1991 = vmatprep.subr.bf16.mxu1 %v2104_v32  ;;  %v90_v32 = vld [vmem:[%s2643_s0 + $0x118] sm:$0xff]  ;;  %v117_v55 = vld [vmem:[%s2643_s0 + $0x1f0] sm:$0xff] }
  0x6e   :  { %v1641_v62 = vcombine.low %v113_v54, %v117_v55 }
  0x6f   :  { %1928 = vmatpush3.bf16.msra.mxu0 %v2103_v31  ;;  %v93_v31 = vld [vmem:[%s2643_s0 + $0x130] sm:$0xff] }
  0x70   :  { %1992 = vmatpush3.bf16.msra.mxu1 %v2105_v33  ;;  %1929 = vmatprep.subr.bf16.mxu0 %v2106_v38  ;;  %v94_v33 = vld [vmem:[%s2643_s0 + $0x138] sm:$0xff]  ;;  %v97_v38 = vld [vmem:[%s2643_s0 + $0x150] sm:$0xff]  ;;  %v1617_v42 = vcombine.low %v89_v30, %v93_v31 }
  0x71   :  { %1008 = vmatmul.mubr.bf16.gmra.mrb[12].mxu0 %v1605_v19  ;;  %1993 = vmatprep.subr.bf16.mxu1 %v2108_v40  ;;  %v1595_v19 = vcombine.low %v66_v8, %v70_v9  ;;  %v98_v40 = vld [vmem:[%s2643_s0 + $0x158] sm:$0xff] }
  0x72   :  { %1105 = vmatmul.mubr.bf16.gmra.mrb[12].mxu1 %v1607_v21  ;;  %1015 = vmatprep.mubr.bf16.mxu0 %v1614_v22  ;;  %v1604_v21 = vcombine.high %v74_v16, %v78_v17  ;;  %v81_v22 = vld [vmem:[%s2643_s0 + $0xd0] sm:$0xff]  ;;  %v1628_v45 = vcombine.high %v98_v40, %v102_v41 }
  0x73   :  { %1112 = vmatprep.mubr.bf16.mxu1 %v1616_v24  ;;  %1930 = vmatpush3.bf16.msra.mxu0 %v2107_v39  ;;  %v82_v24 = vld [vmem:[%s2643_s0 + $0xd8] sm:$0xff]  ;;  %v1610_v28 = vcombine.high %v81_v22, %v85_v23  ;;  %v101_v39 = vld [vmem:[%s2643_s0 + $0x170] sm:$0xff] }
  0x74   :  { %1994 = vmatpush3.bf16.msra.mxu1 %v2109_v43  ;;  %1931 = vmatprep.subr.bf16.mxu0 %v2110_v46  ;;  %v1612_v29 = vcombine.high %v82_v24, %v86_v25  ;;  %v1619_v43 = vcombine.low %v90_v32, %v94_v33  ;;  %v1626_v44 = vcombine.high %v97_v38, %v101_v39  ;;  %v105_v46 = vld [vmem:[%s2643_s0 + $0x190] sm:$0xff] }
  0x75   :  { %1995 = vmatprep.subr.bf16.mxu1 %v2112_v51  ;;  %v1627_v51 = vcombine.low %v98_v40, %v102_v41 }
  0x77   :  { %1932 = vmatpush3.bf16.msra.mxu0 %v2111_v48  ;;  %v106_v48 = vld [vmem:[%s2643_s0 + $0x198] sm:$0xff] }
  0x78   :  { %1996 = vmatpush3.bf16.msra.mxu1 %v2113_v53 }
  0x79   :  { %1016 = vmatmul.mubr.bf16.gmra.mrb[16].mxu0 %v1613_v34  ;;  %v1609_v34 = vcombine.low %v81_v22, %v85_v23 }
  0x7a   :  { %1113 = vmatmul.mubr.bf16.gmra.mrb[16].mxu1 %v1615_v35  ;;  %1023 = vmatprep.mubr.bf16.mxu0 %v1622_v36  ;;  %v1611_v35 = vcombine.low %v82_v24, %v86_v25  ;;  %v1618_v36 = vcombine.high %v89_v30, %v93_v31 }
  0x7b   :  { %1120 = vmatprep.mubr.bf16.mxu1 %v1624_v37  ;;  %v1620_v37 = vcombine.high %v90_v32, %v94_v33 }
  0x81   :  { %1024 = vmatmul.mubr.bf16.gmra.mrb[20].mxu0 %v1621_v47  ;;  %v109_v47 = vld [vmem:[%s2643_s0 + $0x1b0] sm:$0xff] }
  0x82   :  { %1121 = vmatmul.mubr.bf16.gmra.mrb[20].mxu1 %v1623_v49  ;;  %1031 = vmatprep.mubr.bf16.mxu0 %v1630_v50  ;;  %v110_v49 = vld [vmem:[%s2643_s0 + $0x1b8] sm:$0xff]  ;;  %v1625_v50 = vcombine.low %v97_v38, %v101_v39 }
  0x83   :  { %1128 = vmatprep.mubr.bf16.mxu1 %v1632_v52  ;;  %v1634_v52 = vcombine.high %v105_v46, %v109_v47  ;;  %v1636_v53 = vcombine.high %v106_v48, %v110_v49 }
  0x89   :  { %1032 = vmatmul.mubr.bf16.gmra.mrb[24].mxu0 %v1629_v58  ;;  %v1633_v58 = vcombine.low %v105_v46, %v109_v47 }
  0x8a   :  { %1129 = vmatmul.mubr.bf16.gmra.mrb[24].mxu1 %v1631_v59  ;;  %1039 = vmatprep.mubr.bf16.mxu0 %v1638_v60  ;;  %v1635_v59 = vcombine.low %v106_v48, %v110_v49  ;;  %v1642_v60 = vcombine.high %v113_v54, %v117_v55 }
  0x8b   :  { %1136 = vmatprep.mubr.bf16.mxu1 %v1640_v61  ;;  %v1644_v61 = vcombine.high %v114_v56, %v118_v57 }
  0x91   :  { %1040 = vmatmul.mubr.bf16.gmra.mrb[28].mxu0 %v1637_v2 }
  0x92   :  { %1137 = vmatmul.mubr.bf16.gmra.mrb[28].mxu1 %v1639_v3  ;;  %1177 = vmatprep.mubr.bf16.mxu0 %v1586_v4 }
  0x93   :  { %1274 = vmatprep.mubr.bf16.mxu1 %v1588_v5 }
  0x99   :  { %1178 = vmatmul.mubr.bf16.vlgmr.msra.gmra.mrb[32].mxu0 %v1585_v10 }
  0x9a   :  { %1275 = vmatmul.mubr.bf16.vlgmr.msra.gmra.mrb[32].mxu1 %v1587_v11  ;;  %1185 = vmatprep.mubr.bf16.mxu0 %v1594_v12 }
  0x9b   :  { %1282 = vmatprep.mubr.bf16.mxu1 %v1596_v13 }
  0xa1   :  { %1186 = vmatmul.mubr.bf16.gmra.mrb[36].mxu0 %v1593_v18 }
  0xa2   :  { %1283 = vmatmul.mubr.bf16.gmra.mrb[36].mxu1 %v1595_v19  ;;  %1193 = vmatprep.mubr.bf16.mxu0 %v1602_v20 }
  0xa3   :  { %1290 = vmatprep.mubr.bf16.mxu1 %v1604_v21 }
  0xa9   :  { %1194 = vmatmul.mubr.bf16.gmra.mrb[40].mxu0 %v1601_v26 }
  0xaa   :  { %1291 = vmatmul.mubr.bf16.gmra.mrb[40].mxu1 %v1603_v27  ;;  %1201 = vmatprep.mubr.bf16.mxu0 %v1610_v28 }
  0xab   :  { %1298 = vmatprep.mubr.bf16.mxu1 %v1612_v29 }
  0xb1   :  { %1202 = vmatmul.mubr.bf16.gmra.mrb[44].mxu0 %v1609_v34 }
  0xb2   :  { %1299 = vmatmul.mubr.bf16.gmra.mrb[44].mxu1 %v1611_v35  ;;  %1209 = vmatprep.mubr.bf16.mxu0 %v1618_v36 }
  0xb3   :  { %1306 = vmatprep.mubr.bf16.mxu1 %v1620_v37 }
  0xb9   :  { %1210 = vmatmul.mubr.bf16.gmra.mrb[48].mxu0 %v1617_v42 }
  0xba   :  { %1307 = vmatmul.mubr.bf16.gmra.mrb[48].mxu1 %v1619_v43  ;;  %1217 = vmatprep.mubr.bf16.mxu0 %v1626_v44 }
  0xbb   :  { %1314 = vmatprep.mubr.bf16.mxu1 %v1628_v45 }
  0xc1   :  { %1218 = vmatmul.mubr.bf16.gmra.mrb[52].mxu0 %v1625_v50 }
  0xc2   :  { %1315 = vmatmul.mubr.bf16.gmra.mrb[52].mxu1 %v1627_v51  ;;  %1225 = vmatprep.mubr.bf16.mxu0 %v1634_v52 }
  0xc3   :  { %1322 = vmatprep.mubr.bf16.mxu1 %v1636_v53 }
  0xc9   :  { %1226 = vmatmul.mubr.bf16.gmra.mrb[56].mxu0 %v1633_v58 }
  0xca   :  { %1323 = vmatmul.mubr.bf16.gmra.mrb[56].mxu1 %v1635_v59  ;;  %1233 = vmatprep.mubr.bf16.mxu0 %v1642_v60 }
  0xcb   :  { %1330 = vmatprep.mubr.bf16.mxu1 %v1644_v61 }
  0xd1   :  { %1234 = vmatmul.mubr.bf16.gmra.mrb[60].mxu0 %v1641_v62 }
  0xd2   :  { %1331 = vmatmul.mubr.bf16.gmra.mrb[60].mxu1 %v1643_v63 }
 0x12c   :  { %v1805_v0 = vpop.f32.mrb[0].mxu0 }
 0x12d   :  { %v1869_v1 = vpop.f32.mrb[0].mxu1  ;;  %v1806_v2 = vpop.f32.mrb[1].mxu0 }
 0x12e   :  { %v1807_v3 = vadd.f32 %v1806_v2, %v1805_v0  ;;  %v1870_v4 = vpop.f32.mrb[1].mxu1  ;;  %v1808_v5 = vpop.f32.mrb[2].mxu0 }
 0x12f   :  { %v1871_v6 = vadd.f32 %v1870_v4, %v1869_v1  ;;  %v1872_v7 = vpop.f32.mrb[2].mxu1  ;;  %v1809_v8 = vpop.f32.mrb[3].mxu0 }
 0x130   :  { %v1810_v9 = vadd.f32 %v1809_v8, %v1808_v5  ;;  %v1873_v10 = vpop.f32.mrb[3].mxu1 }
 0x131   :  { %v2451_v11 = vadd.f32 %v1871_v6, %v1807_v3  ;;  %v1874_v12 = vadd.f32 %v1873_v10, %v1872_v7 }
 0x133   :  { %v2453_v13 = vadd.f32 %v1874_v12, %v1810_v9 }
 0x134   :  { %v1811_v14 = vpop.f32.mrb[4].mxu0 }
 0x135   :  { %v1875_v15 = vpop.f32.mrb[4].mxu1  ;;  %v1812_v16 = vpop.f32.mrb[5].mxu0 }
 0x136   :  { %v1813_v17 = vadd.f32 %v1812_v16, %v1811_v14  ;;  %v1876_v18 = vpop.f32.mrb[5].mxu1  ;;  %v1814_v19 = vpop.f32.mrb[6].mxu0 }
 0x137   :  { %v1877_v20 = vadd.f32 %v1876_v18, %v1875_v15  ;;  %v1878_v21 = vpop.f32.mrb[6].mxu1  ;;  %v1815_v22 = vpop.f32.mrb[7].mxu0 }
 0x138   :  { %v1816_v23 = vadd.f32 %v1815_v22, %v1814_v19  ;;  %v1879_v24 = vpop.f32.mrb[7].mxu1 }
 0x139   :  { %v2455_v25 = vadd.f32 %v1877_v20, %v1813_v17  ;;  %v1880_v26 = vadd.f32 %v1879_v24, %v1878_v21 }
 0x13b   :  { %v2457_v27 = vadd.f32 %v1880_v26, %v1816_v23 }
 0x13c   :  { %v1817_v28 = vpop.f32.mrb[8].mxu0 }
 0x13d   :  { %v1881_v29 = vpop.f32.mrb[8].mxu1  ;;  %v1818_v30 = vpop.f32.mrb[9].mxu0 }
 0x13e   :  { %v1819_v31 = vadd.f32 %v1818_v30, %v1817_v28  ;;  %v1882_v32 = vpop.f32.mrb[9].mxu1  ;;  %v1820_v33 = vpop.f32.mrb[10].mxu0 }
 0x13f   :  { %v1883_v34 = vadd.f32 %v1882_v32, %v1881_v29  ;;  %v1884_v35 = vpop.f32.mrb[10].mxu1  ;;  %v1821_v36 = vpop.f32.mrb[11].mxu0 }
 0x140   :  { %v1822_v37 = vadd.f32 %v1821_v36, %v1820_v33  ;;  %v1885_v38 = vpop.f32.mrb[11].mxu1 }
 0x141   :  { %v2459_v39 = vadd.f32 %v1883_v34, %v1819_v31  ;;  %v1886_v40 = vadd.f32 %v1885_v38, %v1884_v35 }
 0x143   :  { %v2461_v41 = vadd.f32 %v1886_v40, %v1822_v37 }
 0x144   :  { %v1823_v42 = vpop.f32.mrb[12].mxu0 }
 0x145   :  { %v1887_v43 = vpop.f32.mrb[12].mxu1  ;;  %v1824_v44 = vpop.f32.mrb[13].mxu0 }
 0x146   :  { %v1825_v45 = vadd.f32 %v1824_v44, %v1823_v42  ;;  %v1888_v46 = vpop.f32.mrb[13].mxu1  ;;  %v1826_v47 = vpop.f32.mrb[14].mxu0 }
 0x147   :  { %v1889_v48 = vadd.f32 %v1888_v46, %v1887_v43  ;;  %v1890_v49 = vpop.f32.mrb[14].mxu1  ;;  %v1827_v50 = vpop.f32.mrb[15].mxu0 }
 0x148   :  { %v1828_v51 = vadd.f32 %v1827_v50, %v1826_v47  ;;  %v1891_v52 = vpop.f32.mrb[15].mxu1 }
 0x149   :  { %v2463_v53 = vadd.f32 %v1889_v48, %v1825_v45  ;;  %v1892_v54 = vadd.f32 %v1891_v52, %v1890_v49 }
 0x14b   :  { %v2465_v55 = vadd.f32 %v1892_v54, %v1828_v51 }
 0x14c   :  { %v1829_v56 = vpop.f32.mrb[16].mxu0 }
 0x14d   :  { %v1893_v57 = vpop.f32.mrb[16].mxu1  ;;  %v1830_v58 = vpop.f32.mrb[17].mxu0 }
 0x14e   :  { %v1831_v59 = vadd.f32 %v1830_v58, %v1829_v56  ;;  %v1894_v60 = vpop.f32.mrb[17].mxu1  ;;  %v1832_v61 = vpop.f32.mrb[18].mxu0 }
 0x14f   :  { %v1895_v62 = vadd.f32 %v1894_v60, %v1893_v57  ;;  %v1896_v63 = vpop.f32.mrb[18].mxu1  ;;  %v1833_v0 = vpop.f32.mrb[19].mxu0 }
 0x150   :  { %v1834_v1 = vadd.f32 %v1833_v0, %v1832_v61  ;;  %v1897_v2 = vpop.f32.mrb[19].mxu1 }
 0x151   :  { %v2467_v3 = vadd.f32 %v1895_v62, %v1831_v59  ;;  %v1898_v4 = vadd.f32 %v1897_v2, %v1896_v63 }
 0x153   :  { %v2469_v5 = vadd.f32 %v1898_v4, %v1834_v1 }
 0x154   :  { %v1835_v6 = vpop.f32.mrb[20].mxu0 }
 0x155   :  { %v1899_v7 = vpop.f32.mrb[20].mxu1  ;;  %v1836_v8 = vpop.f32.mrb[21].mxu0 }
 0x156   :  { %v1837_v9 = vadd.f32 %v1836_v8, %v1835_v6  ;;  %v1900_v10 = vpop.f32.mrb[21].mxu1  ;;  %v1838_v12 = vpop.f32.mrb[22].mxu0 }
 0x157   :  { %v1901_v14 = vadd.f32 %v1900_v10, %v1899_v7  ;;  %v1902_v15 = vpop.f32.mrb[22].mxu1  ;;  %v1839_v16 = vpop.f32.mrb[23].mxu0 }
 0x158   :  { %v1840_v17 = vadd.f32 %v1839_v16, %v1838_v12  ;;  %v1903_v18 = vpop.f32.mrb[23].mxu1 }
 0x159   :  { %v2471_v19 = vadd.f32 %v1901_v14, %v1837_v9  ;;  %v1904_v20 = vadd.f32 %v1903_v18, %v1902_v15 }
 0x15b   :  { %v2473_v21 = vadd.f32 %v1904_v20, %v1840_v17 }
 0x15c   :  { %v1841_v22 = vpop.f32.mrb[24].mxu0 }
 0x15d   :  { %v1905_v23 = vpop.f32.mrb[24].mxu1  ;;  %v1842_v24 = vpop.f32.mrb[25].mxu0 }
 0x15e   :  { %v1843_v26 = vadd.f32 %v1842_v24, %v1841_v22  ;;  %v1906_v28 = vpop.f32.mrb[25].mxu1  ;;  %v1844_v29 = vpop.f32.mrb[26].mxu0 }
 0x15f   :  { %v1907_v30 = vadd.f32 %v1906_v28, %v1905_v23  ;;  %v1908_v31 = vpop.f32.mrb[26].mxu1  ;;  %v1845_v32 = vpop.f32.mrb[27].mxu0 }
 0x160   :  { %v1846_v33 = vadd.f32 %v1845_v32, %v1844_v29  ;;  %v1909_v34 = vpop.f32.mrb[27].mxu1 }
 0x161   :  { %v2475_v35 = vadd.f32 %v1907_v30, %v1843_v26  ;;  %v1910_v36 = vadd.f32 %v1909_v34, %v1908_v31 }
 0x163   :  { %v2477_v37 = vadd.f32 %v1910_v36, %v1846_v33 }
 0x164   :  { %v1847_v38 = vpop.f32.mrb[28].mxu0 }
 0x165   :  { %v1911_v40 = vpop.f32.mrb[28].mxu1  ;;  %v1848_v42 = vpop.f32.mrb[29].mxu0 }
 0x166   :  { %v1849_v43 = vadd.f32 %v1848_v42, %v1847_v38  ;;  %v1912_v44 = vpop.f32.mrb[29].mxu1  ;;  %v1850_v45 = vpop.f32.mrb[30].mxu0 }
 0x167   :  { %v1913_v46 = vadd.f32 %v1912_v44, %v1911_v40  ;;  %v1914_v47 = vpop.f32.mrb[30].mxu1  ;;  %v1851_v48 = vpop.f32.mrb[31].mxu0 }
 0x168   :  { %v1852_v49 = vadd.f32 %v1851_v48, %v1850_v45  ;;  %v1915_v50 = vpop.f32.mrb[31].mxu1 }
 0x169   :  { %v2479_v51 = vadd.f32 %v1913_v46, %v1849_v43  ;;  %v1916_v52 = vadd.f32 %v1915_v50, %v1914_v47 }
 0x16b   :  { %v2481_v54 = vadd.f32 %v1916_v52, %v1852_v49 }
 0x16c   :  { %v1933_v56 = vpop.f32.mrb[32].mxu0 }
 0x16d   :  { %v1997_v57 = vpop.f32.mrb[32].mxu1  ;;  %v1934_v58 = vpop.f32.mrb[33].mxu0 }
 0x16e   :  { %v1935_v59 = vadd.f32 %v1934_v58, %v1933_v56  ;;  %v1998_v60 = vpop.f32.mrb[33].mxu1  ;;  %v1936_v61 = vpop.f32.mrb[34].mxu0 }
 0x16f   :  { %v1999_v62 = vadd.f32 %v1998_v60, %v1997_v57  ;;  %v2000_v63 = vpop.f32.mrb[34].mxu1  ;;  %v1937_v0 = vpop.f32.mrb[35].mxu0 }
 0x170   :  { %v1180_v1 = vadd.f32 %v1935_v59, %v2451_v11  ;;  %v1938_v2 = vadd.f32 %v1937_v0, %v1936_v61  ;;  %v2001_v4 = vpop.f32.mrb[35].mxu1 }
 0x171   :  { %v2002_v6 = vadd.f32 %v2001_v4, %v2000_v63 }
 0x172   :  { %v2484_v7 = vadd.f32 %v1999_v62, %v1180_v1  ;;  %v1183_v8 = vadd.f32 %v1938_v2, %v2453_v13 }
 0x174   :  { %v2487_v9 = vadd.f32 %v2002_v6, %v1183_v8  ;;  %v1939_v10 = vpop.f32.mrb[36].mxu0 }
 0x175   :  { %v2003_v12 = vpop.f32.mrb[36].mxu1  ;;  %v1940_v14 = vpop.f32.mrb[37].mxu0 }
 0x176   :  { %v1339_v15 = vadd.f32 %v2487_v9, %v2484_v7  ;;  %v1941_v16 = vadd.f32 %v1940_v14, %v1939_v10  ;;  %v2004_v17 = vpop.f32.mrb[37].mxu1  ;;  %v1942_v18 = vpop.f32.mrb[38].mxu0 }
 0x177   :  { %v2005_v20 = vadd.f32 %v2004_v17, %v2003_v12  ;;  %v2006_v11 = vpop.f32.mrb[38].mxu1  ;;  %v1943_v22 = vpop.f32.mrb[39].mxu0 }
 0x178   :  { %v1188_v23 = vadd.f32 %v1941_v16, %v2455_v25  ;;  %v1944_v24 = vadd.f32 %v1943_v22, %v1942_v18  ;;  %v2007_v26 = vpop.f32.mrb[39].mxu1 }
 0x179   :  { %v2008_v28 = vadd.f32 %v2007_v26, %v2006_v11 }
 0x17a   :  { %v2492_v13 = vadd.f32 %v2005_v20, %v1188_v23  ;;  %v1191_v29 = vadd.f32 %v1944_v24, %v2457_v27 }
 0x17c   :  { %v1340_v30 = vadd.f32 %v1339_v15, %v2492_v13  ;;  %v2496_v31 = vadd.f32 %v2008_v28, %v1191_v29  ;;  %v1945_v32 = vpop.f32.mrb[40].mxu0 }
 0x17d   :  { %v2009_v33 = vpop.f32.mrb[40].mxu1  ;;  %v1946_v34 = vpop.f32.mrb[41].mxu0 }
 0x17e   :  { %v1341_v36 = vadd.f32 %v1340_v30, %v2496_v31  ;;  %v1947_v38 = vadd.f32 %v1946_v34, %v1945_v32  ;;  %v2010_v40 = vpop.f32.mrb[41].mxu1  ;;  %v1948_v42 = vpop.f32.mrb[42].mxu0 }
 0x17f   :  { %v2011_v25 = vadd.f32 %v2010_v40, %v2009_v33  ;;  %v2012_v43 = vpop.f32.mrb[42].mxu1  ;;  %v1949_v44 = vpop.f32.mrb[43].mxu0 }
 0x180   :  { %v1196_v45 = vadd.f32 %v1947_v38, %v2459_v39  ;;  %v1950_v46 = vadd.f32 %v1949_v44, %v1948_v42  ;;  %v2013_v47 = vpop.f32.mrb[43].mxu1 }
 0x181   :  { %v2014_v27 = vadd.f32 %v2013_v47, %v2012_v43 }
 0x182   :  { %v2500_v48 = vadd.f32 %v2011_v25, %v1196_v45  ;;  %v1199_v49 = vadd.f32 %v1950_v46, %v2461_v41 }
 0x184   :  { %v1342_v50 = vadd.f32 %v1341_v36, %v2500_v48  ;;  %v2504_v52 = vadd.f32 %v2014_v27, %v1199_v49  ;;  %v1951_v56 = vpop.f32.mrb[44].mxu0 }
 0x185   :  { %v2015_v57 = vpop.f32.mrb[44].mxu1  ;;  %v1952_v58 = vpop.f32.mrb[45].mxu0 }
 0x186   :  { %v1343_v59 = vadd.f32 %v1342_v50, %v2504_v52  ;;  %v1953_v60 = vadd.f32 %v1952_v58, %v1951_v56  ;;  %v2016_v61 = vpop.f32.mrb[45].mxu1  ;;  %v1954_v62 = vpop.f32.mrb[46].mxu0 }
 0x187   :  { %v2017_v39 = vadd.f32 %v2016_v61, %v2015_v57  ;;  %v2018_v63 = vpop.f32.mrb[46].mxu1  ;;  %v1955_v0 = vpop.f32.mrb[47].mxu0 }
 0x188   :  { %v1204_v1 = vadd.f32 %v1953_v60, %v2463_v53  ;;  %v1956_v2 = vadd.f32 %v1955_v0, %v1954_v62  ;;  %v2019_v4 = vpop.f32.mrb[47].mxu1 }
 0x189   :  { %v2020_v41 = vadd.f32 %v2019_v4, %v2018_v63 }
 0x18a   :  { %v2508_v6 = vadd.f32 %v2017_v39, %v1204_v1  ;;  %v1207_v8 = vadd.f32 %v1956_v2, %v2465_v55 }
 0x18c   :  { %v1344_v10 = vadd.f32 %v1343_v59, %v2508_v6  ;;  %v2512_v12 = vadd.f32 %v2020_v41, %v1207_v8  ;;  %v1957_v14 = vpop.f32.mrb[48].mxu0 }
 0x18d   :  { %v2021_v15 = vpop.f32.mrb[48].mxu1  ;;  %v1958_v16 = vpop.f32.mrb[49].mxu0 }
 0x18e   :  { %v1345_v17 = vadd.f32 %v1344_v10, %v2512_v12  ;;  %v1959_v18 = vadd.f32 %v1958_v16, %v1957_v14  ;;  %v2022_v20 = vpop.f32.mrb[49].mxu1  ;;  %v1960_v11 = vpop.f32.mrb[50].mxu0 }
 0x18f   :  { %v2023_v53 = vadd.f32 %v2022_v20, %v2021_v15  ;;  %v2024_v22 = vpop.f32.mrb[50].mxu1  ;;  %v1961_v23 = vpop.f32.mrb[51].mxu0 }
 0x190   :  { %v1212_v24 = vadd.f32 %v1959_v18, %v2467_v3  ;;  %v1962_v26 = vadd.f32 %v1961_v23, %v1960_v11  ;;  %v2025_v28 = vpop.f32.mrb[51].mxu1 }
 0x191   :  { %v2026_v55 = vadd.f32 %v2025_v28, %v2024_v22 }
 0x192   :  { %v2516_v29 = vadd.f32 %v2023_v53, %v1212_v24  ;;  %v1215_v30 = vadd.f32 %v1962_v26, %v2469_v5 }
 0x194   :  { %v1346_v32 = vadd.f32 %v1345_v17, %v2516_v29  ;;  %v2520_v33 = vadd.f32 %v2026_v55, %v1215_v30  ;;  %v1963_v34 = vpop.f32.mrb[52].mxu0 }
 0x195   :  { %v2027_v36 = vpop.f32.mrb[52].mxu1  ;;  %v1964_v38 = vpop.f32.mrb[53].mxu0 }
 0x196   :  { %v1347_v40 = vadd.f32 %v1346_v32, %v2520_v33  ;;  %v1965_v42 = vadd.f32 %v1964_v38, %v1963_v34  ;;  %v2028_v25 = vpop.f32.mrb[53].mxu1  ;;  %v1966_v43 = vpop.f32.mrb[54].mxu0 }
 0x197   :  { %v2029_v3 = vadd.f32 %v2028_v25, %v2027_v36  ;;  %v2030_v44 = vpop.f32.mrb[54].mxu1  ;;  %v1967_v45 = vpop.f32.mrb[55].mxu0 }
 0x198   :  { %v1220_v46 = vadd.f32 %v1965_v42, %v2471_v19  ;;  %v1968_v47 = vadd.f32 %v1967_v45, %v1966_v43  ;;  %v2031_v27 = vpop.f32.mrb[55].mxu1 }
 0x199   :  { %v2032_v5 = vadd.f32 %v2031_v27, %v2030_v44 }
 0x19a   :  { %v1317_v49 = vadd.f32 %v2029_v3, %v1220_v46  ;;  %v1223_v50 = vadd.f32 %v1968_v47, %v2473_v21 }
 0x19c   :  { %v1348_v56 = vadd.f32 %v1347_v40, %v1317_v49  ;;  %v1320_v57 = vadd.f32 %v2032_v5, %v1223_v50  ;;  %v1969_v58 = vpop.f32.mrb[56].mxu0 }
 0x19d   :  { %v2033_v59 = vpop.f32.mrb[56].mxu1  ;;  %v1970_v60 = vpop.f32.mrb[57].mxu0 }
 0x19e   :  { %v1349_v61 = vadd.f32 %v1348_v56, %v1320_v57  ;;  %v1971_v62 = vadd.f32 %v1970_v60, %v1969_v58  ;;  %v2034_v39 = vpop.f32.mrb[57].mxu1  ;;  %v1972_v63 = vpop.f32.mrb[58].mxu0 }
 0x19f   :  { %v2035_v0 = vadd.f32 %v2034_v39, %v2033_v59  ;;  %v2036_v1 = vpop.f32.mrb[58].mxu1  ;;  %v1973_v2 = vpop.f32.mrb[59].mxu0 }
 0x1a0   :  { %v1228_v19 = vadd.f32 %v1971_v62, %v2475_v35  ;;  %v1974_v4 = vadd.f32 %v1973_v2, %v1972_v63  ;;  %v2037_v41 = vpop.f32.mrb[59].mxu1 }
 0x1a1   :  { %v2038_v8 = vadd.f32 %v2037_v41, %v2036_v1 }
 0x1a2   :  { %v1325_v10 = vadd.f32 %v2035_v0, %v1228_v19  ;;  %v1231_v21 = vadd.f32 %v1974_v4, %v2477_v37 }
 0x1a4   :  { %v1350_v14 = vadd.f32 %v1349_v61, %v1325_v10  ;;  %v1328_v15 = vadd.f32 %v2038_v8, %v1231_v21  ;;  %v1975_v16 = vpop.f32.mrb[60].mxu0 }
 0x1a5   :  { %v2039_v17 = vpop.f32.mrb[60].mxu1  ;;  %v1976_v18 = vpop.f32.mrb[61].mxu0 }
 0x1a6   :  { %v1351_v20 = vadd.f32 %v1350_v14, %v1328_v15  ;;  %v1977_v11 = vadd.f32 %v1976_v18, %v1975_v16  ;;  %v2040_v53 = vpop.f32.mrb[61].mxu1  ;;  %v1978_v22 = vpop.f32.mrb[62].mxu0 }
 0x1a7   :  { %v2041_v23 = vadd.f32 %v2040_v53, %v2039_v17  ;;  %v2042_v24 = vpop.f32.mrb[62].mxu1  ;;  %v1979_v26 = vpop.f32.mrb[63].mxu0 }
 0x1a8   :  { %v1236_v35 = vadd.f32 %v1977_v11, %v2479_v51  ;;  %v1980_v28 = vadd.f32 %v1979_v26, %v1978_v22  ;;  %v2043_v55 = vpop.f32.mrb[63].mxu1 }
 0x1a9   :  { %v2044_v30 = vadd.f32 %v2043_v55, %v2042_v24 }
 0x1aa   :  { %v1333_v32 = vadd.f32 %v2041_v23, %v1236_v35  ;;  %v1239_v37 = vadd.f32 %v1980_v28, %v2481_v54 }
 0x1ac   :  { %v1352_v34 = vadd.f32 %v1351_v20, %v1333_v32  ;;  %v1336_v36 = vadd.f32 %v2044_v30, %v1239_v37 }
 0x1ae   :  { %v1353_v38 = vadd.f32 %v1352_v34, %v1336_v36 }
 0x1b0   :  { %v1354_v40 = vrot.slane %v1353_v38, 4 }
 0x1b2   :  { %v1355_v42 = vadd.f32 %v1354_v40, %v1353_v38  ;;  %v1418_v40 = vld [vmem:[#allocation4] sm:$0x1] }
 0x1b4   :  { %v1356_v25 = vrot.slane %v1355_v42, 2 }
 0x1b6   :  { %v1357_v43 = vadd.f32 %v1356_v25, %v1355_v42 }
 0x1b8   :  { %v1358_v3 = vrot.slane %v1357_v43, 1 }
 0x1ba   :  { %v1359_v44 = vadd.f32 %v1358_v3, %v1357_v43 }
 0x1bc   :  { %v1361_v45 = vmul.f32 0.0078125, %v1359_v44 }
 0x1be   :  { %v2530_v46 = vsub.f32 %v2484_v7, %v1361_v45  ;;  %v2533_v51 = vsub.f32 %v2487_v9, %v1361_v45  ;;  %v2536_v47 = vsub.f32 %v2492_v13, %v1361_v45  ;;  %v2539_v54 = vsub.f32 %v2496_v31, %v1361_v45 }
 0x1bf   :  { %v2542_v27 = vsub.f32 %v2500_v48, %v1361_v45  ;;  %v2545_v5 = vsub.f32 %v2504_v52, %v1361_v45  ;;  %v2548_v50 = vsub.f32 %v2508_v6, %v1361_v45  ;;  %v2551_v7 = vsub.f32 %v2512_v12, %v1361_v45 }
 0x1c0   :  { %v2554_v9 = vsub.f32 %v2516_v29, %v1361_v45  ;;  %v2557_v13 = vsub.f32 %v2520_v33, %v1361_v45  ;;  %v2559_v31 = vsub.f32 %v1317_v49, %v1361_v45  ;;  %v2561_v56 = vsub.f32 %v1320_v57, %v1361_v45 }
 0x1c1   :  { %v2563_v48 = vsub.f32 %v1325_v10, %v1361_v45  ;;  %v2565_v52 = vsub.f32 %v1328_v15, %v1361_v45  ;;  %v2567_v58 = vsub.f32 %v1333_v32, %v1361_v45  ;;  %v2569_v6 = vsub.f32 %v1336_v36, %v1361_v45 }
 0x1c2   :  { %v1378_v12 = vmul.f32 %v2530_v46, %v2530_v46  ;;  %v1379_v29 = vmul.f32 %v2533_v51, %v2533_v51  ;;  %v1380_v33 = vmul.f32 %v2536_v47, %v2536_v47  ;;  %v1381_v57 = vmul.f32 %v2539_v54, %v2539_v54 }
 0x1c3   :  { %v1382_v60 = vmul.f32 %v2542_v27, %v2542_v27  ;;  %v1383_v62 = vmul.f32 %v2545_v5, %v2545_v5  ;;  %v1384_v63 = vmul.f32 %v2548_v50, %v2548_v50  ;;  %v1385_v1 = vmul.f32 %v2551_v7, %v2551_v7 }
 0x1c4   :  { %v1394_v49 = vadd.f32 %v1379_v29, %v1378_v12  ;;  %v1386_v19 = vmul.f32 %v2554_v9, %v2554_v9  ;;  %v1387_v41 = vmul.f32 %v2557_v13, %v2557_v13  ;;  %v1388_v10 = vmul.f32 %v2559_v31, %v2559_v31 }
 0x1c5   :  { %v1389_v14 = vmul.f32 %v2561_v56, %v2561_v56  ;;  %v1390_v16 = vmul.f32 %v2563_v48, %v2563_v48  ;;  %v1391_v18 = vmul.f32 %v2565_v52, %v2565_v52  ;;  %v1392_v11 = vmul.f32 %v2567_v58, %v2567_v58 }
 0x1c6   :  { %v1395_v59 = vadd.f32 %v1394_v49, %v1380_v33  ;;  %v1393_v22 = vmul.f32 %v2569_v6, %v2569_v6  ;;  %v1420_v36 = vlaneseq }
 0x1c8   :  { %v1396_v61 = vadd.f32 %v1395_v59, %v1381_v57  ;;  %v1421_v38 = vshrl.u32 %v1420_v36, 7 }
 0x1ca   :  { %v1397_v39 = vadd.f32 %v1396_v61, %v1382_v60  ;;  %v1422_v42 = vsub.s32 0, %v1421_v38  ;;  %v1709_v60 = vld [vmem:[#allocation6] ss:$0 sm:$0xff] }
 0x1cc   :  { %v1398_v0 = vadd.f32 %v1397_v39, %v1383_v62 }
 0x1ce   :  { %v1399_v2 = vadd.f32 %v1398_v0, %v1384_v63 }
 0x1d0   :  { %v1400_v4 = vadd.f32 %v1399_v2, %v1385_v1 }
 0x1d2   :  { %v1401_v8 = vadd.f32 %v1400_v4, %v1386_v19 }
 0x1d4   :  { %v1402_v21 = vadd.f32 %v1401_v8, %v1387_v41 }
 0x1d6   :  { %v1403_v15 = vadd.f32 %v1402_v21, %v1388_v10 }
 0x1d8   :  { %v1404_v17 = vadd.f32 %v1403_v15, %v1389_v14 }
 0x1da   :  { %v1405_v20 = vadd.f32 %v1404_v17, %v1390_v16 }
 0x1dc   :  { %v1406_v53 = vadd.f32 %v1405_v20, %v1391_v18 }
 0x1de   :  { %v1407_v23 = vadd.f32 %v1406_v53, %v1392_v11 }
 0x1e0   :  { %v1408_v24 = vadd.f32 %v1407_v23, %v1393_v22 }
 0x1e2   :  { %v1409_v26 = vrot.slane %v1408_v24, 4 }
 0x1e4   :  { %v1410_v35 = vadd.f32 %v1409_v26, %v1408_v24 }
 0x1e6   :  { %v1411_v28 = vrot.slane %v1410_v35, 2 }
 0x1e8   :  { %v1412_v55 = vadd.f32 %v1411_v28, %v1410_v35 }
 0x1ea   :  { %v1413_v30 = vrot.slane %v1412_v55, 1 }
 0x1ec   :  { %v1414_v32 = vadd.f32 %v1413_v30, %v1412_v55 }
 0x1ee   :  { %v1415_v37 = vmul.f32 0.0078125, %v1414_v32 }
 0x1f0   :  { %v1416_v34 = vadd.f32 1e-05, %v1415_v37 }
 0x1f2   :  { %2114 = vrsqrt.f32 %v1416_v34 }
 0x1fc   :  { %v2115_v25 = vpop.eup %2114 }
 0x1fd   :  { %v1419_v43 = vmul.f32 %v2115_v25, %v1418_v40 }
 0x1ff   :  { %v1423_v3 = vrot.slane %v1419_v43, %v1422_v42 }
 0x201   :  { %v1424_v44 = vmul.f32 %v1423_v3, %v2530_v46  ;;  %v1425_v45 = vmul.f32 %v1423_v3, %v2533_v51  ;;  %v1426_v12 = vmul.f32 %v1423_v3, %v2536_v47  ;;  %v1427_v29 = vmul.f32 %v1423_v3, %v2539_v54 }
 0x202   :  { %v1428_v33 = vmul.f32 %v1423_v3, %v2542_v27  ;;  %v1429_v49 = vmul.f32 %v1423_v3, %v2545_v5  ;;  %v1430_v57 = vmul.f32 %v1423_v3, %v2548_v50  ;;  %v1431_v59 = vmul.f32 %v1423_v3, %v2551_v7 }
 0x203   :  { %v1432_v61 = vmul.f32 %v1423_v3, %v2554_v9  ;;  %v1433_v62 = vmul.f32 %v1423_v3, %v2557_v13  ;;  %v1434_v46 = vmul.f32 %v1423_v3, %v2559_v31  ;;  %v1435_v51 = vmul.f32 %v1423_v3, %v2561_v56 }
 0x204   :  { %v1436_v47 = vmul.f32 %v1423_v3, %v2563_v48  ;;  %v1437_v54 = vmul.f32 %v1423_v3, %v2565_v52  ;;  %v1438_v27 = vmul.f32 %v1423_v3, %v2567_v58  ;;  %v1439_v5 = vmul.f32 %v1423_v3, %v2569_v6 }
 0x205   :  { %v1447_v50 = vadd.f32 %v1709_v60, %v1424_v44  ;;  %v1448_v39 = vadd.f32 %v1709_v60, %v1425_v45  ;;  %v1449_v7 = vadd.f32 %v1709_v60, %v1426_v12  ;;  %v1450_v63 = vadd.f32 %v1709_v60, %v1427_v29 }
 0x206   :  { %v1451_v0 = vadd.f32 %v1709_v60, %v1428_v33  ;;  %v1452_v9 = vadd.f32 %v1709_v60, %v1429_v49  ;;  %v1453_v1 = vadd.f32 %v1709_v60, %v1430_v57  ;;  %v1454_v13 = vadd.f32 %v1709_v60, %v1431_v59 }
 0x207   :  { %v1455_v2 = vadd.f32 %v1709_v60, %v1432_v61  ;;  %v1456_v31 = vadd.f32 %v1709_v60, %v1433_v62  ;;  %v1457_v19 = vadd.f32 %v1709_v60, %v1434_v46  ;;  %v1458_v56 = vadd.f32 %v1709_v60, %v1435_v51 }
 0x208   :  { %v1459_v4 = vadd.f32 %v1709_v60, %v1436_v47  ;;  %v1460_v48 = vadd.f32 %v1709_v60, %v1437_v54  ;;  %v1461_v41 = vadd.f32 %v1709_v60, %v1438_v27  ;;  %v1463_v52 = vmul.f32 0.01, %v1447_v50 }
 0x209   :  { %v1464_v8 = vmul.f32 0.01, %v1448_v39  ;;  %v1465_v58 = vmul.f32 0.01, %v1449_v7  ;;  %v1462_v10 = vadd.f32 %v1709_v60, %v1439_v5  ;;  %v1466_v6 = vmul.f32 0.01, %v1450_v63 }
 0x20a   :  { %v1467_v21 = vmul.f32 0.01, %v1451_v0  ;;  %v1468_v14 = vmul.f32 0.01, %v1452_v9  ;;  %v1469_v15 = vmul.f32 0.01, %v1453_v1  ;;  %v1479_v18 = vmax.f32 %v1447_v50, %v1463_v52 }
 0x20b   :  { %v1470_v16 = vmul.f32 0.01, %v1454_v13  ;;  %v1471_v17 = vmul.f32 0.01, %v1455_v2  ;;  %v1472_v20 = vmul.f32 0.01, %v1456_v31  ;;  %v1480_v22 = vmax.f32 %v1448_v39, %v1464_v8 }
 0x20c   :  { %v1473_v11 = vmul.f32 0.01, %v1457_v19  ;;  %v1474_v53 = vmul.f32 0.01, %v1458_v56  ;;  %v1475_v23 = vmul.f32 0.01, %v1459_v4  ;;  %v1481_v35 = vmax.f32 %v1449_v7, %v1465_v58 }
 0x20d   :  { %v1476_v24 = vmul.f32 0.01, %v1460_v48  ;;  %v1477_v26 = vmul.f32 0.01, %v1461_v41  ;;  %v1478_v28 = vmul.f32 0.01, %v1462_v10  ;;  %v1482_v55 = vmax.f32 %v1450_v63, %v1466_v6 }
 0x20e   :  { %v1483_v30 = vmax.f32 %v1451_v0, %v1467_v21  ;;  %v1484_v32 = vmax.f32 %v1452_v9, %v1468_v14  ;;  %v1485_v37 = vmax.f32 %v1453_v1, %v1469_v15  ;;  %v1486_v34 = vmax.f32 %v1454_v13, %v1470_v16 }
 0x20f   :  { %v1487_v36 = vmax.f32 %v1455_v2, %v1471_v17  ;;  %v1488_v38 = vmax.f32 %v1456_v31, %v1472_v20  ;;  %v1489_v40 = vmax.f32 %v1457_v19, %v1473_v11  ;;  %v1490_v42 = vmax.f32 %v1458_v56, %v1474_v53 }
 0x210   :  { %v1491_v25 = vmax.f32 %v1459_v4, %v1475_v23  ;;  %v1492_v43 = vmax.f32 %v1460_v48, %v1476_v24  ;;  %v1493_v3 = vmax.f32 %v1461_v41, %v1477_v26  ;;  %v1494_v44 = vmax.f32 %v1462_v10, %v1478_v28 }
 0x211   :  { %v1745_v45 = vpack.c.bf16 %v1480_v22, %v1479_v18  ;;  %v1750_v12 = vpack.c.bf16 %v1482_v55, %v1481_v35  ;;  %v1755_v29 = vpack.c.bf16 %v1484_v32, %v1483_v30  ;;  %v1760_v33 = vpack.c.bf16 %v1486_v34, %v1485_v37 }
 0x212   :  { %v1765_v49 = vpack.c.bf16 %v1488_v38, %v1487_v36  ;;  %v1770_v57 = vpack.c.bf16 %v1490_v42, %v1489_v40  ;;  %v1775_v59 = vpack.c.bf16 %v1492_v43, %v1491_v25  ;;  %v1780_v60 = vpack.c.bf16 %v1494_v44, %v1493_v3 }
 0x213   :  { %1746 = vst [vmem:[%s2647_s4] sm:$0xff] %v1745_v45   ;;  %1782 = vst [vmem:[%s2647_s4 + $0x8] sm:$0xff] %v1750_v12  }
 0x214   :  { %1783 = vst [vmem:[%s2647_s4 + $0x10] sm:$0xff] %v1755_v29   ;;  %1784 = vst [vmem:[%s2647_s4 + $0x18] sm:$0xff] %v1760_v33  }
 0x215   :  { %1785 = vst [vmem:[%s2647_s4 + $0x20] sm:$0xff] %v1765_v49   ;;  %1786 = vst [vmem:[%s2647_s4 + $0x28] sm:$0xff] %v1770_v57  }
 0x216   :  { %1787 = vst [vmem:[%s2647_s4 + $0x30] sm:$0xff] %v1775_v59   ;;  %1788 = vst [vmem:[%s2647_s4 + $0x38] sm:$0xff] %v1780_v60  }
 0x217   :  { %1579 = vsyncpa [#allocation3], 1 }
 0x218   :  { %1580 = vsyncpa [#allocation5], 1 }

// kernel: taming_discriminator_forward.7
= control target key start
LH: loop header
LB: loop body
LE: loop exit
PB: predicated region body
PF: predicated region fallthrough
CT: control target
= control target key end

     0   :  { %9 = vsyncpa [#allocation3], 0  ;;  %s3110_s15 = smov [#allocation2]   ;;  %s3312_s0 = inlined_call_operand.vmem [shape: bf16[32,2048], index: 0, kind: input, shape index: {}]   ;;  %s3313_s1 = inlined_call_operand.hbm [shape: bf16[2048,256], index: 1, kind: input, shape index: {}]   ;;  %s3314_s2 = inlined_call_operand.vmem [shape: f32[1,256], index: 2, kind: input, shape index: {}]   ;;  %s3315_s3 = inlined_call_operand.vmem [shape: f32[1,256], index: 3, kind: input, shape index: {}]   ;;  %s3316_s4 = inlined_call_operand.vmem [shape: bf16[32,256], index: 4, kind: output, shape index: {}]  }
   0x1   :  { %s17_s16 = sshll.u32 %s3110_s15, 4  ;;  %s3086_s19 = scalar_lea.hbm %s3313_s1, 32768  ;;  %s18_s16 = int_to_ptr.vmem [resolvable:$true] %s17_s16 }
   0x2   :  { %p3087_p0 = scmp.ne.s32.totalorder %s3313_s1, %s3086_s19  ;;  %p3090_p1 = scmp.lt.u32.totalorder %s3086_s19, %s3313_s1 }
   0x4   :  { %p3092_p2 = pnand %p3090_p1, %p3087_p0 }
   0x6   :  { %3095 = shalt.err (!%p3092_p2)
}
   0x7   :  { %s3096_s24 = scalar_lea.vmem %s18_s16, 32768  ;;  %p3101_p4 = scmp.lt.s32.totalorder %s18_s16, %s18_s16 }
   0x8   :  { %p3097_p3 = scmp.ne.s32.totalorder %s18_s16, %s3096_s24  ;;  %p3102_p5 = scmp.lt.s32.totalorder %s3096_s24, %s3096_s24 }
   0xa   :  { %p3103_p6 = por %p3102_p5, %p3101_p4 }
   0xc   :  { %p3104_p7 = pnand %p3103_p6, %p3097_p3 }
   0xe   :  { %3107 = shalt.err (!%p3104_p7)
}
   0xf   :  { %s3111_s25 = smov 128   ;;  %s3112_s26 = smov 8  }
  0x10   :  { %23 = dma.hbm_to_vmem [thread:$0]  %s3313_s1, 32768, %s18_s16, [#allocation3], %s3111_s25, %s3111_s25, %s3112_s26  }
  0x11   :  { %3108 = dma.done.wait [#allocation3], 32768  }
  0x12   :  { %3109 = vsyncadd [#allocation3], 4294934528  ;;  %v2698_v0 = vld [vmem:[#allocation2 + $0x4] ss:$8 sps:$4 sm:$0xff]   ;;  %v2702_v2 = vld [vmem:[#allocation2] ss:$8 sps:$4 sm:$0xff]  }
  0x13   :  { %v2700_v1 = vld [vmem:[#allocation2 + $0x404] ss:$8 sps:$4 sm:$0xff]   ;;  %1759 = vmatprep.subr.bf16.mxu1 %v2698_v0  ;;  %v2703_v3 = vld [vmem:[#allocation2 + $0x400] ss:$8 sps:$4 sm:$0xff]   ;;  %v2704_v4 = vld [vmem:[#allocation2 + $0x14] ss:$8 sps:$4 sm:$0xff]  }
  0x14   :  { %1971 = vmatprep.subr.bf16.mxu0 %v2700_v1  ;;  %1760 = vmatpush1.bf16.msra.mxu1 %v2702_v2  ;;  %v2706_v5 = vld [vmem:[#allocation2 + $0x414] ss:$8 sps:$4 sm:$0xff]   ;;  %v2708_v6 = vld [vmem:[#allocation2 + $0x10] ss:$8 sps:$4 sm:$0xff]   ;;  %v2710_v8 = vld [vmem:[#allocation2 + $0x24] ss:$8 sps:$4 sm:$0xff]  }
  0x15   :  { %1972 = vmatpush1.bf16.msra.mxu0 %v2703_v3  ;;  %1761 = vmatprep.subr.bf16.mxu1 %v2704_v4  ;;  %v2709_v7 = vld [vmem:[#allocation2 + $0x410] ss:$8 sps:$4 sm:$0xff]   ;;  %v2712_v9 = vld [vmem:[#allocation2 + $0x424] ss:$8 sps:$4 sm:$0xff]   ;;  %v2714_v10 = vld [vmem:[#allocation2 + $0x20] ss:$8 sps:$4 sm:$0xff]  }
  0x16   :  { %1973 = vmatprep.subr.bf16.mxu0 %v2706_v5  ;;  %v2715_v11 = vld [vmem:[#allocation2 + $0x420] ss:$8 sps:$4 sm:$0xff]   ;;  %v2716_v12 = vld [vmem:[#allocation2 + $0x34] ss:$8 sps:$4 sm:$0xff]   ;;  %v2720_v14 = vld [vmem:[#allocation2 + $0x30] ss:$8 sps:$4 sm:$0xff]  }
  0x17   :  { %v2718_v13 = vld [vmem:[#allocation2 + $0x434] ss:$8 sps:$4 sm:$0xff]   ;;  %v2721_v15 = vld [vmem:[#allocation2 + $0x430] ss:$8 sps:$4 sm:$0xff]   ;;  %v2722_v16 = vld [vmem:[#allocation2 + $0x44] ss:$8 sps:$4 sm:$0xff]  }
  0x18   :  { %1762 = vmatpush1.bf16.msra.mxu1 %v2708_v6  ;;  %v2724_v17 = vld [vmem:[#allocation2 + $0x444] ss:$8 sps:$4 sm:$0xff]   ;;  %v2726_v18 = vld [vmem:[#allocation2 + $0x40] ss:$8 sps:$4 sm:$0xff]   ;;  %v2728_v20 = vld [vmem:[#allocation2 + $0x54] ss:$8 sps:$4 sm:$0xff]  }
  0x19   :  { %1974 = vmatpush1.bf16.msra.mxu0 %v2709_v7  ;;  %1763 = vmatprep.subr.bf16.mxu1 %v2710_v8  ;;  %v2727_v19 = vld [vmem:[#allocation2 + $0x440] ss:$8 sps:$4 sm:$0xff]   ;;  %v2730_v21 = vld [vmem:[#allocation2 + $0x454] ss:$8 sps:$4 sm:$0xff]   ;;  %v2732_v22 = vld [vmem:[#allocation2 + $0x50] ss:$8 sps:$4 sm:$0xff]  }
  0x1a   :  { %1975 = vmatprep.subr.bf16.mxu0 %v2712_v9  ;;  %v2733_v23 = vld [vmem:[#allocation2 + $0x450] ss:$8 sps:$4 sm:$0xff]   ;;  %v2734_v24 = vld [vmem:[#allocation2 + $0x64] ss:$8 sps:$4 sm:$0xff]   ;;  %v2738_v26 = vld [vmem:[#allocation2 + $0x60] ss:$8 sps:$4 sm:$0xff]  }
  0x1b   :  { %v2736_v25 = vld [vmem:[#allocation2 + $0x464] ss:$8 sps:$4 sm:$0xff]   ;;  %v2739_v27 = vld [vmem:[#allocation2 + $0x460] ss:$8 sps:$4 sm:$0xff]   ;;  %v2740_v28 = vld [vmem:[#allocation2 + $0x74] ss:$8 sps:$4 sm:$0xff]  }
  0x1c   :  { %1764 = vmatpush1.bf16.msra.mxu1 %v2714_v10  ;;  %v2742_v29 = vld [vmem:[#allocation2 + $0x474] ss:$8 sps:$4 sm:$0xff]   ;;  %v2744_v30 = vld [vmem:[#allocation2 + $0x70] ss:$8 sps:$4 sm:$0xff]   ;;  %v2746_v32 = vld [vmem:[#allocation2 + $0x84] ss:$8 sps:$4 sm:$0xff]  }
  0x1d   :  { %1976 = vmatpush1.bf16.msra.mxu0 %v2715_v11  ;;  %1765 = vmatprep.subr.bf16.mxu1 %v2716_v12  ;;  %v2745_v31 = vld [vmem:[#allocation2 + $0x470] ss:$8 sps:$4 sm:$0xff]   ;;  %v2748_v33 = vld [vmem:[#allocation2 + $0x484] ss:$8 sps:$4 sm:$0xff]   ;;  %v2750_v34 = vld [vmem:[#allocation2 + $0x80] ss:$8 sps:$4 sm:$0xff]  }
  0x1e   :  { %1977 = vmatprep.subr.bf16.mxu0 %v2718_v13  ;;  %v2751_v35 = vld [vmem:[#allocation2 + $0x480] ss:$8 sps:$4 sm:$0xff]   ;;  %v2752_v36 = vld [vmem:[#allocation2 + $0x94] ss:$8 sps:$4 sm:$0xff]   ;;  %v2756_v38 = vld [vmem:[#allocation2 + $0x90] ss:$8 sps:$4 sm:$0xff]  }
  0x1f   :  { %v2754_v37 = vld [vmem:[#allocation2 + $0x494] ss:$8 sps:$4 sm:$0xff]   ;;  %v2757_v39 = vld [vmem:[#allocation2 + $0x490] ss:$8 sps:$4 sm:$0xff]   ;;  %v2758_v40 = vld [vmem:[#allocation2 + $0xa4] ss:$8 sps:$4 sm:$0xff]  }
  0x20   :  { %1766 = vmatpush1.bf16.msra.mxu1 %v2720_v14  ;;  %v2760_v41 = vld [vmem:[#allocation2 + $0x4a4] ss:$8 sps:$4 sm:$0xff]   ;;  %v2762_v42 = vld [vmem:[#allocation2 + $0xa0] ss:$8 sps:$4 sm:$0xff]   ;;  %v2764_v44 = vld [vmem:[#allocation2 + $0xb4] ss:$8 sps:$4 sm:$0xff]  }
  0x21   :  { %1978 = vmatpush1.bf16.msra.mxu0 %v2721_v15  ;;  %1767 = vmatprep.subr.bf16.mxu1 %v2722_v16  ;;  %v2763_v43 = vld [vmem:[#allocation2 + $0x4a0] ss:$8 sps:$4 sm:$0xff]   ;;  %v2766_v45 = vld [vmem:[#allocation2 + $0x4b4] ss:$8 sps:$4 sm:$0xff]   ;;  %v2768_v46 = vld [vmem:[#allocation2 + $0xb0] ss:$8 sps:$4 sm:$0xff]  }
  0x22   :  { %1979 = vmatprep.subr.bf16.mxu0 %v2724_v17  ;;  %v2769_v47 = vld [vmem:[#allocation2 + $0x4b0] ss:$8 sps:$4 sm:$0xff]   ;;  %v31_v48 = vld [vmem:[%s3312_s0] sm:$0xff]  ;;  %v2776_v58 = vld [vmem:[#allocation2 + $0xd4] ss:$8 sps:$4 sm:$0xff]  }
  0x23   :  { %v39_v49 = vld [vmem:[%s3312_s0 + $0x40] sm:$0xff]  ;;  %v2778_v59 = vld [vmem:[#allocation2 + $0x4d4] ss:$8 sps:$4 sm:$0xff]   ;;  %v2780_v60 = vld [vmem:[#allocation2 + $0xd0] ss:$8 sps:$4 sm:$0xff]  }
  0x24   :  { %1768 = vmatpush1.bf16.msra.mxu1 %v2726_v18  ;;  %v2770_v50 = vld [vmem:[#allocation2 + $0xc4] ss:$8 sps:$4 sm:$0xff]   ;;  %v2344_v52 = vcombine.high %v31_v48, %v39_v49  ;;  %v2774_v56 = vld [vmem:[#allocation2 + $0xc0] ss:$8 sps:$4 sm:$0xff]   ;;  %v2781_v61 = vld [vmem:[#allocation2 + $0x4d0] ss:$8 sps:$4 sm:$0xff]   ;;  %v2343_v8 = vcombine.low %v31_v48, %v39_v49 }
  0x25   :  { %1980 = vmatpush1.bf16.msra.mxu0 %v2727_v19  ;;  %1769 = vmatprep.subr.bf16.mxu1 %v2728_v20  ;;  %v2772_v51 = vld [vmem:[#allocation2 + $0x4c4] ss:$8 sps:$4 sm:$0xff]   ;;  %v2775_v57 = vld [vmem:[#allocation2 + $0x4c0] ss:$8 sps:$4 sm:$0xff]   ;;  %v2788_v2 = vld [vmem:[#allocation2 + $0xf4] ss:$8 sps:$4 sm:$0xff]  }
  0x26   :  { %1981 = vmatprep.subr.bf16.mxu0 %v2730_v21  ;;  %v35_v53 = vld [vmem:[%s3312_s0 + $0x20] sm:$0xff]  ;;  %1791 = vmatprep.mubr.bf16.mxu1 %v2344_v52  ;;  %v2790_v3 = vld [vmem:[#allocation2 + $0x4f4] ss:$8 sps:$4 sm:$0xff]   ;;  %v2792_v4 = vld [vmem:[#allocation2 + $0xf0] ss:$8 sps:$4 sm:$0xff]  }
  0x27   :  { %v43_v54 = vld [vmem:[%s3312_s0 + $0x60] sm:$0xff]  ;;  %v2793_v5 = vld [vmem:[#allocation2 + $0x4f0] ss:$8 sps:$4 sm:$0xff]   ;;  %v2802_v12 = vld [vmem:[#allocation2 + $0x114] ss:$8 sps:$4 sm:$0xff]  }
  0x28   :  { %1770 = vmatpush1.bf16.msra.mxu1 %v2732_v22  ;;  %v2352_v55 = vcombine.high %v35_v53, %v43_v54  ;;  %v2782_v62 = vld [vmem:[#allocation2 + $0xe4] ss:$8 sps:$4 sm:$0xff]   ;;  %v2786_v0 = vld [vmem:[#allocation2 + $0xe0] ss:$8 sps:$4 sm:$0xff]   ;;  %v2351_v10 = vcombine.low %v35_v53, %v43_v54  ;;  %v2805_v13 = vld [vmem:[#allocation2 + $0x514] ss:$8 sps:$4 sm:$0xff]  }
  0x29   :  { %1982 = vmatpush1.bf16.msra.mxu0 %v2733_v23  ;;  %1771 = vmatprep.subr.bf16.mxu1 %v2734_v24  ;;  %v2784_v63 = vld [vmem:[#allocation2 + $0x4e4] ss:$8 sps:$4 sm:$0xff]   ;;  %v2787_v1 = vld [vmem:[#allocation2 + $0x4e0] ss:$8 sps:$4 sm:$0xff]   ;;  %v2800_v14 = vld [vmem:[#allocation2 + $0x110] ss:$8 sps:$4 sm:$0xff]  }
  0x2a   :  { %1983 = vmatprep.subr.bf16.mxu0 %v2736_v25  ;;  %2003 = vmatprep.mubr.bf16.mxu0 %v2352_v55  ;;  %v2796_v6 = vld [vmem:[#allocation2 + $0x104] ss:$8 sps:$4 sm:$0xff]   ;;  %v2794_v9 = vld [vmem:[#allocation2 + $0x100] ss:$8 sps:$4 sm:$0xff]   ;;  %v2803_v15 = vld [vmem:[#allocation2 + $0x510] ss:$8 sps:$4 sm:$0xff]  }
  0x2b   :  { %v2799_v7 = vld [vmem:[#allocation2 + $0x504] ss:$8 sps:$4 sm:$0xff]   ;;  %v2797_v11 = vld [vmem:[#allocation2 + $0x500] ss:$8 sps:$4 sm:$0xff]   ;;  %v2814_v20 = vld [vmem:[#allocation2 + $0x134] ss:$8 sps:$4 sm:$0xff]  }
  0x2c   :  { %1772 = vmatpush1.bf16.msra.mxu1 %v2738_v26  ;;  %v2808_v16 = vld [vmem:[#allocation2 + $0x124] ss:$8 sps:$4 sm:$0xff]   ;;  %v2806_v18 = vld [vmem:[#allocation2 + $0x120] ss:$8 sps:$4 sm:$0xff]   ;;  %v2817_v21 = vld [vmem:[#allocation2 + $0x534] ss:$8 sps:$4 sm:$0xff]  }
  0x2d   :  { %1984 = vmatpush1.bf16.msra.mxu0 %v2739_v27  ;;  %1773 = vmatprep.subr.bf16.mxu1 %v2740_v28  ;;  %v2811_v17 = vld [vmem:[#allocation2 + $0x524] ss:$8 sps:$4 sm:$0xff]   ;;  %v2809_v19 = vld [vmem:[#allocation2 + $0x520] ss:$8 sps:$4 sm:$0xff]   ;;  %v2812_v22 = vld [vmem:[#allocation2 + $0x130] ss:$8 sps:$4 sm:$0xff]  }
  0x2e   :  { %1985 = vmatprep.subr.bf16.mxu0 %v2742_v29  ;;  %v2815_v23 = vld [vmem:[#allocation2 + $0x530] ss:$8 sps:$4 sm:$0xff]   ;;  %v2820_v24 = vld [vmem:[#allocation2 + $0x144] ss:$8 sps:$4 sm:$0xff]   ;;  %v2818_v26 = vld [vmem:[#allocation2 + $0x140] ss:$8 sps:$4 sm:$0xff]  }
  0x2f   :  { %v2823_v25 = vld [vmem:[#allocation2 + $0x544] ss:$8 sps:$4 sm:$0xff]   ;;  %v2821_v27 = vld [vmem:[#allocation2 + $0x540] ss:$8 sps:$4 sm:$0xff]   ;;  %v2826_v28 = vld [vmem:[#allocation2 + $0x154] ss:$8 sps:$4 sm:$0xff]  }
  0x30   :  { %1774 = vmatpush1.bf16.msra.mxu1 %v2744_v30  ;;  %v2829_v29 = vld [vmem:[#allocation2 + $0x554] ss:$8 sps:$4 sm:$0xff]   ;;  %v47_v30 = vld [vmem:[%s3312_s0 + $0x80] sm:$0xff]  ;;  %v3189_v49 = vld [vmem:[%s3312_s0 + $0x28] sm:$0xff] }
  0x31   :  { %1986 = vmatpush1.bf16.msra.mxu0 %v2745_v31  ;;  %1775 = vmatprep.subr.bf16.mxu1 %v2746_v32  ;;  %v55_v31 = vld [vmem:[%s3312_s0 + $0xc0] sm:$0xff]  ;;  %v2824_v32 = vld [vmem:[#allocation2 + $0x150] ss:$8 sps:$4 sm:$0xff]  }
  0x32   :  { %1987 = vmatprep.subr.bf16.mxu0 %v2748_v33  ;;  %v2360_v33 = vcombine.high %v47_v30, %v55_v31  ;;  %v2839_v52 = vld [vmem:[#allocation2 + $0x570] ss:$8 sps:$4 sm:$0xff]   ;;  %v2844_v54 = vld [vmem:[#allocation2 + $0x184] ss:$8 sps:$4 sm:$0xff]  }
  0x33   :  { %v2847_v55 = vld [vmem:[#allocation2 + $0x584] ss:$8 sps:$4 sm:$0xff]  }
  0x34   :  { %1776 = vmatpush1.bf16.msra.mxu1 %v2750_v34  ;;  %v2827_v34 = vld [vmem:[#allocation2 + $0x550] ss:$8 sps:$4 sm:$0xff]  }
  0x35   :  { %1988 = vmatpush1.bf16.msra.mxu0 %v2751_v35  ;;  %1777 = vmatprep.subr.bf16.mxu1 %v2752_v36  ;;  %v51_v35 = vld [vmem:[%s3312_s0 + $0xa0] sm:$0xff] }
  0x36   :  { %1989 = vmatprep.subr.bf16.mxu0 %v2754_v37  ;;  %v59_v36 = vld [vmem:[%s3312_s0 + $0xe0] sm:$0xff]  ;;  %v2359_v37 = vcombine.low %v47_v30, %v55_v31  ;;  %v2898_v30 = vld [vmem:[#allocation2 + $0x214] ss:$8 sps:$4 sm:$0xff]  }
  0x37   :  { %v2901_v31 = vld [vmem:[#allocation2 + $0x614] ss:$8 sps:$4 sm:$0xff]  }
  0x38   :  { %1778 = vmatpush1.bf16.msra.mxu1 %v2756_v38  ;;  %v2832_v38 = vld [vmem:[#allocation2 + $0x164] ss:$8 sps:$4 sm:$0xff]  }
  0x39   :  { %1990 = vmatpush1.bf16.msra.mxu0 %v2757_v39  ;;  %1779 = vmatprep.subr.bf16.mxu1 %v2758_v40  ;;  %v2368_v39 = vcombine.high %v51_v35, %v59_v36  ;;  %v2367_v40 = vcombine.low %v51_v35, %v59_v36  ;;  %v2896_v36 = vld [vmem:[#allocation2 + $0x210] ss:$8 sps:$4 sm:$0xff]  }
  0x3a   :  { %1991 = vmatprep.subr.bf16.mxu0 %v2760_v41  ;;  %v2835_v41 = vld [vmem:[#allocation2 + $0x564] ss:$8 sps:$4 sm:$0xff]  }
  0x3c   :  { %1780 = vmatpush1.bf16.msra.mxu1 %v2762_v42  ;;  %v2830_v42 = vld [vmem:[#allocation2 + $0x160] ss:$8 sps:$4 sm:$0xff]  }
  0x3d   :  { %1992 = vmatpush1.bf16.msra.mxu0 %v2763_v43  ;;  %1781 = vmatprep.subr.bf16.mxu1 %v2764_v44  ;;  %v2833_v43 = vld [vmem:[#allocation2 + $0x560] ss:$8 sps:$4 sm:$0xff]  }
  0x3e   :  { %1993 = vmatprep.subr.bf16.mxu0 %v2766_v45  ;;  %v3177_v44 = vld [vmem:[%s3312_s0 + $0x8] sm:$0xff] }
  0x3f   :  { %v3182_v45 = vld [vmem:[%s3312_s0 + $0x48] sm:$0xff] }
  0x40   :  { %1782 = vmatpush1.bf16.msra.mxu1 %v2768_v46  ;;  %v2838_v46 = vld [vmem:[#allocation2 + $0x174] ss:$8 sps:$4 sm:$0xff]   ;;  %v2346_v48 = vcombine.high %v3177_v44, %v3182_v45 }
  0x41   :  { %1994 = vmatpush1.bf16.msra.mxu0 %v2769_v47  ;;  %1783 = vmatprep.subr.bf16.mxu1 %v2770_v50  ;;  %v2841_v47 = vld [vmem:[#allocation2 + $0x574] ss:$8 sps:$4 sm:$0xff]   ;;  %v3194_v50 = vld [vmem:[%s3312_s0 + $0x68] sm:$0xff] }
  0x42   :  { %1995 = vmatprep.subr.bf16.mxu0 %v2772_v51  ;;  %v2836_v51 = vld [vmem:[#allocation2 + $0x170] ss:$8 sps:$4 sm:$0xff]   ;;  %v2354_v53 = vcombine.high %v3189_v49, %v3194_v50 }
  0x44   :  { %1784 = vmatpush1.bf16.msra.mxu1 %v2774_v56  ;;  %v2842_v56 = vld [vmem:[#allocation2 + $0x180] ss:$8 sps:$4 sm:$0xff]  }
  0x45   :  { %1996 = vmatpush1.bf16.msra.mxu0 %v2775_v57  ;;  %1785 = vmatprep.subr.bf16.mxu1 %v2776_v58  ;;  %v2845_v57 = vld [vmem:[#allocation2 + $0x580] ss:$8 sps:$4 sm:$0xff]   ;;  %v2850_v58 = vld [vmem:[#allocation2 + $0x194] ss:$8 sps:$4 sm:$0xff]  }
  0x46   :  { %1997 = vmatprep.subr.bf16.mxu0 %v2778_v59  ;;  %v2853_v59 = vld [vmem:[#allocation2 + $0x594] ss:$8 sps:$4 sm:$0xff]  }
  0x48   :  { %1786 = vmatpush1.bf16.msra.mxu1 %v2780_v60  ;;  %v2848_v60 = vld [vmem:[#allocation2 + $0x190] ss:$8 sps:$4 sm:$0xff]  }
  0x49   :  { %1998 = vmatpush1.bf16.msra.mxu0 %v2781_v61  ;;  %1787 = vmatprep.subr.bf16.mxu1 %v2782_v62  ;;  %v2851_v61 = vld [vmem:[#allocation2 + $0x590] ss:$8 sps:$4 sm:$0xff]   ;;  %v2856_v62 = vld [vmem:[#allocation2 + $0x1a4] ss:$8 sps:$4 sm:$0xff]  }
  0x4a   :  { %1999 = vmatprep.subr.bf16.mxu0 %v2784_v63  ;;  %v2859_v63 = vld [vmem:[#allocation2 + $0x5a4] ss:$8 sps:$4 sm:$0xff]  }
  0x4c   :  { %1788 = vmatpush1.bf16.msra.mxu1 %v2786_v0  ;;  %v2854_v0 = vld [vmem:[#allocation2 + $0x1a0] ss:$8 sps:$4 sm:$0xff]  }
  0x4d   :  { %2000 = vmatpush1.bf16.msra.mxu0 %v2787_v1  ;;  %1789 = vmatprep.subr.bf16.mxu1 %v2788_v2  ;;  %v2857_v1 = vld [vmem:[#allocation2 + $0x5a0] ss:$8 sps:$4 sm:$0xff]   ;;  %v2862_v2 = vld [vmem:[#allocation2 + $0x1b4] ss:$8 sps:$4 sm:$0xff]  }
  0x4e   :  { %2001 = vmatprep.subr.bf16.mxu0 %v2790_v3  ;;  %v2865_v3 = vld [vmem:[#allocation2 + $0x5b4] ss:$8 sps:$4 sm:$0xff]  }
  0x50   :  { %1790 = vmatpush1.bf16.msra.mxu1 %v2792_v4  ;;  %v2860_v4 = vld [vmem:[#allocation2 + $0x1b0] ss:$8 sps:$4 sm:$0xff]  }
  0x51   :  { %2002 = vmatpush1.bf16.msra.mxu0 %v2793_v5  ;;  %1812 = vmatprep.subr.bf16.mxu1 %v2796_v6  ;;  %v2863_v5 = vld [vmem:[#allocation2 + $0x5b0] ss:$8 sps:$4 sm:$0xff]   ;;  %v2868_v6 = vld [vmem:[#allocation2 + $0x1c4] ss:$8 sps:$4 sm:$0xff]  }
  0x52   :  { %2024 = vmatprep.subr.bf16.mxu0 %v2799_v7  ;;  %v2871_v7 = vld [vmem:[#allocation2 + $0x5c4] ss:$8 sps:$4 sm:$0xff]  }
  0x53   :  { %1792 = vmatmul.mubr.bf16.vlgmr.msra.gmra.mrb[0].mxu1 %v2343_v8  ;;  %v2866_v8 = vld [vmem:[#allocation2 + $0x1c0] ss:$8 sps:$4 sm:$0xff]  }
  0x54   :  { %2004 = vmatmul.mubr.bf16.vlgmr.msra.gmra.mrb[0].mxu0 %v2351_v10  ;;  %1813 = vmatpush1.bf16.msra.mxu1 %v2794_v9  ;;  %v2869_v9 = vld [vmem:[#allocation2 + $0x5c0] ss:$8 sps:$4 sm:$0xff]   ;;  %v2874_v10 = vld [vmem:[#allocation2 + $0x1d4] ss:$8 sps:$4 sm:$0xff]  }
  0x55   :  { %2025 = vmatpush1.bf16.msra.mxu0 %v2797_v11  ;;  %1814 = vmatprep.subr.bf16.mxu1 %v2802_v12  ;;  %v2877_v11 = vld [vmem:[#allocation2 + $0x5d4] ss:$8 sps:$4 sm:$0xff]   ;;  %v2872_v12 = vld [vmem:[#allocation2 + $0x1d0] ss:$8 sps:$4 sm:$0xff]  }
  0x56   :  { %2026 = vmatprep.subr.bf16.mxu0 %v2805_v13  ;;  %1801 = vmatprep.mubr.bf16.mxu1 %v2360_v33  ;;  %v2875_v13 = vld [vmem:[#allocation2 + $0x5d0] ss:$8 sps:$4 sm:$0xff]   ;;  %v60_v33 = vld [vmem:[%s3312_s0 + $0xe8] sm:$0xff] }
  0x57   :  { %2013 = vmatprep.mubr.bf16.mxu0 %v2368_v39  ;;  %v2907_v39 = vld [vmem:[#allocation2 + $0x624] ss:$8 sps:$4 sm:$0xff]  }
  0x58   :  { %1815 = vmatpush1.bf16.msra.mxu1 %v2800_v14  ;;  %v2880_v14 = vld [vmem:[#allocation2 + $0x1e4] ss:$8 sps:$4 sm:$0xff]  }
  0x59   :  { %2027 = vmatpush1.bf16.msra.mxu0 %v2803_v15  ;;  %1816 = vmatprep.subr.bf16.mxu1 %v2808_v16  ;;  %v2883_v15 = vld [vmem:[#allocation2 + $0x5e4] ss:$8 sps:$4 sm:$0xff]   ;;  %v2878_v16 = vld [vmem:[#allocation2 + $0x1e0] ss:$8 sps:$4 sm:$0xff]  }
  0x5a   :  { %2028 = vmatprep.subr.bf16.mxu0 %v2811_v17  ;;  %v2881_v17 = vld [vmem:[#allocation2 + $0x5e0] ss:$8 sps:$4 sm:$0xff]  }
  0x5b   :  { %1802 = vmatmul.mubr.bf16.gmra.mrb[4].mxu1 %v2359_v37  ;;  %v2899_v37 = vld [vmem:[#allocation2 + $0x610] ss:$8 sps:$4 sm:$0xff]  }
  0x5c   :  { %1817 = vmatpush1.bf16.msra.mxu1 %v2806_v18  ;;  %2014 = vmatmul.mubr.bf16.gmra.mrb[4].mxu0 %v2367_v40  ;;  %v2886_v18 = vld [vmem:[#allocation2 + $0x1f4] ss:$8 sps:$4 sm:$0xff]   ;;  %v2902_v40 = vld [vmem:[#allocation2 + $0x220] ss:$8 sps:$4 sm:$0xff]  }
  0x5d   :  { %2029 = vmatpush1.bf16.msra.mxu0 %v2809_v19  ;;  %1818 = vmatprep.subr.bf16.mxu1 %v2814_v20  ;;  %v2889_v19 = vld [vmem:[#allocation2 + $0x5f4] ss:$8 sps:$4 sm:$0xff]   ;;  %v2884_v20 = vld [vmem:[#allocation2 + $0x1f0] ss:$8 sps:$4 sm:$0xff]  }
  0x5e   :  { %2030 = vmatprep.subr.bf16.mxu0 %v2817_v21  ;;  %1844 = vmatprep.mubr.bf16.mxu1 %v2346_v48  ;;  %v2887_v21 = vld [vmem:[#allocation2 + $0x5f0] ss:$8 sps:$4 sm:$0xff]   ;;  %v2910_v48 = vld [vmem:[#allocation2 + $0x234] ss:$8 sps:$4 sm:$0xff]  }
  0x5f   :  { %2056 = vmatprep.mubr.bf16.mxu0 %v2354_v53  ;;  %v2911_v53 = vld [vmem:[#allocation2 + $0x630] ss:$8 sps:$4 sm:$0xff]  }
  0x60   :  { %1819 = vmatpush1.bf16.msra.mxu1 %v2812_v22  ;;  %v2892_v22 = vld [vmem:[#allocation2 + $0x204] ss:$8 sps:$4 sm:$0xff]  }
  0x61   :  { %2031 = vmatpush1.bf16.msra.mxu0 %v2815_v23  ;;  %1820 = vmatprep.subr.bf16.mxu1 %v2820_v24  ;;  %v2895_v23 = vld [vmem:[#allocation2 + $0x604] ss:$8 sps:$4 sm:$0xff]   ;;  %v2890_v24 = vld [vmem:[#allocation2 + $0x200] ss:$8 sps:$4 sm:$0xff]  }
  0x62   :  { %2032 = vmatprep.subr.bf16.mxu0 %v2823_v25  ;;  %v2893_v25 = vld [vmem:[#allocation2 + $0x600] ss:$8 sps:$4 sm:$0xff]  }
  0x64   :  { %1821 = vmatpush1.bf16.msra.mxu1 %v2818_v26  ;;  %v48_v26 = vld [vmem:[%s3312_s0 + $0x88] sm:$0xff] }
  0x65   :  { %2033 = vmatpush1.bf16.msra.mxu0 %v2821_v27  ;;  %1822 = vmatprep.subr.bf16.mxu1 %v2826_v28  ;;  %v2345_v27 = vcombine.low %v3177_v44, %v3182_v45  ;;  %v2353_v28 = vcombine.low %v3189_v49, %v3194_v50  ;;  %v3222_v45 = vld [vmem:[%s3312_s0 + $0x50] sm:$0xff] }
  0x66   :  { %2034 = vmatprep.subr.bf16.mxu0 %v2829_v29  ;;  %v56_v29 = vld [vmem:[%s3312_s0 + $0xc8] sm:$0xff]  ;;  %v2913_v49 = vld [vmem:[#allocation2 + $0x634] ss:$8 sps:$4 sm:$0xff]  }
  0x68   :  { %1823 = vmatpush1.bf16.msra.mxu1 %v2824_v32  ;;  %v52_v32 = vld [vmem:[%s3312_s0 + $0xa8] sm:$0xff] }
  0x69   :  { %2035 = vmatpush1.bf16.msra.mxu0 %v2827_v34  ;;  %1824 = vmatprep.subr.bf16.mxu1 %v2832_v38  ;;  %v2362_v34 = vcombine.high %v48_v26, %v56_v29  ;;  %v2370_v35 = vcombine.high %v52_v32, %v60_v33  ;;  %v2904_v38 = vld [vmem:[#allocation2 + $0x224] ss:$8 sps:$4 sm:$0xff]   ;;  %v2369_v44 = vcombine.low %v52_v32, %v60_v33  ;;  %v2974_v32 = vld [vmem:[#allocation2 + $0x2e0] ss:$8 sps:$4 sm:$0xff]  }
  0x6a   :  { %2036 = vmatprep.subr.bf16.mxu0 %v2835_v41  ;;  %v2905_v41 = vld [vmem:[#allocation2 + $0x620] ss:$8 sps:$4 sm:$0xff]  }
  0x6b   :  { %v2977_v33 = vld [vmem:[#allocation2 + $0x6e0] ss:$8 sps:$4 sm:$0xff]  }
  0x6c   :  { %1825 = vmatpush1.bf16.msra.mxu1 %v2830_v42  ;;  %v3217_v42 = vld [vmem:[%s3312_s0 + $0x10] sm:$0xff] }
  0x6d   :  { %2037 = vmatpush1.bf16.msra.mxu0 %v2833_v43  ;;  %1826 = vmatprep.subr.bf16.mxu1 %v2838_v46  ;;  %v2361_v43 = vcombine.low %v48_v26, %v56_v29  ;;  %v3227_v46 = vld [vmem:[%s3312_s0 + $0x30] sm:$0xff]  ;;  %v2348_v50 = vcombine.high %v3217_v42, %v3222_v45 }
  0x6e   :  { %2038 = vmatprep.subr.bf16.mxu0 %v2841_v47  ;;  %v3232_v47 = vld [vmem:[%s3312_s0 + $0x70] sm:$0xff] }
  0x6f   :  { %v2970_v26 = vld [vmem:[#allocation2 + $0x2d4] ss:$8 sps:$4 sm:$0xff]   ;;  %v2971_v29 = vld [vmem:[#allocation2 + $0x6d0] ss:$8 sps:$4 sm:$0xff]  }
  0x70   :  { %1827 = vmatpush1.bf16.msra.mxu1 %v2836_v51  ;;  %v2356_v51 = vcombine.high %v3227_v46, %v3232_v47 }
  0x71   :  { %2039 = vmatpush1.bf16.msra.mxu0 %v2839_v52  ;;  %1828 = vmatprep.subr.bf16.mxu1 %v2844_v54  ;;  %v2908_v52 = vld [vmem:[#allocation2 + $0x230] ss:$8 sps:$4 sm:$0xff]   ;;  %v2916_v54 = vld [vmem:[#allocation2 + $0x244] ss:$8 sps:$4 sm:$0xff]  }
  0x72   :  { %2040 = vmatprep.subr.bf16.mxu0 %v2847_v55  ;;  %v2919_v55 = vld [vmem:[#allocation2 + $0x644] ss:$8 sps:$4 sm:$0xff]  }
  0x74   :  { %1829 = vmatpush1.bf16.msra.mxu1 %v2842_v56  ;;  %v2914_v56 = vld [vmem:[#allocation2 + $0x240] ss:$8 sps:$4 sm:$0xff]  }
  0x75   :  { %2041 = vmatpush1.bf16.msra.mxu0 %v2845_v57  ;;  %1830 = vmatprep.subr.bf16.mxu1 %v2850_v58  ;;  %v2917_v57 = vld [vmem:[#allocation2 + $0x640] ss:$8 sps:$4 sm:$0xff]   ;;  %v2922_v58 = vld [vmem:[#allocation2 + $0x254] ss:$8 sps:$4 sm:$0xff]  }
  0x76   :  { %2042 = vmatprep.subr.bf16.mxu0 %v2853_v59  ;;  %v2925_v59 = vld [vmem:[#allocation2 + $0x654] ss:$8 sps:$4 sm:$0xff]  }
  0x78   :  { %1831 = vmatpush1.bf16.msra.mxu1 %v2848_v60  ;;  %v2920_v60 = vld [vmem:[#allocation2 + $0x250] ss:$8 sps:$4 sm:$0xff]  }
  0x79   :  { %2043 = vmatpush1.bf16.msra.mxu0 %v2851_v61  ;;  %1832 = vmatprep.subr.bf16.mxu1 %v2856_v62  ;;  %v2923_v61 = vld [vmem:[#allocation2 + $0x650] ss:$8 sps:$4 sm:$0xff]   ;;  %v2928_v62 = vld [vmem:[#allocation2 + $0x264] ss:$8 sps:$4 sm:$0xff]  }
  0x7a   :  { %2044 = vmatprep.subr.bf16.mxu0 %v2859_v63  ;;  %v2931_v63 = vld [vmem:[#allocation2 + $0x664] ss:$8 sps:$4 sm:$0xff]  }
  0x7c   :  { %1833 = vmatpush1.bf16.msra.mxu1 %v2854_v0  ;;  %v2926_v0 = vld [vmem:[#allocation2 + $0x260] ss:$8 sps:$4 sm:$0xff]  }
  0x7d   :  { %2045 = vmatpush1.bf16.msra.mxu0 %v2857_v1  ;;  %1834 = vmatprep.subr.bf16.mxu1 %v2862_v2  ;;  %v2929_v1 = vld [vmem:[#allocation2 + $0x660] ss:$8 sps:$4 sm:$0xff]   ;;  %v2934_v2 = vld [vmem:[#allocation2 + $0x274] ss:$8 sps:$4 sm:$0xff]  }
  0x7e   :  { %2046 = vmatprep.subr.bf16.mxu0 %v2865_v3  ;;  %v2937_v3 = vld [vmem:[#allocation2 + $0x674] ss:$8 sps:$4 sm:$0xff]  }
  0x80   :  { %1835 = vmatpush1.bf16.msra.mxu1 %v2860_v4  ;;  %v2932_v4 = vld [vmem:[#allocation2 + $0x270] ss:$8 sps:$4 sm:$0xff]  }
  0x81   :  { %2047 = vmatpush1.bf16.msra.mxu0 %v2863_v5  ;;  %1836 = vmatprep.subr.bf16.mxu1 %v2868_v6  ;;  %v2935_v5 = vld [vmem:[#allocation2 + $0x670] ss:$8 sps:$4 sm:$0xff]   ;;  %v2940_v6 = vld [vmem:[#allocation2 + $0x284] ss:$8 sps:$4 sm:$0xff]  }
  0x82   :  { %2048 = vmatprep.subr.bf16.mxu0 %v2871_v7  ;;  %v2943_v7 = vld [vmem:[#allocation2 + $0x684] ss:$8 sps:$4 sm:$0xff]  }
  0x84   :  { %1837 = vmatpush1.bf16.msra.mxu1 %v2866_v8  ;;  %v2938_v8 = vld [vmem:[#allocation2 + $0x280] ss:$8 sps:$4 sm:$0xff]  }
  0x85   :  { %2049 = vmatpush1.bf16.msra.mxu0 %v2869_v9  ;;  %1838 = vmatprep.subr.bf16.mxu1 %v2874_v10  ;;  %v2941_v9 = vld [vmem:[#allocation2 + $0x680] ss:$8 sps:$4 sm:$0xff]   ;;  %v2946_v10 = vld [vmem:[#allocation2 + $0x294] ss:$8 sps:$4 sm:$0xff]  }
  0x86   :  { %2050 = vmatprep.subr.bf16.mxu0 %v2877_v11  ;;  %v2949_v11 = vld [vmem:[#allocation2 + $0x694] ss:$8 sps:$4 sm:$0xff]  }
  0x88   :  { %1839 = vmatpush1.bf16.msra.mxu1 %v2872_v12  ;;  %v2944_v12 = vld [vmem:[#allocation2 + $0x290] ss:$8 sps:$4 sm:$0xff]  }
  0x89   :  { %2051 = vmatpush1.bf16.msra.mxu0 %v2875_v13  ;;  %1840 = vmatprep.subr.bf16.mxu1 %v2880_v14  ;;  %v2947_v13 = vld [vmem:[#allocation2 + $0x690] ss:$8 sps:$4 sm:$0xff]   ;;  %v2952_v14 = vld [vmem:[#allocation2 + $0x2a4] ss:$8 sps:$4 sm:$0xff]  }
  0x8a   :  { %2052 = vmatprep.subr.bf16.mxu0 %v2883_v15  ;;  %v2955_v15 = vld [vmem:[#allocation2 + $0x6a4] ss:$8 sps:$4 sm:$0xff]  }
  0x8c   :  { %1841 = vmatpush1.bf16.msra.mxu1 %v2878_v16  ;;  %v2950_v16 = vld [vmem:[#allocation2 + $0x2a0] ss:$8 sps:$4 sm:$0xff]  }
  0x8d   :  { %2053 = vmatpush1.bf16.msra.mxu0 %v2881_v17  ;;  %1842 = vmatprep.subr.bf16.mxu1 %v2886_v18  ;;  %v2953_v17 = vld [vmem:[#allocation2 + $0x6a0] ss:$8 sps:$4 sm:$0xff]   ;;  %v2958_v18 = vld [vmem:[#allocation2 + $0x2b4] ss:$8 sps:$4 sm:$0xff]  }
  0x8e   :  { %2054 = vmatprep.subr.bf16.mxu0 %v2889_v19  ;;  %v2961_v19 = vld [vmem:[#allocation2 + $0x6b4] ss:$8 sps:$4 sm:$0xff]  }
  0x90   :  { %1843 = vmatpush1.bf16.msra.mxu1 %v2884_v20  ;;  %v2956_v20 = vld [vmem:[#allocation2 + $0x2b0] ss:$8 sps:$4 sm:$0xff]  }
  0x91   :  { %2055 = vmatpush1.bf16.msra.mxu0 %v2887_v21  ;;  %1865 = vmatprep.subr.bf16.mxu1 %v2892_v22  ;;  %v2959_v21 = vld [vmem:[#allocation2 + $0x6b0] ss:$8 sps:$4 sm:$0xff]   ;;  %v2964_v22 = vld [vmem:[#allocation2 + $0x2c4] ss:$8 sps:$4 sm:$0xff]  }
  0x92   :  { %2077 = vmatprep.subr.bf16.mxu0 %v2895_v23  ;;  %v2967_v23 = vld [vmem:[#allocation2 + $0x6c4] ss:$8 sps:$4 sm:$0xff]  }
  0x93   :  { %1845 = vmatmul.mubr.bf16.vlgmr.msra.gmra.mrb[0].mxu1 %v2345_v27  ;;  %v2973_v27 = vld [vmem:[#allocation2 + $0x6d4] ss:$8 sps:$4 sm:$0xff]  }
  0x94   :  { %2057 = vmatmul.mubr.bf16.vlgmr.msra.gmra.mrb[0].mxu0 %v2353_v28  ;;  %1866 = vmatpush1.bf16.msra.mxu1 %v2890_v24  ;;  %v2962_v24 = vld [vmem:[#allocation2 + $0x2c0] ss:$8 sps:$4 sm:$0xff]   ;;  %v2968_v28 = vld [vmem:[#allocation2 + $0x2d0] ss:$8 sps:$4 sm:$0xff]  }
  0x95   :  { %2078 = vmatpush1.bf16.msra.mxu0 %v2893_v25  ;;  %1867 = vmatprep.subr.bf16.mxu1 %v2898_v30  ;;  %v2965_v25 = vld [vmem:[#allocation2 + $0x6c0] ss:$8 sps:$4 sm:$0xff]   ;;  %v2976_v30 = vld [vmem:[#allocation2 + $0x2e4] ss:$8 sps:$4 sm:$0xff]  }
  0x96   :  { %2079 = vmatprep.subr.bf16.mxu0 %v2901_v31  ;;  %1854 = vmatprep.mubr.bf16.mxu1 %v2362_v34  ;;  %v2979_v31 = vld [vmem:[#allocation2 + $0x6e4] ss:$8 sps:$4 sm:$0xff]   ;;  %v2982_v34 = vld [vmem:[#allocation2 + $0x2f4] ss:$8 sps:$4 sm:$0xff]  }
  0x97   :  { %2066 = vmatprep.mubr.bf16.mxu0 %v2370_v35  ;;  %v2985_v35 = vld [vmem:[#allocation2 + $0x6f4] ss:$8 sps:$4 sm:$0xff]  }
  0x98   :  { %1868 = vmatpush1.bf16.msra.mxu1 %v2896_v36  ;;  %v2980_v36 = vld [vmem:[#allocation2 + $0x2f0] ss:$8 sps:$4 sm:$0xff]  }
  0x99   :  { %2080 = vmatpush1.bf16.msra.mxu0 %v2899_v37  ;;  %1869 = vmatprep.subr.bf16.mxu1 %v2904_v38  ;;  %v2983_v37 = vld [vmem:[#allocation2 + $0x6f0] ss:$8 sps:$4 sm:$0xff]   ;;  %v2988_v38 = vld [vmem:[#allocation2 + $0x304] ss:$8 sps:$4 sm:$0xff]  }
  0x9a   :  { %2081 = vmatprep.subr.bf16.mxu0 %v2907_v39  ;;  %v2991_v39 = vld [vmem:[#allocation2 + $0x704] ss:$8 sps:$4 sm:$0xff]  }
  0x9b   :  { %1855 = vmatmul.mubr.bf16.gmra.mrb[4].mxu1 %v2361_v43  ;;  %v2355_v43 = vcombine.low %v3227_v46, %v3232_v47 }
  0x9c   :  { %2067 = vmatmul.mubr.bf16.gmra.mrb[4].mxu0 %v2369_v44  ;;  %1870 = vmatpush1.bf16.msra.mxu1 %v2902_v40  ;;  %v49_v40 = vld [vmem:[%s3312_s0 + $0x90] sm:$0xff] }
  0x9d   :  { %2082 = vmatpush1.bf16.msra.mxu0 %v2905_v41  ;;  %1871 = vmatprep.subr.bf16.mxu1 %v2910_v48  ;;  %v2347_v41 = vcombine.low %v3217_v42, %v3222_v45  ;;  %v57_v44 = vld [vmem:[%s3312_s0 + $0xd0] sm:$0xff] }
  0x9e   :  { %2083 = vmatprep.subr.bf16.mxu0 %v2913_v49  ;;  %1897 = vmatprep.mubr.bf16.mxu1 %v2348_v50  ;;  %v53_v48 = vld [vmem:[%s3312_s0 + $0xb0] sm:$0xff]  ;;  %v2986_v50 = vld [vmem:[#allocation2 + $0x300] ss:$8 sps:$4 sm:$0xff]   ;;  %v2364_v46 = vcombine.high %v49_v40, %v57_v44 }
  0x9f   :  { %2109 = vmatprep.mubr.bf16.mxu0 %v2356_v51  ;;  %v61_v49 = vld [vmem:[%s3312_s0 + $0xf0] sm:$0xff]  ;;  %v2989_v51 = vld [vmem:[#allocation2 + $0x700] ss:$8 sps:$4 sm:$0xff]  }
  0xa0   :  { %1872 = vmatpush1.bf16.msra.mxu1 %v2908_v52  ;;  %v2994_v42 = vld [vmem:[#allocation2 + $0x314] ss:$8 sps:$4 sm:$0xff]   ;;  %v2372_v47 = vcombine.high %v53_v48, %v61_v49  ;;  %v2992_v52 = vld [vmem:[#allocation2 + $0x310] ss:$8 sps:$4 sm:$0xff]  }
  0xa1   :  { %2084 = vmatpush1.bf16.msra.mxu0 %v2911_v53  ;;  %1873 = vmatprep.subr.bf16.mxu1 %v2916_v54  ;;  %v2997_v45 = vld [vmem:[#allocation2 + $0x714] ss:$8 sps:$4 sm:$0xff]   ;;  %v2995_v53 = vld [vmem:[#allocation2 + $0x710] ss:$8 sps:$4 sm:$0xff]   ;;  %v3000_v54 = vld [vmem:[#allocation2 + $0x324] ss:$8 sps:$4 sm:$0xff]  }
  0xa2   :  { %2085 = vmatprep.subr.bf16.mxu0 %v2919_v55  ;;  %v3003_v55 = vld [vmem:[#allocation2 + $0x724] ss:$8 sps:$4 sm:$0xff]  }
  0xa4   :  { %1874 = vmatpush1.bf16.msra.mxu1 %v2914_v56  ;;  %v3257_v56 = vld [vmem:[%s3312_s0 + $0x18] sm:$0xff] }
  0xa5   :  { %2086 = vmatpush1.bf16.msra.mxu0 %v2917_v57  ;;  %1875 = vmatprep.subr.bf16.mxu1 %v2922_v58  ;;  %v2363_v57 = vcombine.low %v49_v40, %v57_v44  ;;  %v2371_v58 = vcombine.low %v53_v48, %v61_v49  ;;  %v3058_v40 = vld [vmem:[#allocation2 + $0x3c0] ss:$8 sps:$4 sm:$0xff]   ;;  %v3069_v44 = vld [vmem:[#allocation2 + $0x7d4] ss:$8 sps:$4 sm:$0xff]   ;;  %v3064_v48 = vld [vmem:[#allocation2 + $0x3d0] ss:$8 sps:$4 sm:$0xff]  }
  0xa6   :  { %2087 = vmatprep.subr.bf16.mxu0 %v2925_v59  ;;  %v3262_v59 = vld [vmem:[%s3312_s0 + $0x58] sm:$0xff] }
  0xa7   :  { %v3067_v49 = vld [vmem:[#allocation2 + $0x7d0] ss:$8 sps:$4 sm:$0xff]  }
  0xa8   :  { %1876 = vmatpush1.bf16.msra.mxu1 %v2920_v60  ;;  %v3267_v60 = vld [vmem:[%s3312_s0 + $0x38] sm:$0xff] }
  0xa9   :  { %2088 = vmatpush1.bf16.msra.mxu0 %v2923_v61  ;;  %1877 = vmatprep.subr.bf16.mxu1 %v2928_v62  ;;  %v3272_v61 = vld [vmem:[%s3312_s0 + $0x78] sm:$0xff]  ;;  %v2998_v62 = vld [vmem:[#allocation2 + $0x320] ss:$8 sps:$4 sm:$0xff]  }
  0xaa   :  { %2089 = vmatprep.subr.bf16.mxu0 %v2931_v63  ;;  %v3001_v63 = vld [vmem:[#allocation2 + $0x720] ss:$8 sps:$4 sm:$0xff]  }
  0xac   :  { %1878 = vmatpush1.bf16.msra.mxu1 %v2926_v0  ;;  %v3006_v0 = vld [vmem:[#allocation2 + $0x334] ss:$8 sps:$4 sm:$0xff]  }
  0xad   :  { %2090 = vmatpush1.bf16.msra.mxu0 %v2929_v1  ;;  %1879 = vmatprep.subr.bf16.mxu1 %v2934_v2  ;;  %v3009_v1 = vld [vmem:[#allocation2 + $0x734] ss:$8 sps:$4 sm:$0xff]   ;;  %v2350_v2 = vcombine.high %v3257_v56, %v3262_v59 }
  0xae   :  { %2091 = vmatprep.subr.bf16.mxu0 %v2937_v3  ;;  %v2358_v3 = vcombine.high %v3267_v60, %v3272_v61 }
  0xb0   :  { %1880 = vmatpush1.bf16.msra.mxu1 %v2932_v4  ;;  %v3004_v4 = vld [vmem:[#allocation2 + $0x330] ss:$8 sps:$4 sm:$0xff]  }
  0xb1   :  { %2092 = vmatpush1.bf16.msra.mxu0 %v2935_v5  ;;  %1881 = vmatprep.subr.bf16.mxu1 %v2940_v6  ;;  %v3007_v5 = vld [vmem:[#allocation2 + $0x730] ss:$8 sps:$4 sm:$0xff]   ;;  %v3012_v6 = vld [vmem:[#allocation2 + $0x344] ss:$8 sps:$4 sm:$0xff]  }
  0xb2   :  { %2093 = vmatprep.subr.bf16.mxu0 %v2943_v7  ;;  %v3015_v7 = vld [vmem:[#allocation2 + $0x744] ss:$8 sps:$4 sm:$0xff]  }
  0xb4   :  { %1882 = vmatpush1.bf16.msra.mxu1 %v2938_v8  ;;  %v3010_v8 = vld [vmem:[#allocation2 + $0x340] ss:$8 sps:$4 sm:$0xff]  }
  0xb5   :  { %2094 = vmatpush1.bf16.msra.mxu0 %v2941_v9  ;;  %1883 = vmatprep.subr.bf16.mxu1 %v2946_v10  ;;  %v3013_v9 = vld [vmem:[#allocation2 + $0x740] ss:$8 sps:$4 sm:$0xff]   ;;  %v3018_v10 = vld [vmem:[#allocation2 + $0x354] ss:$8 sps:$4 sm:$0xff]  }
  0xb6   :  { %2095 = vmatprep.subr.bf16.mxu0 %v2949_v11  ;;  %v3021_v11 = vld [vmem:[#allocation2 + $0x754] ss:$8 sps:$4 sm:$0xff]  }
  0xb8   :  { %1884 = vmatpush1.bf16.msra.mxu1 %v2944_v12  ;;  %v3016_v12 = vld [vmem:[#allocation2 + $0x350] ss:$8 sps:$4 sm:$0xff]  }
  0xb9   :  { %2096 = vmatpush1.bf16.msra.mxu0 %v2947_v13  ;;  %1885 = vmatprep.subr.bf16.mxu1 %v2952_v14  ;;  %v3019_v13 = vld [vmem:[#allocation2 + $0x750] ss:$8 sps:$4 sm:$0xff]   ;;  %v3024_v14 = vld [vmem:[#allocation2 + $0x364] ss:$8 sps:$4 sm:$0xff]  }
  0xba   :  { %2097 = vmatprep.subr.bf16.mxu0 %v2955_v15  ;;  %v3027_v15 = vld [vmem:[#allocation2 + $0x764] ss:$8 sps:$4 sm:$0xff]  }
  0xbc   :  { %1886 = vmatpush1.bf16.msra.mxu1 %v2950_v16  ;;  %v3022_v16 = vld [vmem:[#allocation2 + $0x360] ss:$8 sps:$4 sm:$0xff]  }
  0xbd   :  { %2098 = vmatpush1.bf16.msra.mxu0 %v2953_v17  ;;  %1887 = vmatprep.subr.bf16.mxu1 %v2958_v18  ;;  %v3025_v17 = vld [vmem:[#allocation2 + $0x760] ss:$8 sps:$4 sm:$0xff]   ;;  %v3030_v18 = vld [vmem:[#allocation2 + $0x374] ss:$8 sps:$4 sm:$0xff]  }
  0xbe   :  { %2099 = vmatprep.subr.bf16.mxu0 %v2961_v19  ;;  %v3033_v19 = vld [vmem:[#allocation2 + $0x774] ss:$8 sps:$4 sm:$0xff]  }
  0xc0   :  { %1888 = vmatpush1.bf16.msra.mxu1 %v2956_v20  ;;  %v3028_v20 = vld [vmem:[#allocation2 + $0x370] ss:$8 sps:$4 sm:$0xff]  }
  0xc1   :  { %2100 = vmatpush1.bf16.msra.mxu0 %v2959_v21  ;;  %1889 = vmatprep.subr.bf16.mxu1 %v2964_v22  ;;  %v3031_v21 = vld [vmem:[#allocation2 + $0x770] ss:$8 sps:$4 sm:$0xff]   ;;  %v3036_v22 = vld [vmem:[#allocation2 + $0x384] ss:$8 sps:$4 sm:$0xff]  }
  0xc2   :  { %2101 = vmatprep.subr.bf16.mxu0 %v2967_v23  ;;  %v3039_v23 = vld [vmem:[#allocation2 + $0x784] ss:$8 sps:$4 sm:$0xff]  }
  0xc4   :  { %1890 = vmatpush1.bf16.msra.mxu1 %v2962_v24  ;;  %v3034_v24 = vld [vmem:[#allocation2 + $0x380] ss:$8 sps:$4 sm:$0xff]  }
  0xc5   :  { %2102 = vmatpush1.bf16.msra.mxu0 %v2965_v25  ;;  %1891 = vmatprep.subr.bf16.mxu1 %v2970_v26  ;;  %v3037_v25 = vld [vmem:[#allocation2 + $0x780] ss:$8 sps:$4 sm:$0xff]   ;;  %v3042_v26 = vld [vmem:[#allocation2 + $0x394] ss:$8 sps:$4 sm:$0xff]  }
  0xc6   :  { %2103 = vmatprep.subr.bf16.mxu0 %v2973_v27  ;;  %v3045_v27 = vld [vmem:[#allocation2 + $0x794] ss:$8 sps:$4 sm:$0xff]  }
  0xc8   :  { %1892 = vmatpush1.bf16.msra.mxu1 %v2968_v28  ;;  %v3040_v28 = vld [vmem:[#allocation2 + $0x390] ss:$8 sps:$4 sm:$0xff]  }
  0xc9   :  { %2104 = vmatpush1.bf16.msra.mxu0 %v2971_v29  ;;  %1893 = vmatprep.subr.bf16.mxu1 %v2976_v30  ;;  %v3043_v29 = vld [vmem:[#allocation2 + $0x790] ss:$8 sps:$4 sm:$0xff]   ;;  %v3048_v30 = vld [vmem:[#allocation2 + $0x3a4] ss:$8 sps:$4 sm:$0xff]  }
  0xca   :  { %2105 = vmatprep.subr.bf16.mxu0 %v2979_v31  ;;  %v3051_v31 = vld [vmem:[#allocation2 + $0x7a4] ss:$8 sps:$4 sm:$0xff]  }
  0xcc   :  { %1894 = vmatpush1.bf16.msra.mxu1 %v2974_v32  ;;  %v3046_v32 = vld [vmem:[#allocation2 + $0x3a0] ss:$8 sps:$4 sm:$0xff]  }
  0xcd   :  { %2106 = vmatpush1.bf16.msra.mxu0 %v2977_v33  ;;  %1895 = vmatprep.subr.bf16.mxu1 %v2982_v34  ;;  %v3049_v33 = vld [vmem:[#allocation2 + $0x7a0] ss:$8 sps:$4 sm:$0xff]   ;;  %v3054_v34 = vld [vmem:[#allocation2 + $0x3b4] ss:$8 sps:$4 sm:$0xff]  }
  0xce   :  { %2107 = vmatprep.subr.bf16.mxu0 %v2985_v35  ;;  %v3057_v35 = vld [vmem:[#allocation2 + $0x7b4] ss:$8 sps:$4 sm:$0xff]  }
  0xd0   :  { %1896 = vmatpush1.bf16.msra.mxu1 %v2980_v36  ;;  %v3052_v36 = vld [vmem:[#allocation2 + $0x3b0] ss:$8 sps:$4 sm:$0xff]  }
  0xd1   :  { %2108 = vmatpush1.bf16.msra.mxu0 %v2983_v37  ;;  %1918 = vmatprep.subr.bf16.mxu1 %v2988_v38  ;;  %v3055_v37 = vld [vmem:[#allocation2 + $0x7b0] ss:$8 sps:$4 sm:$0xff]   ;;  %v3060_v38 = vld [vmem:[#allocation2 + $0x3c4] ss:$8 sps:$4 sm:$0xff]  }
  0xd2   :  { %2130 = vmatprep.subr.bf16.mxu0 %v2991_v39  ;;  %v3063_v39 = vld [vmem:[#allocation2 + $0x7c4] ss:$8 sps:$4 sm:$0xff]  }
  0xd3   :  { %1898 = vmatmul.mubr.bf16.vlgmr.msra.gmra.mrb[0].mxu1 %v2347_v41  ;;  %v3061_v41 = vld [vmem:[#allocation2 + $0x7c0] ss:$8 sps:$4 sm:$0xff]  }
  0xd4   :  { %2110 = vmatmul.mubr.bf16.vlgmr.msra.gmra.mrb[0].mxu0 %v2355_v43  ;;  %1919 = vmatpush1.bf16.msra.mxu1 %v2986_v50  ;;  %v3066_v43 = vld [vmem:[#allocation2 + $0x3d4] ss:$8 sps:$4 sm:$0xff]   ;;  %v3072_v50 = vld [vmem:[#allocation2 + $0x3e4] ss:$8 sps:$4 sm:$0xff]  }
  0xd5   :  { %2131 = vmatpush1.bf16.msra.mxu0 %v2989_v51  ;;  %1920 = vmatprep.subr.bf16.mxu1 %v2994_v42  ;;  %v3075_v51 = vld [vmem:[#allocation2 + $0x7e4] ss:$8 sps:$4 sm:$0xff]   ;;  %v3070_v42 = vld [vmem:[#allocation2 + $0x3e0] ss:$8 sps:$4 sm:$0xff]  }
  0xd6   :  { %2132 = vmatprep.subr.bf16.mxu0 %v2997_v45  ;;  %1907 = vmatprep.mubr.bf16.mxu1 %v2364_v46  ;;  %v3073_v45 = vld [vmem:[#allocation2 + $0x7e0] ss:$8 sps:$4 sm:$0xff]   ;;  %v3078_v46 = vld [vmem:[#allocation2 + $0x3f4] ss:$8 sps:$4 sm:$0xff]  }
  0xd7   :  { %2119 = vmatprep.mubr.bf16.mxu0 %v2372_v47  ;;  %v3081_v47 = vld [vmem:[#allocation2 + $0x7f4] ss:$8 sps:$4 sm:$0xff]  }
  0xd8   :  { %1921 = vmatpush1.bf16.msra.mxu1 %v2992_v52  ;;  %v3076_v52 = vld [vmem:[#allocation2 + $0x3f0] ss:$8 sps:$4 sm:$0xff]  }
  0xd9   :  { %2133 = vmatpush1.bf16.msra.mxu0 %v2995_v53  ;;  %1922 = vmatprep.subr.bf16.mxu1 %v3000_v54  ;;  %v3079_v53 = vld [vmem:[#allocation2 + $0x7f0] ss:$8 sps:$4 sm:$0xff]  }
  0xda   :  { %2134 = vmatprep.subr.bf16.mxu0 %v3003_v55  ;;  %v50_v54 = vld [vmem:[%s3312_s0 + $0x98] sm:$0xff] }
  0xdb   :  { %1908 = vmatmul.mubr.bf16.gmra.mrb[4].mxu1 %v2363_v57  ;;  %v58_v55 = vld [vmem:[%s3312_s0 + $0xd8] sm:$0xff] }
  0xdc   :  { %2120 = vmatmul.mubr.bf16.gmra.mrb[4].mxu0 %v2371_v58  ;;  %1923 = vmatpush1.bf16.msra.mxu1 %v2998_v62  ;;  %v54_v57 = vld [vmem:[%s3312_s0 + $0xb8] sm:$0xff]  ;;  %v2349_v62 = vcombine.low %v3257_v56, %v3262_v59 }
  0xdd   :  { %2135 = vmatpush1.bf16.msra.mxu0 %v3001_v63  ;;  %1924 = vmatprep.subr.bf16.mxu1 %v3006_v0  ;;  %v62_v58 = vld [vmem:[%s3312_s0 + $0xf8] sm:$0xff]  ;;  %v2357_v63 = vcombine.low %v3267_v60, %v3272_v61  ;;  %v2366_v0 = vcombine.high %v50_v54, %v58_v55 }
  0xde   :  { %2136 = vmatprep.subr.bf16.mxu0 %v3009_v1  ;;  %1950 = vmatprep.mubr.bf16.mxu1 %v2350_v2  ;;  %v2374_v1 = vcombine.high %v54_v57, %v62_v58  ;;  %v2365_v2 = vcombine.low %v50_v54, %v58_v55 }
  0xdf   :  { %2162 = vmatprep.mubr.bf16.mxu0 %v2358_v3  ;;  %v2373_v3 = vcombine.low %v54_v57, %v62_v58 }
  0xe0   :  { %1925 = vmatpush1.bf16.msra.mxu1 %v3004_v4 }
  0xe1   :  { %2137 = vmatpush1.bf16.msra.mxu0 %v3007_v5  ;;  %1926 = vmatprep.subr.bf16.mxu1 %v3012_v6 }
  0xe2   :  { %2138 = vmatprep.subr.bf16.mxu0 %v3015_v7 }
  0xe4   :  { %1927 = vmatpush1.bf16.msra.mxu1 %v3010_v8 }
  0xe5   :  { %2139 = vmatpush1.bf16.msra.mxu0 %v3013_v9  ;;  %1928 = vmatprep.subr.bf16.mxu1 %v3018_v10 }
  0xe6   :  { %2140 = vmatprep.subr.bf16.mxu0 %v3021_v11 }
  0xe8   :  { %1929 = vmatpush1.bf16.msra.mxu1 %v3016_v12 }
  0xe9   :  { %2141 = vmatpush1.bf16.msra.mxu0 %v3019_v13  ;;  %1930 = vmatprep.subr.bf16.mxu1 %v3024_v14 }
  0xea   :  { %2142 = vmatprep.subr.bf16.mxu0 %v3027_v15 }
  0xec   :  { %1931 = vmatpush1.bf16.msra.mxu1 %v3022_v16 }
  0xed   :  { %2143 = vmatpush1.bf16.msra.mxu0 %v3025_v17  ;;  %1932 = vmatprep.subr.bf16.mxu1 %v3030_v18 }
  0xee   :  { %2144 = vmatprep.subr.bf16.mxu0 %v3033_v19 }
  0xf0   :  { %1933 = vmatpush1.bf16.msra.mxu1 %v3028_v20 }
  0xf1   :  { %2145 = vmatpush1.bf16.msra.mxu0 %v3031_v21  ;;  %1934 = vmatprep.subr.bf16.mxu1 %v3036_v22 }
  0xf2   :  { %2146 = vmatprep.subr.bf16.mxu0 %v3039_v23 }
  0xf4   :  { %1935 = vmatpush1.bf16.msra.mxu1 %v3034_v24 }
  0xf5   :  { %2147 = vmatpush1.bf16.msra.mxu0 %v3037_v25  ;;  %1936 = vmatprep.subr.bf16.mxu1 %v3042_v26 }
  0xf6   :  { %2148 = vmatprep.subr.bf16.mxu0 %v3045_v27 }
  0xf8   :  { %1937 = vmatpush1.bf16.msra.mxu1 %v3040_v28 }
  0xf9   :  { %2149 = vmatpush1.bf16.msra.mxu0 %v3043_v29  ;;  %1938 = vmatprep.subr.bf16.mxu1 %v3048_v30 }
  0xfa   :  { %2150 = vmatprep.subr.bf16.mxu0 %v3051_v31 }
  0xfc   :  { %1939 = vmatpush1.bf16.msra.mxu1 %v3046_v32 }
  0xfd   :  { %2151 = vmatpush1.bf16.msra.mxu0 %v3049_v33  ;;  %1940 = vmatprep.subr.bf16.mxu1 %v3054_v34 }
  0xfe   :  { %2152 = vmatprep.subr.bf16.mxu0 %v3057_v35 }
 0x100   :  { %1941 = vmatpush1.bf16.msra.mxu1 %v3052_v36 }
 0x101   :  { %2153 = vmatpush1.bf16.msra.mxu0 %v3055_v37  ;;  %1942 = vmatprep.subr.bf16.mxu1 %v3060_v38 }
 0x102   :  { %2154 = vmatprep.subr.bf16.mxu0 %v3063_v39 }
 0x104   :  { %1943 = vmatpush1.bf16.msra.mxu1 %v3058_v40 }
 0x105   :  { %2155 = vmatpush1.bf16.msra.mxu0 %v3061_v41  ;;  %1944 = vmatprep.subr.bf16.mxu1 %v3066_v43 }
 0x106   :  { %2156 = vmatprep.subr.bf16.mxu0 %v3069_v44 }
 0x108   :  { %1945 = vmatpush1.bf16.msra.mxu1 %v3064_v48 }
 0x109   :  { %2157 = vmatpush1.bf16.msra.mxu0 %v3067_v49  ;;  %1946 = vmatprep.subr.bf16.mxu1 %v3072_v50 }
 0x10a   :  { %2158 = vmatprep.subr.bf16.mxu0 %v3075_v51 }
 0x10c   :  { %1947 = vmatpush1.bf16.msra.mxu1 %v3070_v42 }
 0x10d   :  { %2159 = vmatpush1.bf16.msra.mxu0 %v3073_v45  ;;  %1948 = vmatprep.subr.bf16.mxu1 %v3078_v46 }
 0x10e   :  { %2160 = vmatprep.subr.bf16.mxu0 %v3081_v47 }
 0x110   :  { %1949 = vmatpush1.bf16.msra.mxu1 %v3076_v52 }
 0x111   :  { %2161 = vmatpush1.bf16.msra.mxu0 %v3079_v53 }
 0x113   :  { %1951 = vmatmul.mubr.bf16.vlgmr.msra.gmra.mrb[0].mxu1 %v2349_v62 }
 0x114   :  { %2163 = vmatmul.mubr.bf16.vlgmr.msra.gmra.mrb[0].mxu0 %v2357_v63  ;;  %1960 = vmatprep.mubr.bf16.mxu1 %v2366_v0 }
 0x115   :  { %2172 = vmatprep.mubr.bf16.mxu0 %v2374_v1 }
 0x11b   :  { %1961 = vmatmul.mubr.bf16.gmra.mrb[4].mxu1 %v2365_v2 }
 0x11c   :  { %2173 = vmatmul.mubr.bf16.gmra.mrb[4].mxu0 %v2373_v3 }
 0x1e6   :  { %v1952_v4 = vpop.f32.mrb[0].mxu1 }
 0x1e7   :  { %v2164_v5 = vpop.f32.mrb[0].mxu0  ;;  %v1954_v7 = vpop.f32.mrb[1].mxu1 }
 0x1e8   :  { %v2639_v6 = vadd.f32 %v2164_v5, %v1952_v4  ;;  %v2166_v56 = vpop.f32.mrb[1].mxu0  ;;  %v1956_v8 = vpop.f32.mrb[2].mxu1 }
 0x1e9   :  { %v2640_v59 = vadd.f32 %v2166_v56, %v1954_v7  ;;  %v2168_v60 = vpop.f32.mrb[2].mxu0  ;;  %v1958_v9 = vpop.f32.mrb[3].mxu1 }
 0x1ea   :  { %v2641_v61 = vadd.f32 %v2168_v60, %v1956_v8  ;;  %v2170_v10 = vpop.f32.mrb[3].mxu0 }
 0x1eb   :  { %v2642_v11 = vadd.f32 %v2170_v10, %v1958_v9 }
 0x1ec   :  { %v2183_v12 = vadd.f32 %v2641_v61, %v2639_v6 }
 0x1ed   :  { %v2192_v13 = vadd.f32 %v2642_v11, %v2640_v59 }
 0x1ee   :  { %v1962_v14 = vpop.f32.mrb[4].mxu1 }
 0x1ef   :  { %v2174_v15 = vpop.f32.mrb[4].mxu0  ;;  %v1964_v17 = vpop.f32.mrb[5].mxu1 }
 0x1f0   :  { %v2643_v16 = vadd.f32 %v2174_v15, %v1962_v14  ;;  %v2176_v18 = vpop.f32.mrb[5].mxu0  ;;  %v1966_v20 = vpop.f32.mrb[6].mxu1 }
 0x1f1   :  { %v2644_v19 = vadd.f32 %v2176_v18, %v1964_v17  ;;  %v2178_v21 = vpop.f32.mrb[6].mxu0  ;;  %v1968_v24 = vpop.f32.mrb[7].mxu1 }
 0x1f2   :  { %v2184_v22 = vadd.f32 %v2643_v16, %v2183_v12  ;;  %v2645_v23 = vadd.f32 %v2178_v21, %v1966_v20  ;;  %v2180_v25 = vpop.f32.mrb[7].mxu0  ;;  %v2244_v21 = vld [vmem:[%s3314_s2] sm:$0x3] }
 0x1f3   :  { %v2193_v26 = vadd.f32 %v2644_v19, %v2192_v13  ;;  %v2646_v27 = vadd.f32 %v2180_v25, %v1968_v24  ;;  %v2246_v13 = vlaneseq }
 0x1f4   :  { %v2185_v28 = vadd.f32 %v2645_v23, %v2184_v22 }
 0x1f5   :  { %v2194_v29 = vadd.f32 %v2646_v27, %v2193_v26  ;;  %v2247_v18 = vshrl.u32 %v2246_v13, 7  ;;  %v2274_v26 = vld [vmem:[%s3315_s3] sm:$0x3] }
 0x1f6   :  { %v2186_v30 = vrot.slane %v2185_v28, 4 }
 0x1f7   :  { %v2195_v31 = vrot.slane %v2194_v29, 4  ;;  %v2248_v20 = vsub.s32 0, %v2247_v18  ;;  %v2252_v22 = vsub.s32 1, %v2247_v18 }
 0x1f8   :  { %v2187_v32 = vadd.f32 %v2186_v30, %v2185_v28 }
 0x1f9   :  { %v2196_v33 = vadd.f32 %v2195_v31, %v2194_v29  ;;  %v2253_v24 = vrot.slane %v2244_v21, %v2252_v22  ;;  %v2279_v31 = vrot.slane %v2274_v26, %v2248_v20 }
 0x1fa   :  { %v2188_v34 = vrot.slane %v2187_v32, 2 }
 0x1fb   :  { %v2197_v35 = vrot.slane %v2196_v33, 2 }
 0x1fc   :  { %v2189_v36 = vadd.f32 %v2188_v34, %v2187_v32 }
 0x1fd   :  { %v2198_v37 = vadd.f32 %v2197_v35, %v2196_v33  ;;  %v2283_v33 = vrot.slane %v2274_v26, %v2252_v22 }
 0x1fe   :  { %v2190_v38 = vrot.slane %v2189_v36, 1 }
 0x1ff   :  { %v2199_v39 = vrot.slane %v2198_v37, 1 }
 0x200   :  { %v2191_v40 = vadd.f32 %v2190_v38, %v2189_v36 }
 0x201   :  { %v2200_v41 = vadd.f32 %v2199_v39, %v2198_v37 }
 0x202   :  { %v2202_v43 = vmul.f32 0.03125, %v2191_v40 }
 0x203   :  { %v2203_v44 = vmul.f32 0.03125, %v2200_v41 }
 0x204   :  { %v2204_v48 = vsub.f32 %v2639_v6, %v2202_v43  ;;  %v2206_v49 = vsub.f32 %v2641_v61, %v2202_v43  ;;  %v2208_v50 = vsub.f32 %v2643_v16, %v2202_v43  ;;  %v2210_v51 = vsub.f32 %v2645_v23, %v2202_v43 }
 0x205   :  { %v2205_v42 = vsub.f32 %v2640_v59, %v2203_v44  ;;  %v2207_v45 = vsub.f32 %v2642_v11, %v2203_v44  ;;  %v2209_v46 = vsub.f32 %v2644_v19, %v2203_v44  ;;  %v2211_v47 = vsub.f32 %v2646_v27, %v2203_v44 }
 0x206   :  { %v2212_v52 = vmul.f32 %v2204_v48, %v2204_v48  ;;  %v2214_v53 = vmul.f32 %v2206_v49, %v2206_v49  ;;  %v2216_v57 = vmul.f32 %v2208_v50, %v2208_v50  ;;  %v2218_v0 = vmul.f32 %v2210_v51, %v2210_v51 }
 0x207   :  { %v2213_v54 = vmul.f32 %v2205_v42, %v2205_v42  ;;  %v2215_v55 = vmul.f32 %v2207_v45, %v2207_v45  ;;  %v2217_v62 = vmul.f32 %v2209_v46, %v2209_v46  ;;  %v2219_v2 = vmul.f32 %v2211_v47, %v2211_v47 }
 0x208   :  { %v2220_v58 = vadd.f32 %v2214_v53, %v2212_v52  ;;  %v2249_v23 = vrot.slane %v2244_v21, %v2248_v20 }
 0x209   :  { %v2229_v63 = vadd.f32 %v2215_v55, %v2213_v54 }
 0x20a   :  { %v2221_v1 = vadd.f32 %v2220_v58, %v2216_v57 }
 0x20b   :  { %v2230_v3 = vadd.f32 %v2229_v63, %v2217_v62 }
 0x20c   :  { %v2222_v4 = vadd.f32 %v2221_v1, %v2218_v0 }
 0x20d   :  { %v2231_v5 = vadd.f32 %v2230_v3, %v2219_v2 }
 0x20e   :  { %v2223_v6 = vrot.slane %v2222_v4, 4 }
 0x20f   :  { %v2232_v7 = vrot.slane %v2231_v5, 4 }
 0x210   :  { %v2224_v56 = vadd.f32 %v2223_v6, %v2222_v4 }
 0x211   :  { %v2233_v59 = vadd.f32 %v2232_v7, %v2231_v5 }
 0x212   :  { %v2225_v8 = vrot.slane %v2224_v56, 2 }
 0x213   :  { %v2234_v60 = vrot.slane %v2233_v59, 2 }
 0x214   :  { %v2226_v61 = vadd.f32 %v2225_v8, %v2224_v56 }
 0x215   :  { %v2235_v9 = vadd.f32 %v2234_v60, %v2233_v59 }
 0x216   :  { %v2227_v10 = vrot.slane %v2226_v61, 1 }
 0x217   :  { %v2236_v11 = vrot.slane %v2235_v9, 1 }
 0x218   :  { %v2228_v12 = vadd.f32 %v2227_v10, %v2226_v61 }
 0x219   :  { %v2237_v14 = vadd.f32 %v2236_v11, %v2235_v9 }
 0x21a   :  { %v2238_v15 = vmul.f32 0.03125, %v2228_v12 }
 0x21b   :  { %v2239_v16 = vmul.f32 0.03125, %v2237_v14 }
 0x21c   :  { %v2240_v17 = vadd.f32 1e-05, %v2238_v15 }
 0x21d   :  { %v2241_v19 = vadd.f32 1e-05, %v2239_v16 }
 0x21e   :  { %3082 = vrsqrt.f32 %v2240_v17 }
 0x21f   :  { %3084 = vrsqrt.f32 %v2241_v19 }
 0x228   :  { %v3083_v25 = vpop.eup %3082 }
 0x229   :  { %v3085_v27 = vpop.eup %3084  ;;  %v2256_v28 = vmul.f32 %v3083_v25, %v2249_v23 }
 0x22a   :  { %v2257_v29 = vmul.f32 %v3085_v27, %v2253_v24 }
 0x22b   :  { %v2261_v30 = vrot.slane %v2256_v28, %v2248_v20 }
 0x22c   :  { %v2265_v32 = vrot.slane %v2257_v29, %v2248_v20 }
 0x22d   :  { %v2266_v34 = vmul.f32 %v2261_v30, %v2204_v48  ;;  %v2268_v35 = vmul.f32 %v2261_v30, %v2206_v49  ;;  %v2270_v36 = vmul.f32 %v2261_v30, %v2208_v50  ;;  %v2272_v37 = vmul.f32 %v2261_v30, %v2210_v51 }
 0x22e   :  { %v2267_v38 = vmul.f32 %v2265_v32, %v2205_v42  ;;  %v2269_v39 = vmul.f32 %v2265_v32, %v2207_v45  ;;  %v2271_v40 = vmul.f32 %v2265_v32, %v2209_v46  ;;  %v2273_v41 = vmul.f32 %v2265_v32, %v2211_v47 }
 0x22f   :  { %v2286_v43 = vadd.f32 %v2279_v31, %v2266_v34  ;;  %v2288_v44 = vadd.f32 %v2279_v31, %v2268_v35  ;;  %v2290_v52 = vadd.f32 %v2279_v31, %v2270_v36  ;;  %v2292_v53 = vadd.f32 %v2279_v31, %v2272_v37 }
 0x230   :  { %v2287_v54 = vadd.f32 %v2283_v33, %v2267_v38  ;;  %v2289_v55 = vadd.f32 %v2283_v33, %v2269_v39  ;;  %v2291_v57 = vadd.f32 %v2283_v33, %v2271_v40  ;;  %v2293_v58 = vadd.f32 %v2283_v33, %v2273_v41 }
 0x231   :  { %v2294_v62 = vmul.f32 0.01, %v2286_v43  ;;  %v2296_v63 = vmul.f32 0.01, %v2288_v44  ;;  %v2298_v0 = vmul.f32 0.01, %v2290_v52 }
 0x232   :  { %v2300_v1 = vmul.f32 0.01, %v2292_v53  ;;  %v2295_v48 = vmul.f32 0.01, %v2287_v54  ;;  %v2297_v49 = vmul.f32 0.01, %v2289_v55 }
 0x233   :  { %v2302_v50 = vmax.f32 %v2286_v43, %v2294_v62  ;;  %v2304_v51 = vmax.f32 %v2288_v44, %v2296_v63  ;;  %v2306_v42 = vmax.f32 %v2290_v52, %v2298_v0  ;;  %v2299_v45 = vmul.f32 0.01, %v2291_v57 }
 0x234   :  { %v2308_v46 = vmax.f32 %v2292_v53, %v2300_v1  ;;  %v2301_v47 = vmul.f32 0.01, %v2293_v58  ;;  %v2303_v2 = vmax.f32 %v2287_v54, %v2295_v48  ;;  %v2305_v3 = vmax.f32 %v2289_v55, %v2297_v49 }
 0x235   :  { %v2307_v4 = vmax.f32 %v2291_v57, %v2299_v45 }
 0x236   :  { %v2309_v5 = vmax.f32 %v2293_v58, %v2301_v47  ;;  %v2635_v6 = vpack.c.bf16 %v2303_v2, %v2302_v50  ;;  %v2636_v7 = vpack.c.bf16 %v2305_v3, %v2304_v51 }
 0x237   :  { %v2637_v56 = vpack.c.bf16 %v2307_v4, %v2306_v42 }
 0x238   :  { %v2638_v59 = vpack.c.bf16 %v2309_v5, %v2308_v46  ;;  %2334 = vst [vmem:[%s3316_s4] sm:$0xff] %v2635_v6  ;;  %2335 = vst [vmem:[%s3316_s4 + $0x8] sm:$0xff] %v2636_v7 }
 0x239   :  { %2336 = vst [vmem:[%s3316_s4 + $0x10] sm:$0xff] %v2637_v56 }
 0x23a   :  { %2337 = vst [vmem:[%s3316_s4 + $0x18] sm:$0xff] %v2638_v59 }
 0x23b   :  { %2342 = vsyncpa [#allocation3], 1 }

// kernel: taming_discriminator_forward.8
= control target key start
LH: loop header
LB: loop body
LE: loop exit
PB: predicated region body
PF: predicated region fallthrough
CT: control target
= control target key end

     0   :  { %vm8114_vm0 = vcmask 1041408   ;;  %s14770_s1 = inlined_call_operand.vmem [shape: bf16[4096,512], index: 1, kind: input, shape index: {}]   ;;  %s14771_s0 = inlined_call_operand.vmem [shape: bf16[18,4096], index: 0, kind: input, shape index: {}]   ;;  %s14772_s2 = inlined_call_operand.vmem [shape: f32[1,512], index: 2, kind: input, shape index: {}]   ;;  %s14773_s3 = inlined_call_operand.vmem [shape: f32[1,512], index: 3, kind: input, shape index: {}]   ;;  %s14774_s4 = inlined_call_operand.vmem [shape: bf16[18,512], index: 4, kind: output, shape index: {}]  }
   0x1   :  { %v9729_v0 = vld [vmem:[%s14770_s1 + $0x4] ss:$16 sps:$4 sm:$0xff]   ;;  %v9731_v1 = vld [vmem:[%s14770_s1 + $0xc] ss:$16 sps:$4 sm:$0xff]   ;;  %v9733_v2 = vld [vmem:[%s14770_s1] ss:$16 sps:$4 sm:$0xff]  }
   0x2   :  { %6481 = vmatprep.subr.bf16.mxu0 %v9729_v0  ;;  %v9734_v3 = vld [vmem:[%s14770_s1 + $0x8] ss:$16 sps:$4 sm:$0xff]   ;;  %7297 = vmatprep.subr.bf16.mxu1 %v9731_v1  ;;  %v9735_v4 = vld [vmem:[%s14770_s1 + $0x24] ss:$16 sps:$4 sm:$0xff]   ;;  %v9737_v5 = vld [vmem:[%s14770_s1 + $0x2c] ss:$16 sps:$4 sm:$0xff]  }
   0x3   :  { %6482 = vmatpush1.bf16.msra.mxu0 %v9733_v2  ;;  %7298 = vmatpush1.bf16.msra.mxu1 %v9734_v3  ;;  %v9739_v6 = vld [vmem:[%s14770_s1 + $0x20] ss:$16 sps:$4 sm:$0xff]   ;;  %v9740_v7 = vld [vmem:[%s14770_s1 + $0x28] ss:$16 sps:$4 sm:$0xff]   ;;  %v9741_v8 = vld [vmem:[%s14770_s1 + $0x44] ss:$16 sps:$4 sm:$0xff]  }
   0x4   :  { %6483 = vmatprep.subr.bf16.mxu0 %v9735_v4  ;;  %7299 = vmatprep.subr.bf16.mxu1 %v9737_v5  ;;  %v9743_v9 = vld [vmem:[%s14770_s1 + $0x4c] ss:$16 sps:$4 sm:$0xff]   ;;  %v9745_v10 = vld [vmem:[%s14770_s1 + $0x40] ss:$16 sps:$4 sm:$0xff]   ;;  %v9746_v11 = vld [vmem:[%s14770_s1 + $0x48] ss:$16 sps:$4 sm:$0xff]  }
   0x5   :  { %v9747_v12 = vld [vmem:[%s14770_s1 + $0x64] ss:$16 sps:$4 sm:$0xff]   ;;  %v9749_v13 = vld [vmem:[%s14770_s1 + $0x6c] ss:$16 sps:$4 sm:$0xff]   ;;  %v9751_v14 = vld [vmem:[%s14770_s1 + $0x60] ss:$16 sps:$4 sm:$0xff]  }
   0x6   :  { %v9752_v15 = vld [vmem:[%s14770_s1 + $0x68] ss:$16 sps:$4 sm:$0xff]   ;;  %v9753_v16 = vld [vmem:[%s14770_s1 + $0x84] ss:$16 sps:$4 sm:$0xff]   ;;  %v9755_v17 = vld [vmem:[%s14770_s1 + $0x8c] ss:$16 sps:$4 sm:$0xff]  }
   0x7   :  { %6484 = vmatpush1.bf16.msra.mxu0 %v9739_v6  ;;  %7300 = vmatpush1.bf16.msra.mxu1 %v9740_v7  ;;  %v9757_v18 = vld [vmem:[%s14770_s1 + $0x80] ss:$16 sps:$4 sm:$0xff]   ;;  %v9758_v19 = vld [vmem:[%s14770_s1 + $0x88] ss:$16 sps:$4 sm:$0xff]   ;;  %v9759_v20 = vld [vmem:[%s14770_s1 + $0xa4] ss:$16 sps:$4 sm:$0xff]  }
   0x8   :  { %6485 = vmatprep.subr.bf16.mxu0 %v9741_v8  ;;  %7301 = vmatprep.subr.bf16.mxu1 %v9743_v9  ;;  %v9761_v21 = vld [vmem:[%s14770_s1 + $0xac] ss:$16 sps:$4 sm:$0xff]   ;;  %v9763_v22 = vld [vmem:[%s14770_s1 + $0xa0] ss:$16 sps:$4 sm:$0xff]   ;;  %v9764_v23 = vld [vmem:[%s14770_s1 + $0xa8] ss:$16 sps:$4 sm:$0xff]  }
   0x9   :  { %v9765_v24 = vld [vmem:[%s14770_s1 + $0xc4] ss:$16 sps:$4 sm:$0xff]   ;;  %v9767_v25 = vld [vmem:[%s14770_s1 + $0xcc] ss:$16 sps:$4 sm:$0xff]   ;;  %v9769_v26 = vld [vmem:[%s14770_s1 + $0xc0] ss:$16 sps:$4 sm:$0xff]  }
   0xa   :  { %v9770_v27 = vld [vmem:[%s14770_s1 + $0xc8] ss:$16 sps:$4 sm:$0xff]   ;;  %v9771_v28 = vld [vmem:[%s14770_s1 + $0xe4] ss:$16 sps:$4 sm:$0xff]   ;;  %v9773_v29 = vld [vmem:[%s14770_s1 + $0xec] ss:$16 sps:$4 sm:$0xff]  }
   0xb   :  { %6486 = vmatpush1.bf16.msra.mxu0 %v9745_v10  ;;  %7302 = vmatpush1.bf16.msra.mxu1 %v9746_v11  ;;  %v9775_v30 = vld [vmem:[%s14770_s1 + $0xe0] ss:$16 sps:$4 sm:$0xff]   ;;  %v9776_v31 = vld [vmem:[%s14770_s1 + $0xe8] ss:$16 sps:$4 sm:$0xff]   ;;  %v9777_v32 = vld [vmem:[%s14770_s1 + $0x104] ss:$16 sps:$4 sm:$0xff]  }
   0xc   :  { %6487 = vmatprep.subr.bf16.mxu0 %v9747_v12  ;;  %7303 = vmatprep.subr.bf16.mxu1 %v9749_v13  ;;  %v9779_v33 = vld [vmem:[%s14770_s1 + $0x10c] ss:$16 sps:$4 sm:$0xff]   ;;  %v9781_v34 = vld [vmem:[%s14770_s1 + $0x100] ss:$16 sps:$4 sm:$0xff]   ;;  %v9782_v35 = vld [vmem:[%s14770_s1 + $0x108] ss:$16 sps:$4 sm:$0xff]  }
   0xd   :  { %v9783_v36 = vld [vmem:[%s14770_s1 + $0x124] ss:$16 sps:$4 sm:$0xff]   ;;  %v9785_v37 = vld [vmem:[%s14770_s1 + $0x12c] ss:$16 sps:$4 sm:$0xff]   ;;  %v9787_v38 = vld [vmem:[%s14770_s1 + $0x120] ss:$16 sps:$4 sm:$0xff]  }
   0xe   :  { %v9788_v39 = vld [vmem:[%s14770_s1 + $0x128] ss:$16 sps:$4 sm:$0xff]   ;;  %v9789_v40 = vld [vmem:[%s14770_s1 + $0x144] ss:$16 sps:$4 sm:$0xff]   ;;  %v9791_v41 = vld [vmem:[%s14770_s1 + $0x14c] ss:$16 sps:$4 sm:$0xff]  }
   0xf   :  { %6488 = vmatpush1.bf16.msra.mxu0 %v9751_v14  ;;  %7304 = vmatpush1.bf16.msra.mxu1 %v9752_v15  ;;  %v9793_v42 = vld [vmem:[%s14770_s1 + $0x140] ss:$16 sps:$4 sm:$0xff]   ;;  %v9794_v43 = vld [vmem:[%s14770_s1 + $0x148] ss:$16 sps:$4 sm:$0xff]   ;;  %v9795_v44 = vld [vmem:[%s14770_s1 + $0x164] ss:$16 sps:$4 sm:$0xff]  }
  0x10   :  { %6489 = vmatprep.subr.bf16.mxu0 %v9753_v16  ;;  %7305 = vmatprep.subr.bf16.mxu1 %v9755_v17  ;;  %v9797_v45 = vld [vmem:[%s14770_s1 + $0x16c] ss:$16 sps:$4 sm:$0xff]   ;;  %v17_v46 = vld [vmem:[%s14771_s0] sm:$0xff]  ;;  %v9800_v49 = vld [vmem:[%s14770_s1 + $0x168] ss:$16 sps:$4 sm:$0xff]  }
  0x11   :  { %v33_v47 = vld [vmem:[%s14771_s0 + $0x80] sm:$0xff]  ;;  %v9803_v52 = vld [vmem:[%s14770_s1 + $0x18c] ss:$16 sps:$4 sm:$0xff]   ;;  %v9806_v54 = vld [vmem:[%s14770_s1 + $0x188] ss:$16 sps:$4 sm:$0xff]  }
  0x12   :  { %v9799_v48 = vld [vmem:[%s14770_s1 + $0x160] ss:$16 sps:$4 sm:$0xff]   ;;  %v8390_v50 = vcombine.high %v17_v46, %v33_v47  ;;  %v9801_v51 = vld [vmem:[%s14770_s1 + $0x184] ss:$16 sps:$4 sm:$0xff]   ;;  %v9809_v56 = vld [vmem:[%s14770_s1 + $0x1ac] ss:$16 sps:$4 sm:$0xff]   ;;  %v8389_v5 = vcombine.low %v17_v46, %v33_v47 }
  0x13   :  { %6490 = vmatpush1.bf16.msra.mxu0 %v9757_v18  ;;  %7306 = vmatpush1.bf16.msra.mxu1 %v9758_v19  ;;  %v9805_v53 = vld [vmem:[%s14770_s1 + $0x180] ss:$16 sps:$4 sm:$0xff]   ;;  %v9807_v55 = vld [vmem:[%s14770_s1 + $0x1a4] ss:$16 sps:$4 sm:$0xff]   ;;  %v9812_v58 = vld [vmem:[%s14770_s1 + $0x1a8] ss:$16 sps:$4 sm:$0xff]  }
  0x14   :  { %6491 = vmatprep.subr.bf16.mxu0 %v9759_v20  ;;  %7307 = vmatprep.subr.bf16.mxu1 %v9761_v21  ;;  %v9811_v57 = vld [vmem:[%s14770_s1 + $0x1a0] ss:$16 sps:$4 sm:$0xff]   ;;  %v9813_v59 = vld [vmem:[%s14770_s1 + $0x1c4] ss:$16 sps:$4 sm:$0xff]   ;;  %v9815_v60 = vld [vmem:[%s14770_s1 + $0x1cc] ss:$16 sps:$4 sm:$0xff]  }
  0x15   :  { %6513 = vmatprep.mubr.bf16.mxu0 %v8390_v50  ;;  %7329 = vmatprep.mubr.bf16.mxu1 %v8390_v50  ;;  %v9817_v61 = vld [vmem:[%s14770_s1 + $0x1c0] ss:$16 sps:$4 sm:$0xff]   ;;  %v9818_v62 = vld [vmem:[%s14770_s1 + $0x1c8] ss:$16 sps:$4 sm:$0xff]   ;;  %v9819_v63 = vld [vmem:[%s14770_s1 + $0x1e4] ss:$16 sps:$4 sm:$0xff]  }
  0x16   :  { %v9821_v0 = vld [vmem:[%s14770_s1 + $0x1ec] ss:$16 sps:$4 sm:$0xff]   ;;  %v9823_v1 = vld [vmem:[%s14770_s1 + $0x1e0] ss:$16 sps:$4 sm:$0xff]   ;;  %v9824_v2 = vld [vmem:[%s14770_s1 + $0x1e8] ss:$16 sps:$4 sm:$0xff]  }
  0x17   :  { %6492 = vmatpush1.bf16.msra.mxu0 %v9763_v22  ;;  %7308 = vmatpush1.bf16.msra.mxu1 %v9764_v23  ;;  %v9827_v3 = vld [vmem:[%s14770_s1 + $0x204] ss:$16 sps:$4 sm:$0xff]   ;;  %v9830_v4 = vld [vmem:[%s14770_s1 + $0x20c] ss:$16 sps:$4 sm:$0xff]   ;;  %v9825_v6 = vld [vmem:[%s14770_s1 + $0x200] ss:$16 sps:$4 sm:$0xff]  }
  0x18   :  { %6493 = vmatprep.subr.bf16.mxu0 %v9765_v24  ;;  %7309 = vmatprep.subr.bf16.mxu1 %v9767_v25  ;;  %v9828_v7 = vld [vmem:[%s14770_s1 + $0x208] ss:$16 sps:$4 sm:$0xff]   ;;  %v9833_v8 = vld [vmem:[%s14770_s1 + $0x224] ss:$16 sps:$4 sm:$0xff]   ;;  %v9836_v9 = vld [vmem:[%s14770_s1 + $0x22c] ss:$16 sps:$4 sm:$0xff]  }
  0x19   :  { %v9831_v10 = vld [vmem:[%s14770_s1 + $0x220] ss:$16 sps:$4 sm:$0xff]   ;;  %v9834_v11 = vld [vmem:[%s14770_s1 + $0x228] ss:$16 sps:$4 sm:$0xff]   ;;  %v9839_v12 = vld [vmem:[%s14770_s1 + $0x244] ss:$16 sps:$4 sm:$0xff]  }
  0x1a   :  { %v9842_v13 = vld [vmem:[%s14770_s1 + $0x24c] ss:$16 sps:$4 sm:$0xff]   ;;  %v9837_v14 = vld [vmem:[%s14770_s1 + $0x240] ss:$16 sps:$4 sm:$0xff]   ;;  %v9840_v15 = vld [vmem:[%s14770_s1 + $0x248] ss:$16 sps:$4 sm:$0xff]  }
  0x1b   :  { %6494 = vmatpush1.bf16.msra.mxu0 %v9769_v26  ;;  %7310 = vmatpush1.bf16.msra.mxu1 %v9770_v27  ;;  %v9845_v16 = vld [vmem:[%s14770_s1 + $0x264] ss:$16 sps:$4 sm:$0xff]   ;;  %v9848_v17 = vld [vmem:[%s14770_s1 + $0x26c] ss:$16 sps:$4 sm:$0xff]   ;;  %v9843_v18 = vld [vmem:[%s14770_s1 + $0x260] ss:$16 sps:$4 sm:$0xff]  }
  0x1c   :  { %6495 = vmatprep.subr.bf16.mxu0 %v9771_v28  ;;  %7311 = vmatprep.subr.bf16.mxu1 %v9773_v29  ;;  %v9846_v19 = vld [vmem:[%s14770_s1 + $0x268] ss:$16 sps:$4 sm:$0xff]   ;;  %v9851_v20 = vld [vmem:[%s14770_s1 + $0x284] ss:$16 sps:$4 sm:$0xff]   ;;  %v9854_v21 = vld [vmem:[%s14770_s1 + $0x28c] ss:$16 sps:$4 sm:$0xff]  }
  0x1d   :  { %v9849_v22 = vld [vmem:[%s14770_s1 + $0x280] ss:$16 sps:$4 sm:$0xff]   ;;  %v9852_v23 = vld [vmem:[%s14770_s1 + $0x288] ss:$16 sps:$4 sm:$0xff]   ;;  %v9857_v24 = vld [vmem:[%s14770_s1 + $0x2a4] ss:$16 sps:$4 sm:$0xff]  }
  0x1e   :  { %v49_v25 = vld [vmem:[%s14771_s0 + $0x100] sm:$0x11]  ;;  %v9860_v26 = vld [vmem:[%s14770_s1 + $0x2ac] ss:$16 sps:$4 sm:$0xff]  }
  0x1f   :  { %6496 = vmatpush1.bf16.msra.mxu0 %v9775_v30  ;;  %7312 = vmatpush1.bf16.msra.mxu1 %v9776_v31  ;;  %v8422_v27 = vcombine.high %v49_v25, %v49_v25  ;;  %v8421_v28 = vcombine.low %v49_v25, %v49_v25  ;;  %v9855_v29 = vld [vmem:[%s14770_s1 + $0x2a0] ss:$16 sps:$4 sm:$0xff]   ;;  %v9858_v30 = vld [vmem:[%s14770_s1 + $0x2a8] ss:$16 sps:$4 sm:$0xff]   ;;  %v9863_v31 = vld [vmem:[%s14770_s1 + $0x2c4] ss:$16 sps:$4 sm:$0xff]  }
  0x20   :  { %6497 = vmatprep.subr.bf16.mxu0 %v9777_v32  ;;  %7313 = vmatprep.subr.bf16.mxu1 %v9779_v33  ;;  %v9866_v32 = vld [vmem:[%s14770_s1 + $0x2cc] ss:$16 sps:$4 sm:$0xff]   ;;  %v9881_v46 = vld [vmem:[%s14770_s1 + $0x324] ss:$16 sps:$4 sm:$0xff]  }
  0x21   :  { %v11612_v33 = vld [vmem:[%s14771_s0 + $0x8] sm:$0xff]  ;;  %v9887_v50 = vld [vmem:[%s14770_s1 + $0x344] ss:$16 sps:$4 sm:$0xff]  }
  0x22   :  { %v9884_v47 = vld [vmem:[%s14770_s1 + $0x32c] ss:$16 sps:$4 sm:$0xff]  }
  0x23   :  { %6498 = vmatpush1.bf16.msra.mxu0 %v9781_v34  ;;  %7314 = vmatpush1.bf16.msra.mxu1 %v9782_v35  ;;  %v11617_v34 = vld [vmem:[%s14771_s0 + $0x88] sm:$0xff]  ;;  %v9861_v35 = vld [vmem:[%s14770_s1 + $0x2c0] ss:$16 sps:$4 sm:$0xff]  }
  0x24   :  { %6499 = vmatprep.subr.bf16.mxu0 %v9783_v36  ;;  %7315 = vmatprep.subr.bf16.mxu1 %v9785_v37  ;;  %v8392_v36 = vcombine.high %v11612_v33, %v11617_v34  ;;  %v9864_v37 = vld [vmem:[%s14770_s1 + $0x2c8] ss:$16 sps:$4 sm:$0xff]  }
  0x27   :  { %6500 = vmatpush1.bf16.msra.mxu0 %v9787_v38  ;;  %7316 = vmatpush1.bf16.msra.mxu1 %v9788_v39  ;;  %v9869_v38 = vld [vmem:[%s14770_s1 + $0x2e4] ss:$16 sps:$4 sm:$0xff]   ;;  %v9872_v39 = vld [vmem:[%s14770_s1 + $0x2ec] ss:$16 sps:$4 sm:$0xff]  }
  0x28   :  { %6501 = vmatprep.subr.bf16.mxu0 %v9789_v40  ;;  %7317 = vmatprep.subr.bf16.mxu1 %v9791_v41  ;;  %v9867_v40 = vld [vmem:[%s14770_s1 + $0x2e0] ss:$16 sps:$4 sm:$0xff]   ;;  %v9870_v41 = vld [vmem:[%s14770_s1 + $0x2e8] ss:$16 sps:$4 sm:$0xff]  }
  0x2b   :  { %6502 = vmatpush1.bf16.msra.mxu0 %v9793_v42  ;;  %7318 = vmatpush1.bf16.msra.mxu1 %v9794_v43  ;;  %v9875_v42 = vld [vmem:[%s14770_s1 + $0x304] ss:$16 sps:$4 sm:$0xff]   ;;  %v9878_v43 = vld [vmem:[%s14770_s1 + $0x30c] ss:$16 sps:$4 sm:$0xff]  }
  0x2c   :  { %6503 = vmatprep.subr.bf16.mxu0 %v9795_v44  ;;  %7319 = vmatprep.subr.bf16.mxu1 %v9797_v45  ;;  %v9873_v44 = vld [vmem:[%s14770_s1 + $0x300] ss:$16 sps:$4 sm:$0xff]   ;;  %v9876_v45 = vld [vmem:[%s14770_s1 + $0x308] ss:$16 sps:$4 sm:$0xff]  }
  0x2f   :  { %6504 = vmatpush1.bf16.msra.mxu0 %v9799_v48  ;;  %7320 = vmatpush1.bf16.msra.mxu1 %v9800_v49  ;;  %v9879_v48 = vld [vmem:[%s14770_s1 + $0x320] ss:$16 sps:$4 sm:$0xff]   ;;  %v9882_v49 = vld [vmem:[%s14770_s1 + $0x328] ss:$16 sps:$4 sm:$0xff]  }
  0x30   :  { %6505 = vmatprep.subr.bf16.mxu0 %v9801_v51  ;;  %7321 = vmatprep.subr.bf16.mxu1 %v9803_v52  ;;  %v9890_v51 = vld [vmem:[%s14770_s1 + $0x34c] ss:$16 sps:$4 sm:$0xff]   ;;  %v9885_v52 = vld [vmem:[%s14770_s1 + $0x340] ss:$16 sps:$4 sm:$0xff]  }
  0x33   :  { %6506 = vmatpush1.bf16.msra.mxu0 %v9805_v53  ;;  %7322 = vmatpush1.bf16.msra.mxu1 %v9806_v54  ;;  %v9888_v53 = vld [vmem:[%s14770_s1 + $0x348] ss:$16 sps:$4 sm:$0xff]   ;;  %v9893_v54 = vld [vmem:[%s14770_s1 + $0x364] ss:$16 sps:$4 sm:$0xff]  }
  0x34   :  { %6507 = vmatprep.subr.bf16.mxu0 %v9807_v55  ;;  %7323 = vmatprep.subr.bf16.mxu1 %v9809_v56  ;;  %v9896_v55 = vld [vmem:[%s14770_s1 + $0x36c] ss:$16 sps:$4 sm:$0xff]   ;;  %v9891_v56 = vld [vmem:[%s14770_s1 + $0x360] ss:$16 sps:$4 sm:$0xff]  }
  0x37   :  { %6508 = vmatpush1.bf16.msra.mxu0 %v9811_v57  ;;  %7324 = vmatpush1.bf16.msra.mxu1 %v9812_v58  ;;  %v9894_v57 = vld [vmem:[%s14770_s1 + $0x368] ss:$16 sps:$4 sm:$0xff]   ;;  %v9899_v58 = vld [vmem:[%s14770_s1 + $0x384] ss:$16 sps:$4 sm:$0xff]  }
  0x38   :  { %6509 = vmatprep.subr.bf16.mxu0 %v9813_v59  ;;  %7325 = vmatprep.subr.bf16.mxu1 %v9815_v60  ;;  %v9902_v59 = vld [vmem:[%s14770_s1 + $0x38c] ss:$16 sps:$4 sm:$0xff]   ;;  %v9897_v60 = vld [vmem:[%s14770_s1 + $0x380] ss:$16 sps:$4 sm:$0xff]  }
  0x3b   :  { %6510 = vmatpush1.bf16.msra.mxu0 %v9817_v61  ;;  %7326 = vmatpush1.bf16.msra.mxu1 %v9818_v62  ;;  %v9900_v61 = vld [vmem:[%s14770_s1 + $0x388] ss:$16 sps:$4 sm:$0xff]   ;;  %v9905_v62 = vld [vmem:[%s14770_s1 + $0x3a4] ss:$16 sps:$4 sm:$0xff]  }
  0x3c   :  { %6511 = vmatprep.subr.bf16.mxu0 %v9819_v63  ;;  %7327 = vmatprep.subr.bf16.mxu1 %v9821_v0  ;;  %v9908_v63 = vld [vmem:[%s14770_s1 + $0x3ac] ss:$16 sps:$4 sm:$0xff]   ;;  %v9903_v0 = vld [vmem:[%s14770_s1 + $0x3a0] ss:$16 sps:$4 sm:$0xff]  }
  0x3f   :  { %6512 = vmatpush1.bf16.msra.mxu0 %v9823_v1  ;;  %7328 = vmatpush1.bf16.msra.mxu1 %v9824_v2  ;;  %v9906_v1 = vld [vmem:[%s14770_s1 + $0x3a8] ss:$16 sps:$4 sm:$0xff]   ;;  %v9912_v2 = vld [vmem:[%s14770_s1 + $0x3c4] ss:$16 sps:$4 sm:$0xff]  }
  0x40   :  { %6532 = vmatprep.subr.bf16.mxu0 %v9827_v3  ;;  %7348 = vmatprep.subr.bf16.mxu1 %v9830_v4  ;;  %v9915_v3 = vld [vmem:[%s14770_s1 + $0x3cc] ss:$16 sps:$4 sm:$0xff]   ;;  %v9910_v4 = vld [vmem:[%s14770_s1 + $0x3c0] ss:$16 sps:$4 sm:$0xff]  }
  0x42   :  { %6514 = vmatmul.mubr.bf16.vlgmr.msra.gmra.mrb[0].mxu0 %v8389_v5  ;;  %7330 = vmatmul.mubr.bf16.vlgmr.msra.gmra.mrb[0].mxu1 %v8389_v5  ;;  %v9913_v5 = vld [vmem:[%s14770_s1 + $0x3c8] ss:$16 sps:$4 sm:$0xff]  }
  0x43   :  { %6533 = vmatpush1.bf16.msra.mxu0 %v9825_v6  ;;  %7349 = vmatpush1.bf16.msra.mxu1 %v9828_v7  ;;  %v9919_v6 = vld [vmem:[%s14770_s1 + $0x3e4] ss:$16 sps:$4 sm:$0xff]   ;;  %v9922_v7 = vld [vmem:[%s14770_s1 + $0x3ec] ss:$16 sps:$4 sm:$0xff]  }
  0x44   :  { %6534 = vmatprep.subr.bf16.mxu0 %v9833_v8  ;;  %7350 = vmatprep.subr.bf16.mxu1 %v9836_v9  ;;  %v9917_v8 = vld [vmem:[%s14770_s1 + $0x3e0] ss:$16 sps:$4 sm:$0xff]   ;;  %v9920_v9 = vld [vmem:[%s14770_s1 + $0x3e8] ss:$16 sps:$4 sm:$0xff]  }
  0x45   :  { %6523 = vmatprep.mubr.bf16.mxu0 %v8422_v27  ;;  %7339 = vmatprep.mubr.bf16.mxu1 %v8422_v27  ;;  %v11784_v27 = vld [vmem:[%s14771_s0 + $0x90] sm:$0xff] }
  0x47   :  { %6535 = vmatpush1.bf16.msra.mxu0 %v9831_v10  ;;  %7351 = vmatpush1.bf16.msra.mxu1 %v9834_v11  ;;  %v9925_v10 = vld [vmem:[%s14770_s1 + $0x404] ss:$16 sps:$4 sm:$0xff]   ;;  %v9928_v11 = vld [vmem:[%s14770_s1 + $0x40c] ss:$16 sps:$4 sm:$0xff]  }
  0x48   :  { %6536 = vmatprep.subr.bf16.mxu0 %v9839_v12  ;;  %7352 = vmatprep.subr.bf16.mxu1 %v9842_v13  ;;  %v8391_v12 = vcombine.low %v11612_v33, %v11617_v34  ;;  %v50_v13 = vld [vmem:[%s14771_s0 + $0x108] sm:$0x11]  ;;  %v9949_v33 = vld [vmem:[%s14770_s1 + $0x484] ss:$16 sps:$4 sm:$0xff]  }
  0x49   :  { %v8423_v25 = vcombine.low %v50_v13, %v50_v13  ;;  %v9952_v34 = vld [vmem:[%s14770_s1 + $0x48c] ss:$16 sps:$4 sm:$0xff]  }
  0x4a   :  { %6524 = vmatmul.mubr.bf16.gmra.mrb[4].mxu0 %v8421_v28  ;;  %7340 = vmatmul.mubr.bf16.gmra.mrb[4].mxu1 %v8421_v28  ;;  %v9943_v28 = vld [vmem:[%s14770_s1 + $0x464] ss:$16 sps:$4 sm:$0xff]  }
  0x4b   :  { %6537 = vmatpush1.bf16.msra.mxu0 %v9837_v14  ;;  %7353 = vmatpush1.bf16.msra.mxu1 %v9840_v15  ;;  %v9923_v14 = vld [vmem:[%s14770_s1 + $0x400] ss:$16 sps:$4 sm:$0xff]   ;;  %v9926_v15 = vld [vmem:[%s14770_s1 + $0x408] ss:$16 sps:$4 sm:$0xff]  }
  0x4c   :  { %6538 = vmatprep.subr.bf16.mxu0 %v9845_v16  ;;  %7354 = vmatprep.subr.bf16.mxu1 %v9848_v17  ;;  %v9931_v16 = vld [vmem:[%s14770_s1 + $0x424] ss:$16 sps:$4 sm:$0xff]   ;;  %v9934_v17 = vld [vmem:[%s14770_s1 + $0x42c] ss:$16 sps:$4 sm:$0xff]  }
  0x4d   :  { %6564 = vmatprep.mubr.bf16.mxu0 %v8392_v36  ;;  %7380 = vmatprep.mubr.bf16.mxu1 %v8392_v36  ;;  %v9950_v36 = vld [vmem:[%s14770_s1 + $0x488] ss:$16 sps:$4 sm:$0xff]  }
  0x4f   :  { %6539 = vmatpush1.bf16.msra.mxu0 %v9843_v18  ;;  %7355 = vmatpush1.bf16.msra.mxu1 %v9846_v19  ;;  %v8424_v18 = vcombine.high %v50_v13, %v50_v13  ;;  %v9929_v19 = vld [vmem:[%s14770_s1 + $0x420] ss:$16 sps:$4 sm:$0xff]   ;;  %v10017_v13 = vld [vmem:[%s14770_s1 + $0x5e4] ss:$16 sps:$4 sm:$0xff]  }
  0x50   :  { %6540 = vmatprep.subr.bf16.mxu0 %v9851_v20  ;;  %7356 = vmatprep.subr.bf16.mxu1 %v9854_v21  ;;  %v9932_v20 = vld [vmem:[%s14770_s1 + $0x428] ss:$16 sps:$4 sm:$0xff]   ;;  %v9937_v21 = vld [vmem:[%s14770_s1 + $0x444] ss:$16 sps:$4 sm:$0xff]  }
  0x53   :  { %6541 = vmatpush1.bf16.msra.mxu0 %v9849_v22  ;;  %7357 = vmatpush1.bf16.msra.mxu1 %v9852_v23  ;;  %v9940_v22 = vld [vmem:[%s14770_s1 + $0x44c] ss:$16 sps:$4 sm:$0xff]   ;;  %v9935_v23 = vld [vmem:[%s14770_s1 + $0x440] ss:$16 sps:$4 sm:$0xff]  }
  0x54   :  { %6542 = vmatprep.subr.bf16.mxu0 %v9857_v24  ;;  %7358 = vmatprep.subr.bf16.mxu1 %v9860_v26  ;;  %v9938_v24 = vld [vmem:[%s14770_s1 + $0x448] ss:$16 sps:$4 sm:$0xff]   ;;  %v11779_v26 = vld [vmem:[%s14771_s0 + $0x10] sm:$0xff] }
  0x57   :  { %6543 = vmatpush1.bf16.msra.mxu0 %v9855_v29  ;;  %7359 = vmatpush1.bf16.msra.mxu1 %v9858_v30  ;;  %v9946_v29 = vld [vmem:[%s14770_s1 + $0x46c] ss:$16 sps:$4 sm:$0xff]   ;;  %v8394_v30 = vcombine.high %v11779_v26, %v11784_v27 }
  0x58   :  { %6544 = vmatprep.subr.bf16.mxu0 %v9863_v31  ;;  %7360 = vmatprep.subr.bf16.mxu1 %v9866_v32  ;;  %v9941_v31 = vld [vmem:[%s14770_s1 + $0x460] ss:$16 sps:$4 sm:$0xff]   ;;  %v9944_v32 = vld [vmem:[%s14770_s1 + $0x468] ss:$16 sps:$4 sm:$0xff]  }
  0x5b   :  { %6545 = vmatpush1.bf16.msra.mxu0 %v9861_v35  ;;  %7361 = vmatpush1.bf16.msra.mxu1 %v9864_v37  ;;  %v9947_v35 = vld [vmem:[%s14770_s1 + $0x480] ss:$16 sps:$4 sm:$0xff]   ;;  %v9955_v37 = vld [vmem:[%s14770_s1 + $0x4a4] ss:$16 sps:$4 sm:$0xff]  }
  0x5c   :  { %6546 = vmatprep.subr.bf16.mxu0 %v9869_v38  ;;  %7362 = vmatprep.subr.bf16.mxu1 %v9872_v39  ;;  %v9958_v38 = vld [vmem:[%s14770_s1 + $0x4ac] ss:$16 sps:$4 sm:$0xff]   ;;  %v9953_v39 = vld [vmem:[%s14770_s1 + $0x4a0] ss:$16 sps:$4 sm:$0xff]  }
  0x5f   :  { %6547 = vmatpush1.bf16.msra.mxu0 %v9867_v40  ;;  %7363 = vmatpush1.bf16.msra.mxu1 %v9870_v41  ;;  %v9956_v40 = vld [vmem:[%s14770_s1 + $0x4a8] ss:$16 sps:$4 sm:$0xff]   ;;  %v9961_v41 = vld [vmem:[%s14770_s1 + $0x4c4] ss:$16 sps:$4 sm:$0xff]  }
  0x60   :  { %6548 = vmatprep.subr.bf16.mxu0 %v9875_v42  ;;  %7364 = vmatprep.subr.bf16.mxu1 %v9878_v43  ;;  %v9964_v42 = vld [vmem:[%s14770_s1 + $0x4cc] ss:$16 sps:$4 sm:$0xff]   ;;  %v9959_v43 = vld [vmem:[%s14770_s1 + $0x4c0] ss:$16 sps:$4 sm:$0xff]  }
  0x63   :  { %6549 = vmatpush1.bf16.msra.mxu0 %v9873_v44  ;;  %7365 = vmatpush1.bf16.msra.mxu1 %v9876_v45  ;;  %v9962_v44 = vld [vmem:[%s14770_s1 + $0x4c8] ss:$16 sps:$4 sm:$0xff]   ;;  %v9967_v45 = vld [vmem:[%s14770_s1 + $0x4e4] ss:$16 sps:$4 sm:$0xff]  }
  0x64   :  { %6550 = vmatprep.subr.bf16.mxu0 %v9881_v46  ;;  %7366 = vmatprep.subr.bf16.mxu1 %v9884_v47  ;;  %v9970_v46 = vld [vmem:[%s14770_s1 + $0x4ec] ss:$16 sps:$4 sm:$0xff]   ;;  %v9965_v47 = vld [vmem:[%s14770_s1 + $0x4e0] ss:$16 sps:$4 sm:$0xff]  }
  0x67   :  { %6551 = vmatpush1.bf16.msra.mxu0 %v9879_v48  ;;  %7367 = vmatpush1.bf16.msra.mxu1 %v9882_v49  ;;  %v9968_v48 = vld [vmem:[%s14770_s1 + $0x4e8] ss:$16 sps:$4 sm:$0xff]   ;;  %v9973_v49 = vld [vmem:[%s14770_s1 + $0x504] ss:$16 sps:$4 sm:$0xff]  }
  0x68   :  { %6552 = vmatprep.subr.bf16.mxu0 %v9887_v50  ;;  %7368 = vmatprep.subr.bf16.mxu1 %v9890_v51  ;;  %v9976_v50 = vld [vmem:[%s14770_s1 + $0x50c] ss:$16 sps:$4 sm:$0xff]   ;;  %v9971_v51 = vld [vmem:[%s14770_s1 + $0x500] ss:$16 sps:$4 sm:$0xff]  }
  0x6b   :  { %6553 = vmatpush1.bf16.msra.mxu0 %v9885_v52  ;;  %7369 = vmatpush1.bf16.msra.mxu1 %v9888_v53  ;;  %v9974_v52 = vld [vmem:[%s14770_s1 + $0x508] ss:$16 sps:$4 sm:$0xff]   ;;  %v9979_v53 = vld [vmem:[%s14770_s1 + $0x524] ss:$16 sps:$4 sm:$0xff]  }
  0x6c   :  { %6554 = vmatprep.subr.bf16.mxu0 %v9893_v54  ;;  %7370 = vmatprep.subr.bf16.mxu1 %v9896_v55  ;;  %v9982_v54 = vld [vmem:[%s14770_s1 + $0x52c] ss:$16 sps:$4 sm:$0xff]   ;;  %v9977_v55 = vld [vmem:[%s14770_s1 + $0x520] ss:$16 sps:$4 sm:$0xff]  }
  0x6f   :  { %6555 = vmatpush1.bf16.msra.mxu0 %v9891_v56  ;;  %7371 = vmatpush1.bf16.msra.mxu1 %v9894_v57  ;;  %v9980_v56 = vld [vmem:[%s14770_s1 + $0x528] ss:$16 sps:$4 sm:$0xff]   ;;  %v9985_v57 = vld [vmem:[%s14770_s1 + $0x544] ss:$16 sps:$4 sm:$0xff]  }
  0x70   :  { %6556 = vmatprep.subr.bf16.mxu0 %v9899_v58  ;;  %7372 = vmatprep.subr.bf16.mxu1 %v9902_v59  ;;  %v9988_v58 = vld [vmem:[%s14770_s1 + $0x54c] ss:$16 sps:$4 sm:$0xff]   ;;  %v9983_v59 = vld [vmem:[%s14770_s1 + $0x540] ss:$16 sps:$4 sm:$0xff]  }
  0x73   :  { %6557 = vmatpush1.bf16.msra.mxu0 %v9897_v60  ;;  %7373 = vmatpush1.bf16.msra.mxu1 %v9900_v61  ;;  %v9986_v60 = vld [vmem:[%s14770_s1 + $0x548] ss:$16 sps:$4 sm:$0xff]   ;;  %v9991_v61 = vld [vmem:[%s14770_s1 + $0x564] ss:$16 sps:$4 sm:$0xff]  }
  0x74   :  { %6558 = vmatprep.subr.bf16.mxu0 %v9905_v62  ;;  %7374 = vmatprep.subr.bf16.mxu1 %v9908_v63  ;;  %v9994_v62 = vld [vmem:[%s14770_s1 + $0x56c] ss:$16 sps:$4 sm:$0xff]   ;;  %v9989_v63 = vld [vmem:[%s14770_s1 + $0x560] ss:$16 sps:$4 sm:$0xff]  }
  0x77   :  { %6559 = vmatpush1.bf16.msra.mxu0 %v9903_v0  ;;  %7375 = vmatpush1.bf16.msra.mxu1 %v9906_v1  ;;  %v9992_v0 = vld [vmem:[%s14770_s1 + $0x568] ss:$16 sps:$4 sm:$0xff]   ;;  %v9997_v1 = vld [vmem:[%s14770_s1 + $0x584] ss:$16 sps:$4 sm:$0xff]  }
  0x78   :  { %6560 = vmatprep.subr.bf16.mxu0 %v9912_v2  ;;  %7376 = vmatprep.subr.bf16.mxu1 %v9915_v3  ;;  %v10000_v2 = vld [vmem:[%s14770_s1 + $0x58c] ss:$16 sps:$4 sm:$0xff]   ;;  %v9995_v3 = vld [vmem:[%s14770_s1 + $0x580] ss:$16 sps:$4 sm:$0xff]  }
  0x7b   :  { %6561 = vmatpush1.bf16.msra.mxu0 %v9910_v4  ;;  %7377 = vmatpush1.bf16.msra.mxu1 %v9913_v5  ;;  %v9998_v4 = vld [vmem:[%s14770_s1 + $0x588] ss:$16 sps:$4 sm:$0xff]   ;;  %v10003_v5 = vld [vmem:[%s14770_s1 + $0x5a4] ss:$16 sps:$4 sm:$0xff]  }
  0x7c   :  { %6562 = vmatprep.subr.bf16.mxu0 %v9919_v6  ;;  %7378 = vmatprep.subr.bf16.mxu1 %v9922_v7  ;;  %v10006_v6 = vld [vmem:[%s14770_s1 + $0x5ac] ss:$16 sps:$4 sm:$0xff]   ;;  %v10001_v7 = vld [vmem:[%s14770_s1 + $0x5a0] ss:$16 sps:$4 sm:$0xff]  }
  0x7f   :  { %6563 = vmatpush1.bf16.msra.mxu0 %v9917_v8  ;;  %7379 = vmatpush1.bf16.msra.mxu1 %v9920_v9  ;;  %v10004_v8 = vld [vmem:[%s14770_s1 + $0x5a8] ss:$16 sps:$4 sm:$0xff]   ;;  %v10010_v9 = vld [vmem:[%s14770_s1 + $0x5c4] ss:$16 sps:$4 sm:$0xff]  }
  0x80   :  { %6583 = vmatprep.subr.bf16.mxu0 %v9925_v10  ;;  %7399 = vmatprep.subr.bf16.mxu1 %v9928_v11  ;;  %v10013_v10 = vld [vmem:[%s14770_s1 + $0x5cc] ss:$16 sps:$4 sm:$0xff]   ;;  %v10008_v11 = vld [vmem:[%s14770_s1 + $0x5c0] ss:$16 sps:$4 sm:$0xff]  }
  0x82   :  { %6565 = vmatmul.mubr.bf16.vlgmr.msra.gmra.mrb[0].mxu0 %v8391_v12  ;;  %7381 = vmatmul.mubr.bf16.vlgmr.msra.gmra.mrb[0].mxu1 %v8391_v12  ;;  %v10011_v12 = vld [vmem:[%s14770_s1 + $0x5c8] ss:$16 sps:$4 sm:$0xff]  }
  0x83   :  { %6584 = vmatpush1.bf16.msra.mxu0 %v9923_v14  ;;  %7400 = vmatpush1.bf16.msra.mxu1 %v9926_v15  ;;  %v10020_v14 = vld [vmem:[%s14770_s1 + $0x5ec] ss:$16 sps:$4 sm:$0xff]   ;;  %v10015_v15 = vld [vmem:[%s14770_s1 + $0x5e0] ss:$16 sps:$4 sm:$0xff]  }
  0x84   :  { %6585 = vmatprep.subr.bf16.mxu0 %v9931_v16  ;;  %7401 = vmatprep.subr.bf16.mxu1 %v9934_v17  ;;  %v10018_v16 = vld [vmem:[%s14770_s1 + $0x5e8] ss:$16 sps:$4 sm:$0xff]   ;;  %v10023_v17 = vld [vmem:[%s14770_s1 + $0x604] ss:$16 sps:$4 sm:$0xff]  }
  0x85   :  { %6574 = vmatprep.mubr.bf16.mxu0 %v8424_v18  ;;  %7390 = vmatprep.mubr.bf16.mxu1 %v8424_v18  ;;  %v10026_v18 = vld [vmem:[%s14770_s1 + $0x60c] ss:$16 sps:$4 sm:$0xff]  }
  0x87   :  { %6586 = vmatpush1.bf16.msra.mxu0 %v9929_v19  ;;  %7402 = vmatpush1.bf16.msra.mxu1 %v9932_v20  ;;  %v8393_v19 = vcombine.low %v11779_v26, %v11784_v27  ;;  %v10021_v20 = vld [vmem:[%s14770_s1 + $0x600] ss:$16 sps:$4 sm:$0xff]   ;;  %v10030_v27 = vld [vmem:[%s14770_s1 + $0x628] ss:$16 sps:$4 sm:$0xff]  }
  0x88   :  { %6587 = vmatprep.subr.bf16.mxu0 %v9937_v21  ;;  %7403 = vmatprep.subr.bf16.mxu1 %v9940_v22  ;;  %v51_v21 = vld [vmem:[%s14771_s0 + $0x110] sm:$0x11]  ;;  %v10024_v22 = vld [vmem:[%s14770_s1 + $0x608] ss:$16 sps:$4 sm:$0xff]  }
  0x89   :  { %v10027_v26 = vld [vmem:[%s14770_s1 + $0x620] ss:$16 sps:$4 sm:$0xff]  }
  0x8a   :  { %6575 = vmatmul.mubr.bf16.gmra.mrb[4].mxu0 %v8423_v25  ;;  %7391 = vmatmul.mubr.bf16.gmra.mrb[4].mxu1 %v8423_v25  ;;  %v8426_v25 = vcombine.high %v51_v21, %v51_v21 }
  0x8b   :  { %6588 = vmatpush1.bf16.msra.mxu0 %v9935_v23  ;;  %7404 = vmatpush1.bf16.msra.mxu1 %v9938_v24  ;;  %v10029_v23 = vld [vmem:[%s14770_s1 + $0x624] ss:$16 sps:$4 sm:$0xff]   ;;  %v10032_v24 = vld [vmem:[%s14770_s1 + $0x62c] ss:$16 sps:$4 sm:$0xff]  }
  0x8c   :  { %6589 = vmatprep.subr.bf16.mxu0 %v9943_v28  ;;  %7405 = vmatprep.subr.bf16.mxu1 %v9946_v29  ;;  %v10035_v28 = vld [vmem:[%s14770_s1 + $0x644] ss:$16 sps:$4 sm:$0xff]   ;;  %v10038_v29 = vld [vmem:[%s14770_s1 + $0x64c] ss:$16 sps:$4 sm:$0xff]  }
  0x8d   :  { %6615 = vmatprep.mubr.bf16.mxu0 %v8394_v30  ;;  %7431 = vmatprep.mubr.bf16.mxu1 %v8394_v30  ;;  %v10033_v30 = vld [vmem:[%s14770_s1 + $0x640] ss:$16 sps:$4 sm:$0xff]  }
  0x8f   :  { %6590 = vmatpush1.bf16.msra.mxu0 %v9941_v31  ;;  %7406 = vmatpush1.bf16.msra.mxu1 %v9944_v32  ;;  %v8425_v31 = vcombine.low %v51_v21, %v51_v21  ;;  %v11985_v32 = vld [vmem:[%s14771_s0 + $0x18] sm:$0xff] }
  0x90   :  { %6591 = vmatprep.subr.bf16.mxu0 %v9949_v33  ;;  %7407 = vmatprep.subr.bf16.mxu1 %v9952_v34  ;;  %v11990_v33 = vld [vmem:[%s14771_s0 + $0x98] sm:$0xff] }
  0x91   :  { %v10036_v34 = vld [vmem:[%s14770_s1 + $0x648] ss:$16 sps:$4 sm:$0xff]   ;;  %v10118_v21 = vld [vmem:[%s14770_s1 + $0x7ec] ss:$16 sps:$4 sm:$0xff]  }
  0x93   :  { %6592 = vmatpush1.bf16.msra.mxu0 %v9947_v35  ;;  %7408 = vmatpush1.bf16.msra.mxu1 %v9950_v36  ;;  %v10041_v35 = vld [vmem:[%s14770_s1 + $0x664] ss:$16 sps:$4 sm:$0xff]   ;;  %v10044_v36 = vld [vmem:[%s14770_s1 + $0x66c] ss:$16 sps:$4 sm:$0xff]  }
  0x94   :  { %6593 = vmatprep.subr.bf16.mxu0 %v9955_v37  ;;  %7409 = vmatprep.subr.bf16.mxu1 %v9958_v38  ;;  %v8396_v37 = vcombine.high %v11985_v32, %v11990_v33  ;;  %v10039_v38 = vld [vmem:[%s14770_s1 + $0x660] ss:$16 sps:$4 sm:$0xff]  }
  0x97   :  { %6594 = vmatpush1.bf16.msra.mxu0 %v9953_v39  ;;  %7410 = vmatpush1.bf16.msra.mxu1 %v9956_v40  ;;  %v10042_v39 = vld [vmem:[%s14770_s1 + $0x668] ss:$16 sps:$4 sm:$0xff]   ;;  %v10047_v40 = vld [vmem:[%s14770_s1 + $0x684] ss:$16 sps:$4 sm:$0xff]  }
  0x98   :  { %6595 = vmatprep.subr.bf16.mxu0 %v9961_v41  ;;  %7411 = vmatprep.subr.bf16.mxu1 %v9964_v42  ;;  %v10050_v41 = vld [vmem:[%s14770_s1 + $0x68c] ss:$16 sps:$4 sm:$0xff]   ;;  %v10045_v42 = vld [vmem:[%s14770_s1 + $0x680] ss:$16 sps:$4 sm:$0xff]  }
  0x9b   :  { %6596 = vmatpush1.bf16.msra.mxu0 %v9959_v43  ;;  %7412 = vmatpush1.bf16.msra.mxu1 %v9962_v44  ;;  %v10048_v43 = vld [vmem:[%s14770_s1 + $0x688] ss:$16 sps:$4 sm:$0xff]   ;;  %v10053_v44 = vld [vmem:[%s14770_s1 + $0x6a4] ss:$16 sps:$4 sm:$0xff]  }
  0x9c   :  { %6597 = vmatprep.subr.bf16.mxu0 %v9967_v45  ;;  %7413 = vmatprep.subr.bf16.mxu1 %v9970_v46  ;;  %v10056_v45 = vld [vmem:[%s14770_s1 + $0x6ac] ss:$16 sps:$4 sm:$0xff]   ;;  %v10051_v46 = vld [vmem:[%s14770_s1 + $0x6a0] ss:$16 sps:$4 sm:$0xff]  }
  0x9f   :  { %6598 = vmatpush1.bf16.msra.mxu0 %v9965_v47  ;;  %7414 = vmatpush1.bf16.msra.mxu1 %v9968_v48  ;;  %v10054_v47 = vld [vmem:[%s14770_s1 + $0x6a8] ss:$16 sps:$4 sm:$0xff]   ;;  %v10059_v48 = vld [vmem:[%s14770_s1 + $0x6c4] ss:$16 sps:$4 sm:$0xff]  }
  0xa0   :  { %6599 = vmatprep.subr.bf16.mxu0 %v9973_v49  ;;  %7415 = vmatprep.subr.bf16.mxu1 %v9976_v50  ;;  %v10062_v49 = vld [vmem:[%s14770_s1 + $0x6cc] ss:$16 sps:$4 sm:$0xff]   ;;  %v10057_v50 = vld [vmem:[%s14770_s1 + $0x6c0] ss:$16 sps:$4 sm:$0xff]  }
  0xa3   :  { %6600 = vmatpush1.bf16.msra.mxu0 %v9971_v51  ;;  %7416 = vmatpush1.bf16.msra.mxu1 %v9974_v52  ;;  %v10060_v51 = vld [vmem:[%s14770_s1 + $0x6c8] ss:$16 sps:$4 sm:$0xff]   ;;  %v10065_v52 = vld [vmem:[%s14770_s1 + $0x6e4] ss:$16 sps:$4 sm:$0xff]  }
  0xa4   :  { %6601 = vmatprep.subr.bf16.mxu0 %v9979_v53  ;;  %7417 = vmatprep.subr.bf16.mxu1 %v9982_v54  ;;  %v10068_v53 = vld [vmem:[%s14770_s1 + $0x6ec] ss:$16 sps:$4 sm:$0xff]   ;;  %v10063_v54 = vld [vmem:[%s14770_s1 + $0x6e0] ss:$16 sps:$4 sm:$0xff]  }
  0xa7   :  { %6602 = vmatpush1.bf16.msra.mxu0 %v9977_v55  ;;  %7418 = vmatpush1.bf16.msra.mxu1 %v9980_v56  ;;  %v10066_v55 = vld [vmem:[%s14770_s1 + $0x6e8] ss:$16 sps:$4 sm:$0xff]   ;;  %v10071_v56 = vld [vmem:[%s14770_s1 + $0x704] ss:$16 sps:$4 sm:$0xff]  }
  0xa8   :  { %6603 = vmatprep.subr.bf16.mxu0 %v9985_v57  ;;  %7419 = vmatprep.subr.bf16.mxu1 %v9988_v58  ;;  %v10074_v57 = vld [vmem:[%s14770_s1 + $0x70c] ss:$16 sps:$4 sm:$0xff]   ;;  %v10069_v58 = vld [vmem:[%s14770_s1 + $0x700] ss:$16 sps:$4 sm:$0xff]  }
  0xab   :  { %6604 = vmatpush1.bf16.msra.mxu0 %v9983_v59  ;;  %7420 = vmatpush1.bf16.msra.mxu1 %v9986_v60  ;;  %v10072_v59 = vld [vmem:[%s14770_s1 + $0x708] ss:$16 sps:$4 sm:$0xff]   ;;  %v10077_v60 = vld [vmem:[%s14770_s1 + $0x724] ss:$16 sps:$4 sm:$0xff]  }
  0xac   :  { %6605 = vmatprep.subr.bf16.mxu0 %v9991_v61  ;;  %7421 = vmatprep.subr.bf16.mxu1 %v9994_v62  ;;  %v10080_v61 = vld [vmem:[%s14770_s1 + $0x72c] ss:$16 sps:$4 sm:$0xff]   ;;  %v10075_v62 = vld [vmem:[%s14770_s1 + $0x720] ss:$16 sps:$4 sm:$0xff]  }
  0xaf   :  { %6606 = vmatpush1.bf16.msra.mxu0 %v9989_v63  ;;  %7422 = vmatpush1.bf16.msra.mxu1 %v9992_v0  ;;  %v10078_v63 = vld [vmem:[%s14770_s1 + $0x728] ss:$16 sps:$4 sm:$0xff]   ;;  %v10083_v0 = vld [vmem:[%s14770_s1 + $0x744] ss:$16 sps:$4 sm:$0xff]  }
  0xb0   :  { %6607 = vmatprep.subr.bf16.mxu0 %v9997_v1  ;;  %7423 = vmatprep.subr.bf16.mxu1 %v10000_v2  ;;  %v10086_v1 = vld [vmem:[%s14770_s1 + $0x74c] ss:$16 sps:$4 sm:$0xff]   ;;  %v10081_v2 = vld [vmem:[%s14770_s1 + $0x740] ss:$16 sps:$4 sm:$0xff]  }
  0xb3   :  { %6608 = vmatpush1.bf16.msra.mxu0 %v9995_v3  ;;  %7424 = vmatpush1.bf16.msra.mxu1 %v9998_v4  ;;  %v10084_v3 = vld [vmem:[%s14770_s1 + $0x748] ss:$16 sps:$4 sm:$0xff]   ;;  %v10089_v4 = vld [vmem:[%s14770_s1 + $0x764] ss:$16 sps:$4 sm:$0xff]  }
  0xb4   :  { %6609 = vmatprep.subr.bf16.mxu0 %v10003_v5  ;;  %7425 = vmatprep.subr.bf16.mxu1 %v10006_v6  ;;  %v10092_v5 = vld [vmem:[%s14770_s1 + $0x76c] ss:$16 sps:$4 sm:$0xff]   ;;  %v10087_v6 = vld [vmem:[%s14770_s1 + $0x760] ss:$16 sps:$4 sm:$0xff]  }
  0xb7   :  { %6610 = vmatpush1.bf16.msra.mxu0 %v10001_v7  ;;  %7426 = vmatpush1.bf16.msra.mxu1 %v10004_v8  ;;  %v10090_v7 = vld [vmem:[%s14770_s1 + $0x768] ss:$16 sps:$4 sm:$0xff]   ;;  %v10095_v8 = vld [vmem:[%s14770_s1 + $0x784] ss:$16 sps:$4 sm:$0xff]  }
  0xb8   :  { %6611 = vmatprep.subr.bf16.mxu0 %v10010_v9  ;;  %7427 = vmatprep.subr.bf16.mxu1 %v10013_v10  ;;  %v10098_v9 = vld [vmem:[%s14770_s1 + $0x78c] ss:$16 sps:$4 sm:$0xff]   ;;  %v10093_v10 = vld [vmem:[%s14770_s1 + $0x780] ss:$16 sps:$4 sm:$0xff]  }
  0xbb   :  { %6612 = vmatpush1.bf16.msra.mxu0 %v10008_v11  ;;  %7428 = vmatpush1.bf16.msra.mxu1 %v10011_v12  ;;  %v10096_v11 = vld [vmem:[%s14770_s1 + $0x788] ss:$16 sps:$4 sm:$0xff]   ;;  %v10101_v12 = vld [vmem:[%s14770_s1 + $0x7a4] ss:$16 sps:$4 sm:$0xff]  }
  0xbc   :  { %6613 = vmatprep.subr.bf16.mxu0 %v10017_v13  ;;  %7429 = vmatprep.subr.bf16.mxu1 %v10020_v14  ;;  %v10104_v13 = vld [vmem:[%s14770_s1 + $0x7ac] ss:$16 sps:$4 sm:$0xff]   ;;  %v10099_v14 = vld [vmem:[%s14770_s1 + $0x7a0] ss:$16 sps:$4 sm:$0xff]  }
  0xbf   :  { %6614 = vmatpush1.bf16.msra.mxu0 %v10015_v15  ;;  %7430 = vmatpush1.bf16.msra.mxu1 %v10018_v16  ;;  %v10102_v15 = vld [vmem:[%s14770_s1 + $0x7a8] ss:$16 sps:$4 sm:$0xff]   ;;  %v10108_v16 = vld [vmem:[%s14770_s1 + $0x7c4] ss:$16 sps:$4 sm:$0xff]  }
  0xc0   :  { %6634 = vmatprep.subr.bf16.mxu0 %v10023_v17  ;;  %7450 = vmatprep.subr.bf16.mxu1 %v10026_v18  ;;  %v10111_v17 = vld [vmem:[%s14770_s1 + $0x7cc] ss:$16 sps:$4 sm:$0xff]   ;;  %v10106_v18 = vld [vmem:[%s14770_s1 + $0x7c0] ss:$16 sps:$4 sm:$0xff]  }
  0xc2   :  { %6616 = vmatmul.mubr.bf16.vlgmr.msra.gmra.mrb[0].mxu0 %v8393_v19  ;;  %7432 = vmatmul.mubr.bf16.vlgmr.msra.gmra.mrb[0].mxu1 %v8393_v19  ;;  %v10109_v19 = vld [vmem:[%s14770_s1 + $0x7c8] ss:$16 sps:$4 sm:$0xff]  }
  0xc3   :  { %6635 = vmatpush1.bf16.msra.mxu0 %v10021_v20  ;;  %7451 = vmatpush1.bf16.msra.mxu1 %v10024_v22  ;;  %v10115_v20 = vld [vmem:[%s14770_s1 + $0x7e4] ss:$16 sps:$4 sm:$0xff]   ;;  %v10113_v22 = vld [vmem:[%s14770_s1 + $0x7e0] ss:$16 sps:$4 sm:$0xff]  }
  0xc4   :  { %6636 = vmatprep.subr.bf16.mxu0 %v10029_v23  ;;  %7452 = vmatprep.subr.bf16.mxu1 %v10032_v24  ;;  %v10116_v23 = vld [vmem:[%s14770_s1 + $0x7e8] ss:$16 sps:$4 sm:$0xff]   ;;  %v10121_v24 = vld [vmem:[%s14770_s1 + $0x804] ss:$16 sps:$4 sm:$0xff]  }
  0xc5   :  { %6625 = vmatprep.mubr.bf16.mxu0 %v8426_v25  ;;  %7441 = vmatprep.mubr.bf16.mxu1 %v8426_v25  ;;  %v10124_v25 = vld [vmem:[%s14770_s1 + $0x80c] ss:$16 sps:$4 sm:$0xff]  }
  0xc7   :  { %6637 = vmatpush1.bf16.msra.mxu0 %v10027_v26  ;;  %7453 = vmatpush1.bf16.msra.mxu1 %v10030_v27  ;;  %v8395_v26 = vcombine.low %v11985_v32, %v11990_v33  ;;  %v10119_v27 = vld [vmem:[%s14770_s1 + $0x800] ss:$16 sps:$4 sm:$0xff]  }
  0xc8   :  { %6638 = vmatprep.subr.bf16.mxu0 %v10035_v28  ;;  %7454 = vmatprep.subr.bf16.mxu1 %v10038_v29  ;;  %v52_v28 = vld [vmem:[%s14771_s0 + $0x118] sm:$0x11]  ;;  %v10125_v33 = vld [vmem:[%s14770_s1 + $0x820] ss:$16 sps:$4 sm:$0xff]  }
  0xc9   :  { %v10122_v29 = vld [vmem:[%s14770_s1 + $0x808] ss:$16 sps:$4 sm:$0xff]   ;;  %v8428_v32 = vcombine.high %v52_v28, %v52_v28 }
  0xca   :  { %6626 = vmatmul.mubr.bf16.gmra.mrb[4].mxu0 %v8425_v31  ;;  %7442 = vmatmul.mubr.bf16.gmra.mrb[4].mxu1 %v8425_v31  ;;  %v10130_v31 = vld [vmem:[%s14770_s1 + $0x82c] ss:$16 sps:$4 sm:$0xff]  }
  0xcb   :  { %6639 = vmatpush1.bf16.msra.mxu0 %v10033_v30  ;;  %7455 = vmatpush1.bf16.msra.mxu1 %v10036_v34  ;;  %v10127_v30 = vld [vmem:[%s14770_s1 + $0x824] ss:$16 sps:$4 sm:$0xff]   ;;  %v10128_v34 = vld [vmem:[%s14770_s1 + $0x828] ss:$16 sps:$4 sm:$0xff]  }
  0xcc   :  { %6640 = vmatprep.subr.bf16.mxu0 %v10041_v35  ;;  %7456 = vmatprep.subr.bf16.mxu1 %v10044_v36  ;;  %v10133_v35 = vld [vmem:[%s14770_s1 + $0x844] ss:$16 sps:$4 sm:$0xff]   ;;  %v10136_v36 = vld [vmem:[%s14770_s1 + $0x84c] ss:$16 sps:$4 sm:$0xff]  }
  0xcd   :  { %6666 = vmatprep.mubr.bf16.mxu0 %v8396_v37  ;;  %7482 = vmatprep.mubr.bf16.mxu1 %v8396_v37  ;;  %v10131_v37 = vld [vmem:[%s14770_s1 + $0x840] ss:$16 sps:$4 sm:$0xff]  }
  0xcf   :  { %6641 = vmatpush1.bf16.msra.mxu0 %v10039_v38  ;;  %7457 = vmatpush1.bf16.msra.mxu1 %v10042_v39  ;;  %v12194_v38 = vld [vmem:[%s14771_s0 + $0x20] sm:$0xff]  ;;  %v8427_v39 = vcombine.low %v52_v28, %v52_v28  ;;  %v10216_v28 = vld [vmem:[%s14770_s1 + $0x9ec] ss:$16 sps:$4 sm:$0xff]  }
  0xd0   :  { %6642 = vmatprep.subr.bf16.mxu0 %v10047_v40  ;;  %7458 = vmatprep.subr.bf16.mxu1 %v10050_v41  ;;  %v12199_v40 = vld [vmem:[%s14771_s0 + $0xa0] sm:$0xff]  ;;  %v10134_v41 = vld [vmem:[%s14770_s1 + $0x848] ss:$16 sps:$4 sm:$0xff]  }
  0xd3   :  { %6643 = vmatpush1.bf16.msra.mxu0 %v10045_v42  ;;  %7459 = vmatpush1.bf16.msra.mxu1 %v10048_v43  ;;  %v10139_v42 = vld [vmem:[%s14770_s1 + $0x864] ss:$16 sps:$4 sm:$0xff]   ;;  %v10142_v43 = vld [vmem:[%s14770_s1 + $0x86c] ss:$16 sps:$4 sm:$0xff]  }
  0xd4   :  { %6644 = vmatprep.subr.bf16.mxu0 %v10053_v44  ;;  %7460 = vmatprep.subr.bf16.mxu1 %v10056_v45  ;;  %v8398_v44 = vcombine.high %v12194_v38, %v12199_v40  ;;  %v10137_v45 = vld [vmem:[%s14770_s1 + $0x860] ss:$16 sps:$4 sm:$0xff]  }
  0xd7   :  { %6645 = vmatpush1.bf16.msra.mxu0 %v10051_v46  ;;  %7461 = vmatpush1.bf16.msra.mxu1 %v10054_v47  ;;  %v10140_v46 = vld [vmem:[%s14770_s1 + $0x868] ss:$16 sps:$4 sm:$0xff]   ;;  %v10145_v47 = vld [vmem:[%s14770_s1 + $0x884] ss:$16 sps:$4 sm:$0xff]  }
  0xd8   :  { %6646 = vmatprep.subr.bf16.mxu0 %v10059_v48  ;;  %7462 = vmatprep.subr.bf16.mxu1 %v10062_v49  ;;  %v10148_v48 = vld [vmem:[%s14770_s1 + $0x88c] ss:$16 sps:$4 sm:$0xff]   ;;  %v10143_v49 = vld [vmem:[%s14770_s1 + $0x880] ss:$16 sps:$4 sm:$0xff]  }
  0xdb   :  { %6647 = vmatpush1.bf16.msra.mxu0 %v10057_v50  ;;  %7463 = vmatpush1.bf16.msra.mxu1 %v10060_v51  ;;  %v10146_v50 = vld [vmem:[%s14770_s1 + $0x888] ss:$16 sps:$4 sm:$0xff]   ;;  %v10151_v51 = vld [vmem:[%s14770_s1 + $0x8a4] ss:$16 sps:$4 sm:$0xff]  }
  0xdc   :  { %6648 = vmatprep.subr.bf16.mxu0 %v10065_v52  ;;  %7464 = vmatprep.subr.bf16.mxu1 %v10068_v53  ;;  %v10154_v52 = vld [vmem:[%s14770_s1 + $0x8ac] ss:$16 sps:$4 sm:$0xff]   ;;  %v10149_v53 = vld [vmem:[%s14770_s1 + $0x8a0] ss:$16 sps:$4 sm:$0xff]  }
  0xdf   :  { %6649 = vmatpush1.bf16.msra.mxu0 %v10063_v54  ;;  %7465 = vmatpush1.bf16.msra.mxu1 %v10066_v55  ;;  %v10152_v54 = vld [vmem:[%s14770_s1 + $0x8a8] ss:$16 sps:$4 sm:$0xff]   ;;  %v10157_v55 = vld [vmem:[%s14770_s1 + $0x8c4] ss:$16 sps:$4 sm:$0xff]  }
  0xe0   :  { %6650 = vmatprep.subr.bf16.mxu0 %v10071_v56  ;;  %7466 = vmatprep.subr.bf16.mxu1 %v10074_v57  ;;  %v10160_v56 = vld [vmem:[%s14770_s1 + $0x8cc] ss:$16 sps:$4 sm:$0xff]   ;;  %v10155_v57 = vld [vmem:[%s14770_s1 + $0x8c0] ss:$16 sps:$4 sm:$0xff]  }
  0xe3   :  { %6651 = vmatpush1.bf16.msra.mxu0 %v10069_v58  ;;  %7467 = vmatpush1.bf16.msra.mxu1 %v10072_v59  ;;  %v10158_v58 = vld [vmem:[%s14770_s1 + $0x8c8] ss:$16 sps:$4 sm:$0xff]   ;;  %v10163_v59 = vld [vmem:[%s14770_s1 + $0x8e4] ss:$16 sps:$4 sm:$0xff]  }
  0xe4   :  { %6652 = vmatprep.subr.bf16.mxu0 %v10077_v60  ;;  %7468 = vmatprep.subr.bf16.mxu1 %v10080_v61  ;;  %v10166_v60 = vld [vmem:[%s14770_s1 + $0x8ec] ss:$16 sps:$4 sm:$0xff]   ;;  %v10161_v61 = vld [vmem:[%s14770_s1 + $0x8e0] ss:$16 sps:$4 sm:$0xff]  }
  0xe7   :  { %6653 = vmatpush1.bf16.msra.mxu0 %v10075_v62  ;;  %7469 = vmatpush1.bf16.msra.mxu1 %v10078_v63  ;;  %v10164_v62 = vld [vmem:[%s14770_s1 + $0x8e8] ss:$16 sps:$4 sm:$0xff]   ;;  %v10169_v63 = vld [vmem:[%s14770_s1 + $0x904] ss:$16 sps:$4 sm:$0xff]  }
  0xe8   :  { %6654 = vmatprep.subr.bf16.mxu0 %v10083_v0  ;;  %7470 = vmatprep.subr.bf16.mxu1 %v10086_v1  ;;  %v10172_v0 = vld [vmem:[%s14770_s1 + $0x90c] ss:$16 sps:$4 sm:$0xff]   ;;  %v10167_v1 = vld [vmem:[%s14770_s1 + $0x900] ss:$16 sps:$4 sm:$0xff]  }
  0xeb   :  { %6655 = vmatpush1.bf16.msra.mxu0 %v10081_v2  ;;  %7471 = vmatpush1.bf16.msra.mxu1 %v10084_v3  ;;  %v10170_v2 = vld [vmem:[%s14770_s1 + $0x908] ss:$16 sps:$4 sm:$0xff]   ;;  %v10175_v3 = vld [vmem:[%s14770_s1 + $0x924] ss:$16 sps:$4 sm:$0xff]  }
  0xec   :  { %6656 = vmatprep.subr.bf16.mxu0 %v10089_v4  ;;  %7472 = vmatprep.subr.bf16.mxu1 %v10092_v5  ;;  %v10178_v4 = vld [vmem:[%s14770_s1 + $0x92c] ss:$16 sps:$4 sm:$0xff]   ;;  %v10173_v5 = vld [vmem:[%s14770_s1 + $0x920] ss:$16 sps:$4 sm:$0xff]  }
  0xef   :  { %6657 = vmatpush1.bf16.msra.mxu0 %v10087_v6  ;;  %7473 = vmatpush1.bf16.msra.mxu1 %v10090_v7  ;;  %v10176_v6 = vld [vmem:[%s14770_s1 + $0x928] ss:$16 sps:$4 sm:$0xff]   ;;  %v10181_v7 = vld [vmem:[%s14770_s1 + $0x944] ss:$16 sps:$4 sm:$0xff]  }
  0xf0   :  { %6658 = vmatprep.subr.bf16.mxu0 %v10095_v8  ;;  %7474 = vmatprep.subr.bf16.mxu1 %v10098_v9  ;;  %v10184_v8 = vld [vmem:[%s14770_s1 + $0x94c] ss:$16 sps:$4 sm:$0xff]   ;;  %v10179_v9 = vld [vmem:[%s14770_s1 + $0x940] ss:$16 sps:$4 sm:$0xff]  }
  0xf3   :  { %6659 = vmatpush1.bf16.msra.mxu0 %v10093_v10  ;;  %7475 = vmatpush1.bf16.msra.mxu1 %v10096_v11  ;;  %v10182_v10 = vld [vmem:[%s14770_s1 + $0x948] ss:$16 sps:$4 sm:$0xff]   ;;  %v10187_v11 = vld [vmem:[%s14770_s1 + $0x964] ss:$16 sps:$4 sm:$0xff]  }
  0xf4   :  { %6660 = vmatprep.subr.bf16.mxu0 %v10101_v12  ;;  %7476 = vmatprep.subr.bf16.mxu1 %v10104_v13  ;;  %v10190_v12 = vld [vmem:[%s14770_s1 + $0x96c] ss:$16 sps:$4 sm:$0xff]   ;;  %v10185_v13 = vld [vmem:[%s14770_s1 + $0x960] ss:$16 sps:$4 sm:$0xff]  }
  0xf7   :  { %6661 = vmatpush1.bf16.msra.mxu0 %v10099_v14  ;;  %7477 = vmatpush1.bf16.msra.mxu1 %v10102_v15  ;;  %v10188_v14 = vld [vmem:[%s14770_s1 + $0x968] ss:$16 sps:$4 sm:$0xff]   ;;  %v10193_v15 = vld [vmem:[%s14770_s1 + $0x984] ss:$16 sps:$4 sm:$0xff]  }
  0xf8   :  { %6662 = vmatprep.subr.bf16.mxu0 %v10108_v16  ;;  %7478 = vmatprep.subr.bf16.mxu1 %v10111_v17  ;;  %v10196_v16 = vld [vmem:[%s14770_s1 + $0x98c] ss:$16 sps:$4 sm:$0xff]   ;;  %v10191_v17 = vld [vmem:[%s14770_s1 + $0x980] ss:$16 sps:$4 sm:$0xff]  }
  0xfb   :  { %6663 = vmatpush1.bf16.msra.mxu0 %v10106_v18  ;;  %7479 = vmatpush1.bf16.msra.mxu1 %v10109_v19  ;;  %v10194_v18 = vld [vmem:[%s14770_s1 + $0x988] ss:$16 sps:$4 sm:$0xff]   ;;  %v10199_v19 = vld [vmem:[%s14770_s1 + $0x9a4] ss:$16 sps:$4 sm:$0xff]  }
  0xfc   :  { %6664 = vmatprep.subr.bf16.mxu0 %v10115_v20  ;;  %7480 = vmatprep.subr.bf16.mxu1 %v10118_v21  ;;  %v10202_v20 = vld [vmem:[%s14770_s1 + $0x9ac] ss:$16 sps:$4 sm:$0xff]   ;;  %v10197_v21 = vld [vmem:[%s14770_s1 + $0x9a0] ss:$16 sps:$4 sm:$0xff]  }
  0xff   :  { %6665 = vmatpush1.bf16.msra.mxu0 %v10113_v22  ;;  %7481 = vmatpush1.bf16.msra.mxu1 %v10116_v23  ;;  %v10200_v22 = vld [vmem:[%s14770_s1 + $0x9a8] ss:$16 sps:$4 sm:$0xff]   ;;  %v10206_v23 = vld [vmem:[%s14770_s1 + $0x9c4] ss:$16 sps:$4 sm:$0xff]  }
 0x100   :  { %6685 = vmatprep.subr.bf16.mxu0 %v10121_v24  ;;  %7501 = vmatprep.subr.bf16.mxu1 %v10124_v25  ;;  %v10209_v24 = vld [vmem:[%s14770_s1 + $0x9cc] ss:$16 sps:$4 sm:$0xff]   ;;  %v10204_v25 = vld [vmem:[%s14770_s1 + $0x9c0] ss:$16 sps:$4 sm:$0xff]  }
 0x102   :  { %6667 = vmatmul.mubr.bf16.vlgmr.msra.gmra.mrb[0].mxu0 %v8395_v26  ;;  %7483 = vmatmul.mubr.bf16.vlgmr.msra.gmra.mrb[0].mxu1 %v8395_v26  ;;  %v10207_v26 = vld [vmem:[%s14770_s1 + $0x9c8] ss:$16 sps:$4 sm:$0xff]  }
 0x103   :  { %6686 = vmatpush1.bf16.msra.mxu0 %v10119_v27  ;;  %7502 = vmatpush1.bf16.msra.mxu1 %v10122_v29  ;;  %v10213_v27 = vld [vmem:[%s14770_s1 + $0x9e4] ss:$16 sps:$4 sm:$0xff]   ;;  %v10211_v29 = vld [vmem:[%s14770_s1 + $0x9e0] ss:$16 sps:$4 sm:$0xff]  }
 0x104   :  { %6687 = vmatprep.subr.bf16.mxu0 %v10127_v30  ;;  %7503 = vmatprep.subr.bf16.mxu1 %v10130_v31  ;;  %v10214_v30 = vld [vmem:[%s14770_s1 + $0x9e8] ss:$16 sps:$4 sm:$0xff]   ;;  %v10219_v31 = vld [vmem:[%s14770_s1 + $0xa04] ss:$16 sps:$4 sm:$0xff]  }
 0x105   :  { %6676 = vmatprep.mubr.bf16.mxu0 %v8428_v32  ;;  %7492 = vmatprep.mubr.bf16.mxu1 %v8428_v32  ;;  %v10222_v32 = vld [vmem:[%s14770_s1 + $0xa0c] ss:$16 sps:$4 sm:$0xff]  }
 0x107   :  { %6688 = vmatpush1.bf16.msra.mxu0 %v10125_v33  ;;  %7504 = vmatpush1.bf16.msra.mxu1 %v10128_v34  ;;  %v53_v33 = vld [vmem:[%s14771_s0 + $0x120] sm:$0x11]  ;;  %v8397_v34 = vcombine.low %v12194_v38, %v12199_v40  ;;  %v10228_v38 = vld [vmem:[%s14770_s1 + $0xa2c] ss:$16 sps:$4 sm:$0xff]   ;;  %v10226_v40 = vld [vmem:[%s14770_s1 + $0xa28] ss:$16 sps:$4 sm:$0xff]  }
 0x108   :  { %6689 = vmatprep.subr.bf16.mxu0 %v10133_v35  ;;  %7505 = vmatprep.subr.bf16.mxu1 %v10136_v36  ;;  %v10217_v35 = vld [vmem:[%s14770_s1 + $0xa00] ss:$16 sps:$4 sm:$0xff]   ;;  %v10220_v36 = vld [vmem:[%s14770_s1 + $0xa08] ss:$16 sps:$4 sm:$0xff]  }
 0x10a   :  { %6677 = vmatmul.mubr.bf16.gmra.mrb[4].mxu0 %v8427_v39  ;;  %7493 = vmatmul.mubr.bf16.gmra.mrb[4].mxu1 %v8427_v39  ;;  %v10223_v39 = vld [vmem:[%s14770_s1 + $0xa20] ss:$16 sps:$4 sm:$0xff]  }
 0x10b   :  { %6690 = vmatpush1.bf16.msra.mxu0 %v10131_v37  ;;  %7506 = vmatpush1.bf16.msra.mxu1 %v10134_v41  ;;  %v10225_v37 = vld [vmem:[%s14770_s1 + $0xa24] ss:$16 sps:$4 sm:$0xff]   ;;  %v8430_v41 = vcombine.high %v53_v33, %v53_v33 }
 0x10c   :  { %6691 = vmatprep.subr.bf16.mxu0 %v10139_v42  ;;  %7507 = vmatprep.subr.bf16.mxu1 %v10142_v43  ;;  %v10231_v42 = vld [vmem:[%s14770_s1 + $0xa44] ss:$16 sps:$4 sm:$0xff]   ;;  %v10234_v43 = vld [vmem:[%s14770_s1 + $0xa4c] ss:$16 sps:$4 sm:$0xff]  }
 0x10d   :  { %6717 = vmatprep.mubr.bf16.mxu0 %v8398_v44  ;;  %7533 = vmatprep.mubr.bf16.mxu1 %v8398_v44  ;;  %v12400_v44 = vld [vmem:[%s14771_s0 + $0x28] sm:$0xff] }
 0x10f   :  { %6692 = vmatpush1.bf16.msra.mxu0 %v10137_v45  ;;  %7508 = vmatpush1.bf16.msra.mxu1 %v10140_v46  ;;  %v12405_v45 = vld [vmem:[%s14771_s0 + $0xa8] sm:$0xff]  ;;  %v8429_v46 = vcombine.low %v53_v33, %v53_v33 }
 0x110   :  { %6693 = vmatprep.subr.bf16.mxu0 %v10145_v47  ;;  %7509 = vmatprep.subr.bf16.mxu1 %v10148_v48  ;;  %v10229_v47 = vld [vmem:[%s14770_s1 + $0xa40] ss:$16 sps:$4 sm:$0xff]   ;;  %v10232_v48 = vld [vmem:[%s14770_s1 + $0xa48] ss:$16 sps:$4 sm:$0xff]  }
 0x111   :  { %v10305_v33 = vld [vmem:[%s14770_s1 + $0xbc8] ss:$16 sps:$4 sm:$0xff]  }
 0x113   :  { %6694 = vmatpush1.bf16.msra.mxu0 %v10143_v49  ;;  %7510 = vmatpush1.bf16.msra.mxu1 %v10146_v50  ;;  %v10237_v49 = vld [vmem:[%s14770_s1 + $0xa64] ss:$16 sps:$4 sm:$0xff]   ;;  %v10240_v50 = vld [vmem:[%s14770_s1 + $0xa6c] ss:$16 sps:$4 sm:$0xff]  }
 0x114   :  { %6695 = vmatprep.subr.bf16.mxu0 %v10151_v51  ;;  %7511 = vmatprep.subr.bf16.mxu1 %v10154_v52  ;;  %v8400_v51 = vcombine.high %v12400_v44, %v12405_v45  ;;  %v10235_v52 = vld [vmem:[%s14770_s1 + $0xa60] ss:$16 sps:$4 sm:$0xff]  }
 0x117   :  { %6696 = vmatpush1.bf16.msra.mxu0 %v10149_v53  ;;  %7512 = vmatpush1.bf16.msra.mxu1 %v10152_v54  ;;  %v10238_v53 = vld [vmem:[%s14770_s1 + $0xa68] ss:$16 sps:$4 sm:$0xff]   ;;  %v10243_v54 = vld [vmem:[%s14770_s1 + $0xa84] ss:$16 sps:$4 sm:$0xff]  }
 0x118   :  { %6697 = vmatprep.subr.bf16.mxu0 %v10157_v55  ;;  %7513 = vmatprep.subr.bf16.mxu1 %v10160_v56  ;;  %v10246_v55 = vld [vmem:[%s14770_s1 + $0xa8c] ss:$16 sps:$4 sm:$0xff]   ;;  %v10241_v56 = vld [vmem:[%s14770_s1 + $0xa80] ss:$16 sps:$4 sm:$0xff]  }
 0x11b   :  { %6698 = vmatpush1.bf16.msra.mxu0 %v10155_v57  ;;  %7514 = vmatpush1.bf16.msra.mxu1 %v10158_v58  ;;  %v10244_v57 = vld [vmem:[%s14770_s1 + $0xa88] ss:$16 sps:$4 sm:$0xff]   ;;  %v10249_v58 = vld [vmem:[%s14770_s1 + $0xaa4] ss:$16 sps:$4 sm:$0xff]  }
 0x11c   :  { %6699 = vmatprep.subr.bf16.mxu0 %v10163_v59  ;;  %7515 = vmatprep.subr.bf16.mxu1 %v10166_v60  ;;  %v10252_v59 = vld [vmem:[%s14770_s1 + $0xaac] ss:$16 sps:$4 sm:$0xff]   ;;  %v10247_v60 = vld [vmem:[%s14770_s1 + $0xaa0] ss:$16 sps:$4 sm:$0xff]  }
 0x11f   :  { %6700 = vmatpush1.bf16.msra.mxu0 %v10161_v61  ;;  %7516 = vmatpush1.bf16.msra.mxu1 %v10164_v62  ;;  %v10250_v61 = vld [vmem:[%s14770_s1 + $0xaa8] ss:$16 sps:$4 sm:$0xff]   ;;  %v10255_v62 = vld [vmem:[%s14770_s1 + $0xac4] ss:$16 sps:$4 sm:$0xff]  }
 0x120   :  { %6701 = vmatprep.subr.bf16.mxu0 %v10169_v63  ;;  %7517 = vmatprep.subr.bf16.mxu1 %v10172_v0  ;;  %v10258_v63 = vld [vmem:[%s14770_s1 + $0xacc] ss:$16 sps:$4 sm:$0xff]   ;;  %v10253_v0 = vld [vmem:[%s14770_s1 + $0xac0] ss:$16 sps:$4 sm:$0xff]  }
 0x123   :  { %6702 = vmatpush1.bf16.msra.mxu0 %v10167_v1  ;;  %7518 = vmatpush1.bf16.msra.mxu1 %v10170_v2  ;;  %v10256_v1 = vld [vmem:[%s14770_s1 + $0xac8] ss:$16 sps:$4 sm:$0xff]   ;;  %v10261_v2 = vld [vmem:[%s14770_s1 + $0xae4] ss:$16 sps:$4 sm:$0xff]  }
 0x124   :  { %6703 = vmatprep.subr.bf16.mxu0 %v10175_v3  ;;  %7519 = vmatprep.subr.bf16.mxu1 %v10178_v4  ;;  %v10264_v3 = vld [vmem:[%s14770_s1 + $0xaec] ss:$16 sps:$4 sm:$0xff]   ;;  %v10259_v4 = vld [vmem:[%s14770_s1 + $0xae0] ss:$16 sps:$4 sm:$0xff]  }
 0x127   :  { %6704 = vmatpush1.bf16.msra.mxu0 %v10173_v5  ;;  %7520 = vmatpush1.bf16.msra.mxu1 %v10176_v6  ;;  %v10262_v5 = vld [vmem:[%s14770_s1 + $0xae8] ss:$16 sps:$4 sm:$0xff]   ;;  %v10267_v6 = vld [vmem:[%s14770_s1 + $0xb04] ss:$16 sps:$4 sm:$0xff]  }
 0x128   :  { %6705 = vmatprep.subr.bf16.mxu0 %v10181_v7  ;;  %7521 = vmatprep.subr.bf16.mxu1 %v10184_v8  ;;  %v10270_v7 = vld [vmem:[%s14770_s1 + $0xb0c] ss:$16 sps:$4 sm:$0xff]   ;;  %v10265_v8 = vld [vmem:[%s14770_s1 + $0xb00] ss:$16 sps:$4 sm:$0xff]  }
 0x12b   :  { %6706 = vmatpush1.bf16.msra.mxu0 %v10179_v9  ;;  %7522 = vmatpush1.bf16.msra.mxu1 %v10182_v10  ;;  %v10268_v9 = vld [vmem:[%s14770_s1 + $0xb08] ss:$16 sps:$4 sm:$0xff]   ;;  %v10273_v10 = vld [vmem:[%s14770_s1 + $0xb24] ss:$16 sps:$4 sm:$0xff]  }
 0x12c   :  { %6707 = vmatprep.subr.bf16.mxu0 %v10187_v11  ;;  %7523 = vmatprep.subr.bf16.mxu1 %v10190_v12  ;;  %v10276_v11 = vld [vmem:[%s14770_s1 + $0xb2c] ss:$16 sps:$4 sm:$0xff]   ;;  %v10271_v12 = vld [vmem:[%s14770_s1 + $0xb20] ss:$16 sps:$4 sm:$0xff]  }
 0x12f   :  { %6708 = vmatpush1.bf16.msra.mxu0 %v10185_v13  ;;  %7524 = vmatpush1.bf16.msra.mxu1 %v10188_v14  ;;  %v10274_v13 = vld [vmem:[%s14770_s1 + $0xb28] ss:$16 sps:$4 sm:$0xff]   ;;  %v10279_v14 = vld [vmem:[%s14770_s1 + $0xb44] ss:$16 sps:$4 sm:$0xff]  }
 0x130   :  { %6709 = vmatprep.subr.bf16.mxu0 %v10193_v15  ;;  %7525 = vmatprep.subr.bf16.mxu1 %v10196_v16  ;;  %v10282_v15 = vld [vmem:[%s14770_s1 + $0xb4c] ss:$16 sps:$4 sm:$0xff]   ;;  %v10277_v16 = vld [vmem:[%s14770_s1 + $0xb40] ss:$16 sps:$4 sm:$0xff]  }
 0x133   :  { %6710 = vmatpush1.bf16.msra.mxu0 %v10191_v17  ;;  %7526 = vmatpush1.bf16.msra.mxu1 %v10194_v18  ;;  %v10280_v17 = vld [vmem:[%s14770_s1 + $0xb48] ss:$16 sps:$4 sm:$0xff]   ;;  %v10285_v18 = vld [vmem:[%s14770_s1 + $0xb64] ss:$16 sps:$4 sm:$0xff]  }
 0x134   :  { %6711 = vmatprep.subr.bf16.mxu0 %v10199_v19  ;;  %7527 = vmatprep.subr.bf16.mxu1 %v10202_v20  ;;  %v10288_v19 = vld [vmem:[%s14770_s1 + $0xb6c] ss:$16 sps:$4 sm:$0xff]   ;;  %v10283_v20 = vld [vmem:[%s14770_s1 + $0xb60] ss:$16 sps:$4 sm:$0xff]  }
 0x137   :  { %6712 = vmatpush1.bf16.msra.mxu0 %v10197_v21  ;;  %7528 = vmatpush1.bf16.msra.mxu1 %v10200_v22  ;;  %v10286_v21 = vld [vmem:[%s14770_s1 + $0xb68] ss:$16 sps:$4 sm:$0xff]   ;;  %v10291_v22 = vld [vmem:[%s14770_s1 + $0xb84] ss:$16 sps:$4 sm:$0xff]  }
 0x138   :  { %6713 = vmatprep.subr.bf16.mxu0 %v10206_v23  ;;  %7529 = vmatprep.subr.bf16.mxu1 %v10209_v24  ;;  %v10294_v23 = vld [vmem:[%s14770_s1 + $0xb8c] ss:$16 sps:$4 sm:$0xff]   ;;  %v10289_v24 = vld [vmem:[%s14770_s1 + $0xb80] ss:$16 sps:$4 sm:$0xff]  }
 0x13b   :  { %6714 = vmatpush1.bf16.msra.mxu0 %v10204_v25  ;;  %7530 = vmatpush1.bf16.msra.mxu1 %v10207_v26  ;;  %v10292_v25 = vld [vmem:[%s14770_s1 + $0xb88] ss:$16 sps:$4 sm:$0xff]   ;;  %v10297_v26 = vld [vmem:[%s14770_s1 + $0xba4] ss:$16 sps:$4 sm:$0xff]  }
 0x13c   :  { %6715 = vmatprep.subr.bf16.mxu0 %v10213_v27  ;;  %7531 = vmatprep.subr.bf16.mxu1 %v10216_v28  ;;  %v10300_v27 = vld [vmem:[%s14770_s1 + $0xbac] ss:$16 sps:$4 sm:$0xff]   ;;  %v10295_v28 = vld [vmem:[%s14770_s1 + $0xba0] ss:$16 sps:$4 sm:$0xff]  }
 0x13f   :  { %6716 = vmatpush1.bf16.msra.mxu0 %v10211_v29  ;;  %7532 = vmatpush1.bf16.msra.mxu1 %v10214_v30  ;;  %v10298_v29 = vld [vmem:[%s14770_s1 + $0xba8] ss:$16 sps:$4 sm:$0xff]   ;;  %v10304_v30 = vld [vmem:[%s14770_s1 + $0xbc4] ss:$16 sps:$4 sm:$0xff]  }
 0x140   :  { %6736 = vmatprep.subr.bf16.mxu0 %v10219_v31  ;;  %7552 = vmatprep.subr.bf16.mxu1 %v10222_v32  ;;  %v10307_v31 = vld [vmem:[%s14770_s1 + $0xbcc] ss:$16 sps:$4 sm:$0xff]   ;;  %v10302_v32 = vld [vmem:[%s14770_s1 + $0xbc0] ss:$16 sps:$4 sm:$0xff]  }
 0x142   :  { %6718 = vmatmul.mubr.bf16.vlgmr.msra.gmra.mrb[0].mxu0 %v8397_v34  ;;  %7534 = vmatmul.mubr.bf16.vlgmr.msra.gmra.mrb[0].mxu1 %v8397_v34  ;;  %v10311_v34 = vld [vmem:[%s14770_s1 + $0xbe4] ss:$16 sps:$4 sm:$0xff]  }
 0x143   :  { %6737 = vmatpush1.bf16.msra.mxu0 %v10217_v35  ;;  %7553 = vmatpush1.bf16.msra.mxu1 %v10220_v36  ;;  %v10314_v35 = vld [vmem:[%s14770_s1 + $0xbec] ss:$16 sps:$4 sm:$0xff]   ;;  %v10309_v36 = vld [vmem:[%s14770_s1 + $0xbe0] ss:$16 sps:$4 sm:$0xff]  }
 0x144   :  { %6738 = vmatprep.subr.bf16.mxu0 %v10225_v37  ;;  %7554 = vmatprep.subr.bf16.mxu1 %v10228_v38  ;;  %v10312_v37 = vld [vmem:[%s14770_s1 + $0xbe8] ss:$16 sps:$4 sm:$0xff]   ;;  %v10317_v38 = vld [vmem:[%s14770_s1 + $0xc04] ss:$16 sps:$4 sm:$0xff]  }
 0x145   :  { %6727 = vmatprep.mubr.bf16.mxu0 %v8430_v41  ;;  %7543 = vmatprep.mubr.bf16.mxu1 %v8430_v41  ;;  %v8399_v41 = vcombine.low %v12400_v44, %v12405_v45  ;;  %v10326_v44 = vld [vmem:[%s14770_s1 + $0xc2c] ss:$16 sps:$4 sm:$0xff]   ;;  %v10321_v45 = vld [vmem:[%s14770_s1 + $0xc20] ss:$16 sps:$4 sm:$0xff]  }
 0x147   :  { %6739 = vmatpush1.bf16.msra.mxu0 %v10223_v39  ;;  %7555 = vmatpush1.bf16.msra.mxu1 %v10226_v40  ;;  %v10320_v39 = vld [vmem:[%s14770_s1 + $0xc0c] ss:$16 sps:$4 sm:$0xff]  }
 0x148   :  { %6740 = vmatprep.subr.bf16.mxu0 %v10231_v42  ;;  %7556 = vmatprep.subr.bf16.mxu1 %v10234_v43  ;;  %v54_v40 = vld [vmem:[%s14771_s0 + $0x128] sm:$0x11]  ;;  %v10315_v42 = vld [vmem:[%s14770_s1 + $0xc00] ss:$16 sps:$4 sm:$0xff]  }
 0x149   :  { %v10318_v43 = vld [vmem:[%s14770_s1 + $0xc08] ss:$16 sps:$4 sm:$0xff]  }
 0x14a   :  { %6728 = vmatmul.mubr.bf16.gmra.mrb[4].mxu0 %v8429_v46  ;;  %7544 = vmatmul.mubr.bf16.gmra.mrb[4].mxu1 %v8429_v46  ;;  %v10323_v46 = vld [vmem:[%s14770_s1 + $0xc24] ss:$16 sps:$4 sm:$0xff]  }
 0x14b   :  { %6741 = vmatpush1.bf16.msra.mxu0 %v10229_v47  ;;  %7557 = vmatpush1.bf16.msra.mxu1 %v10232_v48  ;;  %v10324_v47 = vld [vmem:[%s14770_s1 + $0xc28] ss:$16 sps:$4 sm:$0xff]   ;;  %v8432_v48 = vcombine.high %v54_v40, %v54_v40 }
 0x14c   :  { %6742 = vmatprep.subr.bf16.mxu0 %v10237_v49  ;;  %7558 = vmatprep.subr.bf16.mxu1 %v10240_v50  ;;  %v10329_v49 = vld [vmem:[%s14770_s1 + $0xc44] ss:$16 sps:$4 sm:$0xff]   ;;  %v10332_v50 = vld [vmem:[%s14770_s1 + $0xc4c] ss:$16 sps:$4 sm:$0xff]  }
 0x14d   :  { %6768 = vmatprep.mubr.bf16.mxu0 %v8400_v51  ;;  %7584 = vmatprep.mubr.bf16.mxu1 %v8400_v51  ;;  %v12609_v51 = vld [vmem:[%s14771_s0 + $0x30] sm:$0xff] }
 0x14f   :  { %6743 = vmatpush1.bf16.msra.mxu0 %v10235_v52  ;;  %7559 = vmatpush1.bf16.msra.mxu1 %v10238_v53  ;;  %v12614_v52 = vld [vmem:[%s14771_s0 + $0xb0] sm:$0xff]  ;;  %v8431_v53 = vcombine.low %v54_v40, %v54_v40  ;;  %v10403_v40 = vld [vmem:[%s14770_s1 + $0xdc8] ss:$16 sps:$4 sm:$0xff]  }
 0x150   :  { %6744 = vmatprep.subr.bf16.mxu0 %v10243_v54  ;;  %7560 = vmatprep.subr.bf16.mxu1 %v10246_v55  ;;  %v10327_v54 = vld [vmem:[%s14770_s1 + $0xc40] ss:$16 sps:$4 sm:$0xff]   ;;  %v10330_v55 = vld [vmem:[%s14770_s1 + $0xc48] ss:$16 sps:$4 sm:$0xff]  }
 0x153   :  { %6745 = vmatpush1.bf16.msra.mxu0 %v10241_v56  ;;  %7561 = vmatpush1.bf16.msra.mxu1 %v10244_v57  ;;  %v10335_v56 = vld [vmem:[%s14770_s1 + $0xc64] ss:$16 sps:$4 sm:$0xff]   ;;  %v10338_v57 = vld [vmem:[%s14770_s1 + $0xc6c] ss:$16 sps:$4 sm:$0xff]  }
 0x154   :  { %6746 = vmatprep.subr.bf16.mxu0 %v10249_v58  ;;  %7562 = vmatprep.subr.bf16.mxu1 %v10252_v59  ;;  %v8402_v58 = vcombine.high %v12609_v51, %v12614_v52  ;;  %v10333_v59 = vld [vmem:[%s14770_s1 + $0xc60] ss:$16 sps:$4 sm:$0xff]  }
 0x157   :  { %6747 = vmatpush1.bf16.msra.mxu0 %v10247_v60  ;;  %7563 = vmatpush1.bf16.msra.mxu1 %v10250_v61  ;;  %v10336_v60 = vld [vmem:[%s14770_s1 + $0xc68] ss:$16 sps:$4 sm:$0xff]   ;;  %v10341_v61 = vld [vmem:[%s14770_s1 + $0xc84] ss:$16 sps:$4 sm:$0xff]  }
 0x158   :  { %6748 = vmatprep.subr.bf16.mxu0 %v10255_v62  ;;  %7564 = vmatprep.subr.bf16.mxu1 %v10258_v63  ;;  %v10344_v62 = vld [vmem:[%s14770_s1 + $0xc8c] ss:$16 sps:$4 sm:$0xff]   ;;  %v10339_v63 = vld [vmem:[%s14770_s1 + $0xc80] ss:$16 sps:$4 sm:$0xff]  }
 0x15b   :  { %6749 = vmatpush1.bf16.msra.mxu0 %v10253_v0  ;;  %7565 = vmatpush1.bf16.msra.mxu1 %v10256_v1  ;;  %v10342_v0 = vld [vmem:[%s14770_s1 + $0xc88] ss:$16 sps:$4 sm:$0xff]   ;;  %v10347_v1 = vld [vmem:[%s14770_s1 + $0xca4] ss:$16 sps:$4 sm:$0xff]  }
 0x15c   :  { %6750 = vmatprep.subr.bf16.mxu0 %v10261_v2  ;;  %7566 = vmatprep.subr.bf16.mxu1 %v10264_v3  ;;  %v10350_v2 = vld [vmem:[%s14770_s1 + $0xcac] ss:$16 sps:$4 sm:$0xff]   ;;  %v10345_v3 = vld [vmem:[%s14770_s1 + $0xca0] ss:$16 sps:$4 sm:$0xff]  }
 0x15f   :  { %6751 = vmatpush1.bf16.msra.mxu0 %v10259_v4  ;;  %7567 = vmatpush1.bf16.msra.mxu1 %v10262_v5  ;;  %v10348_v4 = vld [vmem:[%s14770_s1 + $0xca8] ss:$16 sps:$4 sm:$0xff]   ;;  %v10353_v5 = vld [vmem:[%s14770_s1 + $0xcc4] ss:$16 sps:$4 sm:$0xff]  }
 0x160   :  { %6752 = vmatprep.subr.bf16.mxu0 %v10267_v6  ;;  %7568 = vmatprep.subr.bf16.mxu1 %v10270_v7  ;;  %v10356_v6 = vld [vmem:[%s14770_s1 + $0xccc] ss:$16 sps:$4 sm:$0xff]   ;;  %v10351_v7 = vld [vmem:[%s14770_s1 + $0xcc0] ss:$16 sps:$4 sm:$0xff]  }
 0x163   :  { %6753 = vmatpush1.bf16.msra.mxu0 %v10265_v8  ;;  %7569 = vmatpush1.bf16.msra.mxu1 %v10268_v9  ;;  %v10354_v8 = vld [vmem:[%s14770_s1 + $0xcc8] ss:$16 sps:$4 sm:$0xff]   ;;  %v10359_v9 = vld [vmem:[%s14770_s1 + $0xce4] ss:$16 sps:$4 sm:$0xff]  }
 0x164   :  { %6754 = vmatprep.subr.bf16.mxu0 %v10273_v10  ;;  %7570 = vmatprep.subr.bf16.mxu1 %v10276_v11  ;;  %v10362_v10 = vld [vmem:[%s14770_s1 + $0xcec] ss:$16 sps:$4 sm:$0xff]   ;;  %v10357_v11 = vld [vmem:[%s14770_s1 + $0xce0] ss:$16 sps:$4 sm:$0xff]  }
 0x167   :  { %6755 = vmatpush1.bf16.msra.mxu0 %v10271_v12  ;;  %7571 = vmatpush1.bf16.msra.mxu1 %v10274_v13  ;;  %v10360_v12 = vld [vmem:[%s14770_s1 + $0xce8] ss:$16 sps:$4 sm:$0xff]   ;;  %v10365_v13 = vld [vmem:[%s14770_s1 + $0xd04] ss:$16 sps:$4 sm:$0xff]  }
 0x168   :  { %6756 = vmatprep.subr.bf16.mxu0 %v10279_v14  ;;  %7572 = vmatprep.subr.bf16.mxu1 %v10282_v15  ;;  %v10368_v14 = vld [vmem:[%s14770_s1 + $0xd0c] ss:$16 sps:$4 sm:$0xff]   ;;  %v10363_v15 = vld [vmem:[%s14770_s1 + $0xd00] ss:$16 sps:$4 sm:$0xff]  }
 0x16b   :  { %6757 = vmatpush1.bf16.msra.mxu0 %v10277_v16  ;;  %7573 = vmatpush1.bf16.msra.mxu1 %v10280_v17  ;;  %v10366_v16 = vld [vmem:[%s14770_s1 + $0xd08] ss:$16 sps:$4 sm:$0xff]   ;;  %v10371_v17 = vld [vmem:[%s14770_s1 + $0xd24] ss:$16 sps:$4 sm:$0xff]  }
 0x16c   :  { %6758 = vmatprep.subr.bf16.mxu0 %v10285_v18  ;;  %7574 = vmatprep.subr.bf16.mxu1 %v10288_v19  ;;  %v10374_v18 = vld [vmem:[%s14770_s1 + $0xd2c] ss:$16 sps:$4 sm:$0xff]   ;;  %v10369_v19 = vld [vmem:[%s14770_s1 + $0xd20] ss:$16 sps:$4 sm:$0xff]  }
 0x16f   :  { %6759 = vmatpush1.bf16.msra.mxu0 %v10283_v20  ;;  %7575 = vmatpush1.bf16.msra.mxu1 %v10286_v21  ;;  %v10372_v20 = vld [vmem:[%s14770_s1 + $0xd28] ss:$16 sps:$4 sm:$0xff]   ;;  %v10377_v21 = vld [vmem:[%s14770_s1 + $0xd44] ss:$16 sps:$4 sm:$0xff]  }
 0x170   :  { %6760 = vmatprep.subr.bf16.mxu0 %v10291_v22  ;;  %7576 = vmatprep.subr.bf16.mxu1 %v10294_v23  ;;  %v10380_v22 = vld [vmem:[%s14770_s1 + $0xd4c] ss:$16 sps:$4 sm:$0xff]   ;;  %v10375_v23 = vld [vmem:[%s14770_s1 + $0xd40] ss:$16 sps:$4 sm:$0xff]  }
 0x173   :  { %6761 = vmatpush1.bf16.msra.mxu0 %v10289_v24  ;;  %7577 = vmatpush1.bf16.msra.mxu1 %v10292_v25  ;;  %v10378_v24 = vld [vmem:[%s14770_s1 + $0xd48] ss:$16 sps:$4 sm:$0xff]   ;;  %v10383_v25 = vld [vmem:[%s14770_s1 + $0xd64] ss:$16 sps:$4 sm:$0xff]  }
 0x174   :  { %6762 = vmatprep.subr.bf16.mxu0 %v10297_v26  ;;  %7578 = vmatprep.subr.bf16.mxu1 %v10300_v27  ;;  %v10386_v26 = vld [vmem:[%s14770_s1 + $0xd6c] ss:$16 sps:$4 sm:$0xff]   ;;  %v10381_v27 = vld [vmem:[%s14770_s1 + $0xd60] ss:$16 sps:$4 sm:$0xff]  }
 0x177   :  { %6763 = vmatpush1.bf16.msra.mxu0 %v10295_v28  ;;  %7579 = vmatpush1.bf16.msra.mxu1 %v10298_v29  ;;  %v10384_v28 = vld [vmem:[%s14770_s1 + $0xd68] ss:$16 sps:$4 sm:$0xff]   ;;  %v10389_v29 = vld [vmem:[%s14770_s1 + $0xd84] ss:$16 sps:$4 sm:$0xff]  }
 0x178   :  { %6764 = vmatprep.subr.bf16.mxu0 %v10304_v30  ;;  %7580 = vmatprep.subr.bf16.mxu1 %v10307_v31  ;;  %v10392_v30 = vld [vmem:[%s14770_s1 + $0xd8c] ss:$16 sps:$4 sm:$0xff]   ;;  %v10387_v31 = vld [vmem:[%s14770_s1 + $0xd80] ss:$16 sps:$4 sm:$0xff]  }
 0x17b   :  { %6765 = vmatpush1.bf16.msra.mxu0 %v10302_v32  ;;  %7581 = vmatpush1.bf16.msra.mxu1 %v10305_v33  ;;  %v10390_v32 = vld [vmem:[%s14770_s1 + $0xd88] ss:$16 sps:$4 sm:$0xff]   ;;  %v10395_v33 = vld [vmem:[%s14770_s1 + $0xda4] ss:$16 sps:$4 sm:$0xff]  }
 0x17c   :  { %6766 = vmatprep.subr.bf16.mxu0 %v10311_v34  ;;  %7582 = vmatprep.subr.bf16.mxu1 %v10314_v35  ;;  %v10398_v34 = vld [vmem:[%s14770_s1 + $0xdac] ss:$16 sps:$4 sm:$0xff]   ;;  %v10393_v35 = vld [vmem:[%s14770_s1 + $0xda0] ss:$16 sps:$4 sm:$0xff]  }
 0x17f   :  { %6767 = vmatpush1.bf16.msra.mxu0 %v10309_v36  ;;  %7583 = vmatpush1.bf16.msra.mxu1 %v10312_v37  ;;  %v10396_v36 = vld [vmem:[%s14770_s1 + $0xda8] ss:$16 sps:$4 sm:$0xff]   ;;  %v10402_v37 = vld [vmem:[%s14770_s1 + $0xdc4] ss:$16 sps:$4 sm:$0xff]  }
 0x180   :  { %6787 = vmatprep.subr.bf16.mxu0 %v10317_v38  ;;  %7603 = vmatprep.subr.bf16.mxu1 %v10320_v39  ;;  %v10405_v38 = vld [vmem:[%s14770_s1 + $0xdcc] ss:$16 sps:$4 sm:$0xff]   ;;  %v10400_v39 = vld [vmem:[%s14770_s1 + $0xdc0] ss:$16 sps:$4 sm:$0xff]  }
 0x182   :  { %6769 = vmatmul.mubr.bf16.vlgmr.msra.gmra.mrb[0].mxu0 %v8399_v41  ;;  %7585 = vmatmul.mubr.bf16.vlgmr.msra.gmra.mrb[0].mxu1 %v8399_v41  ;;  %v10409_v41 = vld [vmem:[%s14770_s1 + $0xde4] ss:$16 sps:$4 sm:$0xff]  }
 0x183   :  { %6788 = vmatpush1.bf16.msra.mxu0 %v10315_v42  ;;  %7604 = vmatpush1.bf16.msra.mxu1 %v10318_v43  ;;  %v10412_v42 = vld [vmem:[%s14770_s1 + $0xdec] ss:$16 sps:$4 sm:$0xff]   ;;  %v10407_v43 = vld [vmem:[%s14770_s1 + $0xde0] ss:$16 sps:$4 sm:$0xff]  }
 0x184   :  { %6789 = vmatprep.subr.bf16.mxu0 %v10323_v46  ;;  %7605 = vmatprep.subr.bf16.mxu1 %v10326_v44  ;;  %v10410_v46 = vld [vmem:[%s14770_s1 + $0xde8] ss:$16 sps:$4 sm:$0xff]   ;;  %v10415_v44 = vld [vmem:[%s14770_s1 + $0xe04] ss:$16 sps:$4 sm:$0xff]  }
 0x185   :  { %6778 = vmatprep.mubr.bf16.mxu0 %v8432_v48  ;;  %7594 = vmatprep.mubr.bf16.mxu1 %v8432_v48  ;;  %v8401_v48 = vcombine.low %v12609_v51, %v12614_v52  ;;  %v10424_v51 = vld [vmem:[%s14770_s1 + $0xe2c] ss:$16 sps:$4 sm:$0xff]   ;;  %v10419_v52 = vld [vmem:[%s14770_s1 + $0xe20] ss:$16 sps:$4 sm:$0xff]  }
 0x187   :  { %6790 = vmatpush1.bf16.msra.mxu0 %v10321_v45  ;;  %7606 = vmatpush1.bf16.msra.mxu1 %v10324_v47  ;;  %v10418_v45 = vld [vmem:[%s14770_s1 + $0xe0c] ss:$16 sps:$4 sm:$0xff]   ;;  %v55_v47 = vld [vmem:[%s14771_s0 + $0x130] sm:$0x11] }
 0x188   :  { %6791 = vmatprep.subr.bf16.mxu0 %v10329_v49  ;;  %7607 = vmatprep.subr.bf16.mxu1 %v10332_v50  ;;  %v10413_v49 = vld [vmem:[%s14770_s1 + $0xe00] ss:$16 sps:$4 sm:$0xff]   ;;  %v10416_v50 = vld [vmem:[%s14770_s1 + $0xe08] ss:$16 sps:$4 sm:$0xff]  }
 0x18a   :  { %6779 = vmatmul.mubr.bf16.gmra.mrb[4].mxu0 %v8431_v53  ;;  %7595 = vmatmul.mubr.bf16.gmra.mrb[4].mxu1 %v8431_v53  ;;  %v10421_v53 = vld [vmem:[%s14770_s1 + $0xe24] ss:$16 sps:$4 sm:$0xff]  }
 0x18b   :  { %6792 = vmatpush1.bf16.msra.mxu0 %v10327_v54  ;;  %7608 = vmatpush1.bf16.msra.mxu1 %v10330_v55  ;;  %v10422_v54 = vld [vmem:[%s14770_s1 + $0xe28] ss:$16 sps:$4 sm:$0xff]   ;;  %v8434_v55 = vcombine.high %v55_v47, %v55_v47 }
 0x18c   :  { %6793 = vmatprep.subr.bf16.mxu0 %v10335_v56  ;;  %7609 = vmatprep.subr.bf16.mxu1 %v10338_v57  ;;  %v10427_v56 = vld [vmem:[%s14770_s1 + $0xe44] ss:$16 sps:$4 sm:$0xff]   ;;  %v10430_v57 = vld [vmem:[%s14770_s1 + $0xe4c] ss:$16 sps:$4 sm:$0xff]  }
 0x18d   :  { %6819 = vmatprep.mubr.bf16.mxu0 %v8402_v58  ;;  %7635 = vmatprep.mubr.bf16.mxu1 %v8402_v58  ;;  %v12818_v58 = vld [vmem:[%s14771_s0 + $0x38] sm:$0xff] }
 0x18f   :  { %6794 = vmatpush1.bf16.msra.mxu0 %v10333_v59  ;;  %7610 = vmatpush1.bf16.msra.mxu1 %v10336_v60  ;;  %v12823_v59 = vld [vmem:[%s14771_s0 + $0xb8] sm:$0xff]  ;;  %v8433_v60 = vcombine.low %v55_v47, %v55_v47 }
 0x190   :  { %6795 = vmatprep.subr.bf16.mxu0 %v10341_v61  ;;  %7611 = vmatprep.subr.bf16.mxu1 %v10344_v62  ;;  %v10425_v61 = vld [vmem:[%s14770_s1 + $0xe40] ss:$16 sps:$4 sm:$0xff]   ;;  %v10428_v62 = vld [vmem:[%s14770_s1 + $0xe48] ss:$16 sps:$4 sm:$0xff]  }
 0x191   :  { %v10501_v47 = vld [vmem:[%s14770_s1 + $0xfc8] ss:$16 sps:$4 sm:$0xff]  }
 0x193   :  { %6796 = vmatpush1.bf16.msra.mxu0 %v10339_v63  ;;  %7612 = vmatpush1.bf16.msra.mxu1 %v10342_v0  ;;  %v10433_v63 = vld [vmem:[%s14770_s1 + $0xe64] ss:$16 sps:$4 sm:$0xff]   ;;  %v10436_v0 = vld [vmem:[%s14770_s1 + $0xe6c] ss:$16 sps:$4 sm:$0xff]  }
 0x194   :  { %6797 = vmatprep.subr.bf16.mxu0 %v10347_v1  ;;  %7613 = vmatprep.subr.bf16.mxu1 %v10350_v2  ;;  %v8404_v1 = vcombine.high %v12818_v58, %v12823_v59  ;;  %v10431_v2 = vld [vmem:[%s14770_s1 + $0xe60] ss:$16 sps:$4 sm:$0xff]  }
 0x197   :  { %6798 = vmatpush1.bf16.msra.mxu0 %v10345_v3  ;;  %7614 = vmatpush1.bf16.msra.mxu1 %v10348_v4  ;;  %v10434_v3 = vld [vmem:[%s14770_s1 + $0xe68] ss:$16 sps:$4 sm:$0xff]   ;;  %v10439_v4 = vld [vmem:[%s14770_s1 + $0xe84] ss:$16 sps:$4 sm:$0xff]  }
 0x198   :  { %6799 = vmatprep.subr.bf16.mxu0 %v10353_v5  ;;  %7615 = vmatprep.subr.bf16.mxu1 %v10356_v6  ;;  %v10442_v5 = vld [vmem:[%s14770_s1 + $0xe8c] ss:$16 sps:$4 sm:$0xff]   ;;  %v10437_v6 = vld [vmem:[%s14770_s1 + $0xe80] ss:$16 sps:$4 sm:$0xff]  }
 0x19b   :  { %6800 = vmatpush1.bf16.msra.mxu0 %v10351_v7  ;;  %7616 = vmatpush1.bf16.msra.mxu1 %v10354_v8  ;;  %v10440_v7 = vld [vmem:[%s14770_s1 + $0xe88] ss:$16 sps:$4 sm:$0xff]   ;;  %v10445_v8 = vld [vmem:[%s14770_s1 + $0xea4] ss:$16 sps:$4 sm:$0xff]  }
 0x19c   :  { %6801 = vmatprep.subr.bf16.mxu0 %v10359_v9  ;;  %7617 = vmatprep.subr.bf16.mxu1 %v10362_v10  ;;  %v10448_v9 = vld [vmem:[%s14770_s1 + $0xeac] ss:$16 sps:$4 sm:$0xff]   ;;  %v10443_v10 = vld [vmem:[%s14770_s1 + $0xea0] ss:$16 sps:$4 sm:$0xff]  }
 0x19f   :  { %6802 = vmatpush1.bf16.msra.mxu0 %v10357_v11  ;;  %7618 = vmatpush1.bf16.msra.mxu1 %v10360_v12  ;;  %v10446_v11 = vld [vmem:[%s14770_s1 + $0xea8] ss:$16 sps:$4 sm:$0xff]   ;;  %v10451_v12 = vld [vmem:[%s14770_s1 + $0xec4] ss:$16 sps:$4 sm:$0xff]  }
 0x1a0   :  { %6803 = vmatprep.subr.bf16.mxu0 %v10365_v13  ;;  %7619 = vmatprep.subr.bf16.mxu1 %v10368_v14  ;;  %v10454_v13 = vld [vmem:[%s14770_s1 + $0xecc] ss:$16 sps:$4 sm:$0xff]   ;;  %v10449_v14 = vld [vmem:[%s14770_s1 + $0xec0] ss:$16 sps:$4 sm:$0xff]  }
 0x1a3   :  { %6804 = vmatpush1.bf16.msra.mxu0 %v10363_v15  ;;  %7620 = vmatpush1.bf16.msra.mxu1 %v10366_v16  ;;  %v10452_v15 = vld [vmem:[%s14770_s1 + $0xec8] ss:$16 sps:$4 sm:$0xff]   ;;  %v10457_v16 = vld [vmem:[%s14770_s1 + $0xee4] ss:$16 sps:$4 sm:$0xff]  }
 0x1a4   :  { %6805 = vmatprep.subr.bf16.mxu0 %v10371_v17  ;;  %7621 = vmatprep.subr.bf16.mxu1 %v10374_v18  ;;  %v10460_v17 = vld [vmem:[%s14770_s1 + $0xeec] ss:$16 sps:$4 sm:$0xff]   ;;  %v10455_v18 = vld [vmem:[%s14770_s1 + $0xee0] ss:$16 sps:$4 sm:$0xff]  }
 0x1a7   :  { %6806 = vmatpush1.bf16.msra.mxu0 %v10369_v19  ;;  %7622 = vmatpush1.bf16.msra.mxu1 %v10372_v20  ;;  %v10458_v19 = vld [vmem:[%s14770_s1 + $0xee8] ss:$16 sps:$4 sm:$0xff]   ;;  %v10463_v20 = vld [vmem:[%s14770_s1 + $0xf04] ss:$16 sps:$4 sm:$0xff]  }
 0x1a8   :  { %6807 = vmatprep.subr.bf16.mxu0 %v10377_v21  ;;  %7623 = vmatprep.subr.bf16.mxu1 %v10380_v22  ;;  %v10466_v21 = vld [vmem:[%s14770_s1 + $0xf0c] ss:$16 sps:$4 sm:$0xff]   ;;  %v10461_v22 = vld [vmem:[%s14770_s1 + $0xf00] ss:$16 sps:$4 sm:$0xff]  }
 0x1ab   :  { %6808 = vmatpush1.bf16.msra.mxu0 %v10375_v23  ;;  %7624 = vmatpush1.bf16.msra.mxu1 %v10378_v24  ;;  %v10464_v23 = vld [vmem:[%s14770_s1 + $0xf08] ss:$16 sps:$4 sm:$0xff]   ;;  %v10469_v24 = vld [vmem:[%s14770_s1 + $0xf24] ss:$16 sps:$4 sm:$0xff]  }
 0x1ac   :  { %6809 = vmatprep.subr.bf16.mxu0 %v10383_v25  ;;  %7625 = vmatprep.subr.bf16.mxu1 %v10386_v26  ;;  %v10472_v25 = vld [vmem:[%s14770_s1 + $0xf2c] ss:$16 sps:$4 sm:$0xff]   ;;  %v10467_v26 = vld [vmem:[%s14770_s1 + $0xf20] ss:$16 sps:$4 sm:$0xff]  }
 0x1af   :  { %6810 = vmatpush1.bf16.msra.mxu0 %v10381_v27  ;;  %7626 = vmatpush1.bf16.msra.mxu1 %v10384_v28  ;;  %v10470_v27 = vld [vmem:[%s14770_s1 + $0xf28] ss:$16 sps:$4 sm:$0xff]   ;;  %v10475_v28 = vld [vmem:[%s14770_s1 + $0xf44] ss:$16 sps:$4 sm:$0xff]  }
 0x1b0   :  { %6811 = vmatprep.subr.bf16.mxu0 %v10389_v29  ;;  %7627 = vmatprep.subr.bf16.mxu1 %v10392_v30  ;;  %v10478_v29 = vld [vmem:[%s14770_s1 + $0xf4c] ss:$16 sps:$4 sm:$0xff]   ;;  %v10473_v30 = vld [vmem:[%s14770_s1 + $0xf40] ss:$16 sps:$4 sm:$0xff]  }
 0x1b3   :  { %6812 = vmatpush1.bf16.msra.mxu0 %v10387_v31  ;;  %7628 = vmatpush1.bf16.msra.mxu1 %v10390_v32  ;;  %v10476_v31 = vld [vmem:[%s14770_s1 + $0xf48] ss:$16 sps:$4 sm:$0xff]   ;;  %v10481_v32 = vld [vmem:[%s14770_s1 + $0xf64] ss:$16 sps:$4 sm:$0xff]  }
 0x1b4   :  { %6813 = vmatprep.subr.bf16.mxu0 %v10395_v33  ;;  %7629 = vmatprep.subr.bf16.mxu1 %v10398_v34  ;;  %v10484_v33 = vld [vmem:[%s14770_s1 + $0xf6c] ss:$16 sps:$4 sm:$0xff]   ;;  %v10479_v34 = vld [vmem:[%s14770_s1 + $0xf60] ss:$16 sps:$4 sm:$0xff]  }
 0x1b7   :  { %6814 = vmatpush1.bf16.msra.mxu0 %v10393_v35  ;;  %7630 = vmatpush1.bf16.msra.mxu1 %v10396_v36  ;;  %v10482_v35 = vld [vmem:[%s14770_s1 + $0xf68] ss:$16 sps:$4 sm:$0xff]   ;;  %v10487_v36 = vld [vmem:[%s14770_s1 + $0xf84] ss:$16 sps:$4 sm:$0xff]  }
 0x1b8   :  { %6815 = vmatprep.subr.bf16.mxu0 %v10402_v37  ;;  %7631 = vmatprep.subr.bf16.mxu1 %v10405_v38  ;;  %v10490_v37 = vld [vmem:[%s14770_s1 + $0xf8c] ss:$16 sps:$4 sm:$0xff]   ;;  %v10485_v38 = vld [vmem:[%s14770_s1 + $0xf80] ss:$16 sps:$4 sm:$0xff]  }
 0x1bb   :  { %6816 = vmatpush1.bf16.msra.mxu0 %v10400_v39  ;;  %7632 = vmatpush1.bf16.msra.mxu1 %v10403_v40  ;;  %v10488_v39 = vld [vmem:[%s14770_s1 + $0xf88] ss:$16 sps:$4 sm:$0xff]   ;;  %v10493_v40 = vld [vmem:[%s14770_s1 + $0xfa4] ss:$16 sps:$4 sm:$0xff]  }
 0x1bc   :  { %6817 = vmatprep.subr.bf16.mxu0 %v10409_v41  ;;  %7633 = vmatprep.subr.bf16.mxu1 %v10412_v42  ;;  %v10496_v41 = vld [vmem:[%s14770_s1 + $0xfac] ss:$16 sps:$4 sm:$0xff]   ;;  %v10491_v42 = vld [vmem:[%s14770_s1 + $0xfa0] ss:$16 sps:$4 sm:$0xff]  }
 0x1bf   :  { %6818 = vmatpush1.bf16.msra.mxu0 %v10407_v43  ;;  %7634 = vmatpush1.bf16.msra.mxu1 %v10410_v46  ;;  %v10494_v43 = vld [vmem:[%s14770_s1 + $0xfa8] ss:$16 sps:$4 sm:$0xff]   ;;  %v10500_v46 = vld [vmem:[%s14770_s1 + $0xfc4] ss:$16 sps:$4 sm:$0xff]  }
 0x1c0   :  { %6838 = vmatprep.subr.bf16.mxu0 %v10415_v44  ;;  %7654 = vmatprep.subr.bf16.mxu1 %v10418_v45  ;;  %v10503_v44 = vld [vmem:[%s14770_s1 + $0xfcc] ss:$16 sps:$4 sm:$0xff]   ;;  %v10498_v45 = vld [vmem:[%s14770_s1 + $0xfc0] ss:$16 sps:$4 sm:$0xff]  }
 0x1c2   :  { %6820 = vmatmul.mubr.bf16.vlgmr.msra.gmra.mrb[0].mxu0 %v8401_v48  ;;  %7636 = vmatmul.mubr.bf16.vlgmr.msra.gmra.mrb[0].mxu1 %v8401_v48  ;;  %v10507_v48 = vld [vmem:[%s14770_s1 + $0xfe4] ss:$16 sps:$4 sm:$0xff]  }
 0x1c3   :  { %6839 = vmatpush1.bf16.msra.mxu0 %v10413_v49  ;;  %7655 = vmatpush1.bf16.msra.mxu1 %v10416_v50  ;;  %v10510_v49 = vld [vmem:[%s14770_s1 + $0xfec] ss:$16 sps:$4 sm:$0xff]   ;;  %v10505_v50 = vld [vmem:[%s14770_s1 + $0xfe0] ss:$16 sps:$4 sm:$0xff]  }
 0x1c4   :  { %6840 = vmatprep.subr.bf16.mxu0 %v10421_v53  ;;  %7656 = vmatprep.subr.bf16.mxu1 %v10424_v51  ;;  %v10508_v53 = vld [vmem:[%s14770_s1 + $0xfe8] ss:$16 sps:$4 sm:$0xff]   ;;  %v10513_v51 = vld [vmem:[%s14770_s1 + $0x1004] ss:$16 sps:$4 sm:$0xff]  }
 0x1c5   :  { %6829 = vmatprep.mubr.bf16.mxu0 %v8434_v55  ;;  %7645 = vmatprep.mubr.bf16.mxu1 %v8434_v55  ;;  %v8403_v55 = vcombine.low %v12818_v58, %v12823_v59  ;;  %v10522_v58 = vld [vmem:[%s14770_s1 + $0x102c] ss:$16 sps:$4 sm:$0xff]   ;;  %v10517_v59 = vld [vmem:[%s14770_s1 + $0x1020] ss:$16 sps:$4 sm:$0xff]  }
 0x1c7   :  { %6841 = vmatpush1.bf16.msra.mxu0 %v10419_v52  ;;  %7657 = vmatpush1.bf16.msra.mxu1 %v10422_v54  ;;  %v10516_v52 = vld [vmem:[%s14770_s1 + $0x100c] ss:$16 sps:$4 sm:$0xff]  }
 0x1c8   :  { %6842 = vmatprep.subr.bf16.mxu0 %v10427_v56  ;;  %7658 = vmatprep.subr.bf16.mxu1 %v10430_v57  ;;  %v56_v54 = vld [vmem:[%s14771_s0 + $0x138] sm:$0x11]  ;;  %v10511_v56 = vld [vmem:[%s14770_s1 + $0x1000] ss:$16 sps:$4 sm:$0xff]  }
 0x1c9   :  { %v10514_v57 = vld [vmem:[%s14770_s1 + $0x1008] ss:$16 sps:$4 sm:$0xff]  }
 0x1ca   :  { %6830 = vmatmul.mubr.bf16.gmra.mrb[4].mxu0 %v8433_v60  ;;  %7646 = vmatmul.mubr.bf16.gmra.mrb[4].mxu1 %v8433_v60  ;;  %v10519_v60 = vld [vmem:[%s14770_s1 + $0x1024] ss:$16 sps:$4 sm:$0xff]  }
 0x1cb   :  { %6843 = vmatpush1.bf16.msra.mxu0 %v10425_v61  ;;  %7659 = vmatpush1.bf16.msra.mxu1 %v10428_v62  ;;  %v10520_v61 = vld [vmem:[%s14770_s1 + $0x1028] ss:$16 sps:$4 sm:$0xff]   ;;  %v8436_v62 = vcombine.high %v56_v54, %v56_v54 }
 0x1cc   :  { %6844 = vmatprep.subr.bf16.mxu0 %v10433_v63  ;;  %7660 = vmatprep.subr.bf16.mxu1 %v10436_v0  ;;  %v10525_v63 = vld [vmem:[%s14770_s1 + $0x1044] ss:$16 sps:$4 sm:$0xff]   ;;  %v10528_v0 = vld [vmem:[%s14770_s1 + $0x104c] ss:$16 sps:$4 sm:$0xff]  }
 0x1cd   :  { %6870 = vmatprep.mubr.bf16.mxu0 %v8404_v1  ;;  %7686 = vmatprep.mubr.bf16.mxu1 %v8404_v1  ;;  %v13027_v1 = vld [vmem:[%s14771_s0 + $0x40] sm:$0xff] }
 0x1cf   :  { %6845 = vmatpush1.bf16.msra.mxu0 %v10431_v2  ;;  %7661 = vmatpush1.bf16.msra.mxu1 %v10434_v3  ;;  %v13032_v2 = vld [vmem:[%s14771_s0 + $0xc0] sm:$0xff]  ;;  %v8435_v3 = vcombine.low %v56_v54, %v56_v54  ;;  %v10599_v54 = vld [vmem:[%s14770_s1 + $0x11c8] ss:$16 sps:$4 sm:$0xff]  }
 0x1d0   :  { %6846 = vmatprep.subr.bf16.mxu0 %v10439_v4  ;;  %7662 = vmatprep.subr.bf16.mxu1 %v10442_v5  ;;  %v10523_v4 = vld [vmem:[%s14770_s1 + $0x1040] ss:$16 sps:$4 sm:$0xff]   ;;  %v10526_v5 = vld [vmem:[%s14770_s1 + $0x1048] ss:$16 sps:$4 sm:$0xff]  }
 0x1d3   :  { %6847 = vmatpush1.bf16.msra.mxu0 %v10437_v6  ;;  %7663 = vmatpush1.bf16.msra.mxu1 %v10440_v7  ;;  %v10531_v6 = vld [vmem:[%s14770_s1 + $0x1064] ss:$16 sps:$4 sm:$0xff]   ;;  %v10534_v7 = vld [vmem:[%s14770_s1 + $0x106c] ss:$16 sps:$4 sm:$0xff]  }
 0x1d4   :  { %6848 = vmatprep.subr.bf16.mxu0 %v10445_v8  ;;  %7664 = vmatprep.subr.bf16.mxu1 %v10448_v9  ;;  %v8406_v8 = vcombine.high %v13027_v1, %v13032_v2  ;;  %v10529_v9 = vld [vmem:[%s14770_s1 + $0x1060] ss:$16 sps:$4 sm:$0xff]  }
 0x1d7   :  { %6849 = vmatpush1.bf16.msra.mxu0 %v10443_v10  ;;  %7665 = vmatpush1.bf16.msra.mxu1 %v10446_v11  ;;  %v10532_v10 = vld [vmem:[%s14770_s1 + $0x1068] ss:$16 sps:$4 sm:$0xff]   ;;  %v10537_v11 = vld [vmem:[%s14770_s1 + $0x1084] ss:$16 sps:$4 sm:$0xff]  }
 0x1d8   :  { %6850 = vmatprep.subr.bf16.mxu0 %v10451_v12  ;;  %7666 = vmatprep.subr.bf16.mxu1 %v10454_v13  ;;  %v10540_v12 = vld [vmem:[%s14770_s1 + $0x108c] ss:$16 sps:$4 sm:$0xff]   ;;  %v10535_v13 = vld [vmem:[%s14770_s1 + $0x1080] ss:$16 sps:$4 sm:$0xff]  }
 0x1db   :  { %6851 = vmatpush1.bf16.msra.mxu0 %v10449_v14  ;;  %7667 = vmatpush1.bf16.msra.mxu1 %v10452_v15  ;;  %v10538_v14 = vld [vmem:[%s14770_s1 + $0x1088] ss:$16 sps:$4 sm:$0xff]   ;;  %v10543_v15 = vld [vmem:[%s14770_s1 + $0x10a4] ss:$16 sps:$4 sm:$0xff]  }
 0x1dc   :  { %6852 = vmatprep.subr.bf16.mxu0 %v10457_v16  ;;  %7668 = vmatprep.subr.bf16.mxu1 %v10460_v17  ;;  %v10546_v16 = vld [vmem:[%s14770_s1 + $0x10ac] ss:$16 sps:$4 sm:$0xff]   ;;  %v10541_v17 = vld [vmem:[%s14770_s1 + $0x10a0] ss:$16 sps:$4 sm:$0xff]  }
 0x1df   :  { %6853 = vmatpush1.bf16.msra.mxu0 %v10455_v18  ;;  %7669 = vmatpush1.bf16.msra.mxu1 %v10458_v19  ;;  %v10544_v18 = vld [vmem:[%s14770_s1 + $0x10a8] ss:$16 sps:$4 sm:$0xff]   ;;  %v10549_v19 = vld [vmem:[%s14770_s1 + $0x10c4] ss:$16 sps:$4 sm:$0xff]  }
 0x1e0   :  { %6854 = vmatprep.subr.bf16.mxu0 %v10463_v20  ;;  %7670 = vmatprep.subr.bf16.mxu1 %v10466_v21  ;;  %v10552_v20 = vld [vmem:[%s14770_s1 + $0x10cc] ss:$16 sps:$4 sm:$0xff]   ;;  %v10547_v21 = vld [vmem:[%s14770_s1 + $0x10c0] ss:$16 sps:$4 sm:$0xff]  }
 0x1e3   :  { %6855 = vmatpush1.bf16.msra.mxu0 %v10461_v22  ;;  %7671 = vmatpush1.bf16.msra.mxu1 %v10464_v23  ;;  %v10550_v22 = vld [vmem:[%s14770_s1 + $0x10c8] ss:$16 sps:$4 sm:$0xff]   ;;  %v10555_v23 = vld [vmem:[%s14770_s1 + $0x10e4] ss:$16 sps:$4 sm:$0xff]  }
 0x1e4   :  { %6856 = vmatprep.subr.bf16.mxu0 %v10469_v24  ;;  %7672 = vmatprep.subr.bf16.mxu1 %v10472_v25  ;;  %v10558_v24 = vld [vmem:[%s14770_s1 + $0x10ec] ss:$16 sps:$4 sm:$0xff]   ;;  %v10553_v25 = vld [vmem:[%s14770_s1 + $0x10e0] ss:$16 sps:$4 sm:$0xff]  }
 0x1e7   :  { %6857 = vmatpush1.bf16.msra.mxu0 %v10467_v26  ;;  %7673 = vmatpush1.bf16.msra.mxu1 %v10470_v27  ;;  %v10556_v26 = vld [vmem:[%s14770_s1 + $0x10e8] ss:$16 sps:$4 sm:$0xff]   ;;  %v10561_v27 = vld [vmem:[%s14770_s1 + $0x1104] ss:$16 sps:$4 sm:$0xff]  }
 0x1e8   :  { %6858 = vmatprep.subr.bf16.mxu0 %v10475_v28  ;;  %7674 = vmatprep.subr.bf16.mxu1 %v10478_v29  ;;  %v10564_v28 = vld [vmem:[%s14770_s1 + $0x110c] ss:$16 sps:$4 sm:$0xff]   ;;  %v10559_v29 = vld [vmem:[%s14770_s1 + $0x1100] ss:$16 sps:$4 sm:$0xff]  }
 0x1eb   :  { %6859 = vmatpush1.bf16.msra.mxu0 %v10473_v30  ;;  %7675 = vmatpush1.bf16.msra.mxu1 %v10476_v31  ;;  %v10562_v30 = vld [vmem:[%s14770_s1 + $0x1108] ss:$16 sps:$4 sm:$0xff]   ;;  %v10567_v31 = vld [vmem:[%s14770_s1 + $0x1124] ss:$16 sps:$4 sm:$0xff]  }
 0x1ec   :  { %6860 = vmatprep.subr.bf16.mxu0 %v10481_v32  ;;  %7676 = vmatprep.subr.bf16.mxu1 %v10484_v33  ;;  %v10570_v32 = vld [vmem:[%s14770_s1 + $0x112c] ss:$16 sps:$4 sm:$0xff]   ;;  %v10565_v33 = vld [vmem:[%s14770_s1 + $0x1120] ss:$16 sps:$4 sm:$0xff]  }
 0x1ef   :  { %6861 = vmatpush1.bf16.msra.mxu0 %v10479_v34  ;;  %7677 = vmatpush1.bf16.msra.mxu1 %v10482_v35  ;;  %v10568_v34 = vld [vmem:[%s14770_s1 + $0x1128] ss:$16 sps:$4 sm:$0xff]   ;;  %v10573_v35 = vld [vmem:[%s14770_s1 + $0x1144] ss:$16 sps:$4 sm:$0xff]  }
 0x1f0   :  { %6862 = vmatprep.subr.bf16.mxu0 %v10487_v36  ;;  %7678 = vmatprep.subr.bf16.mxu1 %v10490_v37  ;;  %v10576_v36 = vld [vmem:[%s14770_s1 + $0x114c] ss:$16 sps:$4 sm:$0xff]   ;;  %v10571_v37 = vld [vmem:[%s14770_s1 + $0x1140] ss:$16 sps:$4 sm:$0xff]  }
 0x1f3   :  { %6863 = vmatpush1.bf16.msra.mxu0 %v10485_v38  ;;  %7679 = vmatpush1.bf16.msra.mxu1 %v10488_v39  ;;  %v10574_v38 = vld [vmem:[%s14770_s1 + $0x1148] ss:$16 sps:$4 sm:$0xff]   ;;  %v10579_v39 = vld [vmem:[%s14770_s1 + $0x1164] ss:$16 sps:$4 sm:$0xff]  }
 0x1f4   :  { %6864 = vmatprep.subr.bf16.mxu0 %v10493_v40  ;;  %7680 = vmatprep.subr.bf16.mxu1 %v10496_v41  ;;  %v10582_v40 = vld [vmem:[%s14770_s1 + $0x116c] ss:$16 sps:$4 sm:$0xff]   ;;  %v10577_v41 = vld [vmem:[%s14770_s1 + $0x1160] ss:$16 sps:$4 sm:$0xff]  }
 0x1f7   :  { %6865 = vmatpush1.bf16.msra.mxu0 %v10491_v42  ;;  %7681 = vmatpush1.bf16.msra.mxu1 %v10494_v43  ;;  %v10580_v42 = vld [vmem:[%s14770_s1 + $0x1168] ss:$16 sps:$4 sm:$0xff]   ;;  %v10585_v43 = vld [vmem:[%s14770_s1 + $0x1184] ss:$16 sps:$4 sm:$0xff]  }
 0x1f8   :  { %6866 = vmatprep.subr.bf16.mxu0 %v10500_v46  ;;  %7682 = vmatprep.subr.bf16.mxu1 %v10503_v44  ;;  %v10588_v46 = vld [vmem:[%s14770_s1 + $0x118c] ss:$16 sps:$4 sm:$0xff]   ;;  %v10583_v44 = vld [vmem:[%s14770_s1 + $0x1180] ss:$16 sps:$4 sm:$0xff]  }
 0x1fb   :  { %6867 = vmatpush1.bf16.msra.mxu0 %v10498_v45  ;;  %7683 = vmatpush1.bf16.msra.mxu1 %v10501_v47  ;;  %v10586_v45 = vld [vmem:[%s14770_s1 + $0x1188] ss:$16 sps:$4 sm:$0xff]   ;;  %v10591_v47 = vld [vmem:[%s14770_s1 + $0x11a4] ss:$16 sps:$4 sm:$0xff]  }
 0x1fc   :  { %6868 = vmatprep.subr.bf16.mxu0 %v10507_v48  ;;  %7684 = vmatprep.subr.bf16.mxu1 %v10510_v49  ;;  %v10594_v48 = vld [vmem:[%s14770_s1 + $0x11ac] ss:$16 sps:$4 sm:$0xff]   ;;  %v10589_v49 = vld [vmem:[%s14770_s1 + $0x11a0] ss:$16 sps:$4 sm:$0xff]  }
 0x1ff   :  { %6869 = vmatpush1.bf16.msra.mxu0 %v10505_v50  ;;  %7685 = vmatpush1.bf16.msra.mxu1 %v10508_v53  ;;  %v10592_v50 = vld [vmem:[%s14770_s1 + $0x11a8] ss:$16 sps:$4 sm:$0xff]   ;;  %v10598_v53 = vld [vmem:[%s14770_s1 + $0x11c4] ss:$16 sps:$4 sm:$0xff]  }
 0x200   :  { %6889 = vmatprep.subr.bf16.mxu0 %v10513_v51  ;;  %7705 = vmatprep.subr.bf16.mxu1 %v10516_v52  ;;  %v10601_v51 = vld [vmem:[%s14770_s1 + $0x11cc] ss:$16 sps:$4 sm:$0xff]   ;;  %v10596_v52 = vld [vmem:[%s14770_s1 + $0x11c0] ss:$16 sps:$4 sm:$0xff]  }
 0x202   :  { %6871 = vmatmul.mubr.bf16.vlgmr.msra.gmra.mrb[0].mxu0 %v8403_v55  ;;  %7687 = vmatmul.mubr.bf16.vlgmr.msra.gmra.mrb[0].mxu1 %v8403_v55  ;;  %v10605_v55 = vld [vmem:[%s14770_s1 + $0x11e4] ss:$16 sps:$4 sm:$0xff]  }
 0x203   :  { %6890 = vmatpush1.bf16.msra.mxu0 %v10511_v56  ;;  %7706 = vmatpush1.bf16.msra.mxu1 %v10514_v57  ;;  %v10608_v56 = vld [vmem:[%s14770_s1 + $0x11ec] ss:$16 sps:$4 sm:$0xff]   ;;  %v10603_v57 = vld [vmem:[%s14770_s1 + $0x11e0] ss:$16 sps:$4 sm:$0xff]  }
 0x204   :  { %6891 = vmatprep.subr.bf16.mxu0 %v10519_v60  ;;  %7707 = vmatprep.subr.bf16.mxu1 %v10522_v58  ;;  %v10606_v60 = vld [vmem:[%s14770_s1 + $0x11e8] ss:$16 sps:$4 sm:$0xff]   ;;  %v10611_v58 = vld [vmem:[%s14770_s1 + $0x1204] ss:$16 sps:$4 sm:$0xff]  }
 0x205   :  { %6880 = vmatprep.mubr.bf16.mxu0 %v8436_v62  ;;  %7696 = vmatprep.mubr.bf16.mxu1 %v8436_v62  ;;  %v8405_v62 = vcombine.low %v13027_v1, %v13032_v2  ;;  %v10620_v1 = vld [vmem:[%s14770_s1 + $0x122c] ss:$16 sps:$4 sm:$0xff]   ;;  %v10615_v2 = vld [vmem:[%s14770_s1 + $0x1220] ss:$16 sps:$4 sm:$0xff]  }
 0x207   :  { %6892 = vmatpush1.bf16.msra.mxu0 %v10517_v59  ;;  %7708 = vmatpush1.bf16.msra.mxu1 %v10520_v61  ;;  %v10614_v59 = vld [vmem:[%s14770_s1 + $0x120c] ss:$16 sps:$4 sm:$0xff]   ;;  %v57_v61 = vld [vmem:[%s14771_s0 + $0x140] sm:$0x11] }
 0x208   :  { %6893 = vmatprep.subr.bf16.mxu0 %v10525_v63  ;;  %7709 = vmatprep.subr.bf16.mxu1 %v10528_v0  ;;  %v10609_v63 = vld [vmem:[%s14770_s1 + $0x1200] ss:$16 sps:$4 sm:$0xff]   ;;  %v10612_v0 = vld [vmem:[%s14770_s1 + $0x1208] ss:$16 sps:$4 sm:$0xff]  }
 0x20a   :  { %6881 = vmatmul.mubr.bf16.gmra.mrb[4].mxu0 %v8435_v3  ;;  %7697 = vmatmul.mubr.bf16.gmra.mrb[4].mxu1 %v8435_v3  ;;  %v10617_v3 = vld [vmem:[%s14770_s1 + $0x1224] ss:$16 sps:$4 sm:$0xff]  }
 0x20b   :  { %6894 = vmatpush1.bf16.msra.mxu0 %v10523_v4  ;;  %7710 = vmatpush1.bf16.msra.mxu1 %v10526_v5  ;;  %v10618_v4 = vld [vmem:[%s14770_s1 + $0x1228] ss:$16 sps:$4 sm:$0xff]   ;;  %v8438_v5 = vcombine.high %v57_v61, %v57_v61 }
 0x20c   :  { %6895 = vmatprep.subr.bf16.mxu0 %v10531_v6  ;;  %7711 = vmatprep.subr.bf16.mxu1 %v10534_v7  ;;  %v10623_v6 = vld [vmem:[%s14770_s1 + $0x1244] ss:$16 sps:$4 sm:$0xff]   ;;  %v10626_v7 = vld [vmem:[%s14770_s1 + $0x124c] ss:$16 sps:$4 sm:$0xff]  }
 0x20d   :  { %6921 = vmatprep.mubr.bf16.mxu0 %v8406_v8  ;;  %7737 = vmatprep.mubr.bf16.mxu1 %v8406_v8  ;;  %v13236_v8 = vld [vmem:[%s14771_s0 + $0x48] sm:$0xff] }
 0x20f   :  { %6896 = vmatpush1.bf16.msra.mxu0 %v10529_v9  ;;  %7712 = vmatpush1.bf16.msra.mxu1 %v10532_v10  ;;  %v13241_v9 = vld [vmem:[%s14771_s0 + $0xc8] sm:$0xff]  ;;  %v8437_v10 = vcombine.low %v57_v61, %v57_v61 }
 0x210   :  { %6897 = vmatprep.subr.bf16.mxu0 %v10537_v11  ;;  %7713 = vmatprep.subr.bf16.mxu1 %v10540_v12  ;;  %v10621_v11 = vld [vmem:[%s14770_s1 + $0x1240] ss:$16 sps:$4 sm:$0xff]   ;;  %v10624_v12 = vld [vmem:[%s14770_s1 + $0x1248] ss:$16 sps:$4 sm:$0xff]  }
 0x211   :  { %v10697_v61 = vld [vmem:[%s14770_s1 + $0x13c8] ss:$16 sps:$4 sm:$0xff]  }
 0x213   :  { %6898 = vmatpush1.bf16.msra.mxu0 %v10535_v13  ;;  %7714 = vmatpush1.bf16.msra.mxu1 %v10538_v14  ;;  %v10629_v13 = vld [vmem:[%s14770_s1 + $0x1264] ss:$16 sps:$4 sm:$0xff]   ;;  %v10632_v14 = vld [vmem:[%s14770_s1 + $0x126c] ss:$16 sps:$4 sm:$0xff]  }
 0x214   :  { %6899 = vmatprep.subr.bf16.mxu0 %v10543_v15  ;;  %7715 = vmatprep.subr.bf16.mxu1 %v10546_v16  ;;  %v8408_v15 = vcombine.high %v13236_v8, %v13241_v9  ;;  %v10627_v16 = vld [vmem:[%s14770_s1 + $0x1260] ss:$16 sps:$4 sm:$0xff]  }
 0x217   :  { %6900 = vmatpush1.bf16.msra.mxu0 %v10541_v17  ;;  %7716 = vmatpush1.bf16.msra.mxu1 %v10544_v18  ;;  %v10630_v17 = vld [vmem:[%s14770_s1 + $0x1268] ss:$16 sps:$4 sm:$0xff]   ;;  %v10635_v18 = vld [vmem:[%s14770_s1 + $0x1284] ss:$16 sps:$4 sm:$0xff]  }
 0x218   :  { %6901 = vmatprep.subr.bf16.mxu0 %v10549_v19  ;;  %7717 = vmatprep.subr.bf16.mxu1 %v10552_v20  ;;  %v10638_v19 = vld [vmem:[%s14770_s1 + $0x128c] ss:$16 sps:$4 sm:$0xff]   ;;  %v10633_v20 = vld [vmem:[%s14770_s1 + $0x1280] ss:$16 sps:$4 sm:$0xff]  }
 0x21b   :  { %6902 = vmatpush1.bf16.msra.mxu0 %v10547_v21  ;;  %7718 = vmatpush1.bf16.msra.mxu1 %v10550_v22  ;;  %v10636_v21 = vld [vmem:[%s14770_s1 + $0x1288] ss:$16 sps:$4 sm:$0xff]   ;;  %v10641_v22 = vld [vmem:[%s14770_s1 + $0x12a4] ss:$16 sps:$4 sm:$0xff]  }
 0x21c   :  { %6903 = vmatprep.subr.bf16.mxu0 %v10555_v23  ;;  %7719 = vmatprep.subr.bf16.mxu1 %v10558_v24  ;;  %v10644_v23 = vld [vmem:[%s14770_s1 + $0x12ac] ss:$16 sps:$4 sm:$0xff]   ;;  %v10639_v24 = vld [vmem:[%s14770_s1 + $0x12a0] ss:$16 sps:$4 sm:$0xff]  }
 0x21f   :  { %6904 = vmatpush1.bf16.msra.mxu0 %v10553_v25  ;;  %7720 = vmatpush1.bf16.msra.mxu1 %v10556_v26  ;;  %v10642_v25 = vld [vmem:[%s14770_s1 + $0x12a8] ss:$16 sps:$4 sm:$0xff]   ;;  %v10647_v26 = vld [vmem:[%s14770_s1 + $0x12c4] ss:$16 sps:$4 sm:$0xff]  }
 0x220   :  { %6905 = vmatprep.subr.bf16.mxu0 %v10561_v27  ;;  %7721 = vmatprep.subr.bf16.mxu1 %v10564_v28  ;;  %v10650_v27 = vld [vmem:[%s14770_s1 + $0x12cc] ss:$16 sps:$4 sm:$0xff]   ;;  %v10645_v28 = vld [vmem:[%s14770_s1 + $0x12c0] ss:$16 sps:$4 sm:$0xff]  }
 0x223   :  { %6906 = vmatpush1.bf16.msra.mxu0 %v10559_v29  ;;  %7722 = vmatpush1.bf16.msra.mxu1 %v10562_v30  ;;  %v10648_v29 = vld [vmem:[%s14770_s1 + $0x12c8] ss:$16 sps:$4 sm:$0xff]   ;;  %v10653_v30 = vld [vmem:[%s14770_s1 + $0x12e4] ss:$16 sps:$4 sm:$0xff]  }
 0x224   :  { %6907 = vmatprep.subr.bf16.mxu0 %v10567_v31  ;;  %7723 = vmatprep.subr.bf16.mxu1 %v10570_v32  ;;  %v10656_v31 = vld [vmem:[%s14770_s1 + $0x12ec] ss:$16 sps:$4 sm:$0xff]   ;;  %v10651_v32 = vld [vmem:[%s14770_s1 + $0x12e0] ss:$16 sps:$4 sm:$0xff]  }
 0x227   :  { %6908 = vmatpush1.bf16.msra.mxu0 %v10565_v33  ;;  %7724 = vmatpush1.bf16.msra.mxu1 %v10568_v34  ;;  %v10654_v33 = vld [vmem:[%s14770_s1 + $0x12e8] ss:$16 sps:$4 sm:$0xff]   ;;  %v10659_v34 = vld [vmem:[%s14770_s1 + $0x1304] ss:$16 sps:$4 sm:$0xff]  }
 0x228   :  { %6909 = vmatprep.subr.bf16.mxu0 %v10573_v35  ;;  %7725 = vmatprep.subr.bf16.mxu1 %v10576_v36  ;;  %v10662_v35 = vld [vmem:[%s14770_s1 + $0x130c] ss:$16 sps:$4 sm:$0xff]   ;;  %v10657_v36 = vld [vmem:[%s14770_s1 + $0x1300] ss:$16 sps:$4 sm:$0xff]  }
 0x22b   :  { %6910 = vmatpush1.bf16.msra.mxu0 %v10571_v37  ;;  %7726 = vmatpush1.bf16.msra.mxu1 %v10574_v38  ;;  %v10660_v37 = vld [vmem:[%s14770_s1 + $0x1308] ss:$16 sps:$4 sm:$0xff]   ;;  %v10665_v38 = vld [vmem:[%s14770_s1 + $0x1324] ss:$16 sps:$4 sm:$0xff]  }
 0x22c   :  { %6911 = vmatprep.subr.bf16.mxu0 %v10579_v39  ;;  %7727 = vmatprep.subr.bf16.mxu1 %v10582_v40  ;;  %v10668_v39 = vld [vmem:[%s14770_s1 + $0x132c] ss:$16 sps:$4 sm:$0xff]   ;;  %v10663_v40 = vld [vmem:[%s14770_s1 + $0x1320] ss:$16 sps:$4 sm:$0xff]  }
 0x22f   :  { %6912 = vmatpush1.bf16.msra.mxu0 %v10577_v41  ;;  %7728 = vmatpush1.bf16.msra.mxu1 %v10580_v42  ;;  %v10666_v41 = vld [vmem:[%s14770_s1 + $0x1328] ss:$16 sps:$4 sm:$0xff]   ;;  %v10671_v42 = vld [vmem:[%s14770_s1 + $0x1344] ss:$16 sps:$4 sm:$0xff]  }
 0x230   :  { %6913 = vmatprep.subr.bf16.mxu0 %v10585_v43  ;;  %7729 = vmatprep.subr.bf16.mxu1 %v10588_v46  ;;  %v10674_v43 = vld [vmem:[%s14770_s1 + $0x134c] ss:$16 sps:$4 sm:$0xff]   ;;  %v10669_v46 = vld [vmem:[%s14770_s1 + $0x1340] ss:$16 sps:$4 sm:$0xff]  }
 0x233   :  { %6914 = vmatpush1.bf16.msra.mxu0 %v10583_v44  ;;  %7730 = vmatpush1.bf16.msra.mxu1 %v10586_v45  ;;  %v10672_v44 = vld [vmem:[%s14770_s1 + $0x1348] ss:$16 sps:$4 sm:$0xff]   ;;  %v10677_v45 = vld [vmem:[%s14770_s1 + $0x1364] ss:$16 sps:$4 sm:$0xff]  }
 0x234   :  { %6915 = vmatprep.subr.bf16.mxu0 %v10591_v47  ;;  %7731 = vmatprep.subr.bf16.mxu1 %v10594_v48  ;;  %v10680_v47 = vld [vmem:[%s14770_s1 + $0x136c] ss:$16 sps:$4 sm:$0xff]   ;;  %v10675_v48 = vld [vmem:[%s14770_s1 + $0x1360] ss:$16 sps:$4 sm:$0xff]  }
 0x237   :  { %6916 = vmatpush1.bf16.msra.mxu0 %v10589_v49  ;;  %7732 = vmatpush1.bf16.msra.mxu1 %v10592_v50  ;;  %v10678_v49 = vld [vmem:[%s14770_s1 + $0x1368] ss:$16 sps:$4 sm:$0xff]   ;;  %v10683_v50 = vld [vmem:[%s14770_s1 + $0x1384] ss:$16 sps:$4 sm:$0xff]  }
 0x238   :  { %6917 = vmatprep.subr.bf16.mxu0 %v10598_v53  ;;  %7733 = vmatprep.subr.bf16.mxu1 %v10601_v51  ;;  %v10686_v53 = vld [vmem:[%s14770_s1 + $0x138c] ss:$16 sps:$4 sm:$0xff]   ;;  %v10681_v51 = vld [vmem:[%s14770_s1 + $0x1380] ss:$16 sps:$4 sm:$0xff]  }
 0x23b   :  { %6918 = vmatpush1.bf16.msra.mxu0 %v10596_v52  ;;  %7734 = vmatpush1.bf16.msra.mxu1 %v10599_v54  ;;  %v10684_v52 = vld [vmem:[%s14770_s1 + $0x1388] ss:$16 sps:$4 sm:$0xff]   ;;  %v10689_v54 = vld [vmem:[%s14770_s1 + $0x13a4] ss:$16 sps:$4 sm:$0xff]  }
 0x23c   :  { %6919 = vmatprep.subr.bf16.mxu0 %v10605_v55  ;;  %7735 = vmatprep.subr.bf16.mxu1 %v10608_v56  ;;  %v10692_v55 = vld [vmem:[%s14770_s1 + $0x13ac] ss:$16 sps:$4 sm:$0xff]   ;;  %v10687_v56 = vld [vmem:[%s14770_s1 + $0x13a0] ss:$16 sps:$4 sm:$0xff]  }
 0x23f   :  { %6920 = vmatpush1.bf16.msra.mxu0 %v10603_v57  ;;  %7736 = vmatpush1.bf16.msra.mxu1 %v10606_v60  ;;  %v10690_v57 = vld [vmem:[%s14770_s1 + $0x13a8] ss:$16 sps:$4 sm:$0xff]   ;;  %v10696_v60 = vld [vmem:[%s14770_s1 + $0x13c4] ss:$16 sps:$4 sm:$0xff]  }
 0x240   :  { %6940 = vmatprep.subr.bf16.mxu0 %v10611_v58  ;;  %7756 = vmatprep.subr.bf16.mxu1 %v10614_v59  ;;  %v10699_v58 = vld [vmem:[%s14770_s1 + $0x13cc] ss:$16 sps:$4 sm:$0xff]   ;;  %v10694_v59 = vld [vmem:[%s14770_s1 + $0x13c0] ss:$16 sps:$4 sm:$0xff]  }
 0x242   :  { %6922 = vmatmul.mubr.bf16.vlgmr.msra.gmra.mrb[0].mxu0 %v8405_v62  ;;  %7738 = vmatmul.mubr.bf16.vlgmr.msra.gmra.mrb[0].mxu1 %v8405_v62  ;;  %v10703_v62 = vld [vmem:[%s14770_s1 + $0x13e4] ss:$16 sps:$4 sm:$0xff]  }
 0x243   :  { %6941 = vmatpush1.bf16.msra.mxu0 %v10609_v63  ;;  %7757 = vmatpush1.bf16.msra.mxu1 %v10612_v0  ;;  %v10706_v63 = vld [vmem:[%s14770_s1 + $0x13ec] ss:$16 sps:$4 sm:$0xff]   ;;  %v10701_v0 = vld [vmem:[%s14770_s1 + $0x13e0] ss:$16 sps:$4 sm:$0xff]  }
 0x244   :  { %6942 = vmatprep.subr.bf16.mxu0 %v10617_v3  ;;  %7758 = vmatprep.subr.bf16.mxu1 %v10620_v1  ;;  %v10704_v3 = vld [vmem:[%s14770_s1 + $0x13e8] ss:$16 sps:$4 sm:$0xff]   ;;  %v10709_v1 = vld [vmem:[%s14770_s1 + $0x1404] ss:$16 sps:$4 sm:$0xff]  }
 0x245   :  { %6931 = vmatprep.mubr.bf16.mxu0 %v8438_v5  ;;  %7747 = vmatprep.mubr.bf16.mxu1 %v8438_v5  ;;  %v58_v5 = vld [vmem:[%s14771_s0 + $0x148] sm:$0x11] }
 0x247   :  { %6943 = vmatpush1.bf16.msra.mxu0 %v10615_v2  ;;  %7759 = vmatpush1.bf16.msra.mxu1 %v10618_v4  ;;  %v10712_v2 = vld [vmem:[%s14770_s1 + $0x140c] ss:$16 sps:$4 sm:$0xff]   ;;  %v8407_v4 = vcombine.low %v13236_v8, %v13241_v9  ;;  %v10715_v8 = vld [vmem:[%s14770_s1 + $0x1424] ss:$16 sps:$4 sm:$0xff]  }
 0x248   :  { %6944 = vmatprep.subr.bf16.mxu0 %v10623_v6  ;;  %7760 = vmatprep.subr.bf16.mxu1 %v10626_v7  ;;  %v10707_v6 = vld [vmem:[%s14770_s1 + $0x1400] ss:$16 sps:$4 sm:$0xff]   ;;  %v10710_v7 = vld [vmem:[%s14770_s1 + $0x1408] ss:$16 sps:$4 sm:$0xff]   ;;  %v10718_v9 = vld [vmem:[%s14770_s1 + $0x142c] ss:$16 sps:$4 sm:$0xff]  }
 0x24a   :  { %6932 = vmatmul.mubr.bf16.gmra.mrb[4].mxu0 %v8437_v10  ;;  %7748 = vmatmul.mubr.bf16.gmra.mrb[4].mxu1 %v8437_v10  ;;  %v8440_v10 = vcombine.high %v58_v5, %v58_v5 }
 0x24b   :  { %6945 = vmatpush1.bf16.msra.mxu0 %v10621_v11  ;;  %7761 = vmatpush1.bf16.msra.mxu1 %v10624_v12  ;;  %v10713_v11 = vld [vmem:[%s14770_s1 + $0x1420] ss:$16 sps:$4 sm:$0xff]   ;;  %v10716_v12 = vld [vmem:[%s14770_s1 + $0x1428] ss:$16 sps:$4 sm:$0xff]  }
 0x24c   :  { %6946 = vmatprep.subr.bf16.mxu0 %v10629_v13  ;;  %7762 = vmatprep.subr.bf16.mxu1 %v10632_v14  ;;  %v10721_v13 = vld [vmem:[%s14770_s1 + $0x1444] ss:$16 sps:$4 sm:$0xff]   ;;  %v10724_v14 = vld [vmem:[%s14770_s1 + $0x144c] ss:$16 sps:$4 sm:$0xff]  }
 0x24d   :  { %6972 = vmatprep.mubr.bf16.mxu0 %v8408_v15  ;;  %7788 = vmatprep.mubr.bf16.mxu1 %v8408_v15  ;;  %v8439_v15 = vcombine.low %v58_v5, %v58_v5  ;;  %v10801_v5 = vld [vmem:[%s14770_s1 + $0x15e4] ss:$16 sps:$4 sm:$0xff]  }
 0x24f   :  { %6947 = vmatpush1.bf16.msra.mxu0 %v10627_v16  ;;  %7763 = vmatpush1.bf16.msra.mxu1 %v10630_v17  ;;  %v13445_v16 = vld [vmem:[%s14771_s0 + $0x50] sm:$0xff] }
 0x250   :  { %6948 = vmatprep.subr.bf16.mxu0 %v10635_v18  ;;  %7764 = vmatprep.subr.bf16.mxu1 %v10638_v19  ;;  %v13450_v17 = vld [vmem:[%s14771_s0 + $0xd0] sm:$0xff]  ;;  %v10722_v19 = vld [vmem:[%s14770_s1 + $0x1448] ss:$16 sps:$4 sm:$0xff]  }
 0x251   :  { %v10719_v18 = vld [vmem:[%s14770_s1 + $0x1440] ss:$16 sps:$4 sm:$0xff]  }
 0x253   :  { %6949 = vmatpush1.bf16.msra.mxu0 %v10633_v20  ;;  %7765 = vmatpush1.bf16.msra.mxu1 %v10636_v21  ;;  %v10727_v20 = vld [vmem:[%s14770_s1 + $0x1464] ss:$16 sps:$4 sm:$0xff]   ;;  %v10730_v21 = vld [vmem:[%s14770_s1 + $0x146c] ss:$16 sps:$4 sm:$0xff]  }
 0x254   :  { %6950 = vmatprep.subr.bf16.mxu0 %v10641_v22  ;;  %7766 = vmatprep.subr.bf16.mxu1 %v10644_v23  ;;  %v8410_v22 = vcombine.high %v13445_v16, %v13450_v17  ;;  %v10725_v23 = vld [vmem:[%s14770_s1 + $0x1460] ss:$16 sps:$4 sm:$0xff]  }
 0x257   :  { %6951 = vmatpush1.bf16.msra.mxu0 %v10639_v24  ;;  %7767 = vmatpush1.bf16.msra.mxu1 %v10642_v25  ;;  %v10728_v24 = vld [vmem:[%s14770_s1 + $0x1468] ss:$16 sps:$4 sm:$0xff]   ;;  %v10733_v25 = vld [vmem:[%s14770_s1 + $0x1484] ss:$16 sps:$4 sm:$0xff]  }
 0x258   :  { %6952 = vmatprep.subr.bf16.mxu0 %v10647_v26  ;;  %7768 = vmatprep.subr.bf16.mxu1 %v10650_v27  ;;  %v10736_v26 = vld [vmem:[%s14770_s1 + $0x148c] ss:$16 sps:$4 sm:$0xff]   ;;  %v10731_v27 = vld [vmem:[%s14770_s1 + $0x1480] ss:$16 sps:$4 sm:$0xff]  }
 0x25b   :  { %6953 = vmatpush1.bf16.msra.mxu0 %v10645_v28  ;;  %7769 = vmatpush1.bf16.msra.mxu1 %v10648_v29  ;;  %v10734_v28 = vld [vmem:[%s14770_s1 + $0x1488] ss:$16 sps:$4 sm:$0xff]   ;;  %v10739_v29 = vld [vmem:[%s14770_s1 + $0x14a4] ss:$16 sps:$4 sm:$0xff]  }
 0x25c   :  { %6954 = vmatprep.subr.bf16.mxu0 %v10653_v30  ;;  %7770 = vmatprep.subr.bf16.mxu1 %v10656_v31  ;;  %v10742_v30 = vld [vmem:[%s14770_s1 + $0x14ac] ss:$16 sps:$4 sm:$0xff]   ;;  %v10737_v31 = vld [vmem:[%s14770_s1 + $0x14a0] ss:$16 sps:$4 sm:$0xff]  }
 0x25f   :  { %6955 = vmatpush1.bf16.msra.mxu0 %v10651_v32  ;;  %7771 = vmatpush1.bf16.msra.mxu1 %v10654_v33  ;;  %v10740_v32 = vld [vmem:[%s14770_s1 + $0x14a8] ss:$16 sps:$4 sm:$0xff]   ;;  %v10745_v33 = vld [vmem:[%s14770_s1 + $0x14c4] ss:$16 sps:$4 sm:$0xff]  }
 0x260   :  { %6956 = vmatprep.subr.bf16.mxu0 %v10659_v34  ;;  %7772 = vmatprep.subr.bf16.mxu1 %v10662_v35  ;;  %v10748_v34 = vld [vmem:[%s14770_s1 + $0x14cc] ss:$16 sps:$4 sm:$0xff]   ;;  %v10743_v35 = vld [vmem:[%s14770_s1 + $0x14c0] ss:$16 sps:$4 sm:$0xff]  }
 0x263   :  { %6957 = vmatpush1.bf16.msra.mxu0 %v10657_v36  ;;  %7773 = vmatpush1.bf16.msra.mxu1 %v10660_v37  ;;  %v10746_v36 = vld [vmem:[%s14770_s1 + $0x14c8] ss:$16 sps:$4 sm:$0xff]   ;;  %v10751_v37 = vld [vmem:[%s14770_s1 + $0x14e4] ss:$16 sps:$4 sm:$0xff]  }
 0x264   :  { %6958 = vmatprep.subr.bf16.mxu0 %v10665_v38  ;;  %7774 = vmatprep.subr.bf16.mxu1 %v10668_v39  ;;  %v10754_v38 = vld [vmem:[%s14770_s1 + $0x14ec] ss:$16 sps:$4 sm:$0xff]   ;;  %v10749_v39 = vld [vmem:[%s14770_s1 + $0x14e0] ss:$16 sps:$4 sm:$0xff]  }
 0x267   :  { %6959 = vmatpush1.bf16.msra.mxu0 %v10663_v40  ;;  %7775 = vmatpush1.bf16.msra.mxu1 %v10666_v41  ;;  %v10752_v40 = vld [vmem:[%s14770_s1 + $0x14e8] ss:$16 sps:$4 sm:$0xff]   ;;  %v10757_v41 = vld [vmem:[%s14770_s1 + $0x1504] ss:$16 sps:$4 sm:$0xff]  }
 0x268   :  { %6960 = vmatprep.subr.bf16.mxu0 %v10671_v42  ;;  %7776 = vmatprep.subr.bf16.mxu1 %v10674_v43  ;;  %v10760_v42 = vld [vmem:[%s14770_s1 + $0x150c] ss:$16 sps:$4 sm:$0xff]   ;;  %v10755_v43 = vld [vmem:[%s14770_s1 + $0x1500] ss:$16 sps:$4 sm:$0xff]  }
 0x26b   :  { %6961 = vmatpush1.bf16.msra.mxu0 %v10669_v46  ;;  %7777 = vmatpush1.bf16.msra.mxu1 %v10672_v44  ;;  %v10758_v46 = vld [vmem:[%s14770_s1 + $0x1508] ss:$16 sps:$4 sm:$0xff]   ;;  %v10763_v44 = vld [vmem:[%s14770_s1 + $0x1524] ss:$16 sps:$4 sm:$0xff]  }
 0x26c   :  { %6962 = vmatprep.subr.bf16.mxu0 %v10677_v45  ;;  %7778 = vmatprep.subr.bf16.mxu1 %v10680_v47  ;;  %v10766_v45 = vld [vmem:[%s14770_s1 + $0x152c] ss:$16 sps:$4 sm:$0xff]   ;;  %v10761_v47 = vld [vmem:[%s14770_s1 + $0x1520] ss:$16 sps:$4 sm:$0xff]  }
 0x26f   :  { %6963 = vmatpush1.bf16.msra.mxu0 %v10675_v48  ;;  %7779 = vmatpush1.bf16.msra.mxu1 %v10678_v49  ;;  %v10764_v48 = vld [vmem:[%s14770_s1 + $0x1528] ss:$16 sps:$4 sm:$0xff]   ;;  %v10769_v49 = vld [vmem:[%s14770_s1 + $0x1544] ss:$16 sps:$4 sm:$0xff]  }
 0x270   :  { %6964 = vmatprep.subr.bf16.mxu0 %v10683_v50  ;;  %7780 = vmatprep.subr.bf16.mxu1 %v10686_v53  ;;  %v10772_v50 = vld [vmem:[%s14770_s1 + $0x154c] ss:$16 sps:$4 sm:$0xff]   ;;  %v10767_v53 = vld [vmem:[%s14770_s1 + $0x1540] ss:$16 sps:$4 sm:$0xff]  }
 0x273   :  { %6965 = vmatpush1.bf16.msra.mxu0 %v10681_v51  ;;  %7781 = vmatpush1.bf16.msra.mxu1 %v10684_v52  ;;  %v10770_v51 = vld [vmem:[%s14770_s1 + $0x1548] ss:$16 sps:$4 sm:$0xff]   ;;  %v10775_v52 = vld [vmem:[%s14770_s1 + $0x1564] ss:$16 sps:$4 sm:$0xff]  }
 0x274   :  { %6966 = vmatprep.subr.bf16.mxu0 %v10689_v54  ;;  %7782 = vmatprep.subr.bf16.mxu1 %v10692_v55  ;;  %v10778_v54 = vld [vmem:[%s14770_s1 + $0x156c] ss:$16 sps:$4 sm:$0xff]   ;;  %v10773_v55 = vld [vmem:[%s14770_s1 + $0x1560] ss:$16 sps:$4 sm:$0xff]  }
 0x277   :  { %6967 = vmatpush1.bf16.msra.mxu0 %v10687_v56  ;;  %7783 = vmatpush1.bf16.msra.mxu1 %v10690_v57  ;;  %v10776_v56 = vld [vmem:[%s14770_s1 + $0x1568] ss:$16 sps:$4 sm:$0xff]   ;;  %v10781_v57 = vld [vmem:[%s14770_s1 + $0x1584] ss:$16 sps:$4 sm:$0xff]  }
 0x278   :  { %6968 = vmatprep.subr.bf16.mxu0 %v10696_v60  ;;  %7784 = vmatprep.subr.bf16.mxu1 %v10699_v58  ;;  %v10784_v60 = vld [vmem:[%s14770_s1 + $0x158c] ss:$16 sps:$4 sm:$0xff]   ;;  %v10779_v58 = vld [vmem:[%s14770_s1 + $0x1580] ss:$16 sps:$4 sm:$0xff]  }
 0x27b   :  { %6969 = vmatpush1.bf16.msra.mxu0 %v10694_v59  ;;  %7785 = vmatpush1.bf16.msra.mxu1 %v10697_v61  ;;  %v10782_v59 = vld [vmem:[%s14770_s1 + $0x1588] ss:$16 sps:$4 sm:$0xff]   ;;  %v10787_v61 = vld [vmem:[%s14770_s1 + $0x15a4] ss:$16 sps:$4 sm:$0xff]  }
 0x27c   :  { %6970 = vmatprep.subr.bf16.mxu0 %v10703_v62  ;;  %7786 = vmatprep.subr.bf16.mxu1 %v10706_v63  ;;  %v10790_v62 = vld [vmem:[%s14770_s1 + $0x15ac] ss:$16 sps:$4 sm:$0xff]   ;;  %v10785_v63 = vld [vmem:[%s14770_s1 + $0x15a0] ss:$16 sps:$4 sm:$0xff]  }
 0x27f   :  { %6971 = vmatpush1.bf16.msra.mxu0 %v10701_v0  ;;  %7787 = vmatpush1.bf16.msra.mxu1 %v10704_v3  ;;  %v10788_v0 = vld [vmem:[%s14770_s1 + $0x15a8] ss:$16 sps:$4 sm:$0xff]   ;;  %v10794_v3 = vld [vmem:[%s14770_s1 + $0x15c4] ss:$16 sps:$4 sm:$0xff]  }
 0x280   :  { %6991 = vmatprep.subr.bf16.mxu0 %v10709_v1  ;;  %7807 = vmatprep.subr.bf16.mxu1 %v10712_v2  ;;  %v10797_v1 = vld [vmem:[%s14770_s1 + $0x15cc] ss:$16 sps:$4 sm:$0xff]   ;;  %v10792_v2 = vld [vmem:[%s14770_s1 + $0x15c0] ss:$16 sps:$4 sm:$0xff]  }
 0x282   :  { %6973 = vmatmul.mubr.bf16.vlgmr.msra.gmra.mrb[0].mxu0 %v8407_v4  ;;  %7789 = vmatmul.mubr.bf16.vlgmr.msra.gmra.mrb[0].mxu1 %v8407_v4  ;;  %v10795_v4 = vld [vmem:[%s14770_s1 + $0x15c8] ss:$16 sps:$4 sm:$0xff]  }
 0x283   :  { %6992 = vmatpush1.bf16.msra.mxu0 %v10707_v6  ;;  %7808 = vmatpush1.bf16.msra.mxu1 %v10710_v7  ;;  %v10804_v6 = vld [vmem:[%s14770_s1 + $0x15ec] ss:$16 sps:$4 sm:$0xff]   ;;  %v10799_v7 = vld [vmem:[%s14770_s1 + $0x15e0] ss:$16 sps:$4 sm:$0xff]  }
 0x284   :  { %6993 = vmatprep.subr.bf16.mxu0 %v10715_v8  ;;  %7809 = vmatprep.subr.bf16.mxu1 %v10718_v9  ;;  %v10802_v8 = vld [vmem:[%s14770_s1 + $0x15e8] ss:$16 sps:$4 sm:$0xff]   ;;  %v10807_v9 = vld [vmem:[%s14770_s1 + $0x1604] ss:$16 sps:$4 sm:$0xff]  }
 0x285   :  { %6982 = vmatprep.mubr.bf16.mxu0 %v8440_v10  ;;  %7798 = vmatprep.mubr.bf16.mxu1 %v8440_v10  ;;  %v10810_v10 = vld [vmem:[%s14770_s1 + $0x160c] ss:$16 sps:$4 sm:$0xff]  }
 0x287   :  { %6994 = vmatpush1.bf16.msra.mxu0 %v10713_v11  ;;  %7810 = vmatpush1.bf16.msra.mxu1 %v10716_v12  ;;  %v8409_v11 = vcombine.low %v13445_v16, %v13450_v17  ;;  %v59_v12 = vld [vmem:[%s14771_s0 + $0x150] sm:$0x11]  ;;  %v10816_v16 = vld [vmem:[%s14770_s1 + $0x162c] ss:$16 sps:$4 sm:$0xff]  }
 0x288   :  { %6995 = vmatprep.subr.bf16.mxu0 %v10721_v13  ;;  %7811 = vmatprep.subr.bf16.mxu1 %v10724_v14  ;;  %v10805_v13 = vld [vmem:[%s14770_s1 + $0x1600] ss:$16 sps:$4 sm:$0xff]   ;;  %v10808_v14 = vld [vmem:[%s14770_s1 + $0x1608] ss:$16 sps:$4 sm:$0xff]   ;;  %v8442_v17 = vcombine.high %v59_v12, %v59_v12 }
 0x28a   :  { %6983 = vmatmul.mubr.bf16.gmra.mrb[4].mxu0 %v8439_v15  ;;  %7799 = vmatmul.mubr.bf16.gmra.mrb[4].mxu1 %v8439_v15  ;;  %v10813_v15 = vld [vmem:[%s14770_s1 + $0x1624] ss:$16 sps:$4 sm:$0xff]  }
 0x28b   :  { %6996 = vmatpush1.bf16.msra.mxu0 %v10719_v18  ;;  %7812 = vmatpush1.bf16.msra.mxu1 %v10722_v19  ;;  %v10811_v18 = vld [vmem:[%s14770_s1 + $0x1620] ss:$16 sps:$4 sm:$0xff]   ;;  %v10814_v19 = vld [vmem:[%s14770_s1 + $0x1628] ss:$16 sps:$4 sm:$0xff]  }
 0x28c   :  { %6997 = vmatprep.subr.bf16.mxu0 %v10727_v20  ;;  %7813 = vmatprep.subr.bf16.mxu1 %v10730_v21  ;;  %v10819_v20 = vld [vmem:[%s14770_s1 + $0x1644] ss:$16 sps:$4 sm:$0xff]   ;;  %v10822_v21 = vld [vmem:[%s14770_s1 + $0x164c] ss:$16 sps:$4 sm:$0xff]  }
 0x28d   :  { %7023 = vmatprep.mubr.bf16.mxu0 %v8410_v22  ;;  %7839 = vmatprep.mubr.bf16.mxu1 %v8410_v22  ;;  %v8441_v22 = vcombine.low %v59_v12, %v59_v12  ;;  %v10899_v12 = vld [vmem:[%s14770_s1 + $0x17e4] ss:$16 sps:$4 sm:$0xff]  }
 0x28f   :  { %6998 = vmatpush1.bf16.msra.mxu0 %v10725_v23  ;;  %7814 = vmatpush1.bf16.msra.mxu1 %v10728_v24  ;;  %v13654_v23 = vld [vmem:[%s14771_s0 + $0x58] sm:$0xff] }
 0x290   :  { %6999 = vmatprep.subr.bf16.mxu0 %v10733_v25  ;;  %7815 = vmatprep.subr.bf16.mxu1 %v10736_v26  ;;  %v13659_v24 = vld [vmem:[%s14771_s0 + $0xd8] sm:$0xff]  ;;  %v10817_v25 = vld [vmem:[%s14770_s1 + $0x1640] ss:$16 sps:$4 sm:$0xff]  }
 0x291   :  { %v10820_v26 = vld [vmem:[%s14770_s1 + $0x1648] ss:$16 sps:$4 sm:$0xff]  }
 0x293   :  { %7000 = vmatpush1.bf16.msra.mxu0 %v10731_v27  ;;  %7816 = vmatpush1.bf16.msra.mxu1 %v10734_v28  ;;  %v10825_v27 = vld [vmem:[%s14770_s1 + $0x1664] ss:$16 sps:$4 sm:$0xff]   ;;  %v10828_v28 = vld [vmem:[%s14770_s1 + $0x166c] ss:$16 sps:$4 sm:$0xff]  }
 0x294   :  { %7001 = vmatprep.subr.bf16.mxu0 %v10739_v29  ;;  %7817 = vmatprep.subr.bf16.mxu1 %v10742_v30  ;;  %v8412_v29 = vcombine.high %v13654_v23, %v13659_v24  ;;  %v10823_v30 = vld [vmem:[%s14770_s1 + $0x1660] ss:$16 sps:$4 sm:$0xff]  }
 0x297   :  { %7002 = vmatpush1.bf16.msra.mxu0 %v10737_v31  ;;  %7818 = vmatpush1.bf16.msra.mxu1 %v10740_v32  ;;  %v10826_v31 = vld [vmem:[%s14770_s1 + $0x1668] ss:$16 sps:$4 sm:$0xff]   ;;  %v10831_v32 = vld [vmem:[%s14770_s1 + $0x1684] ss:$16 sps:$4 sm:$0xff]  }
 0x298   :  { %7003 = vmatprep.subr.bf16.mxu0 %v10745_v33  ;;  %7819 = vmatprep.subr.bf16.mxu1 %v10748_v34  ;;  %v10834_v33 = vld [vmem:[%s14770_s1 + $0x168c] ss:$16 sps:$4 sm:$0xff]   ;;  %v10829_v34 = vld [vmem:[%s14770_s1 + $0x1680] ss:$16 sps:$4 sm:$0xff]  }
 0x29b   :  { %7004 = vmatpush1.bf16.msra.mxu0 %v10743_v35  ;;  %7820 = vmatpush1.bf16.msra.mxu1 %v10746_v36  ;;  %v10832_v35 = vld [vmem:[%s14770_s1 + $0x1688] ss:$16 sps:$4 sm:$0xff]   ;;  %v10837_v36 = vld [vmem:[%s14770_s1 + $0x16a4] ss:$16 sps:$4 sm:$0xff]  }
 0x29c   :  { %7005 = vmatprep.subr.bf16.mxu0 %v10751_v37  ;;  %7821 = vmatprep.subr.bf16.mxu1 %v10754_v38  ;;  %v10840_v37 = vld [vmem:[%s14770_s1 + $0x16ac] ss:$16 sps:$4 sm:$0xff]   ;;  %v10835_v38 = vld [vmem:[%s14770_s1 + $0x16a0] ss:$16 sps:$4 sm:$0xff]  }
 0x29f   :  { %7006 = vmatpush1.bf16.msra.mxu0 %v10749_v39  ;;  %7822 = vmatpush1.bf16.msra.mxu1 %v10752_v40  ;;  %v10838_v39 = vld [vmem:[%s14770_s1 + $0x16a8] ss:$16 sps:$4 sm:$0xff]   ;;  %v10843_v40 = vld [vmem:[%s14770_s1 + $0x16c4] ss:$16 sps:$4 sm:$0xff]  }
 0x2a0   :  { %7007 = vmatprep.subr.bf16.mxu0 %v10757_v41  ;;  %7823 = vmatprep.subr.bf16.mxu1 %v10760_v42  ;;  %v10846_v41 = vld [vmem:[%s14770_s1 + $0x16cc] ss:$16 sps:$4 sm:$0xff]   ;;  %v10841_v42 = vld [vmem:[%s14770_s1 + $0x16c0] ss:$16 sps:$4 sm:$0xff]  }
 0x2a3   :  { %7008 = vmatpush1.bf16.msra.mxu0 %v10755_v43  ;;  %7824 = vmatpush1.bf16.msra.mxu1 %v10758_v46  ;;  %v10844_v43 = vld [vmem:[%s14770_s1 + $0x16c8] ss:$16 sps:$4 sm:$0xff]   ;;  %v10849_v46 = vld [vmem:[%s14770_s1 + $0x16e4] ss:$16 sps:$4 sm:$0xff]  }
 0x2a4   :  { %7009 = vmatprep.subr.bf16.mxu0 %v10763_v44  ;;  %7825 = vmatprep.subr.bf16.mxu1 %v10766_v45  ;;  %v10852_v44 = vld [vmem:[%s14770_s1 + $0x16ec] ss:$16 sps:$4 sm:$0xff]   ;;  %v10847_v45 = vld [vmem:[%s14770_s1 + $0x16e0] ss:$16 sps:$4 sm:$0xff]  }
 0x2a7   :  { %7010 = vmatpush1.bf16.msra.mxu0 %v10761_v47  ;;  %7826 = vmatpush1.bf16.msra.mxu1 %v10764_v48  ;;  %v10850_v47 = vld [vmem:[%s14770_s1 + $0x16e8] ss:$16 sps:$4 sm:$0xff]   ;;  %v10855_v48 = vld [vmem:[%s14770_s1 + $0x1704] ss:$16 sps:$4 sm:$0xff]  }
 0x2a8   :  { %7011 = vmatprep.subr.bf16.mxu0 %v10769_v49  ;;  %7827 = vmatprep.subr.bf16.mxu1 %v10772_v50  ;;  %v10858_v49 = vld [vmem:[%s14770_s1 + $0x170c] ss:$16 sps:$4 sm:$0xff]   ;;  %v10853_v50 = vld [vmem:[%s14770_s1 + $0x1700] ss:$16 sps:$4 sm:$0xff]  }
 0x2ab   :  { %7012 = vmatpush1.bf16.msra.mxu0 %v10767_v53  ;;  %7828 = vmatpush1.bf16.msra.mxu1 %v10770_v51  ;;  %v10856_v53 = vld [vmem:[%s14770_s1 + $0x1708] ss:$16 sps:$4 sm:$0xff]   ;;  %v10861_v51 = vld [vmem:[%s14770_s1 + $0x1724] ss:$16 sps:$4 sm:$0xff]  }
 0x2ac   :  { %7013 = vmatprep.subr.bf16.mxu0 %v10775_v52  ;;  %7829 = vmatprep.subr.bf16.mxu1 %v10778_v54  ;;  %v10864_v52 = vld [vmem:[%s14770_s1 + $0x172c] ss:$16 sps:$4 sm:$0xff]   ;;  %v10859_v54 = vld [vmem:[%s14770_s1 + $0x1720] ss:$16 sps:$4 sm:$0xff]  }
 0x2af   :  { %7014 = vmatpush1.bf16.msra.mxu0 %v10773_v55  ;;  %7830 = vmatpush1.bf16.msra.mxu1 %v10776_v56  ;;  %v10862_v55 = vld [vmem:[%s14770_s1 + $0x1728] ss:$16 sps:$4 sm:$0xff]   ;;  %v10867_v56 = vld [vmem:[%s14770_s1 + $0x1744] ss:$16 sps:$4 sm:$0xff]  }
 0x2b0   :  { %7015 = vmatprep.subr.bf16.mxu0 %v10781_v57  ;;  %7831 = vmatprep.subr.bf16.mxu1 %v10784_v60  ;;  %v10870_v57 = vld [vmem:[%s14770_s1 + $0x174c] ss:$16 sps:$4 sm:$0xff]   ;;  %v10865_v60 = vld [vmem:[%s14770_s1 + $0x1740] ss:$16 sps:$4 sm:$0xff]  }
 0x2b3   :  { %7016 = vmatpush1.bf16.msra.mxu0 %v10779_v58  ;;  %7832 = vmatpush1.bf16.msra.mxu1 %v10782_v59  ;;  %v10868_v58 = vld [vmem:[%s14770_s1 + $0x1748] ss:$16 sps:$4 sm:$0xff]   ;;  %v10873_v59 = vld [vmem:[%s14770_s1 + $0x1764] ss:$16 sps:$4 sm:$0xff]  }
 0x2b4   :  { %7017 = vmatprep.subr.bf16.mxu0 %v10787_v61  ;;  %7833 = vmatprep.subr.bf16.mxu1 %v10790_v62  ;;  %v10876_v61 = vld [vmem:[%s14770_s1 + $0x176c] ss:$16 sps:$4 sm:$0xff]   ;;  %v10871_v62 = vld [vmem:[%s14770_s1 + $0x1760] ss:$16 sps:$4 sm:$0xff]  }
 0x2b7   :  { %7018 = vmatpush1.bf16.msra.mxu0 %v10785_v63  ;;  %7834 = vmatpush1.bf16.msra.mxu1 %v10788_v0  ;;  %v10874_v63 = vld [vmem:[%s14770_s1 + $0x1768] ss:$16 sps:$4 sm:$0xff]   ;;  %v10879_v0 = vld [vmem:[%s14770_s1 + $0x1784] ss:$16 sps:$4 sm:$0xff]  }
 0x2b8   :  { %7019 = vmatprep.subr.bf16.mxu0 %v10794_v3  ;;  %7835 = vmatprep.subr.bf16.mxu1 %v10797_v1  ;;  %v10882_v3 = vld [vmem:[%s14770_s1 + $0x178c] ss:$16 sps:$4 sm:$0xff]   ;;  %v10877_v1 = vld [vmem:[%s14770_s1 + $0x1780] ss:$16 sps:$4 sm:$0xff]  }
 0x2bb   :  { %7020 = vmatpush1.bf16.msra.mxu0 %v10792_v2  ;;  %7836 = vmatpush1.bf16.msra.mxu1 %v10795_v4  ;;  %v10880_v2 = vld [vmem:[%s14770_s1 + $0x1788] ss:$16 sps:$4 sm:$0xff]   ;;  %v10885_v4 = vld [vmem:[%s14770_s1 + $0x17a4] ss:$16 sps:$4 sm:$0xff]  }
 0x2bc   :  { %7021 = vmatprep.subr.bf16.mxu0 %v10801_v5  ;;  %7837 = vmatprep.subr.bf16.mxu1 %v10804_v6  ;;  %v10888_v5 = vld [vmem:[%s14770_s1 + $0x17ac] ss:$16 sps:$4 sm:$0xff]   ;;  %v10883_v6 = vld [vmem:[%s14770_s1 + $0x17a0] ss:$16 sps:$4 sm:$0xff]  }
 0x2bf   :  { %7022 = vmatpush1.bf16.msra.mxu0 %v10799_v7  ;;  %7838 = vmatpush1.bf16.msra.mxu1 %v10802_v8  ;;  %v10886_v7 = vld [vmem:[%s14770_s1 + $0x17a8] ss:$16 sps:$4 sm:$0xff]   ;;  %v10892_v8 = vld [vmem:[%s14770_s1 + $0x17c4] ss:$16 sps:$4 sm:$0xff]  }
 0x2c0   :  { %7042 = vmatprep.subr.bf16.mxu0 %v10807_v9  ;;  %7858 = vmatprep.subr.bf16.mxu1 %v10810_v10  ;;  %v10895_v9 = vld [vmem:[%s14770_s1 + $0x17cc] ss:$16 sps:$4 sm:$0xff]   ;;  %v10890_v10 = vld [vmem:[%s14770_s1 + $0x17c0] ss:$16 sps:$4 sm:$0xff]  }
 0x2c2   :  { %7024 = vmatmul.mubr.bf16.vlgmr.msra.gmra.mrb[0].mxu0 %v8409_v11  ;;  %7840 = vmatmul.mubr.bf16.vlgmr.msra.gmra.mrb[0].mxu1 %v8409_v11  ;;  %v10893_v11 = vld [vmem:[%s14770_s1 + $0x17c8] ss:$16 sps:$4 sm:$0xff]  }
 0x2c3   :  { %7043 = vmatpush1.bf16.msra.mxu0 %v10805_v13  ;;  %7859 = vmatpush1.bf16.msra.mxu1 %v10808_v14  ;;  %v10902_v13 = vld [vmem:[%s14770_s1 + $0x17ec] ss:$16 sps:$4 sm:$0xff]   ;;  %v10897_v14 = vld [vmem:[%s14770_s1 + $0x17e0] ss:$16 sps:$4 sm:$0xff]  }
 0x2c4   :  { %7044 = vmatprep.subr.bf16.mxu0 %v10813_v15  ;;  %7860 = vmatprep.subr.bf16.mxu1 %v10816_v16  ;;  %v10900_v15 = vld [vmem:[%s14770_s1 + $0x17e8] ss:$16 sps:$4 sm:$0xff]   ;;  %v10905_v16 = vld [vmem:[%s14770_s1 + $0x1804] ss:$16 sps:$4 sm:$0xff]  }
 0x2c5   :  { %7033 = vmatprep.mubr.bf16.mxu0 %v8442_v17  ;;  %7849 = vmatprep.mubr.bf16.mxu1 %v8442_v17  ;;  %v10908_v17 = vld [vmem:[%s14770_s1 + $0x180c] ss:$16 sps:$4 sm:$0xff]  }
 0x2c7   :  { %7045 = vmatpush1.bf16.msra.mxu0 %v10811_v18  ;;  %7861 = vmatpush1.bf16.msra.mxu1 %v10814_v19  ;;  %v8411_v18 = vcombine.low %v13654_v23, %v13659_v24  ;;  %v60_v19 = vld [vmem:[%s14771_s0 + $0x158] sm:$0x11] }
 0x2c8   :  { %7046 = vmatprep.subr.bf16.mxu0 %v10819_v20  ;;  %7862 = vmatprep.subr.bf16.mxu1 %v10822_v21  ;;  %v10903_v20 = vld [vmem:[%s14770_s1 + $0x1800] ss:$16 sps:$4 sm:$0xff]   ;;  %v10906_v21 = vld [vmem:[%s14770_s1 + $0x1808] ss:$16 sps:$4 sm:$0xff]   ;;  %v10914_v23 = vld [vmem:[%s14770_s1 + $0x182c] ss:$16 sps:$4 sm:$0xff]   ;;  %v8444_v24 = vcombine.high %v60_v19, %v60_v19 }
 0x2ca   :  { %7034 = vmatmul.mubr.bf16.gmra.mrb[4].mxu0 %v8441_v22  ;;  %7850 = vmatmul.mubr.bf16.gmra.mrb[4].mxu1 %v8441_v22  ;;  %v10911_v22 = vld [vmem:[%s14770_s1 + $0x1824] ss:$16 sps:$4 sm:$0xff]  }
 0x2cb   :  { %7047 = vmatpush1.bf16.msra.mxu0 %v10817_v25  ;;  %7863 = vmatpush1.bf16.msra.mxu1 %v10820_v26  ;;  %v10909_v25 = vld [vmem:[%s14770_s1 + $0x1820] ss:$16 sps:$4 sm:$0xff]   ;;  %v10912_v26 = vld [vmem:[%s14770_s1 + $0x1828] ss:$16 sps:$4 sm:$0xff]  }
 0x2cc   :  { %7048 = vmatprep.subr.bf16.mxu0 %v10825_v27  ;;  %7864 = vmatprep.subr.bf16.mxu1 %v10828_v28  ;;  %v10917_v27 = vld [vmem:[%s14770_s1 + $0x1844] ss:$16 sps:$4 sm:$0xff]   ;;  %v10920_v28 = vld [vmem:[%s14770_s1 + $0x184c] ss:$16 sps:$4 sm:$0xff]  }
 0x2cd   :  { %7074 = vmatprep.mubr.bf16.mxu0 %v8412_v29  ;;  %7890 = vmatprep.mubr.bf16.mxu1 %v8412_v29  ;;  %v8443_v29 = vcombine.low %v60_v19, %v60_v19  ;;  %v10997_v19 = vld [vmem:[%s14770_s1 + $0x19e4] ss:$16 sps:$4 sm:$0xff]  }
 0x2cf   :  { %7049 = vmatpush1.bf16.msra.mxu0 %v10823_v30  ;;  %7865 = vmatpush1.bf16.msra.mxu1 %v10826_v31  ;;  %v13863_v30 = vld [vmem:[%s14771_s0 + $0x60] sm:$0xff] }
 0x2d0   :  { %7050 = vmatprep.subr.bf16.mxu0 %v10831_v32  ;;  %7866 = vmatprep.subr.bf16.mxu1 %v10834_v33  ;;  %v13868_v31 = vld [vmem:[%s14771_s0 + $0xe0] sm:$0xff]  ;;  %v10918_v33 = vld [vmem:[%s14770_s1 + $0x1848] ss:$16 sps:$4 sm:$0xff]  }
 0x2d1   :  { %v10915_v32 = vld [vmem:[%s14770_s1 + $0x1840] ss:$16 sps:$4 sm:$0xff]  }
 0x2d3   :  { %7051 = vmatpush1.bf16.msra.mxu0 %v10829_v34  ;;  %7867 = vmatpush1.bf16.msra.mxu1 %v10832_v35  ;;  %v10923_v34 = vld [vmem:[%s14770_s1 + $0x1864] ss:$16 sps:$4 sm:$0xff]   ;;  %v10926_v35 = vld [vmem:[%s14770_s1 + $0x186c] ss:$16 sps:$4 sm:$0xff]  }
 0x2d4   :  { %7052 = vmatprep.subr.bf16.mxu0 %v10837_v36  ;;  %7868 = vmatprep.subr.bf16.mxu1 %v10840_v37  ;;  %v8414_v36 = vcombine.high %v13863_v30, %v13868_v31  ;;  %v10921_v37 = vld [vmem:[%s14770_s1 + $0x1860] ss:$16 sps:$4 sm:$0xff]  }
 0x2d7   :  { %7053 = vmatpush1.bf16.msra.mxu0 %v10835_v38  ;;  %7869 = vmatpush1.bf16.msra.mxu1 %v10838_v39  ;;  %v10924_v38 = vld [vmem:[%s14770_s1 + $0x1868] ss:$16 sps:$4 sm:$0xff]   ;;  %v10929_v39 = vld [vmem:[%s14770_s1 + $0x1884] ss:$16 sps:$4 sm:$0xff]  }
 0x2d8   :  { %7054 = vmatprep.subr.bf16.mxu0 %v10843_v40  ;;  %7870 = vmatprep.subr.bf16.mxu1 %v10846_v41  ;;  %v10932_v40 = vld [vmem:[%s14770_s1 + $0x188c] ss:$16 sps:$4 sm:$0xff]   ;;  %v10927_v41 = vld [vmem:[%s14770_s1 + $0x1880] ss:$16 sps:$4 sm:$0xff]  }
 0x2db   :  { %7055 = vmatpush1.bf16.msra.mxu0 %v10841_v42  ;;  %7871 = vmatpush1.bf16.msra.mxu1 %v10844_v43  ;;  %v10930_v42 = vld [vmem:[%s14770_s1 + $0x1888] ss:$16 sps:$4 sm:$0xff]   ;;  %v10935_v43 = vld [vmem:[%s14770_s1 + $0x18a4] ss:$16 sps:$4 sm:$0xff]  }
 0x2dc   :  { %7056 = vmatprep.subr.bf16.mxu0 %v10849_v46  ;;  %7872 = vmatprep.subr.bf16.mxu1 %v10852_v44  ;;  %v10938_v46 = vld [vmem:[%s14770_s1 + $0x18ac] ss:$16 sps:$4 sm:$0xff]   ;;  %v10933_v44 = vld [vmem:[%s14770_s1 + $0x18a0] ss:$16 sps:$4 sm:$0xff]  }
 0x2df   :  { %7057 = vmatpush1.bf16.msra.mxu0 %v10847_v45  ;;  %7873 = vmatpush1.bf16.msra.mxu1 %v10850_v47  ;;  %v10936_v45 = vld [vmem:[%s14770_s1 + $0x18a8] ss:$16 sps:$4 sm:$0xff]   ;;  %v10941_v47 = vld [vmem:[%s14770_s1 + $0x18c4] ss:$16 sps:$4 sm:$0xff]  }
 0x2e0   :  { %7058 = vmatprep.subr.bf16.mxu0 %v10855_v48  ;;  %7874 = vmatprep.subr.bf16.mxu1 %v10858_v49  ;;  %v10944_v48 = vld [vmem:[%s14770_s1 + $0x18cc] ss:$16 sps:$4 sm:$0xff]   ;;  %v10939_v49 = vld [vmem:[%s14770_s1 + $0x18c0] ss:$16 sps:$4 sm:$0xff]  }
 0x2e3   :  { %7059 = vmatpush1.bf16.msra.mxu0 %v10853_v50  ;;  %7875 = vmatpush1.bf16.msra.mxu1 %v10856_v53  ;;  %v10942_v50 = vld [vmem:[%s14770_s1 + $0x18c8] ss:$16 sps:$4 sm:$0xff]   ;;  %v10947_v53 = vld [vmem:[%s14770_s1 + $0x18e4] ss:$16 sps:$4 sm:$0xff]  }
 0x2e4   :  { %7060 = vmatprep.subr.bf16.mxu0 %v10861_v51  ;;  %7876 = vmatprep.subr.bf16.mxu1 %v10864_v52  ;;  %v10950_v51 = vld [vmem:[%s14770_s1 + $0x18ec] ss:$16 sps:$4 sm:$0xff]   ;;  %v10945_v52 = vld [vmem:[%s14770_s1 + $0x18e0] ss:$16 sps:$4 sm:$0xff]  }
 0x2e7   :  { %7061 = vmatpush1.bf16.msra.mxu0 %v10859_v54  ;;  %7877 = vmatpush1.bf16.msra.mxu1 %v10862_v55  ;;  %v10948_v54 = vld [vmem:[%s14770_s1 + $0x18e8] ss:$16 sps:$4 sm:$0xff]   ;;  %v10953_v55 = vld [vmem:[%s14770_s1 + $0x1904] ss:$16 sps:$4 sm:$0xff]  }
 0x2e8   :  { %7062 = vmatprep.subr.bf16.mxu0 %v10867_v56  ;;  %7878 = vmatprep.subr.bf16.mxu1 %v10870_v57  ;;  %v10956_v56 = vld [vmem:[%s14770_s1 + $0x190c] ss:$16 sps:$4 sm:$0xff]   ;;  %v10951_v57 = vld [vmem:[%s14770_s1 + $0x1900] ss:$16 sps:$4 sm:$0xff]  }
 0x2eb   :  { %7063 = vmatpush1.bf16.msra.mxu0 %v10865_v60  ;;  %7879 = vmatpush1.bf16.msra.mxu1 %v10868_v58  ;;  %v10954_v60 = vld [vmem:[%s14770_s1 + $0x1908] ss:$16 sps:$4 sm:$0xff]   ;;  %v10959_v58 = vld [vmem:[%s14770_s1 + $0x1924] ss:$16 sps:$4 sm:$0xff]  }
 0x2ec   :  { %7064 = vmatprep.subr.bf16.mxu0 %v10873_v59  ;;  %7880 = vmatprep.subr.bf16.mxu1 %v10876_v61  ;;  %v10962_v59 = vld [vmem:[%s14770_s1 + $0x192c] ss:$16 sps:$4 sm:$0xff]   ;;  %v10957_v61 = vld [vmem:[%s14770_s1 + $0x1920] ss:$16 sps:$4 sm:$0xff]  }
 0x2ef   :  { %7065 = vmatpush1.bf16.msra.mxu0 %v10871_v62  ;;  %7881 = vmatpush1.bf16.msra.mxu1 %v10874_v63  ;;  %v10960_v62 = vld [vmem:[%s14770_s1 + $0x1928] ss:$16 sps:$4 sm:$0xff]   ;;  %v10965_v63 = vld [vmem:[%s14770_s1 + $0x1944] ss:$16 sps:$4 sm:$0xff]  }
 0x2f0   :  { %7066 = vmatprep.subr.bf16.mxu0 %v10879_v0  ;;  %7882 = vmatprep.subr.bf16.mxu1 %v10882_v3  ;;  %v10968_v0 = vld [vmem:[%s14770_s1 + $0x194c] ss:$16 sps:$4 sm:$0xff]   ;;  %v10963_v3 = vld [vmem:[%s14770_s1 + $0x1940] ss:$16 sps:$4 sm:$0xff]  }
 0x2f3   :  { %7067 = vmatpush1.bf16.msra.mxu0 %v10877_v1  ;;  %7883 = vmatpush1.bf16.msra.mxu1 %v10880_v2  ;;  %v10966_v1 = vld [vmem:[%s14770_s1 + $0x1948] ss:$16 sps:$4 sm:$0xff]   ;;  %v10971_v2 = vld [vmem:[%s14770_s1 + $0x1964] ss:$16 sps:$4 sm:$0xff]  }
 0x2f4   :  { %7068 = vmatprep.subr.bf16.mxu0 %v10885_v4  ;;  %7884 = vmatprep.subr.bf16.mxu1 %v10888_v5  ;;  %v10974_v4 = vld [vmem:[%s14770_s1 + $0x196c] ss:$16 sps:$4 sm:$0xff]   ;;  %v10969_v5 = vld [vmem:[%s14770_s1 + $0x1960] ss:$16 sps:$4 sm:$0xff]  }
 0x2f7   :  { %7069 = vmatpush1.bf16.msra.mxu0 %v10883_v6  ;;  %7885 = vmatpush1.bf16.msra.mxu1 %v10886_v7  ;;  %v10972_v6 = vld [vmem:[%s14770_s1 + $0x1968] ss:$16 sps:$4 sm:$0xff]   ;;  %v10977_v7 = vld [vmem:[%s14770_s1 + $0x1984] ss:$16 sps:$4 sm:$0xff]  }
 0x2f8   :  { %7070 = vmatprep.subr.bf16.mxu0 %v10892_v8  ;;  %7886 = vmatprep.subr.bf16.mxu1 %v10895_v9  ;;  %v10980_v8 = vld [vmem:[%s14770_s1 + $0x198c] ss:$16 sps:$4 sm:$0xff]   ;;  %v10975_v9 = vld [vmem:[%s14770_s1 + $0x1980] ss:$16 sps:$4 sm:$0xff]  }
 0x2fb   :  { %7071 = vmatpush1.bf16.msra.mxu0 %v10890_v10  ;;  %7887 = vmatpush1.bf16.msra.mxu1 %v10893_v11  ;;  %v10978_v10 = vld [vmem:[%s14770_s1 + $0x1988] ss:$16 sps:$4 sm:$0xff]   ;;  %v10983_v11 = vld [vmem:[%s14770_s1 + $0x19a4] ss:$16 sps:$4 sm:$0xff]  }
 0x2fc   :  { %7072 = vmatprep.subr.bf16.mxu0 %v10899_v12  ;;  %7888 = vmatprep.subr.bf16.mxu1 %v10902_v13  ;;  %v10986_v12 = vld [vmem:[%s14770_s1 + $0x19ac] ss:$16 sps:$4 sm:$0xff]   ;;  %v10981_v13 = vld [vmem:[%s14770_s1 + $0x19a0] ss:$16 sps:$4 sm:$0xff]  }
 0x2ff   :  { %7073 = vmatpush1.bf16.msra.mxu0 %v10897_v14  ;;  %7889 = vmatpush1.bf16.msra.mxu1 %v10900_v15  ;;  %v10984_v14 = vld [vmem:[%s14770_s1 + $0x19a8] ss:$16 sps:$4 sm:$0xff]   ;;  %v10990_v15 = vld [vmem:[%s14770_s1 + $0x19c4] ss:$16 sps:$4 sm:$0xff]  }
 0x300   :  { %7093 = vmatprep.subr.bf16.mxu0 %v10905_v16  ;;  %7909 = vmatprep.subr.bf16.mxu1 %v10908_v17  ;;  %v10993_v16 = vld [vmem:[%s14770_s1 + $0x19cc] ss:$16 sps:$4 sm:$0xff]   ;;  %v10988_v17 = vld [vmem:[%s14770_s1 + $0x19c0] ss:$16 sps:$4 sm:$0xff]  }
 0x302   :  { %7075 = vmatmul.mubr.bf16.vlgmr.msra.gmra.mrb[0].mxu0 %v8411_v18  ;;  %7891 = vmatmul.mubr.bf16.vlgmr.msra.gmra.mrb[0].mxu1 %v8411_v18  ;;  %v10991_v18 = vld [vmem:[%s14770_s1 + $0x19c8] ss:$16 sps:$4 sm:$0xff]  }
 0x303   :  { %7094 = vmatpush1.bf16.msra.mxu0 %v10903_v20  ;;  %7910 = vmatpush1.bf16.msra.mxu1 %v10906_v21  ;;  %v11000_v20 = vld [vmem:[%s14770_s1 + $0x19ec] ss:$16 sps:$4 sm:$0xff]   ;;  %v10995_v21 = vld [vmem:[%s14770_s1 + $0x19e0] ss:$16 sps:$4 sm:$0xff]  }
 0x304   :  { %7095 = vmatprep.subr.bf16.mxu0 %v10911_v22  ;;  %7911 = vmatprep.subr.bf16.mxu1 %v10914_v23  ;;  %v10998_v22 = vld [vmem:[%s14770_s1 + $0x19e8] ss:$16 sps:$4 sm:$0xff]   ;;  %v11003_v23 = vld [vmem:[%s14770_s1 + $0x1a04] ss:$16 sps:$4 sm:$0xff]  }
 0x305   :  { %7084 = vmatprep.mubr.bf16.mxu0 %v8444_v24  ;;  %7900 = vmatprep.mubr.bf16.mxu1 %v8444_v24  ;;  %v11006_v24 = vld [vmem:[%s14770_s1 + $0x1a0c] ss:$16 sps:$4 sm:$0xff]  }
 0x307   :  { %7096 = vmatpush1.bf16.msra.mxu0 %v10909_v25  ;;  %7912 = vmatpush1.bf16.msra.mxu1 %v10912_v26  ;;  %v8413_v25 = vcombine.low %v13863_v30, %v13868_v31  ;;  %v61_v26 = vld [vmem:[%s14771_s0 + $0x160] sm:$0x11]  ;;  %v11012_v30 = vld [vmem:[%s14770_s1 + $0x1a2c] ss:$16 sps:$4 sm:$0xff]  }
 0x308   :  { %7097 = vmatprep.subr.bf16.mxu0 %v10917_v27  ;;  %7913 = vmatprep.subr.bf16.mxu1 %v10920_v28  ;;  %v11001_v27 = vld [vmem:[%s14770_s1 + $0x1a00] ss:$16 sps:$4 sm:$0xff]   ;;  %v11004_v28 = vld [vmem:[%s14770_s1 + $0x1a08] ss:$16 sps:$4 sm:$0xff]   ;;  %v8446_v31 = vcombine.high %v61_v26, %v61_v26 }
 0x30a   :  { %7085 = vmatmul.mubr.bf16.gmra.mrb[4].mxu0 %v8443_v29  ;;  %7901 = vmatmul.mubr.bf16.gmra.mrb[4].mxu1 %v8443_v29  ;;  %v11009_v29 = vld [vmem:[%s14770_s1 + $0x1a24] ss:$16 sps:$4 sm:$0xff]  }
 0x30b   :  { %7098 = vmatpush1.bf16.msra.mxu0 %v10915_v32  ;;  %7914 = vmatpush1.bf16.msra.mxu1 %v10918_v33  ;;  %v11007_v32 = vld [vmem:[%s14770_s1 + $0x1a20] ss:$16 sps:$4 sm:$0xff]   ;;  %v11010_v33 = vld [vmem:[%s14770_s1 + $0x1a28] ss:$16 sps:$4 sm:$0xff]  }
 0x30c   :  { %7099 = vmatprep.subr.bf16.mxu0 %v10923_v34  ;;  %7915 = vmatprep.subr.bf16.mxu1 %v10926_v35  ;;  %v11015_v34 = vld [vmem:[%s14770_s1 + $0x1a44] ss:$16 sps:$4 sm:$0xff]   ;;  %v11018_v35 = vld [vmem:[%s14770_s1 + $0x1a4c] ss:$16 sps:$4 sm:$0xff]  }
 0x30d   :  { %7125 = vmatprep.mubr.bf16.mxu0 %v8414_v36  ;;  %7941 = vmatprep.mubr.bf16.mxu1 %v8414_v36  ;;  %v8445_v36 = vcombine.low %v61_v26, %v61_v26  ;;  %v11095_v26 = vld [vmem:[%s14770_s1 + $0x1be4] ss:$16 sps:$4 sm:$0xff]  }
 0x30f   :  { %7100 = vmatpush1.bf16.msra.mxu0 %v10921_v37  ;;  %7916 = vmatpush1.bf16.msra.mxu1 %v10924_v38  ;;  %v14072_v37 = vld [vmem:[%s14771_s0 + $0x68] sm:$0xff] }
 0x310   :  { %7101 = vmatprep.subr.bf16.mxu0 %v10929_v39  ;;  %7917 = vmatprep.subr.bf16.mxu1 %v10932_v40  ;;  %v14077_v38 = vld [vmem:[%s14771_s0 + $0xe8] sm:$0xff]  ;;  %v11013_v39 = vld [vmem:[%s14770_s1 + $0x1a40] ss:$16 sps:$4 sm:$0xff]  }
 0x311   :  { %v11016_v40 = vld [vmem:[%s14770_s1 + $0x1a48] ss:$16 sps:$4 sm:$0xff]  }
 0x313   :  { %7102 = vmatpush1.bf16.msra.mxu0 %v10927_v41  ;;  %7918 = vmatpush1.bf16.msra.mxu1 %v10930_v42  ;;  %v11021_v41 = vld [vmem:[%s14770_s1 + $0x1a64] ss:$16 sps:$4 sm:$0xff]   ;;  %v11024_v42 = vld [vmem:[%s14770_s1 + $0x1a6c] ss:$16 sps:$4 sm:$0xff]  }
 0x314   :  { %7103 = vmatprep.subr.bf16.mxu0 %v10935_v43  ;;  %7919 = vmatprep.subr.bf16.mxu1 %v10938_v46  ;;  %v8416_v43 = vcombine.high %v14072_v37, %v14077_v38  ;;  %v11019_v46 = vld [vmem:[%s14770_s1 + $0x1a60] ss:$16 sps:$4 sm:$0xff]  }
 0x317   :  { %7104 = vmatpush1.bf16.msra.mxu0 %v10933_v44  ;;  %7920 = vmatpush1.bf16.msra.mxu1 %v10936_v45  ;;  %v11022_v44 = vld [vmem:[%s14770_s1 + $0x1a68] ss:$16 sps:$4 sm:$0xff]   ;;  %v11027_v45 = vld [vmem:[%s14770_s1 + $0x1a84] ss:$16 sps:$4 sm:$0xff]  }
 0x318   :  { %7105 = vmatprep.subr.bf16.mxu0 %v10941_v47  ;;  %7921 = vmatprep.subr.bf16.mxu1 %v10944_v48  ;;  %v11030_v47 = vld [vmem:[%s14770_s1 + $0x1a8c] ss:$16 sps:$4 sm:$0xff]   ;;  %v11025_v48 = vld [vmem:[%s14770_s1 + $0x1a80] ss:$16 sps:$4 sm:$0xff]  }
 0x31b   :  { %7106 = vmatpush1.bf16.msra.mxu0 %v10939_v49  ;;  %7922 = vmatpush1.bf16.msra.mxu1 %v10942_v50  ;;  %v11028_v49 = vld [vmem:[%s14770_s1 + $0x1a88] ss:$16 sps:$4 sm:$0xff]   ;;  %v11033_v50 = vld [vmem:[%s14770_s1 + $0x1aa4] ss:$16 sps:$4 sm:$0xff]  }
 0x31c   :  { %7107 = vmatprep.subr.bf16.mxu0 %v10947_v53  ;;  %7923 = vmatprep.subr.bf16.mxu1 %v10950_v51  ;;  %v11036_v53 = vld [vmem:[%s14770_s1 + $0x1aac] ss:$16 sps:$4 sm:$0xff]   ;;  %v11031_v51 = vld [vmem:[%s14770_s1 + $0x1aa0] ss:$16 sps:$4 sm:$0xff]  }
 0x31f   :  { %7108 = vmatpush1.bf16.msra.mxu0 %v10945_v52  ;;  %7924 = vmatpush1.bf16.msra.mxu1 %v10948_v54  ;;  %v11034_v52 = vld [vmem:[%s14770_s1 + $0x1aa8] ss:$16 sps:$4 sm:$0xff]   ;;  %v11039_v54 = vld [vmem:[%s14770_s1 + $0x1ac4] ss:$16 sps:$4 sm:$0xff]  }
 0x320   :  { %7109 = vmatprep.subr.bf16.mxu0 %v10953_v55  ;;  %7925 = vmatprep.subr.bf16.mxu1 %v10956_v56  ;;  %v11042_v55 = vld [vmem:[%s14770_s1 + $0x1acc] ss:$16 sps:$4 sm:$0xff]   ;;  %v11037_v56 = vld [vmem:[%s14770_s1 + $0x1ac0] ss:$16 sps:$4 sm:$0xff]  }
 0x323   :  { %7110 = vmatpush1.bf16.msra.mxu0 %v10951_v57  ;;  %7926 = vmatpush1.bf16.msra.mxu1 %v10954_v60  ;;  %v11040_v57 = vld [vmem:[%s14770_s1 + $0x1ac8] ss:$16 sps:$4 sm:$0xff]   ;;  %v11045_v60 = vld [vmem:[%s14770_s1 + $0x1ae4] ss:$16 sps:$4 sm:$0xff]  }
 0x324   :  { %7111 = vmatprep.subr.bf16.mxu0 %v10959_v58  ;;  %7927 = vmatprep.subr.bf16.mxu1 %v10962_v59  ;;  %v11048_v58 = vld [vmem:[%s14770_s1 + $0x1aec] ss:$16 sps:$4 sm:$0xff]   ;;  %v11043_v59 = vld [vmem:[%s14770_s1 + $0x1ae0] ss:$16 sps:$4 sm:$0xff]  }
 0x327   :  { %7112 = vmatpush1.bf16.msra.mxu0 %v10957_v61  ;;  %7928 = vmatpush1.bf16.msra.mxu1 %v10960_v62  ;;  %v11046_v61 = vld [vmem:[%s14770_s1 + $0x1ae8] ss:$16 sps:$4 sm:$0xff]   ;;  %v11051_v62 = vld [vmem:[%s14770_s1 + $0x1b04] ss:$16 sps:$4 sm:$0xff]  }
 0x328   :  { %7113 = vmatprep.subr.bf16.mxu0 %v10965_v63  ;;  %7929 = vmatprep.subr.bf16.mxu1 %v10968_v0  ;;  %v11054_v63 = vld [vmem:[%s14770_s1 + $0x1b0c] ss:$16 sps:$4 sm:$0xff]   ;;  %v11049_v0 = vld [vmem:[%s14770_s1 + $0x1b00] ss:$16 sps:$4 sm:$0xff]  }
 0x32b   :  { %7114 = vmatpush1.bf16.msra.mxu0 %v10963_v3  ;;  %7930 = vmatpush1.bf16.msra.mxu1 %v10966_v1  ;;  %v11052_v3 = vld [vmem:[%s14770_s1 + $0x1b08] ss:$16 sps:$4 sm:$0xff]   ;;  %v11057_v1 = vld [vmem:[%s14770_s1 + $0x1b24] ss:$16 sps:$4 sm:$0xff]  }
 0x32c   :  { %7115 = vmatprep.subr.bf16.mxu0 %v10971_v2  ;;  %7931 = vmatprep.subr.bf16.mxu1 %v10974_v4  ;;  %v11060_v2 = vld [vmem:[%s14770_s1 + $0x1b2c] ss:$16 sps:$4 sm:$0xff]   ;;  %v11055_v4 = vld [vmem:[%s14770_s1 + $0x1b20] ss:$16 sps:$4 sm:$0xff]  }
 0x32f   :  { %7116 = vmatpush1.bf16.msra.mxu0 %v10969_v5  ;;  %7932 = vmatpush1.bf16.msra.mxu1 %v10972_v6  ;;  %v11058_v5 = vld [vmem:[%s14770_s1 + $0x1b28] ss:$16 sps:$4 sm:$0xff]   ;;  %v11063_v6 = vld [vmem:[%s14770_s1 + $0x1b44] ss:$16 sps:$4 sm:$0xff]  }
 0x330   :  { %7117 = vmatprep.subr.bf16.mxu0 %v10977_v7  ;;  %7933 = vmatprep.subr.bf16.mxu1 %v10980_v8  ;;  %v11066_v7 = vld [vmem:[%s14770_s1 + $0x1b4c] ss:$16 sps:$4 sm:$0xff]   ;;  %v11061_v8 = vld [vmem:[%s14770_s1 + $0x1b40] ss:$16 sps:$4 sm:$0xff]  }
 0x333   :  { %7118 = vmatpush1.bf16.msra.mxu0 %v10975_v9  ;;  %7934 = vmatpush1.bf16.msra.mxu1 %v10978_v10  ;;  %v11064_v9 = vld [vmem:[%s14770_s1 + $0x1b48] ss:$16 sps:$4 sm:$0xff]   ;;  %v11069_v10 = vld [vmem:[%s14770_s1 + $0x1b64] ss:$16 sps:$4 sm:$0xff]  }
 0x334   :  { %7119 = vmatprep.subr.bf16.mxu0 %v10983_v11  ;;  %7935 = vmatprep.subr.bf16.mxu1 %v10986_v12  ;;  %v11072_v11 = vld [vmem:[%s14770_s1 + $0x1b6c] ss:$16 sps:$4 sm:$0xff]   ;;  %v11067_v12 = vld [vmem:[%s14770_s1 + $0x1b60] ss:$16 sps:$4 sm:$0xff]  }
 0x337   :  { %7120 = vmatpush1.bf16.msra.mxu0 %v10981_v13  ;;  %7936 = vmatpush1.bf16.msra.mxu1 %v10984_v14  ;;  %v11070_v13 = vld [vmem:[%s14770_s1 + $0x1b68] ss:$16 sps:$4 sm:$0xff]   ;;  %v11075_v14 = vld [vmem:[%s14770_s1 + $0x1b84] ss:$16 sps:$4 sm:$0xff]  }
 0x338   :  { %7121 = vmatprep.subr.bf16.mxu0 %v10990_v15  ;;  %7937 = vmatprep.subr.bf16.mxu1 %v10993_v16  ;;  %v11078_v15 = vld [vmem:[%s14770_s1 + $0x1b8c] ss:$16 sps:$4 sm:$0xff]   ;;  %v11073_v16 = vld [vmem:[%s14770_s1 + $0x1b80] ss:$16 sps:$4 sm:$0xff]  }
 0x33b   :  { %7122 = vmatpush1.bf16.msra.mxu0 %v10988_v17  ;;  %7938 = vmatpush1.bf16.msra.mxu1 %v10991_v18  ;;  %v11076_v17 = vld [vmem:[%s14770_s1 + $0x1b88] ss:$16 sps:$4 sm:$0xff]   ;;  %v11081_v18 = vld [vmem:[%s14770_s1 + $0x1ba4] ss:$16 sps:$4 sm:$0xff]  }
 0x33c   :  { %7123 = vmatprep.subr.bf16.mxu0 %v10997_v19  ;;  %7939 = vmatprep.subr.bf16.mxu1 %v11000_v20  ;;  %v11084_v19 = vld [vmem:[%s14770_s1 + $0x1bac] ss:$16 sps:$4 sm:$0xff]   ;;  %v11079_v20 = vld [vmem:[%s14770_s1 + $0x1ba0] ss:$16 sps:$4 sm:$0xff]  }
 0x33f   :  { %7124 = vmatpush1.bf16.msra.mxu0 %v10995_v21  ;;  %7940 = vmatpush1.bf16.msra.mxu1 %v10998_v22  ;;  %v11082_v21 = vld [vmem:[%s14770_s1 + $0x1ba8] ss:$16 sps:$4 sm:$0xff]   ;;  %v11088_v22 = vld [vmem:[%s14770_s1 + $0x1bc4] ss:$16 sps:$4 sm:$0xff]  }
 0x340   :  { %7144 = vmatprep.subr.bf16.mxu0 %v11003_v23  ;;  %7960 = vmatprep.subr.bf16.mxu1 %v11006_v24  ;;  %v11091_v23 = vld [vmem:[%s14770_s1 + $0x1bcc] ss:$16 sps:$4 sm:$0xff]   ;;  %v11086_v24 = vld [vmem:[%s14770_s1 + $0x1bc0] ss:$16 sps:$4 sm:$0xff]  }
 0x342   :  { %7126 = vmatmul.mubr.bf16.vlgmr.msra.gmra.mrb[0].mxu0 %v8413_v25  ;;  %7942 = vmatmul.mubr.bf16.vlgmr.msra.gmra.mrb[0].mxu1 %v8413_v25  ;;  %v11089_v25 = vld [vmem:[%s14770_s1 + $0x1bc8] ss:$16 sps:$4 sm:$0xff]  }
 0x343   :  { %7145 = vmatpush1.bf16.msra.mxu0 %v11001_v27  ;;  %7961 = vmatpush1.bf16.msra.mxu1 %v11004_v28  ;;  %v11098_v27 = vld [vmem:[%s14770_s1 + $0x1bec] ss:$16 sps:$4 sm:$0xff]   ;;  %v11093_v28 = vld [vmem:[%s14770_s1 + $0x1be0] ss:$16 sps:$4 sm:$0xff]  }
 0x344   :  { %7146 = vmatprep.subr.bf16.mxu0 %v11009_v29  ;;  %7962 = vmatprep.subr.bf16.mxu1 %v11012_v30  ;;  %v11096_v29 = vld [vmem:[%s14770_s1 + $0x1be8] ss:$16 sps:$4 sm:$0xff]   ;;  %v11101_v30 = vld [vmem:[%s14770_s1 + $0x1c04] ss:$16 sps:$4 sm:$0xff]  }
 0x345   :  { %7135 = vmatprep.mubr.bf16.mxu0 %v8446_v31  ;;  %7951 = vmatprep.mubr.bf16.mxu1 %v8446_v31  ;;  %v11104_v31 = vld [vmem:[%s14770_s1 + $0x1c0c] ss:$16 sps:$4 sm:$0xff]  }
 0x347   :  { %7147 = vmatpush1.bf16.msra.mxu0 %v11007_v32  ;;  %7963 = vmatpush1.bf16.msra.mxu1 %v11010_v33  ;;  %v8415_v32 = vcombine.low %v14072_v37, %v14077_v38  ;;  %v62_v33 = vld [vmem:[%s14771_s0 + $0x168] sm:$0x11] }
 0x348   :  { %7148 = vmatprep.subr.bf16.mxu0 %v11015_v34  ;;  %7964 = vmatprep.subr.bf16.mxu1 %v11018_v35  ;;  %v11099_v34 = vld [vmem:[%s14770_s1 + $0x1c00] ss:$16 sps:$4 sm:$0xff]   ;;  %v11102_v35 = vld [vmem:[%s14770_s1 + $0x1c08] ss:$16 sps:$4 sm:$0xff]   ;;  %v11110_v37 = vld [vmem:[%s14770_s1 + $0x1c2c] ss:$16 sps:$4 sm:$0xff]   ;;  %v8448_v38 = vcombine.high %v62_v33, %v62_v33 }
 0x34a   :  { %7136 = vmatmul.mubr.bf16.gmra.mrb[4].mxu0 %v8445_v36  ;;  %7952 = vmatmul.mubr.bf16.gmra.mrb[4].mxu1 %v8445_v36  ;;  %v11107_v36 = vld [vmem:[%s14770_s1 + $0x1c24] ss:$16 sps:$4 sm:$0xff]  }
 0x34b   :  { %7149 = vmatpush1.bf16.msra.mxu0 %v11013_v39  ;;  %7965 = vmatpush1.bf16.msra.mxu1 %v11016_v40  ;;  %v11105_v39 = vld [vmem:[%s14770_s1 + $0x1c20] ss:$16 sps:$4 sm:$0xff]   ;;  %v11108_v40 = vld [vmem:[%s14770_s1 + $0x1c28] ss:$16 sps:$4 sm:$0xff]  }
 0x34c   :  { %7150 = vmatprep.subr.bf16.mxu0 %v11021_v41  ;;  %7966 = vmatprep.subr.bf16.mxu1 %v11024_v42  ;;  %v11113_v41 = vld [vmem:[%s14770_s1 + $0x1c44] ss:$16 sps:$4 sm:$0xff]   ;;  %v11116_v42 = vld [vmem:[%s14770_s1 + $0x1c4c] ss:$16 sps:$4 sm:$0xff]  }
 0x34d   :  { %7176 = vmatprep.mubr.bf16.mxu0 %v8416_v43  ;;  %7992 = vmatprep.mubr.bf16.mxu1 %v8416_v43  ;;  %v8447_v43 = vcombine.low %v62_v33, %v62_v33  ;;  %v11193_v33 = vld [vmem:[%s14770_s1 + $0x1de4] ss:$16 sps:$4 sm:$0xff]  }
 0x34f   :  { %7151 = vmatpush1.bf16.msra.mxu0 %v11019_v46  ;;  %7967 = vmatpush1.bf16.msra.mxu1 %v11022_v44  ;;  %v14281_v46 = vld [vmem:[%s14771_s0 + $0x70] sm:$0xff] }
 0x350   :  { %7152 = vmatprep.subr.bf16.mxu0 %v11027_v45  ;;  %7968 = vmatprep.subr.bf16.mxu1 %v11030_v47  ;;  %v14286_v44 = vld [vmem:[%s14771_s0 + $0xf0] sm:$0xff]  ;;  %v11114_v47 = vld [vmem:[%s14770_s1 + $0x1c48] ss:$16 sps:$4 sm:$0xff]  }
 0x351   :  { %v11111_v45 = vld [vmem:[%s14770_s1 + $0x1c40] ss:$16 sps:$4 sm:$0xff]  }
 0x353   :  { %7153 = vmatpush1.bf16.msra.mxu0 %v11025_v48  ;;  %7969 = vmatpush1.bf16.msra.mxu1 %v11028_v49  ;;  %v11119_v48 = vld [vmem:[%s14770_s1 + $0x1c64] ss:$16 sps:$4 sm:$0xff]   ;;  %v11122_v49 = vld [vmem:[%s14770_s1 + $0x1c6c] ss:$16 sps:$4 sm:$0xff]  }
 0x354   :  { %7154 = vmatprep.subr.bf16.mxu0 %v11033_v50  ;;  %7970 = vmatprep.subr.bf16.mxu1 %v11036_v53  ;;  %v8418_v50 = vcombine.high %v14281_v46, %v14286_v44  ;;  %v11117_v53 = vld [vmem:[%s14770_s1 + $0x1c60] ss:$16 sps:$4 sm:$0xff]  }
 0x357   :  { %7155 = vmatpush1.bf16.msra.mxu0 %v11031_v51  ;;  %7971 = vmatpush1.bf16.msra.mxu1 %v11034_v52  ;;  %v11120_v51 = vld [vmem:[%s14770_s1 + $0x1c68] ss:$16 sps:$4 sm:$0xff]   ;;  %v11125_v52 = vld [vmem:[%s14770_s1 + $0x1c84] ss:$16 sps:$4 sm:$0xff]  }
 0x358   :  { %7156 = vmatprep.subr.bf16.mxu0 %v11039_v54  ;;  %7972 = vmatprep.subr.bf16.mxu1 %v11042_v55  ;;  %v11128_v54 = vld [vmem:[%s14770_s1 + $0x1c8c] ss:$16 sps:$4 sm:$0xff]   ;;  %v11123_v55 = vld [vmem:[%s14770_s1 + $0x1c80] ss:$16 sps:$4 sm:$0xff]  }
 0x35b   :  { %7157 = vmatpush1.bf16.msra.mxu0 %v11037_v56  ;;  %7973 = vmatpush1.bf16.msra.mxu1 %v11040_v57  ;;  %v11126_v56 = vld [vmem:[%s14770_s1 + $0x1c88] ss:$16 sps:$4 sm:$0xff]   ;;  %v11131_v57 = vld [vmem:[%s14770_s1 + $0x1ca4] ss:$16 sps:$4 sm:$0xff]  }
 0x35c   :  { %7158 = vmatprep.subr.bf16.mxu0 %v11045_v60  ;;  %7974 = vmatprep.subr.bf16.mxu1 %v11048_v58  ;;  %v11134_v60 = vld [vmem:[%s14770_s1 + $0x1cac] ss:$16 sps:$4 sm:$0xff]   ;;  %v11129_v58 = vld [vmem:[%s14770_s1 + $0x1ca0] ss:$16 sps:$4 sm:$0xff]  }
 0x35f   :  { %7159 = vmatpush1.bf16.msra.mxu0 %v11043_v59  ;;  %7975 = vmatpush1.bf16.msra.mxu1 %v11046_v61  ;;  %v11132_v59 = vld [vmem:[%s14770_s1 + $0x1ca8] ss:$16 sps:$4 sm:$0xff]   ;;  %v11137_v61 = vld [vmem:[%s14770_s1 + $0x1cc4] ss:$16 sps:$4 sm:$0xff]  }
 0x360   :  { %7160 = vmatprep.subr.bf16.mxu0 %v11051_v62  ;;  %7976 = vmatprep.subr.bf16.mxu1 %v11054_v63  ;;  %v11140_v62 = vld [vmem:[%s14770_s1 + $0x1ccc] ss:$16 sps:$4 sm:$0xff]   ;;  %v11135_v63 = vld [vmem:[%s14770_s1 + $0x1cc0] ss:$16 sps:$4 sm:$0xff]  }
 0x363   :  { %7161 = vmatpush1.bf16.msra.mxu0 %v11049_v0  ;;  %7977 = vmatpush1.bf16.msra.mxu1 %v11052_v3  ;;  %v11138_v0 = vld [vmem:[%s14770_s1 + $0x1cc8] ss:$16 sps:$4 sm:$0xff]   ;;  %v11143_v3 = vld [vmem:[%s14770_s1 + $0x1ce4] ss:$16 sps:$4 sm:$0xff]  }
 0x364   :  { %7162 = vmatprep.subr.bf16.mxu0 %v11057_v1  ;;  %7978 = vmatprep.subr.bf16.mxu1 %v11060_v2  ;;  %v11146_v1 = vld [vmem:[%s14770_s1 + $0x1cec] ss:$16 sps:$4 sm:$0xff]   ;;  %v11141_v2 = vld [vmem:[%s14770_s1 + $0x1ce0] ss:$16 sps:$4 sm:$0xff]  }
 0x367   :  { %7163 = vmatpush1.bf16.msra.mxu0 %v11055_v4  ;;  %7979 = vmatpush1.bf16.msra.mxu1 %v11058_v5  ;;  %v11144_v4 = vld [vmem:[%s14770_s1 + $0x1ce8] ss:$16 sps:$4 sm:$0xff]   ;;  %v11149_v5 = vld [vmem:[%s14770_s1 + $0x1d04] ss:$16 sps:$4 sm:$0xff]  }
 0x368   :  { %7164 = vmatprep.subr.bf16.mxu0 %v11063_v6  ;;  %7980 = vmatprep.subr.bf16.mxu1 %v11066_v7  ;;  %v11152_v6 = vld [vmem:[%s14770_s1 + $0x1d0c] ss:$16 sps:$4 sm:$0xff]   ;;  %v11147_v7 = vld [vmem:[%s14770_s1 + $0x1d00] ss:$16 sps:$4 sm:$0xff]  }
 0x36b   :  { %7165 = vmatpush1.bf16.msra.mxu0 %v11061_v8  ;;  %7981 = vmatpush1.bf16.msra.mxu1 %v11064_v9  ;;  %v11150_v8 = vld [vmem:[%s14770_s1 + $0x1d08] ss:$16 sps:$4 sm:$0xff]   ;;  %v11155_v9 = vld [vmem:[%s14770_s1 + $0x1d24] ss:$16 sps:$4 sm:$0xff]  }
 0x36c   :  { %7166 = vmatprep.subr.bf16.mxu0 %v11069_v10  ;;  %7982 = vmatprep.subr.bf16.mxu1 %v11072_v11  ;;  %v11158_v10 = vld [vmem:[%s14770_s1 + $0x1d2c] ss:$16 sps:$4 sm:$0xff]   ;;  %v11153_v11 = vld [vmem:[%s14770_s1 + $0x1d20] ss:$16 sps:$4 sm:$0xff]  }
 0x36f   :  { %7167 = vmatpush1.bf16.msra.mxu0 %v11067_v12  ;;  %7983 = vmatpush1.bf16.msra.mxu1 %v11070_v13  ;;  %v11156_v12 = vld [vmem:[%s14770_s1 + $0x1d28] ss:$16 sps:$4 sm:$0xff]   ;;  %v11161_v13 = vld [vmem:[%s14770_s1 + $0x1d44] ss:$16 sps:$4 sm:$0xff]  }
 0x370   :  { %7168 = vmatprep.subr.bf16.mxu0 %v11075_v14  ;;  %7984 = vmatprep.subr.bf16.mxu1 %v11078_v15  ;;  %v11164_v14 = vld [vmem:[%s14770_s1 + $0x1d4c] ss:$16 sps:$4 sm:$0xff]   ;;  %v11159_v15 = vld [vmem:[%s14770_s1 + $0x1d40] ss:$16 sps:$4 sm:$0xff]  }
 0x373   :  { %7169 = vmatpush1.bf16.msra.mxu0 %v11073_v16  ;;  %7985 = vmatpush1.bf16.msra.mxu1 %v11076_v17  ;;  %v11162_v16 = vld [vmem:[%s14770_s1 + $0x1d48] ss:$16 sps:$4 sm:$0xff]   ;;  %v11167_v17 = vld [vmem:[%s14770_s1 + $0x1d64] ss:$16 sps:$4 sm:$0xff]  }
 0x374   :  { %7170 = vmatprep.subr.bf16.mxu0 %v11081_v18  ;;  %7986 = vmatprep.subr.bf16.mxu1 %v11084_v19  ;;  %v11170_v18 = vld [vmem:[%s14770_s1 + $0x1d6c] ss:$16 sps:$4 sm:$0xff]   ;;  %v11165_v19 = vld [vmem:[%s14770_s1 + $0x1d60] ss:$16 sps:$4 sm:$0xff]  }
 0x377   :  { %7171 = vmatpush1.bf16.msra.mxu0 %v11079_v20  ;;  %7987 = vmatpush1.bf16.msra.mxu1 %v11082_v21  ;;  %v11168_v20 = vld [vmem:[%s14770_s1 + $0x1d68] ss:$16 sps:$4 sm:$0xff]   ;;  %v11173_v21 = vld [vmem:[%s14770_s1 + $0x1d84] ss:$16 sps:$4 sm:$0xff]  }
 0x378   :  { %7172 = vmatprep.subr.bf16.mxu0 %v11088_v22  ;;  %7988 = vmatprep.subr.bf16.mxu1 %v11091_v23  ;;  %v11176_v22 = vld [vmem:[%s14770_s1 + $0x1d8c] ss:$16 sps:$4 sm:$0xff]   ;;  %v11171_v23 = vld [vmem:[%s14770_s1 + $0x1d80] ss:$16 sps:$4 sm:$0xff]  }
 0x37b   :  { %7173 = vmatpush1.bf16.msra.mxu0 %v11086_v24  ;;  %7989 = vmatpush1.bf16.msra.mxu1 %v11089_v25  ;;  %v11174_v24 = vld [vmem:[%s14770_s1 + $0x1d88] ss:$16 sps:$4 sm:$0xff]   ;;  %v11179_v25 = vld [vmem:[%s14770_s1 + $0x1da4] ss:$16 sps:$4 sm:$0xff]  }
 0x37c   :  { %7174 = vmatprep.subr.bf16.mxu0 %v11095_v26  ;;  %7990 = vmatprep.subr.bf16.mxu1 %v11098_v27  ;;  %v11182_v26 = vld [vmem:[%s14770_s1 + $0x1dac] ss:$16 sps:$4 sm:$0xff]   ;;  %v11177_v27 = vld [vmem:[%s14770_s1 + $0x1da0] ss:$16 sps:$4 sm:$0xff]  }
 0x37f   :  { %7175 = vmatpush1.bf16.msra.mxu0 %v11093_v28  ;;  %7991 = vmatpush1.bf16.msra.mxu1 %v11096_v29  ;;  %v11180_v28 = vld [vmem:[%s14770_s1 + $0x1da8] ss:$16 sps:$4 sm:$0xff]   ;;  %v11186_v29 = vld [vmem:[%s14770_s1 + $0x1dc4] ss:$16 sps:$4 sm:$0xff]  }
 0x380   :  { %7195 = vmatprep.subr.bf16.mxu0 %v11101_v30  ;;  %8011 = vmatprep.subr.bf16.mxu1 %v11104_v31  ;;  %v11189_v30 = vld [vmem:[%s14770_s1 + $0x1dcc] ss:$16 sps:$4 sm:$0xff]   ;;  %v11184_v31 = vld [vmem:[%s14770_s1 + $0x1dc0] ss:$16 sps:$4 sm:$0xff]  }
 0x382   :  { %7177 = vmatmul.mubr.bf16.vlgmr.msra.gmra.mrb[0].mxu0 %v8415_v32  ;;  %7993 = vmatmul.mubr.bf16.vlgmr.msra.gmra.mrb[0].mxu1 %v8415_v32  ;;  %v11187_v32 = vld [vmem:[%s14770_s1 + $0x1dc8] ss:$16 sps:$4 sm:$0xff]  }
 0x383   :  { %7196 = vmatpush1.bf16.msra.mxu0 %v11099_v34  ;;  %8012 = vmatpush1.bf16.msra.mxu1 %v11102_v35  ;;  %v11196_v34 = vld [vmem:[%s14770_s1 + $0x1dec] ss:$16 sps:$4 sm:$0xff]   ;;  %v11191_v35 = vld [vmem:[%s14770_s1 + $0x1de0] ss:$16 sps:$4 sm:$0xff]  }
 0x384   :  { %7197 = vmatprep.subr.bf16.mxu0 %v11107_v36  ;;  %8013 = vmatprep.subr.bf16.mxu1 %v11110_v37  ;;  %v11194_v36 = vld [vmem:[%s14770_s1 + $0x1de8] ss:$16 sps:$4 sm:$0xff]   ;;  %v11199_v37 = vld [vmem:[%s14770_s1 + $0x1e04] ss:$16 sps:$4 sm:$0xff]  }
 0x385   :  { %7186 = vmatprep.mubr.bf16.mxu0 %v8448_v38  ;;  %8002 = vmatprep.mubr.bf16.mxu1 %v8448_v38  ;;  %v11202_v38 = vld [vmem:[%s14770_s1 + $0x1e0c] ss:$16 sps:$4 sm:$0xff]  }
 0x387   :  { %7198 = vmatpush1.bf16.msra.mxu0 %v11105_v39  ;;  %8014 = vmatpush1.bf16.msra.mxu1 %v11108_v40  ;;  %v8417_v39 = vcombine.low %v14281_v46, %v14286_v44  ;;  %v63_v40 = vld [vmem:[%s14771_s0 + $0x170] sm:$0x11]  ;;  %v11208_v46 = vld [vmem:[%s14770_s1 + $0x1e2c] ss:$16 sps:$4 sm:$0xff]  }
 0x388   :  { %7199 = vmatprep.subr.bf16.mxu0 %v11113_v41  ;;  %8015 = vmatprep.subr.bf16.mxu1 %v11116_v42  ;;  %v11197_v41 = vld [vmem:[%s14770_s1 + $0x1e00] ss:$16 sps:$4 sm:$0xff]   ;;  %v11200_v42 = vld [vmem:[%s14770_s1 + $0x1e08] ss:$16 sps:$4 sm:$0xff]   ;;  %v8450_v44 = vcombine.high %v63_v40, %v63_v40 }
 0x38a   :  { %7187 = vmatmul.mubr.bf16.gmra.mrb[4].mxu0 %v8447_v43  ;;  %8003 = vmatmul.mubr.bf16.gmra.mrb[4].mxu1 %v8447_v43  ;;  %v11205_v43 = vld [vmem:[%s14770_s1 + $0x1e24] ss:$16 sps:$4 sm:$0xff]  }
 0x38b   :  { %7200 = vmatpush1.bf16.msra.mxu0 %v11111_v45  ;;  %8016 = vmatpush1.bf16.msra.mxu1 %v11114_v47  ;;  %v11203_v45 = vld [vmem:[%s14770_s1 + $0x1e20] ss:$16 sps:$4 sm:$0xff]   ;;  %v11206_v47 = vld [vmem:[%s14770_s1 + $0x1e28] ss:$16 sps:$4 sm:$0xff]  }
 0x38c   :  { %7201 = vmatprep.subr.bf16.mxu0 %v11119_v48  ;;  %8017 = vmatprep.subr.bf16.mxu1 %v11122_v49  ;;  %v11211_v48 = vld [vmem:[%s14770_s1 + $0x1e44] ss:$16 sps:$4 sm:$0xff]   ;;  %v11214_v49 = vld [vmem:[%s14770_s1 + $0x1e4c] ss:$16 sps:$4 sm:$0xff]  }
 0x38d   :  { %7227 = vmatprep.mubr.bf16.mxu0 %v8418_v50  ;;  %8043 = vmatprep.mubr.bf16.mxu1 %v8418_v50  ;;  %v8449_v50 = vcombine.low %v63_v40, %v63_v40  ;;  %v11291_v40 = vld [vmem:[%s14770_s1 + $0x1fe4] ss:$16 sps:$4 sm:$0xff]  }
 0x38f   :  { %7202 = vmatpush1.bf16.msra.mxu0 %v11117_v53  ;;  %8018 = vmatpush1.bf16.msra.mxu1 %v11120_v51  ;;  %v14490_v53 = vld [vmem:[%s14771_s0 + $0x78] sm:$0xff] }
 0x390   :  { %7203 = vmatprep.subr.bf16.mxu0 %v11125_v52  ;;  %8019 = vmatprep.subr.bf16.mxu1 %v11128_v54  ;;  %v14495_v51 = vld [vmem:[%s14771_s0 + $0xf8] sm:$0xff]  ;;  %v11209_v52 = vld [vmem:[%s14770_s1 + $0x1e40] ss:$16 sps:$4 sm:$0xff]  }
 0x391   :  { %v11212_v54 = vld [vmem:[%s14770_s1 + $0x1e48] ss:$16 sps:$4 sm:$0xff]  }
 0x393   :  { %7204 = vmatpush1.bf16.msra.mxu0 %v11123_v55  ;;  %8020 = vmatpush1.bf16.msra.mxu1 %v11126_v56  ;;  %v11217_v55 = vld [vmem:[%s14770_s1 + $0x1e64] ss:$16 sps:$4 sm:$0xff]   ;;  %v11220_v56 = vld [vmem:[%s14770_s1 + $0x1e6c] ss:$16 sps:$4 sm:$0xff]  }
 0x394   :  { %7205 = vmatprep.subr.bf16.mxu0 %v11131_v57  ;;  %8021 = vmatprep.subr.bf16.mxu1 %v11134_v60  ;;  %v8420_v57 = vcombine.high %v14490_v53, %v14495_v51  ;;  %v11215_v60 = vld [vmem:[%s14770_s1 + $0x1e60] ss:$16 sps:$4 sm:$0xff]  }
 0x397   :  { %7206 = vmatpush1.bf16.msra.mxu0 %v11129_v58  ;;  %8022 = vmatpush1.bf16.msra.mxu1 %v11132_v59  ;;  %v11218_v58 = vld [vmem:[%s14770_s1 + $0x1e68] ss:$16 sps:$4 sm:$0xff]   ;;  %v11223_v59 = vld [vmem:[%s14770_s1 + $0x1e84] ss:$16 sps:$4 sm:$0xff]  }
 0x398   :  { %7207 = vmatprep.subr.bf16.mxu0 %v11137_v61  ;;  %8023 = vmatprep.subr.bf16.mxu1 %v11140_v62  ;;  %v11226_v61 = vld [vmem:[%s14770_s1 + $0x1e8c] ss:$16 sps:$4 sm:$0xff]   ;;  %v11221_v62 = vld [vmem:[%s14770_s1 + $0x1e80] ss:$16 sps:$4 sm:$0xff]  }
 0x39b   :  { %7208 = vmatpush1.bf16.msra.mxu0 %v11135_v63  ;;  %8024 = vmatpush1.bf16.msra.mxu1 %v11138_v0  ;;  %v11224_v63 = vld [vmem:[%s14770_s1 + $0x1e88] ss:$16 sps:$4 sm:$0xff]   ;;  %v11229_v0 = vld [vmem:[%s14770_s1 + $0x1ea4] ss:$16 sps:$4 sm:$0xff]  }
 0x39c   :  { %7209 = vmatprep.subr.bf16.mxu0 %v11143_v3  ;;  %8025 = vmatprep.subr.bf16.mxu1 %v11146_v1  ;;  %v11232_v3 = vld [vmem:[%s14770_s1 + $0x1eac] ss:$16 sps:$4 sm:$0xff]   ;;  %v11227_v1 = vld [vmem:[%s14770_s1 + $0x1ea0] ss:$16 sps:$4 sm:$0xff]  }
 0x39f   :  { %7210 = vmatpush1.bf16.msra.mxu0 %v11141_v2  ;;  %8026 = vmatpush1.bf16.msra.mxu1 %v11144_v4  ;;  %v11230_v2 = vld [vmem:[%s14770_s1 + $0x1ea8] ss:$16 sps:$4 sm:$0xff]   ;;  %v11235_v4 = vld [vmem:[%s14770_s1 + $0x1ec4] ss:$16 sps:$4 sm:$0xff]  }
 0x3a0   :  { %7211 = vmatprep.subr.bf16.mxu0 %v11149_v5  ;;  %8027 = vmatprep.subr.bf16.mxu1 %v11152_v6  ;;  %v11238_v5 = vld [vmem:[%s14770_s1 + $0x1ecc] ss:$16 sps:$4 sm:$0xff]   ;;  %v11233_v6 = vld [vmem:[%s14770_s1 + $0x1ec0] ss:$16 sps:$4 sm:$0xff]  }
 0x3a3   :  { %7212 = vmatpush1.bf16.msra.mxu0 %v11147_v7  ;;  %8028 = vmatpush1.bf16.msra.mxu1 %v11150_v8  ;;  %v11236_v7 = vld [vmem:[%s14770_s1 + $0x1ec8] ss:$16 sps:$4 sm:$0xff]   ;;  %v11241_v8 = vld [vmem:[%s14770_s1 + $0x1ee4] ss:$16 sps:$4 sm:$0xff]  }
 0x3a4   :  { %7213 = vmatprep.subr.bf16.mxu0 %v11155_v9  ;;  %8029 = vmatprep.subr.bf16.mxu1 %v11158_v10  ;;  %v11244_v9 = vld [vmem:[%s14770_s1 + $0x1eec] ss:$16 sps:$4 sm:$0xff]   ;;  %v11239_v10 = vld [vmem:[%s14770_s1 + $0x1ee0] ss:$16 sps:$4 sm:$0xff]  }
 0x3a7   :  { %7214 = vmatpush1.bf16.msra.mxu0 %v11153_v11  ;;  %8030 = vmatpush1.bf16.msra.mxu1 %v11156_v12  ;;  %v11242_v11 = vld [vmem:[%s14770_s1 + $0x1ee8] ss:$16 sps:$4 sm:$0xff]   ;;  %v11247_v12 = vld [vmem:[%s14770_s1 + $0x1f04] ss:$16 sps:$4 sm:$0xff]  }
 0x3a8   :  { %7215 = vmatprep.subr.bf16.mxu0 %v11161_v13  ;;  %8031 = vmatprep.subr.bf16.mxu1 %v11164_v14  ;;  %v11250_v13 = vld [vmem:[%s14770_s1 + $0x1f0c] ss:$16 sps:$4 sm:$0xff]   ;;  %v11245_v14 = vld [vmem:[%s14770_s1 + $0x1f00] ss:$16 sps:$4 sm:$0xff]  }
 0x3ab   :  { %7216 = vmatpush1.bf16.msra.mxu0 %v11159_v15  ;;  %8032 = vmatpush1.bf16.msra.mxu1 %v11162_v16  ;;  %v11248_v15 = vld [vmem:[%s14770_s1 + $0x1f08] ss:$16 sps:$4 sm:$0xff]   ;;  %v11253_v16 = vld [vmem:[%s14770_s1 + $0x1f24] ss:$16 sps:$4 sm:$0xff]  }
 0x3ac   :  { %7217 = vmatprep.subr.bf16.mxu0 %v11167_v17  ;;  %8033 = vmatprep.subr.bf16.mxu1 %v11170_v18  ;;  %v11256_v17 = vld [vmem:[%s14770_s1 + $0x1f2c] ss:$16 sps:$4 sm:$0xff]   ;;  %v11251_v18 = vld [vmem:[%s14770_s1 + $0x1f20] ss:$16 sps:$4 sm:$0xff]  }
 0x3af   :  { %7218 = vmatpush1.bf16.msra.mxu0 %v11165_v19  ;;  %8034 = vmatpush1.bf16.msra.mxu1 %v11168_v20  ;;  %v11254_v19 = vld [vmem:[%s14770_s1 + $0x1f28] ss:$16 sps:$4 sm:$0xff]   ;;  %v11259_v20 = vld [vmem:[%s14770_s1 + $0x1f44] ss:$16 sps:$4 sm:$0xff]  }
 0x3b0   :  { %7219 = vmatprep.subr.bf16.mxu0 %v11173_v21  ;;  %8035 = vmatprep.subr.bf16.mxu1 %v11176_v22  ;;  %v11262_v21 = vld [vmem:[%s14770_s1 + $0x1f4c] ss:$16 sps:$4 sm:$0xff]   ;;  %v11257_v22 = vld [vmem:[%s14770_s1 + $0x1f40] ss:$16 sps:$4 sm:$0xff]  }
 0x3b3   :  { %7220 = vmatpush1.bf16.msra.mxu0 %v11171_v23  ;;  %8036 = vmatpush1.bf16.msra.mxu1 %v11174_v24  ;;  %v11260_v23 = vld [vmem:[%s14770_s1 + $0x1f48] ss:$16 sps:$4 sm:$0xff]   ;;  %v11265_v24 = vld [vmem:[%s14770_s1 + $0x1f64] ss:$16 sps:$4 sm:$0xff]  }
 0x3b4   :  { %7221 = vmatprep.subr.bf16.mxu0 %v11179_v25  ;;  %8037 = vmatprep.subr.bf16.mxu1 %v11182_v26  ;;  %v11268_v25 = vld [vmem:[%s14770_s1 + $0x1f6c] ss:$16 sps:$4 sm:$0xff]   ;;  %v11263_v26 = vld [vmem:[%s14770_s1 + $0x1f60] ss:$16 sps:$4 sm:$0xff]  }
 0x3b7   :  { %7222 = vmatpush1.bf16.msra.mxu0 %v11177_v27  ;;  %8038 = vmatpush1.bf16.msra.mxu1 %v11180_v28  ;;  %v11266_v27 = vld [vmem:[%s14770_s1 + $0x1f68] ss:$16 sps:$4 sm:$0xff]   ;;  %v11271_v28 = vld [vmem:[%s14770_s1 + $0x1f84] ss:$16 sps:$4 sm:$0xff]  }
 0x3b8   :  { %7223 = vmatprep.subr.bf16.mxu0 %v11186_v29  ;;  %8039 = vmatprep.subr.bf16.mxu1 %v11189_v30  ;;  %v11274_v29 = vld [vmem:[%s14770_s1 + $0x1f8c] ss:$16 sps:$4 sm:$0xff]   ;;  %v11269_v30 = vld [vmem:[%s14770_s1 + $0x1f80] ss:$16 sps:$4 sm:$0xff]  }
 0x3bb   :  { %7224 = vmatpush1.bf16.msra.mxu0 %v11184_v31  ;;  %8040 = vmatpush1.bf16.msra.mxu1 %v11187_v32  ;;  %v11272_v31 = vld [vmem:[%s14770_s1 + $0x1f88] ss:$16 sps:$4 sm:$0xff]   ;;  %v11277_v32 = vld [vmem:[%s14770_s1 + $0x1fa4] ss:$16 sps:$4 sm:$0xff]  }
 0x3bc   :  { %7225 = vmatprep.subr.bf16.mxu0 %v11193_v33  ;;  %8041 = vmatprep.subr.bf16.mxu1 %v11196_v34  ;;  %v11280_v33 = vld [vmem:[%s14770_s1 + $0x1fac] ss:$16 sps:$4 sm:$0xff]   ;;  %v11275_v34 = vld [vmem:[%s14770_s1 + $0x1fa0] ss:$16 sps:$4 sm:$0xff]  }
 0x3bf   :  { %7226 = vmatpush1.bf16.msra.mxu0 %v11191_v35  ;;  %8042 = vmatpush1.bf16.msra.mxu1 %v11194_v36  ;;  %v11278_v35 = vld [vmem:[%s14770_s1 + $0x1fa8] ss:$16 sps:$4 sm:$0xff]   ;;  %v11285_v36 = vld [vmem:[%s14770_s1 + $0x1fc4] ss:$16 sps:$4 sm:$0xff]  }
 0x3c0   :  { %7246 = vmatprep.subr.bf16.mxu0 %v11199_v37  ;;  %8062 = vmatprep.subr.bf16.mxu1 %v11202_v38  ;;  %v11288_v37 = vld [vmem:[%s14770_s1 + $0x1fcc] ss:$16 sps:$4 sm:$0xff]   ;;  %v11283_v38 = vld [vmem:[%s14770_s1 + $0x1fc0] ss:$16 sps:$4 sm:$0xff]  }
 0x3c2   :  { %7228 = vmatmul.mubr.bf16.vlgmr.msra.gmra.mrb[0].mxu0 %v8417_v39  ;;  %8044 = vmatmul.mubr.bf16.vlgmr.msra.gmra.mrb[0].mxu1 %v8417_v39  ;;  %v11286_v39 = vld [vmem:[%s14770_s1 + $0x1fc8] ss:$16 sps:$4 sm:$0xff]  }
 0x3c3   :  { %7247 = vmatpush1.bf16.msra.mxu0 %v11197_v41  ;;  %8063 = vmatpush1.bf16.msra.mxu1 %v11200_v42  ;;  %v11294_v41 = vld [vmem:[%s14770_s1 + $0x1fec] ss:$16 sps:$4 sm:$0xff]   ;;  %v11289_v42 = vld [vmem:[%s14770_s1 + $0x1fe0] ss:$16 sps:$4 sm:$0xff]  }
 0x3c4   :  { %7248 = vmatprep.subr.bf16.mxu0 %v11205_v43  ;;  %8064 = vmatprep.subr.bf16.mxu1 %v11208_v46  ;;  %v11292_v43 = vld [vmem:[%s14770_s1 + $0x1fe8] ss:$16 sps:$4 sm:$0xff]  }
 0x3c5   :  { %7237 = vmatprep.mubr.bf16.mxu0 %v8450_v44  ;;  %8053 = vmatprep.mubr.bf16.mxu1 %v8450_v44  ;;  %v64_v46 = vld [vmem:[%s14771_s0 + $0x178] sm:$0x11]  ;;  %v8419_v44 = vcombine.low %v14490_v53, %v14495_v51 }
 0x3c7   :  { %7249 = vmatpush1.bf16.msra.mxu0 %v11203_v45  ;;  %8065 = vmatpush1.bf16.msra.mxu1 %v11206_v47  ;;  %v8452_v45 = vcombine.high %v64_v46, %v64_v46  ;;  %v8451_v47 = vcombine.low %v64_v46, %v64_v46 }
 0x3c8   :  { %7250 = vmatprep.subr.bf16.mxu0 %v11211_v48  ;;  %8066 = vmatprep.subr.bf16.mxu1 %v11214_v49 }
 0x3ca   :  { %7238 = vmatmul.mubr.bf16.gmra.mrb[4].mxu0 %v8449_v50  ;;  %8054 = vmatmul.mubr.bf16.gmra.mrb[4].mxu1 %v8449_v50 }
 0x3cb   :  { %7251 = vmatpush1.bf16.msra.mxu0 %v11209_v52  ;;  %8067 = vmatpush1.bf16.msra.mxu1 %v11212_v54 }
 0x3cc   :  { %7252 = vmatprep.subr.bf16.mxu0 %v11217_v55  ;;  %8068 = vmatprep.subr.bf16.mxu1 %v11220_v56 }
 0x3cd   :  { %7278 = vmatprep.mubr.bf16.mxu0 %v8420_v57  ;;  %8094 = vmatprep.mubr.bf16.mxu1 %v8420_v57 }
 0x3cf   :  { %7253 = vmatpush1.bf16.msra.mxu0 %v11215_v60  ;;  %8069 = vmatpush1.bf16.msra.mxu1 %v11218_v58 }
 0x3d0   :  { %7254 = vmatprep.subr.bf16.mxu0 %v11223_v59  ;;  %8070 = vmatprep.subr.bf16.mxu1 %v11226_v61 }
 0x3d3   :  { %7255 = vmatpush1.bf16.msra.mxu0 %v11221_v62  ;;  %8071 = vmatpush1.bf16.msra.mxu1 %v11224_v63 }
 0x3d4   :  { %7256 = vmatprep.subr.bf16.mxu0 %v11229_v0  ;;  %8072 = vmatprep.subr.bf16.mxu1 %v11232_v3 }
 0x3d7   :  { %7257 = vmatpush1.bf16.msra.mxu0 %v11227_v1  ;;  %8073 = vmatpush1.bf16.msra.mxu1 %v11230_v2 }
 0x3d8   :  { %7258 = vmatprep.subr.bf16.mxu0 %v11235_v4  ;;  %8074 = vmatprep.subr.bf16.mxu1 %v11238_v5 }
 0x3db   :  { %7259 = vmatpush1.bf16.msra.mxu0 %v11233_v6  ;;  %8075 = vmatpush1.bf16.msra.mxu1 %v11236_v7 }
 0x3dc   :  { %7260 = vmatprep.subr.bf16.mxu0 %v11241_v8  ;;  %8076 = vmatprep.subr.bf16.mxu1 %v11244_v9 }
 0x3df   :  { %7261 = vmatpush1.bf16.msra.mxu0 %v11239_v10  ;;  %8077 = vmatpush1.bf16.msra.mxu1 %v11242_v11 }
 0x3e0   :  { %7262 = vmatprep.subr.bf16.mxu0 %v11247_v12  ;;  %8078 = vmatprep.subr.bf16.mxu1 %v11250_v13 }
 0x3e3   :  { %7263 = vmatpush1.bf16.msra.mxu0 %v11245_v14  ;;  %8079 = vmatpush1.bf16.msra.mxu1 %v11248_v15 }
 0x3e4   :  { %7264 = vmatprep.subr.bf16.mxu0 %v11253_v16  ;;  %8080 = vmatprep.subr.bf16.mxu1 %v11256_v17 }
 0x3e7   :  { %7265 = vmatpush1.bf16.msra.mxu0 %v11251_v18  ;;  %8081 = vmatpush1.bf16.msra.mxu1 %v11254_v19 }
 0x3e8   :  { %7266 = vmatprep.subr.bf16.mxu0 %v11259_v20  ;;  %8082 = vmatprep.subr.bf16.mxu1 %v11262_v21 }
 0x3eb   :  { %7267 = vmatpush1.bf16.msra.mxu0 %v11257_v22  ;;  %8083 = vmatpush1.bf16.msra.mxu1 %v11260_v23 }
 0x3ec   :  { %7268 = vmatprep.subr.bf16.mxu0 %v11265_v24  ;;  %8084 = vmatprep.subr.bf16.mxu1 %v11268_v25 }
 0x3ef   :  { %7269 = vmatpush1.bf16.msra.mxu0 %v11263_v26  ;;  %8085 = vmatpush1.bf16.msra.mxu1 %v11266_v27 }
 0x3f0   :  { %7270 = vmatprep.subr.bf16.mxu0 %v11271_v28  ;;  %8086 = vmatprep.subr.bf16.mxu1 %v11274_v29 }
 0x3f3   :  { %7271 = vmatpush1.bf16.msra.mxu0 %v11269_v30  ;;  %8087 = vmatpush1.bf16.msra.mxu1 %v11272_v31 }
 0x3f4   :  { %7272 = vmatprep.subr.bf16.mxu0 %v11277_v32  ;;  %8088 = vmatprep.subr.bf16.mxu1 %v11280_v33 }
 0x3f7   :  { %7273 = vmatpush1.bf16.msra.mxu0 %v11275_v34  ;;  %8089 = vmatpush1.bf16.msra.mxu1 %v11278_v35 }
 0x3f8   :  { %7274 = vmatprep.subr.bf16.mxu0 %v11285_v36  ;;  %8090 = vmatprep.subr.bf16.mxu1 %v11288_v37 }
 0x3fb   :  { %7275 = vmatpush1.bf16.msra.mxu0 %v11283_v38  ;;  %8091 = vmatpush1.bf16.msra.mxu1 %v11286_v39 }
 0x3fc   :  { %7276 = vmatprep.subr.bf16.mxu0 %v11291_v40  ;;  %8092 = vmatprep.subr.bf16.mxu1 %v11294_v41 }
 0x3ff   :  { %7277 = vmatpush1.bf16.msra.mxu0 %v11289_v42  ;;  %8093 = vmatpush1.bf16.msra.mxu1 %v11292_v43 }
 0x402   :  { %7279 = vmatmul.mubr.bf16.vlgmr.msra.gmra.mrb[0].mxu0 %v8419_v44  ;;  %8095 = vmatmul.mubr.bf16.vlgmr.msra.gmra.mrb[0].mxu1 %v8419_v44 }
 0x403   :  { %7288 = vmatprep.mubr.bf16.mxu0 %v8452_v45  ;;  %8104 = vmatprep.mubr.bf16.mxu1 %v8452_v45 }
 0x40a   :  { %7289 = vmatmul.mubr.bf16.gmra.mrb[4].mxu0 %v8451_v47  ;;  %8105 = vmatmul.mubr.bf16.gmra.mrb[4].mxu1 %v8451_v47 }
 0x4d5   :  { %v7280_v48 = vpop.f32.mrb[0].mxu0  ;;  %v8096_v49 = vpop.f32.mrb[0].mxu1 }
 0x4d6   :  { %v7282_v50 = vpop.f32.mrb[1].mxu0  ;;  %v14666_v52 = vpop.f32.mrb[1].mxu1 }
 0x4d7   :  { %v7284_v54 = vpop.f32.mrb[2].mxu0  ;;  %v8100_v55 = vpop.f32.mrb[2].mxu1 }
 0x4d8   :  { %v8113_v56 = vadd.f32 %v7284_v54, %v7280_v48  ;;  %v8132_v57 = vadd.f32 %v8100_v55, %v8096_v49  ;;  %v7286_v53 = vpop.f32.mrb[3].mxu0  ;;  %v14668_v51 = vpop.f32.mrb[3].mxu1 }
 0x4d9   :  { %v8123_v60 = vadd.f32 %v7286_v53, %v7282_v50  ;;  %v8141_v58 = vadd.f32 %v14668_v51, %v14666_v52 }
 0x4dd   :  { %v7290_v59 = vpop.f32.mrb[4].mxu0  ;;  %v8106_v61 = vpop.f32.mrb[4].mxu1 }
 0x4de   :  { %v8115_v62 = vsel %vm8114_vm0, %v7290_v59, 0.0  ;;  %v8133_v63 = vsel %vm8114_vm0, %v8106_v61, 0.0  ;;  %v7292_v0 = vpop.f32.mrb[5].mxu0  ;;  %v14674_v3 = vpop.f32.mrb[5].mxu1 }
 0x4df   :  { %v8116_v1 = vadd.f32 %v8115_v62, %v8113_v56  ;;  %v8134_v2 = vadd.f32 %v8133_v63, %v8132_v57  ;;  %v8124_v4 = vsel %vm8114_vm0, %v7292_v0, 0.0  ;;  %v8142_v5 = vsel %vm8114_vm0, %v14674_v3, 0.0  ;;  %v7294_v6 = vpop.f32.mrb[6].mxu0  ;;  %v8110_v7 = vpop.f32.mrb[6].mxu1 }
 0x4e0   :  { %v8125_v8 = vadd.f32 %v8124_v4, %v8123_v60  ;;  %v8143_v9 = vadd.f32 %v8142_v5, %v8141_v58  ;;  %v7295_v10 = vpop.f32.mrb[7].mxu0  ;;  %v8111_v11 = vpop.f32.mrb[7].mxu1 }
 0x4e1   :  { %v8117_v12 = vrot.slane %v8116_v1, 4  ;;  %v8135_v13 = vrot.slane %v8134_v2, 4 }
 0x4e2   :  { %v8126_v14 = vrot.slane %v8125_v8, 4  ;;  %v8144_v15 = vrot.slane %v8143_v9, 4 }
 0x4e3   :  { %v8118_v16 = vadd.f32 %v8117_v12, %v8116_v1  ;;  %v8136_v17 = vadd.f32 %v8135_v13, %v8134_v2 }
 0x4e4   :  { %v8127_v18 = vadd.f32 %v8126_v14, %v8125_v8  ;;  %v8145_v19 = vadd.f32 %v8144_v15, %v8143_v9 }
 0x4e5   :  { %v8119_v20 = vrot.slane %v8118_v16, 2  ;;  %v8137_v21 = vrot.slane %v8136_v17, 2 }
 0x4e6   :  { %v8128_v22 = vrot.slane %v8127_v18, 2  ;;  %v8146_v23 = vrot.slane %v8145_v19, 2 }
 0x4e7   :  { %v8120_v24 = vadd.f32 %v8119_v20, %v8118_v16  ;;  %v8138_v25 = vadd.f32 %v8137_v21, %v8136_v17 }
 0x4e8   :  { %v8129_v26 = vadd.f32 %v8128_v22, %v8127_v18  ;;  %v8147_v27 = vadd.f32 %v8146_v23, %v8145_v19 }
 0x4e9   :  { %v8121_v28 = vrot.slane %v8120_v24, 1  ;;  %v8139_v29 = vrot.slane %v8138_v25, 1 }
 0x4ea   :  { %v8130_v30 = vrot.slane %v8129_v26, 1  ;;  %v8148_v31 = vrot.slane %v8147_v27, 1 }
 0x4eb   :  { %v8122_v32 = vadd.f32 %v8121_v28, %v8120_v24  ;;  %v8140_v33 = vadd.f32 %v8139_v29, %v8138_v25 }
 0x4ec   :  { %v8131_v34 = vadd.f32 %v8130_v30, %v8129_v26  ;;  %v8149_v35 = vadd.f32 %v8148_v31, %v8147_v27  ;;  %v8229_v31 = vlaneseq }
 0x4ed   :  { %v8151_v36 = vmul.f32 0.055555556, %v8122_v32  ;;  %v8153_v37 = vmul.f32 0.055555556, %v8140_v33 }
 0x4ee   :  { %v8152_v38 = vmul.f32 0.055555556, %v8131_v34  ;;  %v8154_v39 = vmul.f32 0.055555556, %v8149_v35 }
 0x4ef   :  { %v14679_v40 = vsub.f32 %v7280_v48, %v8151_v36  ;;  %v14681_v41 = vsub.f32 %v7284_v54, %v8151_v36  ;;  %v14683_v42 = vsub.f32 %v7290_v59, %v8151_v36  ;;  %v14685_v43 = vsub.f32 %v8096_v49, %v8153_v37 }
 0x4f0   :  { %v14687_v46 = vsub.f32 %v8100_v55, %v8153_v37  ;;  %v14689_v44 = vsub.f32 %v8106_v61, %v8153_v37  ;;  %v14691_v45 = vsub.f32 %v7282_v50, %v8152_v38  ;;  %v14693_v47 = vsub.f32 %v7286_v53, %v8152_v38 }
 0x4f1   :  { %v8167_v56 = vmul.f32 %v14679_v40, %v14679_v40  ;;  %v8171_v48 = vmul.f32 %v14681_v41, %v14681_v41  ;;  %v8175_v54 = vmul.f32 %v14683_v42, %v14683_v42  ;;  %v8169_v49 = vmul.f32 %v14685_v43, %v14685_v43 }
 0x4f2   :  { %v8173_v55 = vmul.f32 %v14687_v46, %v14687_v46  ;;  %v8177_v50 = vmul.f32 %v14689_v44, %v14689_v44  ;;  %v14707_v57 = vsub.f32 %v7292_v0, %v8152_v38  ;;  %v8168_v53 = vmul.f32 %v14691_v45, %v14691_v45 }
 0x4f3   :  { %v8179_v60 = vadd.f32 %v8171_v48, %v8167_v56  ;;  %v8180_v58 = vsel %vm8114_vm0, %v8175_v54, 0.0  ;;  %v8172_v59 = vmul.f32 %v14693_v47, %v14693_v47  ;;  %v14715_v61 = vsub.f32 %v14666_v52, %v8154_v39 }
 0x4f4   :  { %v8197_v62 = vadd.f32 %v8173_v55, %v8169_v49  ;;  %v8198_v63 = vsel %vm8114_vm0, %v8177_v50, 0.0  ;;  %v8176_v1 = vmul.f32 %v14707_v57, %v14707_v57  ;;  %v14721_v0 = vsub.f32 %v14668_v51, %v8154_v39 }
 0x4f5   :  { %v8181_v2 = vadd.f32 %v8180_v58, %v8179_v60  ;;  %v8188_v4 = vadd.f32 %v8172_v59, %v8168_v53  ;;  %v14724_v5 = vsub.f32 %v14674_v3, %v8154_v39  ;;  %v8170_v6 = vmul.f32 %v14715_v61, %v14715_v61  ;;  %v8227_v60 = vld [vmem:[%s14772_s2] sm:$0xf] }
 0x4f6   :  { %v8199_v7 = vadd.f32 %v8198_v63, %v8197_v62  ;;  %v8189_v52 = vsel %vm8114_vm0, %v8176_v1, 0.0  ;;  %v8174_v8 = vmul.f32 %v14721_v0, %v14721_v0  ;;  %v8230_v56 = vshrl.u32 %v8229_v31, 7 }
 0x4f7   :  { %v8182_v9 = vrot.slane %v8181_v2, 4  ;;  %v8190_v10 = vadd.f32 %v8189_v52, %v8188_v4  ;;  %v8178_v51 = vmul.f32 %v14724_v5, %v14724_v5  ;;  %v8281_v4 = vld [vmem:[%s14773_s3] sm:$0xf] }
 0x4f8   :  { %v8200_v11 = vrot.slane %v8199_v7, 4  ;;  %v8206_v12 = vadd.f32 %v8174_v8, %v8170_v6  ;;  %v8231_v50 = vsub.s32 0, %v8230_v56  ;;  %v8239_v58 = vsub.s32 2, %v8230_v56 }
 0x4f9   :  { %v8183_v13 = vadd.f32 %v8182_v9, %v8181_v2  ;;  %v8191_v14 = vrot.slane %v8190_v10, 4  ;;  %v8207_v3 = vsel %vm8114_vm0, %v8178_v51, 0.0  ;;  %v8235_v59 = vsub.s32 1, %v8230_v56 }
 0x4fa   :  { %v8201_v15 = vadd.f32 %v8200_v11, %v8199_v7  ;;  %v8208_v16 = vadd.f32 %v8207_v3, %v8206_v12  ;;  %v8232_v62 = vrot.slane %v8227_v60, %v8231_v50  ;;  %v8240_v63 = vrot.slane %v8227_v60, %v8239_v58 }
 0x4fb   :  { %v8184_v17 = vrot.slane %v8183_v13, 2  ;;  %v8192_v18 = vadd.f32 %v8191_v14, %v8190_v10  ;;  %v8236_v1 = vrot.slane %v8227_v60, %v8235_v59  ;;  %v8243_v6 = vsub.s32 3, %v8230_v56 }
 0x4fc   :  { %v8202_v19 = vrot.slane %v8201_v15, 2  ;;  %v8209_v20 = vrot.slane %v8208_v16, 4  ;;  %v8286_v51 = vrot.slane %v8281_v4, %v8231_v50 }
 0x4fd   :  { %v8185_v21 = vadd.f32 %v8184_v17, %v8183_v13  ;;  %v8193_v22 = vrot.slane %v8192_v18, 2  ;;  %v8294_v13 = vrot.slane %v8281_v4, %v8239_v58  ;;  %v8244_v14 = vrot.slane %v8227_v60, %v8243_v6 }
 0x4fe   :  { %v8203_v23 = vadd.f32 %v8202_v19, %v8201_v15  ;;  %v8210_v24 = vadd.f32 %v8209_v20, %v8208_v16 }
 0x4ff   :  { %v8186_v25 = vrot.slane %v8185_v21, 1  ;;  %v8194_v26 = vadd.f32 %v8193_v22, %v8192_v18  ;;  %v8290_v22 = vrot.slane %v8281_v4, %v8235_v59 }
 0x500   :  { %v8204_v27 = vrot.slane %v8203_v23, 1  ;;  %v8211_v28 = vrot.slane %v8210_v24, 2 }
 0x501   :  { %v8187_v29 = vadd.f32 %v8186_v25, %v8185_v21  ;;  %v8195_v30 = vrot.slane %v8194_v26, 1 }
 0x502   :  { %v8205_v32 = vadd.f32 %v8204_v27, %v8203_v23  ;;  %v8212_v33 = vadd.f32 %v8211_v28, %v8210_v24 }
 0x503   :  { %v8215_v34 = vmul.f32 0.055555556, %v8187_v29  ;;  %v8196_v35 = vadd.f32 %v8195_v30, %v8194_v26 }
 0x504   :  { %v8217_v36 = vmul.f32 0.055555556, %v8205_v32  ;;  %v8213_v37 = vrot.slane %v8212_v33, 1 }
 0x505   :  { %v8219_v38 = vadd.f32 1e-05, %v8215_v34  ;;  %v8216_v39 = vmul.f32 0.055555556, %v8196_v35  ;;  %v8298_v34 = vrot.slane %v8281_v4, %v8243_v6 }
 0x506   :  { %v8221_v48 = vadd.f32 1e-05, %v8217_v36  ;;  %v8214_v54 = vadd.f32 %v8213_v37, %v8212_v33 }
 0x507   :  { %11297 = vrsqrt.f32 %v8219_v38  ;;  %v8220_v49 = vadd.f32 1e-05, %v8216_v39 }
 0x508   :  { %11299 = vrsqrt.f32 %v8221_v48  ;;  %v8218_v55 = vmul.f32 0.055555556, %v8214_v54 }
 0x509   :  { %11301 = vrsqrt.f32 %v8220_v49 }
 0x50a   :  { %v8222_v53 = vadd.f32 1e-05, %v8218_v55 }
 0x50c   :  { %11303 = vrsqrt.f32 %v8222_v53 }
 0x511   :  { %v11298_v2 = vpop.eup %11297 }
 0x512   :  { %v11300_v7 = vpop.eup %11299  ;;  %v8249_v52 = vmul.f32 %v11298_v2, %v8232_v62 }
 0x513   :  { %v11302_v8 = vpop.eup %11301  ;;  %v8251_v9 = vmul.f32 %v11300_v7, %v8240_v63 }
 0x514   :  { %v8256_v10 = vrot.slane %v8249_v52, %v8231_v50  ;;  %v8250_v11 = vmul.f32 %v11302_v8, %v8236_v1 }
 0x515   :  { %v8264_v12 = vrot.slane %v8251_v9, %v8231_v50 }
 0x516   :  { %v8269_v3 = vmul.f32 %v8256_v10, %v14679_v40  ;;  %v8273_v15 = vmul.f32 %v8256_v10, %v14681_v41  ;;  %v8277_v16 = vmul.f32 %v8256_v10, %v14683_v42  ;;  %v8260_v17 = vrot.slane %v8250_v11, %v8231_v50  ;;  %v11304_v18 = vpop.eup %11303 }
 0x517   :  { %v8271_v19 = vmul.f32 %v8264_v12, %v14685_v43  ;;  %v8275_v20 = vmul.f32 %v8264_v12, %v14687_v46  ;;  %v8279_v21 = vmul.f32 %v8264_v12, %v14689_v44  ;;  %v8252_v28 = vmul.f32 %v11304_v18, %v8244_v14 }
 0x518   :  { %v8303_v23 = vadd.f32 %v8286_v51, %v8269_v3  ;;  %v8307_v24 = vadd.f32 %v8286_v51, %v8273_v15  ;;  %v8311_v25 = vadd.f32 %v8286_v51, %v8277_v16  ;;  %v8270_v26 = vmul.f32 %v8260_v17, %v14691_v45 }
 0x519   :  { %v8274_v40 = vmul.f32 %v8260_v17, %v14693_v47  ;;  %v8278_v42 = vmul.f32 %v8260_v17, %v14707_v57  ;;  %v8305_v30 = vadd.f32 %v8294_v13, %v8271_v19  ;;  %v8309_v43 = vadd.f32 %v8294_v13, %v8275_v20 }
 0x51a   :  { %v8315_v27 = vmul.f32 0.01, %v8303_v23  ;;  %v8319_v41 = vmul.f32 0.01, %v8307_v24  ;;  %v8323_v29 = vmul.f32 0.01, %v8311_v25  ;;  %v8304_v31 = vadd.f32 %v8290_v22, %v8270_v26 }
 0x51b   :  { %v8308_v46 = vadd.f32 %v8290_v22, %v8274_v40  ;;  %v8313_v44 = vadd.f32 %v8294_v13, %v8279_v21  ;;  %v8312_v33 = vadd.f32 %v8290_v22, %v8278_v42  ;;  %v8268_v45 = vrot.slane %v8252_v28, %v8231_v50 }
 0x51c   :  { %v8327_v32 = vmax.f32 %v8303_v23, %v8315_v27  ;;  %v8331_v35 = vmax.f32 %v8307_v24, %v8319_v41  ;;  %v8316_v36 = vmul.f32 0.01, %v8304_v31  ;;  %v8335_v38 = vmax.f32 %v8311_v25, %v8323_v29 }
 0x51d   :  { %v8320_v37 = vmul.f32 0.01, %v8308_v46  ;;  %v8317_v47 = vmul.f32 0.01, %v8305_v30  ;;  %v8321_v39 = vmul.f32 0.01, %v8309_v43  ;;  %v8272_v54 = vmul.f32 %v8268_v45, %v14715_v61 }
 0x51e   :  { %v8324_v56 = vmul.f32 0.01, %v8312_v33  ;;  %v8328_v48 = vmax.f32 %v8304_v31, %v8316_v36  ;;  %v8276_v49 = vmul.f32 %v8268_v45, %v14721_v0  ;;  %v8325_v55 = vmul.f32 0.01, %v8313_v44 }
 0x51f   :  { %v8332_v57 = vmax.f32 %v8308_v46, %v8320_v37  ;;  %v8280_v60 = vmul.f32 %v8268_v45, %v14724_v5  ;;  %v8306_v62 = vadd.f32 %v8298_v34, %v8272_v54  ;;  %v8329_v2 = vmax.f32 %v8305_v30, %v8317_v47 }
 0x520   :  { %v8336_v53 = vmax.f32 %v8312_v33, %v8324_v56  ;;  %v9483_v58 = vpack.c.bf16 %v8328_v48, %v8327_v32  ;;  %v8310_v63 = vadd.f32 %v8298_v34, %v8276_v49  ;;  %v8333_v4 = vmax.f32 %v8309_v43, %v8321_v39 }
 0x521   :  { %v9485_v59 = vpack.c.bf16 %v8332_v57, %v8331_v35  ;;  %v8314_v50 = vadd.f32 %v8298_v34, %v8280_v60  ;;  %v8318_v61 = vmul.f32 0.01, %v8306_v62  ;;  %v8337_v6 = vmax.f32 %v8313_v44, %v8325_v55 }
 0x522   :  { %v9487_v1 = vpack.c.bf16 %v8336_v53, %v8335_v38  ;;  %8379 = vst [vmem:[%s14774_s4] sm:$0xff] %v9483_v58  ;;  %v8322_v0 = vmul.f32 0.01, %v8310_v63 }
 0x523   :  { %8381 = vst [vmem:[%s14774_s4 + $0x10] sm:$0xff] %v9485_v59  ;;  %v8326_v5 = vmul.f32 0.01, %v8314_v50  ;;  %v8330_v7 = vmax.f32 %v8306_v62, %v8318_v61 }
 0x524   :  { %8383 = vst [vmem:[%s14774_s4 + $0x20] sm:$0x11] %v9487_v1  ;;  %v8334_v52 = vmax.f32 %v8310_v63, %v8322_v0 }
 0x525   :  { %v8338_v8 = vmax.f32 %v8314_v50, %v8326_v5  ;;  %v9484_v9 = vpack.c.bf16 %v8330_v7, %v8329_v2 }
 0x526   :  { %v9486_v10 = vpack.c.bf16 %v8334_v52, %v8333_v4 }
 0x527   :  { %v9488_v51 = vpack.c.bf16 %v8338_v8, %v8337_v6  ;;  %8380 = vst [vmem:[%s14774_s4 + $0x8] sm:$0xff] %v9484_v9 }
 0x528   :  { %8382 = vst [vmem:[%s14774_s4 + $0x18] sm:$0xff] %v9486_v10 }
 0x529   :  { %8384 = vst [vmem:[%s14774_s4 + $0x28] sm:$0x11] %v9488_v51 }

// kernel: taming_discriminator_forward.9
= control target key start
LH: loop header
LB: loop body
LE: loop exit
PB: predicated region body
PF: predicated region fallthrough
CT: control target
= control target key end

     0   :  { %s9198_s1 = inlined_call_operand.vmem [shape: bf16[8192,128], index: 1, kind: input, shape index: {}]   ;;  %s9199_s0 = inlined_call_operand.vmem [shape: bf16[8,8192], index: 0, kind: input, shape index: {}]   ;;  %s9200_s2 = inlined_call_operand.vmem [shape: f32[1,128], index: 2, kind: input, shape index: {}]   ;;  %s9201_s3 = inlined_call_operand.vmem [shape: f32[8,128], index: 3, kind: output, shape index: {}]  }
   0x1   :  { %v6940_v0 = vld [vmem:[%s9198_s1 + $0x40] sm:$0xff]   ;;  %v6944_v4 = vld [vmem:[%s9198_s1 + $0x48] sm:$0xff]   ;;  %v6948_v8 = vld [vmem:[%s9198_s1 + $0x50] sm:$0xff]  }
   0x2   :  { %v6941_v1 = vld [vmem:[%s9198_s1 + $0xc0] sm:$0xff]   ;;  %6236 = vmatprep.subr.bf16.mxu0 %v6940_v0  ;;  %v6945_v5 = vld [vmem:[%s9198_s1 + $0xc8] sm:$0xff]   ;;  %v6949_v9 = vld [vmem:[%s9198_s1 + $0xd0] sm:$0xff]  }
   0x3   :  { %v6942_v2 = vld [vmem:[%s9198_s1] sm:$0xff]   ;;  %6258 = vmatprep.subr.bf16.mxu1 %v6941_v1  ;;  %v6946_v6 = vld [vmem:[%s9198_s1 + $0x8] sm:$0xff]   ;;  %v6950_v10 = vld [vmem:[%s9198_s1 + $0x10] sm:$0xff]  }
   0x4   :  { %v6943_v3 = vld [vmem:[%s9198_s1 + $0x80] sm:$0xff]   ;;  %6237 = vmatpush3.bf16.msra.mxu0 %v6942_v2  ;;  %v6947_v7 = vld [vmem:[%s9198_s1 + $0x88] sm:$0xff]   ;;  %v6951_v11 = vld [vmem:[%s9198_s1 + $0x90] sm:$0xff]  }
   0x5   :  { %6259 = vmatpush3.bf16.msra.mxu1 %v6943_v3  ;;  %6238 = vmatprep.subr.bf16.mxu0 %v6944_v4  ;;  %v6952_v12 = vld [vmem:[%s9198_s1 + $0x58] sm:$0xff]   ;;  %v6956_v16 = vld [vmem:[%s9198_s1 + $0x60] sm:$0xff]   ;;  %v6960_v20 = vld [vmem:[%s9198_s1 + $0x68] sm:$0xff]  }
   0x6   :  { %6260 = vmatprep.subr.bf16.mxu1 %v6945_v5  ;;  %v6953_v13 = vld [vmem:[%s9198_s1 + $0xd8] sm:$0xff]   ;;  %v6957_v17 = vld [vmem:[%s9198_s1 + $0xe0] sm:$0xff]   ;;  %v6961_v21 = vld [vmem:[%s9198_s1 + $0xe8] sm:$0xff]  }
   0x7   :  { %v6954_v14 = vld [vmem:[%s9198_s1 + $0x18] sm:$0xff]   ;;  %v6958_v18 = vld [vmem:[%s9198_s1 + $0x20] sm:$0xff]   ;;  %v6962_v22 = vld [vmem:[%s9198_s1 + $0x28] sm:$0xff]  }
   0x8   :  { %6239 = vmatpush3.bf16.msra.mxu0 %v6946_v6  ;;  %v6955_v15 = vld [vmem:[%s9198_s1 + $0x98] sm:$0xff]   ;;  %v6959_v19 = vld [vmem:[%s9198_s1 + $0xa0] sm:$0xff]   ;;  %v6963_v23 = vld [vmem:[%s9198_s1 + $0xa8] sm:$0xff]  }
   0x9   :  { %6261 = vmatpush3.bf16.msra.mxu1 %v6947_v7  ;;  %6240 = vmatprep.subr.bf16.mxu0 %v6948_v8  ;;  %v6964_v24 = vld [vmem:[%s9198_s1 + $0x70] sm:$0xff]   ;;  %v6968_v28 = vld [vmem:[%s9198_s1 + $0x78] sm:$0xff]   ;;  %v15_v32 = vld [vmem:[%s9199_s0] sm:$0xff] }
   0xa   :  { %6262 = vmatprep.subr.bf16.mxu1 %v6949_v9  ;;  %v6965_v25 = vld [vmem:[%s9198_s1 + $0xf0] sm:$0xff]   ;;  %v6969_v29 = vld [vmem:[%s9198_s1 + $0xf8] sm:$0xff]   ;;  %v16_v33 = vld [vmem:[%s9199_s0 + $0x8] sm:$0xff]  ;;  %v5660_v34 = vcombine.low %v15_v32, %v15_v32  ;;  %v5661_v35 = vcombine.high %v15_v32, %v15_v32 }
   0xb   :  { %v6966_v26 = vld [vmem:[%s9198_s1 + $0x30] sm:$0xff]   ;;  %v6970_v30 = vld [vmem:[%s9198_s1 + $0x38] sm:$0xff]   ;;  %v5662_v36 = vcombine.low %v16_v33, %v16_v33  ;;  %v5663_v37 = vcombine.high %v16_v33, %v16_v33  ;;  %v6976_v38 = vld [vmem:[%s9198_s1 + $0x140] sm:$0xff]  }
   0xc   :  { %6241 = vmatpush3.bf16.msra.mxu0 %v6950_v10  ;;  %v6967_v27 = vld [vmem:[%s9198_s1 + $0xb0] sm:$0xff]   ;;  %v6971_v31 = vld [vmem:[%s9198_s1 + $0xb8] sm:$0xff]   ;;  %v6977_v39 = vld [vmem:[%s9198_s1 + $0x1c0] sm:$0xff]   ;;  %4406 = vmatprep.mubr.bf16.mxu0 %v5661_v35 }
   0xd   :  { %6263 = vmatpush3.bf16.msra.mxu1 %v6951_v11  ;;  %6242 = vmatprep.subr.bf16.mxu0 %v6952_v12  ;;  %v6978_v40 = vld [vmem:[%s9198_s1 + $0x100] sm:$0xff]   ;;  %v6980_v42 = vld [vmem:[%s9198_s1 + $0x148] sm:$0xff]   ;;  %v6984_v46 = vld [vmem:[%s9198_s1 + $0x150] sm:$0xff]  }
   0xe   :  { %6264 = vmatprep.subr.bf16.mxu1 %v6953_v13  ;;  %4446 = vmatprep.mubr.bf16.mxu1 %v5663_v37  ;;  %v6979_v41 = vld [vmem:[%s9198_s1 + $0x180] sm:$0xff]   ;;  %v6981_v43 = vld [vmem:[%s9198_s1 + $0x1c8] sm:$0xff]   ;;  %v6985_v47 = vld [vmem:[%s9198_s1 + $0x1d0] sm:$0xff]  }
   0xf   :  { %v6982_v44 = vld [vmem:[%s9198_s1 + $0x108] sm:$0xff]   ;;  %v6986_v48 = vld [vmem:[%s9198_s1 + $0x110] sm:$0xff]   ;;  %v6988_v50 = vld [vmem:[%s9198_s1 + $0x158] sm:$0xff]  }
  0x10   :  { %6243 = vmatpush3.bf16.msra.mxu0 %v6954_v14  ;;  %v6983_v45 = vld [vmem:[%s9198_s1 + $0x188] sm:$0xff]   ;;  %v6987_v49 = vld [vmem:[%s9198_s1 + $0x190] sm:$0xff]   ;;  %v6989_v51 = vld [vmem:[%s9198_s1 + $0x1d8] sm:$0xff]  }
  0x11   :  { %6265 = vmatpush3.bf16.msra.mxu1 %v6955_v15  ;;  %6244 = vmatprep.subr.bf16.mxu0 %v6956_v16  ;;  %v6990_v52 = vld [vmem:[%s9198_s1 + $0x118] sm:$0xff]   ;;  %v6992_v54 = vld [vmem:[%s9198_s1 + $0x160] sm:$0xff]   ;;  %v6996_v58 = vld [vmem:[%s9198_s1 + $0x168] sm:$0xff]  }
  0x12   :  { %6266 = vmatprep.subr.bf16.mxu1 %v6957_v17  ;;  %v6991_v53 = vld [vmem:[%s9198_s1 + $0x198] sm:$0xff]   ;;  %v6993_v55 = vld [vmem:[%s9198_s1 + $0x1e0] sm:$0xff]   ;;  %v6997_v59 = vld [vmem:[%s9198_s1 + $0x1e8] sm:$0xff]  }
  0x13   :  { %v6994_v56 = vld [vmem:[%s9198_s1 + $0x120] sm:$0xff]   ;;  %v6998_v60 = vld [vmem:[%s9198_s1 + $0x128] sm:$0xff]   ;;  %v7000_v62 = vld [vmem:[%s9198_s1 + $0x170] sm:$0xff]  }
  0x14   :  { %6245 = vmatpush3.bf16.msra.mxu0 %v6958_v18  ;;  %v6995_v57 = vld [vmem:[%s9198_s1 + $0x1a0] sm:$0xff]   ;;  %v6999_v61 = vld [vmem:[%s9198_s1 + $0x1a8] sm:$0xff]   ;;  %v7001_v63 = vld [vmem:[%s9198_s1 + $0x1f0] sm:$0xff]  }
  0x15   :  { %6267 = vmatpush3.bf16.msra.mxu1 %v6959_v19  ;;  %6246 = vmatprep.subr.bf16.mxu0 %v6960_v20  ;;  %v7002_v0 = vld [vmem:[%s9198_s1 + $0x130] sm:$0xff]   ;;  %v7004_v2 = vld [vmem:[%s9198_s1 + $0x178] sm:$0xff]   ;;  %v7012_v12 = vld [vmem:[%s9198_s1 + $0x240] sm:$0xff]  }
  0x16   :  { %6268 = vmatprep.subr.bf16.mxu1 %v6961_v21  ;;  %v7003_v1 = vld [vmem:[%s9198_s1 + $0x1b0] sm:$0xff]   ;;  %v7005_v3 = vld [vmem:[%s9198_s1 + $0x1f8] sm:$0xff]   ;;  %v7013_v13 = vld [vmem:[%s9198_s1 + $0x2c0] sm:$0xff]  }
  0x17   :  { %v7006_v4 = vld [vmem:[%s9198_s1 + $0x138] sm:$0xff]   ;;  %v17_v6 = vld [vmem:[%s9199_s0 + $0x10] sm:$0xff]  ;;  %v7014_v14 = vld [vmem:[%s9198_s1 + $0x200] sm:$0xff]  }
  0x18   :  { %6247 = vmatpush3.bf16.msra.mxu0 %v6962_v22  ;;  %v7007_v5 = vld [vmem:[%s9198_s1 + $0x1b8] sm:$0xff]   ;;  %v5664_v7 = vcombine.low %v17_v6, %v17_v6  ;;  %v5665_v8 = vcombine.high %v17_v6, %v17_v6  ;;  %v7015_v15 = vld [vmem:[%s9198_s1 + $0x280] sm:$0xff]   ;;  %v7016_v16 = vld [vmem:[%s9198_s1 + $0x248] sm:$0xff]  }
  0x19   :  { %6269 = vmatpush3.bf16.msra.mxu1 %v6963_v23  ;;  %6248 = vmatprep.subr.bf16.mxu0 %v6964_v24  ;;  %v18_v9 = vld [vmem:[%s9199_s0 + $0x18] sm:$0xff]  ;;  %v7017_v17 = vld [vmem:[%s9198_s1 + $0x2c8] sm:$0xff]   ;;  %v7020_v20 = vld [vmem:[%s9198_s1 + $0x250] sm:$0xff]  }
  0x1a   :  { %6270 = vmatprep.subr.bf16.mxu1 %v6965_v25  ;;  %v5666_v10 = vcombine.low %v18_v9, %v18_v9  ;;  %v5667_v11 = vcombine.high %v18_v9, %v18_v9  ;;  %v7018_v18 = vld [vmem:[%s9198_s1 + $0x208] sm:$0xff]   ;;  %v7021_v21 = vld [vmem:[%s9198_s1 + $0x2d0] sm:$0xff]   ;;  %v7024_v24 = vld [vmem:[%s9198_s1 + $0x258] sm:$0xff]  }
  0x1b   :  { %v7019_v19 = vld [vmem:[%s9198_s1 + $0x288] sm:$0xff]   ;;  %v7022_v22 = vld [vmem:[%s9198_s1 + $0x210] sm:$0xff]   ;;  %v7025_v25 = vld [vmem:[%s9198_s1 + $0x2d8] sm:$0xff]  }
  0x1c   :  { %6249 = vmatpush3.bf16.msra.mxu0 %v6966_v26  ;;  %v7023_v23 = vld [vmem:[%s9198_s1 + $0x290] sm:$0xff]   ;;  %v7026_v26 = vld [vmem:[%s9198_s1 + $0x218] sm:$0xff]   ;;  %v7032_v32 = vld [vmem:[%s9198_s1 + $0x268] sm:$0xff]  }
  0x1d   :  { %6271 = vmatpush3.bf16.msra.mxu1 %v6967_v27  ;;  %6250 = vmatprep.subr.bf16.mxu0 %v6968_v28  ;;  %v7027_v27 = vld [vmem:[%s9198_s1 + $0x298] sm:$0xff]   ;;  %v7028_v28 = vld [vmem:[%s9198_s1 + $0x260] sm:$0xff]   ;;  %v7033_v33 = vld [vmem:[%s9198_s1 + $0x2e8] sm:$0xff]  }
  0x1e   :  { %6272 = vmatprep.subr.bf16.mxu1 %v6969_v29  ;;  %v7029_v29 = vld [vmem:[%s9198_s1 + $0x2e0] sm:$0xff]   ;;  %v7035_v35 = vld [vmem:[%s9198_s1 + $0x2a8] sm:$0xff]   ;;  %v7037_v37 = vld [vmem:[%s9198_s1 + $0x2f0] sm:$0xff]  }
  0x1f   :  { %v7068_v6 = vld [vmem:[%s9198_s1 + $0x368] sm:$0xff]  }
  0x20   :  { %6251 = vmatpush3.bf16.msra.mxu0 %v6970_v30  ;;  %v7030_v30 = vld [vmem:[%s9198_s1 + $0x220] sm:$0xff]   ;;  %v7071_v9 = vld [vmem:[%s9198_s1 + $0x3a8] sm:$0xff]  }
  0x21   :  { %6273 = vmatpush3.bf16.msra.mxu1 %v6971_v31  ;;  %6280 = vmatprep.subr.bf16.mxu0 %v6976_v38  ;;  %v7031_v31 = vld [vmem:[%s9198_s1 + $0x2a0] sm:$0xff]   ;;  %v7038_v38 = vld [vmem:[%s9198_s1 + $0x230] sm:$0xff]  }
  0x22   :  { %6302 = vmatprep.subr.bf16.mxu1 %v6977_v39  ;;  %v7039_v39 = vld [vmem:[%s9198_s1 + $0x2b0] sm:$0xff]  }
  0x23   :  { %4407 = vmatmul.mubr.bf16.vlgmr.msra.gmra.mrb[0].mxu0 %v5660_v34  ;;  %v7034_v34 = vld [vmem:[%s9198_s1 + $0x228] sm:$0xff]  }
  0x24   :  { %4447 = vmatmul.mubr.bf16.vlgmr.msra.gmra.mrb[0].mxu1 %v5662_v36  ;;  %6281 = vmatpush3.bf16.msra.mxu0 %v6978_v40  ;;  %v7036_v36 = vld [vmem:[%s9198_s1 + $0x270] sm:$0xff]   ;;  %v7040_v40 = vld [vmem:[%s9198_s1 + $0x278] sm:$0xff]  }
  0x25   :  { %6303 = vmatpush3.bf16.msra.mxu1 %v6979_v41  ;;  %6282 = vmatprep.subr.bf16.mxu0 %v6980_v42  ;;  %v7041_v41 = vld [vmem:[%s9198_s1 + $0x2f8] sm:$0xff]  }
  0x26   :  { %6304 = vmatprep.subr.bf16.mxu1 %v6981_v43  ;;  %4486 = vmatprep.mubr.bf16.mxu0 %v5665_v8  ;;  %v7042_v42 = vld [vmem:[%s9198_s1 + $0x238] sm:$0xff]   ;;  %v7070_v8 = vld [vmem:[%s9198_s1 + $0x328] sm:$0xff]  }
  0x27   :  { %4526 = vmatprep.mubr.bf16.mxu1 %v5667_v11  ;;  %v7043_v43 = vld [vmem:[%s9198_s1 + $0x2b8] sm:$0xff]   ;;  %v7073_v11 = vld [vmem:[%s9198_s1 + $0x3f0] sm:$0xff]  }
  0x28   :  { %6283 = vmatpush3.bf16.msra.mxu0 %v6982_v44  ;;  %v19_v44 = vld [vmem:[%s9199_s0 + $0x20] sm:$0xff] }
  0x29   :  { %6305 = vmatpush3.bf16.msra.mxu1 %v6983_v45  ;;  %6284 = vmatprep.subr.bf16.mxu0 %v6984_v46  ;;  %v20_v45 = vld [vmem:[%s9199_s0 + $0x28] sm:$0xff]  ;;  %v5668_v46 = vcombine.low %v19_v44, %v19_v44 }
  0x2a   :  { %6306 = vmatprep.subr.bf16.mxu1 %v6985_v47  ;;  %v5669_v47 = vcombine.high %v19_v44, %v19_v44  ;;  %v7104_v44 = vld [vmem:[%s9198_s1 + $0x468] sm:$0xff]  }
  0x2c   :  { %6285 = vmatpush3.bf16.msra.mxu0 %v6986_v48  ;;  %v5670_v48 = vcombine.low %v20_v45, %v20_v45 }
  0x2d   :  { %6307 = vmatpush3.bf16.msra.mxu1 %v6987_v49  ;;  %6286 = vmatprep.subr.bf16.mxu0 %v6988_v50  ;;  %v5671_v49 = vcombine.high %v20_v45, %v20_v45  ;;  %v7048_v50 = vld [vmem:[%s9198_s1 + $0x340] sm:$0xff]   ;;  %v7105_v45 = vld [vmem:[%s9198_s1 + $0x4e8] sm:$0xff]  }
  0x2e   :  { %6308 = vmatprep.subr.bf16.mxu1 %v6989_v51  ;;  %v7049_v51 = vld [vmem:[%s9198_s1 + $0x3c0] sm:$0xff]  }
  0x30   :  { %6287 = vmatpush3.bf16.msra.mxu0 %v6990_v52  ;;  %v7050_v52 = vld [vmem:[%s9198_s1 + $0x300] sm:$0xff]  }
  0x31   :  { %6309 = vmatpush3.bf16.msra.mxu1 %v6991_v53  ;;  %6288 = vmatprep.subr.bf16.mxu0 %v6992_v54  ;;  %v7051_v53 = vld [vmem:[%s9198_s1 + $0x380] sm:$0xff]   ;;  %v7052_v54 = vld [vmem:[%s9198_s1 + $0x348] sm:$0xff]  }
  0x32   :  { %6310 = vmatprep.subr.bf16.mxu1 %v6993_v55  ;;  %v7053_v55 = vld [vmem:[%s9198_s1 + $0x3c8] sm:$0xff]  }
  0x34   :  { %6289 = vmatpush3.bf16.msra.mxu0 %v6994_v56  ;;  %v7054_v56 = vld [vmem:[%s9198_s1 + $0x308] sm:$0xff]  }
  0x35   :  { %6311 = vmatpush3.bf16.msra.mxu1 %v6995_v57  ;;  %6290 = vmatprep.subr.bf16.mxu0 %v6996_v58  ;;  %v7055_v57 = vld [vmem:[%s9198_s1 + $0x388] sm:$0xff]   ;;  %v7056_v58 = vld [vmem:[%s9198_s1 + $0x350] sm:$0xff]  }
  0x36   :  { %6312 = vmatprep.subr.bf16.mxu1 %v6997_v59  ;;  %v7057_v59 = vld [vmem:[%s9198_s1 + $0x3d0] sm:$0xff]  }
  0x38   :  { %6291 = vmatpush3.bf16.msra.mxu0 %v6998_v60  ;;  %v7058_v60 = vld [vmem:[%s9198_s1 + $0x310] sm:$0xff]  }
  0x39   :  { %6313 = vmatpush3.bf16.msra.mxu1 %v6999_v61  ;;  %6292 = vmatprep.subr.bf16.mxu0 %v7000_v62  ;;  %v7059_v61 = vld [vmem:[%s9198_s1 + $0x390] sm:$0xff]   ;;  %v7060_v62 = vld [vmem:[%s9198_s1 + $0x358] sm:$0xff]  }
  0x3a   :  { %6314 = vmatprep.subr.bf16.mxu1 %v7001_v63  ;;  %v7061_v63 = vld [vmem:[%s9198_s1 + $0x3d8] sm:$0xff]  }
  0x3c   :  { %6293 = vmatpush3.bf16.msra.mxu0 %v7002_v0  ;;  %v7062_v0 = vld [vmem:[%s9198_s1 + $0x318] sm:$0xff]  }
  0x3d   :  { %6315 = vmatpush3.bf16.msra.mxu1 %v7003_v1  ;;  %6294 = vmatprep.subr.bf16.mxu0 %v7004_v2  ;;  %v7063_v1 = vld [vmem:[%s9198_s1 + $0x398] sm:$0xff]   ;;  %v7064_v2 = vld [vmem:[%s9198_s1 + $0x360] sm:$0xff]  }
  0x3e   :  { %6316 = vmatprep.subr.bf16.mxu1 %v7005_v3  ;;  %v7065_v3 = vld [vmem:[%s9198_s1 + $0x3e0] sm:$0xff]  }
  0x40   :  { %6295 = vmatpush3.bf16.msra.mxu0 %v7006_v4  ;;  %v7066_v4 = vld [vmem:[%s9198_s1 + $0x320] sm:$0xff]  }
  0x41   :  { %6317 = vmatpush3.bf16.msra.mxu1 %v7007_v5  ;;  %6324 = vmatprep.subr.bf16.mxu0 %v7012_v12  ;;  %v7067_v5 = vld [vmem:[%s9198_s1 + $0x3a0] sm:$0xff]   ;;  %v7074_v12 = vld [vmem:[%s9198_s1 + $0x330] sm:$0xff]  }
  0x42   :  { %6346 = vmatprep.subr.bf16.mxu1 %v7013_v13  ;;  %v7075_v13 = vld [vmem:[%s9198_s1 + $0x3b0] sm:$0xff]  }
  0x43   :  { %4487 = vmatmul.mubr.bf16.vlgmr.msra.gmra.mrb[4].mxu0 %v5664_v7  ;;  %v7069_v7 = vld [vmem:[%s9198_s1 + $0x3e8] sm:$0xff]  }
  0x44   :  { %4527 = vmatmul.mubr.bf16.vlgmr.msra.gmra.mrb[4].mxu1 %v5666_v10  ;;  %6325 = vmatpush3.bf16.msra.mxu0 %v7014_v14  ;;  %v7072_v10 = vld [vmem:[%s9198_s1 + $0x370] sm:$0xff]   ;;  %v7076_v14 = vld [vmem:[%s9198_s1 + $0x378] sm:$0xff]  }
  0x45   :  { %6347 = vmatpush3.bf16.msra.mxu1 %v7015_v15  ;;  %6326 = vmatprep.subr.bf16.mxu0 %v7016_v16  ;;  %v7077_v15 = vld [vmem:[%s9198_s1 + $0x3f8] sm:$0xff]  }
  0x46   :  { %6348 = vmatprep.subr.bf16.mxu1 %v7017_v17  ;;  %4566 = vmatprep.mubr.bf16.mxu0 %v5669_v47  ;;  %v7078_v16 = vld [vmem:[%s9198_s1 + $0x338] sm:$0xff]   ;;  %v7107_v47 = vld [vmem:[%s9198_s1 + $0x4a8] sm:$0xff]  }
  0x47   :  { %4606 = vmatprep.mubr.bf16.mxu1 %v5671_v49  ;;  %v7079_v17 = vld [vmem:[%s9198_s1 + $0x3b8] sm:$0xff]   ;;  %v7109_v49 = vld [vmem:[%s9198_s1 + $0x4f0] sm:$0xff]  }
  0x48   :  { %6327 = vmatpush3.bf16.msra.mxu0 %v7018_v18  ;;  %v21_v18 = vld [vmem:[%s9199_s0 + $0x30] sm:$0xff] }
  0x49   :  { %6349 = vmatpush3.bf16.msra.mxu1 %v7019_v19  ;;  %6328 = vmatprep.subr.bf16.mxu0 %v7020_v20  ;;  %v22_v19 = vld [vmem:[%s9199_s0 + $0x38] sm:$0xff]  ;;  %v5672_v20 = vcombine.low %v21_v18, %v21_v18 }
  0x4a   :  { %6350 = vmatprep.subr.bf16.mxu1 %v7021_v21  ;;  %v5673_v21 = vcombine.high %v21_v18, %v21_v18  ;;  %v7140_v18 = vld [vmem:[%s9198_s1 + $0x568] sm:$0xff]  }
  0x4c   :  { %6329 = vmatpush3.bf16.msra.mxu0 %v7022_v22  ;;  %v5674_v22 = vcombine.low %v22_v19, %v22_v19 }
  0x4d   :  { %6351 = vmatpush3.bf16.msra.mxu1 %v7023_v23  ;;  %6330 = vmatprep.subr.bf16.mxu0 %v7024_v24  ;;  %v7084_v23 = vld [vmem:[%s9198_s1 + $0x440] sm:$0xff]   ;;  %v5675_v24 = vcombine.high %v22_v19, %v22_v19  ;;  %v7141_v19 = vld [vmem:[%s9198_s1 + $0x5e8] sm:$0xff]  }
  0x4e   :  { %6352 = vmatprep.subr.bf16.mxu1 %v7025_v25  ;;  %v7085_v25 = vld [vmem:[%s9198_s1 + $0x4c0] sm:$0xff]  }
  0x50   :  { %6331 = vmatpush3.bf16.msra.mxu0 %v7026_v26  ;;  %v7086_v26 = vld [vmem:[%s9198_s1 + $0x400] sm:$0xff]  }
  0x51   :  { %6353 = vmatpush3.bf16.msra.mxu1 %v7027_v27  ;;  %6332 = vmatprep.subr.bf16.mxu0 %v7028_v28  ;;  %v7087_v27 = vld [vmem:[%s9198_s1 + $0x480] sm:$0xff]   ;;  %v7088_v28 = vld [vmem:[%s9198_s1 + $0x448] sm:$0xff]  }
  0x52   :  { %6354 = vmatprep.subr.bf16.mxu1 %v7029_v29  ;;  %v7089_v29 = vld [vmem:[%s9198_s1 + $0x4c8] sm:$0xff]  }
  0x54   :  { %6333 = vmatpush3.bf16.msra.mxu0 %v7030_v30  ;;  %v7090_v30 = vld [vmem:[%s9198_s1 + $0x408] sm:$0xff]  }
  0x55   :  { %6355 = vmatpush3.bf16.msra.mxu1 %v7031_v31  ;;  %6334 = vmatprep.subr.bf16.mxu0 %v7032_v32  ;;  %v7091_v31 = vld [vmem:[%s9198_s1 + $0x488] sm:$0xff]   ;;  %v7092_v32 = vld [vmem:[%s9198_s1 + $0x450] sm:$0xff]  }
  0x56   :  { %6356 = vmatprep.subr.bf16.mxu1 %v7033_v33  ;;  %v7093_v33 = vld [vmem:[%s9198_s1 + $0x4d0] sm:$0xff]  }
  0x58   :  { %6335 = vmatpush3.bf16.msra.mxu0 %v7034_v34  ;;  %v7094_v34 = vld [vmem:[%s9198_s1 + $0x410] sm:$0xff]  }
  0x59   :  { %6357 = vmatpush3.bf16.msra.mxu1 %v7035_v35  ;;  %6336 = vmatprep.subr.bf16.mxu0 %v7036_v36  ;;  %v7095_v35 = vld [vmem:[%s9198_s1 + $0x490] sm:$0xff]   ;;  %v7096_v36 = vld [vmem:[%s9198_s1 + $0x458] sm:$0xff]  }
  0x5a   :  { %6358 = vmatprep.subr.bf16.mxu1 %v7037_v37  ;;  %v7097_v37 = vld [vmem:[%s9198_s1 + $0x4d8] sm:$0xff]  }
  0x5c   :  { %6337 = vmatpush3.bf16.msra.mxu0 %v7038_v38  ;;  %v7098_v38 = vld [vmem:[%s9198_s1 + $0x418] sm:$0xff]  }
  0x5d   :  { %6359 = vmatpush3.bf16.msra.mxu1 %v7039_v39  ;;  %6338 = vmatprep.subr.bf16.mxu0 %v7040_v40  ;;  %v7099_v39 = vld [vmem:[%s9198_s1 + $0x498] sm:$0xff]   ;;  %v7100_v40 = vld [vmem:[%s9198_s1 + $0x460] sm:$0xff]  }
  0x5e   :  { %6360 = vmatprep.subr.bf16.mxu1 %v7041_v41  ;;  %v7101_v41 = vld [vmem:[%s9198_s1 + $0x4e0] sm:$0xff]  }
  0x60   :  { %6339 = vmatpush3.bf16.msra.mxu0 %v7042_v42  ;;  %v7102_v42 = vld [vmem:[%s9198_s1 + $0x420] sm:$0xff]  }
  0x61   :  { %6361 = vmatpush3.bf16.msra.mxu1 %v7043_v43  ;;  %6368 = vmatprep.subr.bf16.mxu0 %v7048_v50  ;;  %v7103_v43 = vld [vmem:[%s9198_s1 + $0x4a0] sm:$0xff]   ;;  %v7110_v50 = vld [vmem:[%s9198_s1 + $0x430] sm:$0xff]  }
  0x62   :  { %6390 = vmatprep.subr.bf16.mxu1 %v7049_v51  ;;  %v7111_v51 = vld [vmem:[%s9198_s1 + $0x4b0] sm:$0xff]  }
  0x63   :  { %4567 = vmatmul.mubr.bf16.vlgmr.msra.gmra.mrb[8].mxu0 %v5668_v46  ;;  %v7106_v46 = vld [vmem:[%s9198_s1 + $0x428] sm:$0xff]  }
  0x64   :  { %4607 = vmatmul.mubr.bf16.vlgmr.msra.gmra.mrb[8].mxu1 %v5670_v48  ;;  %6369 = vmatpush3.bf16.msra.mxu0 %v7050_v52  ;;  %v7108_v48 = vld [vmem:[%s9198_s1 + $0x470] sm:$0xff]   ;;  %v7112_v52 = vld [vmem:[%s9198_s1 + $0x478] sm:$0xff]  }
  0x65   :  { %6391 = vmatpush3.bf16.msra.mxu1 %v7051_v53  ;;  %6370 = vmatprep.subr.bf16.mxu0 %v7052_v54  ;;  %v7113_v53 = vld [vmem:[%s9198_s1 + $0x4f8] sm:$0xff]  }
  0x66   :  { %6392 = vmatprep.subr.bf16.mxu1 %v7053_v55  ;;  %4646 = vmatprep.mubr.bf16.mxu0 %v5673_v21  ;;  %v7114_v54 = vld [vmem:[%s9198_s1 + $0x438] sm:$0xff]   ;;  %v7143_v21 = vld [vmem:[%s9198_s1 + $0x5a8] sm:$0xff]  }
  0x67   :  { %4686 = vmatprep.mubr.bf16.mxu1 %v5675_v24  ;;  %v7115_v55 = vld [vmem:[%s9198_s1 + $0x4b8] sm:$0xff]   ;;  %v7146_v24 = vld [vmem:[%s9198_s1 + $0x530] sm:$0xff]  }
  0x68   :  { %6371 = vmatpush3.bf16.msra.mxu0 %v7054_v56  ;;  %v23_v56 = vld [vmem:[%s9199_s0 + $0x40] sm:$0xff] }
  0x69   :  { %6393 = vmatpush3.bf16.msra.mxu1 %v7055_v57  ;;  %6372 = vmatprep.subr.bf16.mxu0 %v7056_v58  ;;  %v5676_v57 = vcombine.low %v23_v56, %v23_v56  ;;  %v5677_v58 = vcombine.high %v23_v56, %v23_v56  ;;  %v7176_v56 = vld [vmem:[%s9198_s1 + $0x668] sm:$0xff]  }
  0x6a   :  { %6394 = vmatprep.subr.bf16.mxu1 %v7057_v59  ;;  %v24_v59 = vld [vmem:[%s9199_s0 + $0x48] sm:$0xff] }
  0x6c   :  { %6373 = vmatpush3.bf16.msra.mxu0 %v7058_v60  ;;  %v5678_v60 = vcombine.low %v24_v59, %v24_v59 }
  0x6d   :  { %6395 = vmatpush3.bf16.msra.mxu1 %v7059_v61  ;;  %6374 = vmatprep.subr.bf16.mxu0 %v7060_v62  ;;  %v5679_v61 = vcombine.high %v24_v59, %v24_v59  ;;  %v7120_v62 = vld [vmem:[%s9198_s1 + $0x540] sm:$0xff]   ;;  %v7179_v59 = vld [vmem:[%s9198_s1 + $0x6a8] sm:$0xff]  }
  0x6e   :  { %6396 = vmatprep.subr.bf16.mxu1 %v7061_v63  ;;  %v7121_v63 = vld [vmem:[%s9198_s1 + $0x5c0] sm:$0xff]  }
  0x70   :  { %6375 = vmatpush3.bf16.msra.mxu0 %v7062_v0  ;;  %v7122_v0 = vld [vmem:[%s9198_s1 + $0x500] sm:$0xff]  }
  0x71   :  { %6397 = vmatpush3.bf16.msra.mxu1 %v7063_v1  ;;  %6376 = vmatprep.subr.bf16.mxu0 %v7064_v2  ;;  %v7123_v1 = vld [vmem:[%s9198_s1 + $0x580] sm:$0xff]   ;;  %v7124_v2 = vld [vmem:[%s9198_s1 + $0x548] sm:$0xff]  }
  0x72   :  { %6398 = vmatprep.subr.bf16.mxu1 %v7065_v3  ;;  %v7125_v3 = vld [vmem:[%s9198_s1 + $0x5c8] sm:$0xff]  }
  0x74   :  { %6377 = vmatpush3.bf16.msra.mxu0 %v7066_v4  ;;  %v7126_v4 = vld [vmem:[%s9198_s1 + $0x508] sm:$0xff]  }
  0x75   :  { %6399 = vmatpush3.bf16.msra.mxu1 %v7067_v5  ;;  %6378 = vmatprep.subr.bf16.mxu0 %v7068_v6  ;;  %v7127_v5 = vld [vmem:[%s9198_s1 + $0x588] sm:$0xff]   ;;  %v7128_v6 = vld [vmem:[%s9198_s1 + $0x550] sm:$0xff]  }
  0x76   :  { %6400 = vmatprep.subr.bf16.mxu1 %v7069_v7  ;;  %v7129_v7 = vld [vmem:[%s9198_s1 + $0x5d0] sm:$0xff]  }
  0x78   :  { %6379 = vmatpush3.bf16.msra.mxu0 %v7070_v8  ;;  %v7130_v8 = vld [vmem:[%s9198_s1 + $0x510] sm:$0xff]  }
  0x79   :  { %6401 = vmatpush3.bf16.msra.mxu1 %v7071_v9  ;;  %6380 = vmatprep.subr.bf16.mxu0 %v7072_v10  ;;  %v7131_v9 = vld [vmem:[%s9198_s1 + $0x590] sm:$0xff]   ;;  %v7132_v10 = vld [vmem:[%s9198_s1 + $0x558] sm:$0xff]  }
  0x7a   :  { %6402 = vmatprep.subr.bf16.mxu1 %v7073_v11  ;;  %v7133_v11 = vld [vmem:[%s9198_s1 + $0x5d8] sm:$0xff]  }
  0x7c   :  { %6381 = vmatpush3.bf16.msra.mxu0 %v7074_v12  ;;  %v7134_v12 = vld [vmem:[%s9198_s1 + $0x518] sm:$0xff]  }
  0x7d   :  { %6403 = vmatpush3.bf16.msra.mxu1 %v7075_v13  ;;  %6382 = vmatprep.subr.bf16.mxu0 %v7076_v14  ;;  %v7135_v13 = vld [vmem:[%s9198_s1 + $0x598] sm:$0xff]   ;;  %v7136_v14 = vld [vmem:[%s9198_s1 + $0x560] sm:$0xff]  }
  0x7e   :  { %6404 = vmatprep.subr.bf16.mxu1 %v7077_v15  ;;  %v7137_v15 = vld [vmem:[%s9198_s1 + $0x5e0] sm:$0xff]  }
  0x80   :  { %6383 = vmatpush3.bf16.msra.mxu0 %v7078_v16  ;;  %v7138_v16 = vld [vmem:[%s9198_s1 + $0x520] sm:$0xff]  }
  0x81   :  { %6405 = vmatpush3.bf16.msra.mxu1 %v7079_v17  ;;  %6412 = vmatprep.subr.bf16.mxu0 %v7084_v23  ;;  %v7139_v17 = vld [vmem:[%s9198_s1 + $0x5a0] sm:$0xff]   ;;  %v7145_v23 = vld [vmem:[%s9198_s1 + $0x5f0] sm:$0xff]  }
  0x82   :  { %6434 = vmatprep.subr.bf16.mxu1 %v7085_v25  ;;  %v7147_v25 = vld [vmem:[%s9198_s1 + $0x5b0] sm:$0xff]  }
  0x83   :  { %4647 = vmatmul.mubr.bf16.vlgmr.msra.gmra.mrb[12].mxu0 %v5672_v20  ;;  %v7142_v20 = vld [vmem:[%s9198_s1 + $0x528] sm:$0xff]  }
  0x84   :  { %4687 = vmatmul.mubr.bf16.vlgmr.msra.gmra.mrb[12].mxu1 %v5674_v22  ;;  %6413 = vmatpush3.bf16.msra.mxu0 %v7086_v26  ;;  %v7144_v22 = vld [vmem:[%s9198_s1 + $0x570] sm:$0xff]   ;;  %v7148_v26 = vld [vmem:[%s9198_s1 + $0x578] sm:$0xff]  }
  0x85   :  { %6435 = vmatpush3.bf16.msra.mxu1 %v7087_v27  ;;  %6414 = vmatprep.subr.bf16.mxu0 %v7088_v28  ;;  %v7149_v27 = vld [vmem:[%s9198_s1 + $0x5f8] sm:$0xff]  }
  0x86   :  { %6436 = vmatprep.subr.bf16.mxu1 %v7089_v29  ;;  %4726 = vmatprep.mubr.bf16.mxu0 %v5677_v58  ;;  %v7150_v28 = vld [vmem:[%s9198_s1 + $0x538] sm:$0xff]   ;;  %v7178_v58 = vld [vmem:[%s9198_s1 + $0x628] sm:$0xff]  }
  0x87   :  { %4766 = vmatprep.mubr.bf16.mxu1 %v5679_v61  ;;  %v7151_v29 = vld [vmem:[%s9198_s1 + $0x5b8] sm:$0xff]   ;;  %v7181_v61 = vld [vmem:[%s9198_s1 + $0x6f0] sm:$0xff]  }
  0x88   :  { %6415 = vmatpush3.bf16.msra.mxu0 %v7090_v30  ;;  %v25_v30 = vld [vmem:[%s9199_s0 + $0x50] sm:$0xff] }
  0x89   :  { %6437 = vmatpush3.bf16.msra.mxu1 %v7091_v31  ;;  %6416 = vmatprep.subr.bf16.mxu0 %v7092_v32  ;;  %v26_v31 = vld [vmem:[%s9199_s0 + $0x58] sm:$0xff]  ;;  %v5680_v32 = vcombine.low %v25_v30, %v25_v30 }
  0x8a   :  { %6438 = vmatprep.subr.bf16.mxu1 %v7093_v33  ;;  %v5681_v33 = vcombine.high %v25_v30, %v25_v30  ;;  %v7211_v30 = vld [vmem:[%s9198_s1 + $0x7a0] sm:$0xff]  }
  0x8c   :  { %6417 = vmatpush3.bf16.msra.mxu0 %v7094_v34  ;;  %v5682_v34 = vcombine.low %v26_v31, %v26_v31 }
  0x8d   :  { %6439 = vmatpush3.bf16.msra.mxu1 %v7095_v35  ;;  %6418 = vmatprep.subr.bf16.mxu0 %v7096_v36  ;;  %v5683_v35 = vcombine.high %v26_v31, %v26_v31  ;;  %v7156_v36 = vld [vmem:[%s9198_s1 + $0x640] sm:$0xff]  }
  0x8e   :  { %6440 = vmatprep.subr.bf16.mxu1 %v7097_v37  ;;  %v7157_v37 = vld [vmem:[%s9198_s1 + $0x6c0] sm:$0xff]  }
  0x90   :  { %6419 = vmatpush3.bf16.msra.mxu0 %v7098_v38  ;;  %v7158_v38 = vld [vmem:[%s9198_s1 + $0x600] sm:$0xff]  }
  0x91   :  { %6441 = vmatpush3.bf16.msra.mxu1 %v7099_v39  ;;  %6420 = vmatprep.subr.bf16.mxu0 %v7100_v40  ;;  %v7159_v39 = vld [vmem:[%s9198_s1 + $0x680] sm:$0xff]   ;;  %v7160_v40 = vld [vmem:[%s9198_s1 + $0x648] sm:$0xff]  }
  0x92   :  { %6442 = vmatprep.subr.bf16.mxu1 %v7101_v41  ;;  %v7161_v41 = vld [vmem:[%s9198_s1 + $0x6c8] sm:$0xff]  }
  0x94   :  { %6421 = vmatpush3.bf16.msra.mxu0 %v7102_v42  ;;  %v7162_v42 = vld [vmem:[%s9198_s1 + $0x608] sm:$0xff]  }
  0x95   :  { %6443 = vmatpush3.bf16.msra.mxu1 %v7103_v43  ;;  %6422 = vmatprep.subr.bf16.mxu0 %v7104_v44  ;;  %v7163_v43 = vld [vmem:[%s9198_s1 + $0x688] sm:$0xff]   ;;  %v7164_v44 = vld [vmem:[%s9198_s1 + $0x650] sm:$0xff]  }
  0x96   :  { %6444 = vmatprep.subr.bf16.mxu1 %v7105_v45  ;;  %v7165_v45 = vld [vmem:[%s9198_s1 + $0x6d0] sm:$0xff]  }
  0x98   :  { %6423 = vmatpush3.bf16.msra.mxu0 %v7106_v46  ;;  %v7166_v46 = vld [vmem:[%s9198_s1 + $0x610] sm:$0xff]  }
  0x99   :  { %6445 = vmatpush3.bf16.msra.mxu1 %v7107_v47  ;;  %6424 = vmatprep.subr.bf16.mxu0 %v7108_v48  ;;  %v7167_v47 = vld [vmem:[%s9198_s1 + $0x690] sm:$0xff]   ;;  %v7168_v48 = vld [vmem:[%s9198_s1 + $0x658] sm:$0xff]  }
  0x9a   :  { %6446 = vmatprep.subr.bf16.mxu1 %v7109_v49  ;;  %v7169_v49 = vld [vmem:[%s9198_s1 + $0x6d8] sm:$0xff]  }
  0x9c   :  { %6425 = vmatpush3.bf16.msra.mxu0 %v7110_v50  ;;  %v7170_v50 = vld [vmem:[%s9198_s1 + $0x618] sm:$0xff]  }
  0x9d   :  { %6447 = vmatpush3.bf16.msra.mxu1 %v7111_v51  ;;  %6426 = vmatprep.subr.bf16.mxu0 %v7112_v52  ;;  %v7171_v51 = vld [vmem:[%s9198_s1 + $0x698] sm:$0xff]   ;;  %v7172_v52 = vld [vmem:[%s9198_s1 + $0x660] sm:$0xff]  }
  0x9e   :  { %6448 = vmatprep.subr.bf16.mxu1 %v7113_v53  ;;  %v7173_v53 = vld [vmem:[%s9198_s1 + $0x6e0] sm:$0xff]  }
  0xa0   :  { %6427 = vmatpush3.bf16.msra.mxu0 %v7114_v54  ;;  %v7174_v54 = vld [vmem:[%s9198_s1 + $0x620] sm:$0xff]  }
  0xa1   :  { %6449 = vmatpush3.bf16.msra.mxu1 %v7115_v55  ;;  %6456 = vmatprep.subr.bf16.mxu0 %v7120_v62  ;;  %v7175_v55 = vld [vmem:[%s9198_s1 + $0x6a0] sm:$0xff]   ;;  %v7182_v62 = vld [vmem:[%s9198_s1 + $0x630] sm:$0xff]  }
  0xa2   :  { %6478 = vmatprep.subr.bf16.mxu1 %v7121_v63  ;;  %v7183_v63 = vld [vmem:[%s9198_s1 + $0x6b0] sm:$0xff]  }
  0xa3   :  { %4727 = vmatmul.mubr.bf16.vlgmr.msra.gmra.mrb[16].mxu0 %v5676_v57  ;;  %v7177_v57 = vld [vmem:[%s9198_s1 + $0x6e8] sm:$0xff]  }
  0xa4   :  { %4767 = vmatmul.mubr.bf16.vlgmr.msra.gmra.mrb[16].mxu1 %v5678_v60  ;;  %6457 = vmatpush3.bf16.msra.mxu0 %v7122_v0  ;;  %v7180_v60 = vld [vmem:[%s9198_s1 + $0x670] sm:$0xff]   ;;  %v7184_v0 = vld [vmem:[%s9198_s1 + $0x678] sm:$0xff]  }
  0xa5   :  { %6479 = vmatpush3.bf16.msra.mxu1 %v7123_v1  ;;  %6458 = vmatprep.subr.bf16.mxu0 %v7124_v2  ;;  %v7185_v1 = vld [vmem:[%s9198_s1 + $0x6f8] sm:$0xff]  }
  0xa6   :  { %6480 = vmatprep.subr.bf16.mxu1 %v7125_v3  ;;  %4806 = vmatprep.mubr.bf16.mxu0 %v5681_v33  ;;  %v7186_v2 = vld [vmem:[%s9198_s1 + $0x638] sm:$0xff]  }
  0xa7   :  { %4846 = vmatprep.mubr.bf16.mxu1 %v5683_v35  ;;  %v7187_v3 = vld [vmem:[%s9198_s1 + $0x6b8] sm:$0xff]  }
  0xa8   :  { %6459 = vmatpush3.bf16.msra.mxu0 %v7126_v4  ;;  %v27_v4 = vld [vmem:[%s9199_s0 + $0x60] sm:$0xff] }
  0xa9   :  { %6481 = vmatpush3.bf16.msra.mxu1 %v7127_v5  ;;  %6460 = vmatprep.subr.bf16.mxu0 %v7128_v6  ;;  %v28_v5 = vld [vmem:[%s9199_s0 + $0x68] sm:$0xff]  ;;  %v5684_v6 = vcombine.low %v27_v4, %v27_v4 }
  0xaa   :  { %6482 = vmatprep.subr.bf16.mxu1 %v7129_v7  ;;  %v5685_v7 = vcombine.high %v27_v4, %v27_v4  ;;  %v7235_v4 = vld [vmem:[%s9198_s1 + $0x888] sm:$0xff]  }
  0xac   :  { %6461 = vmatpush3.bf16.msra.mxu0 %v7130_v8  ;;  %v5686_v8 = vcombine.low %v28_v5, %v28_v5 }
  0xad   :  { %6483 = vmatpush3.bf16.msra.mxu1 %v7131_v9  ;;  %6462 = vmatprep.subr.bf16.mxu0 %v7132_v10  ;;  %v7192_v9 = vld [vmem:[%s9198_s1 + $0x740] sm:$0xff]   ;;  %v5687_v10 = vcombine.high %v28_v5, %v28_v5  ;;  %v7236_v5 = vld [vmem:[%s9198_s1 + $0x850] sm:$0xff]  }
  0xae   :  { %6484 = vmatprep.subr.bf16.mxu1 %v7133_v11  ;;  %v7193_v11 = vld [vmem:[%s9198_s1 + $0x7c0] sm:$0xff]  }
  0xb0   :  { %6463 = vmatpush3.bf16.msra.mxu0 %v7134_v12  ;;  %v7194_v12 = vld [vmem:[%s9198_s1 + $0x700] sm:$0xff]  }
  0xb1   :  { %6485 = vmatpush3.bf16.msra.mxu1 %v7135_v13  ;;  %6464 = vmatprep.subr.bf16.mxu0 %v7136_v14  ;;  %v7195_v13 = vld [vmem:[%s9198_s1 + $0x780] sm:$0xff]   ;;  %v7196_v14 = vld [vmem:[%s9198_s1 + $0x748] sm:$0xff]  }
  0xb2   :  { %6486 = vmatprep.subr.bf16.mxu1 %v7137_v15  ;;  %v7197_v15 = vld [vmem:[%s9198_s1 + $0x7c8] sm:$0xff]  }
  0xb4   :  { %6465 = vmatpush3.bf16.msra.mxu0 %v7138_v16  ;;  %v7198_v16 = vld [vmem:[%s9198_s1 + $0x708] sm:$0xff]  }
  0xb5   :  { %6487 = vmatpush3.bf16.msra.mxu1 %v7139_v17  ;;  %6466 = vmatprep.subr.bf16.mxu0 %v7140_v18  ;;  %v7199_v17 = vld [vmem:[%s9198_s1 + $0x788] sm:$0xff]   ;;  %v7200_v18 = vld [vmem:[%s9198_s1 + $0x750] sm:$0xff]  }
  0xb6   :  { %6488 = vmatprep.subr.bf16.mxu1 %v7141_v19  ;;  %v7201_v19 = vld [vmem:[%s9198_s1 + $0x7d0] sm:$0xff]  }
  0xb8   :  { %6467 = vmatpush3.bf16.msra.mxu0 %v7142_v20  ;;  %v7202_v20 = vld [vmem:[%s9198_s1 + $0x710] sm:$0xff]  }
  0xb9   :  { %6489 = vmatpush3.bf16.msra.mxu1 %v7143_v21  ;;  %6468 = vmatprep.subr.bf16.mxu0 %v7144_v22  ;;  %v7203_v21 = vld [vmem:[%s9198_s1 + $0x790] sm:$0xff]   ;;  %v7204_v22 = vld [vmem:[%s9198_s1 + $0x758] sm:$0xff]  }
  0xba   :  { %6490 = vmatprep.subr.bf16.mxu1 %v7145_v23  ;;  %v7205_v23 = vld [vmem:[%s9198_s1 + $0x7d8] sm:$0xff]  }
  0xbc   :  { %6469 = vmatpush3.bf16.msra.mxu0 %v7146_v24  ;;  %v7206_v24 = vld [vmem:[%s9198_s1 + $0x718] sm:$0xff]  }
  0xbd   :  { %6491 = vmatpush3.bf16.msra.mxu1 %v7147_v25  ;;  %6470 = vmatprep.subr.bf16.mxu0 %v7148_v26  ;;  %v7207_v25 = vld [vmem:[%s9198_s1 + $0x798] sm:$0xff]   ;;  %v7208_v26 = vld [vmem:[%s9198_s1 + $0x760] sm:$0xff]  }
  0xbe   :  { %6492 = vmatprep.subr.bf16.mxu1 %v7149_v27  ;;  %v7209_v27 = vld [vmem:[%s9198_s1 + $0x7e0] sm:$0xff]  }
  0xc0   :  { %6471 = vmatpush3.bf16.msra.mxu0 %v7150_v28  ;;  %v7210_v28 = vld [vmem:[%s9198_s1 + $0x720] sm:$0xff]  }
  0xc1   :  { %6493 = vmatpush3.bf16.msra.mxu1 %v7151_v29  ;;  %6500 = vmatprep.subr.bf16.mxu0 %v7156_v36 }
  0xc2   :  { %6522 = vmatprep.subr.bf16.mxu1 %v7157_v37  ;;  %v7212_v37 = vld [vmem:[%s9198_s1 + $0x768] sm:$0xff]  }
  0xc3   :  { %4807 = vmatmul.mubr.bf16.vlgmr.msra.gmra.mrb[20].mxu0 %v5680_v32  ;;  %v5659_v32 = vld [vmem:[%s9200_s2] ss:$0 sm:$0xff] }
  0xc4   :  { %4847 = vmatmul.mubr.bf16.vlgmr.msra.gmra.mrb[20].mxu1 %v5682_v34  ;;  %6501 = vmatpush3.bf16.msra.mxu0 %v7158_v38 }
  0xc5   :  { %6523 = vmatpush3.bf16.msra.mxu1 %v7159_v39  ;;  %6502 = vmatprep.subr.bf16.mxu0 %v7160_v40  ;;  %v7213_v39 = vld [vmem:[%s9198_s1 + $0x7e8] sm:$0xff]  }
  0xc6   :  { %6524 = vmatprep.subr.bf16.mxu1 %v7161_v41  ;;  %4886 = vmatprep.mubr.bf16.mxu0 %v5685_v7  ;;  %v7238_v7 = vld [vmem:[%s9198_s1 + $0x810] sm:$0xff]  }
  0xc7   :  { %4926 = vmatprep.mubr.bf16.mxu1 %v5687_v10  ;;  %v7241_v10 = vld [vmem:[%s9198_s1 + $0x8d8] sm:$0xff]  }
  0xc8   :  { %6503 = vmatpush3.bf16.msra.mxu0 %v7162_v42  ;;  %v7214_v42 = vld [vmem:[%s9198_s1 + $0x728] sm:$0xff]  }
  0xc9   :  { %6525 = vmatpush3.bf16.msra.mxu1 %v7163_v43  ;;  %6504 = vmatprep.subr.bf16.mxu0 %v7164_v44  ;;  %v7215_v44 = vld [vmem:[%s9198_s1 + $0x7a8] sm:$0xff]  }
  0xca   :  { %6526 = vmatprep.subr.bf16.mxu1 %v7165_v45 }
  0xcc   :  { %6505 = vmatpush3.bf16.msra.mxu0 %v7166_v46 }
  0xcd   :  { %6527 = vmatpush3.bf16.msra.mxu1 %v7167_v47  ;;  %6506 = vmatprep.subr.bf16.mxu0 %v7168_v48  ;;  %v7216_v47 = vld [vmem:[%s9198_s1 + $0x770] sm:$0xff]  }
  0xce   :  { %6528 = vmatprep.subr.bf16.mxu1 %v7169_v49  ;;  %v7217_v48 = vld [vmem:[%s9198_s1 + $0x7f0] sm:$0xff]  }
  0xcf   :  { %v7218_v49 = vld [vmem:[%s9198_s1 + $0x730] sm:$0xff]  }
  0xd0   :  { %6507 = vmatpush3.bf16.msra.mxu0 %v7170_v50  ;;  %v7219_v50 = vld [vmem:[%s9198_s1 + $0x7b0] sm:$0xff]  }
  0xd1   :  { %6529 = vmatpush3.bf16.msra.mxu1 %v7171_v51  ;;  %6508 = vmatprep.subr.bf16.mxu0 %v7172_v52  ;;  %v7220_v51 = vld [vmem:[%s9198_s1 + $0x778] sm:$0xff]  }
  0xd2   :  { %6530 = vmatprep.subr.bf16.mxu1 %v7173_v53  ;;  %v7221_v52 = vld [vmem:[%s9198_s1 + $0x7f8] sm:$0xff]  }
  0xd3   :  { %v7222_v53 = vld [vmem:[%s9198_s1 + $0x738] sm:$0xff]  }
  0xd4   :  { %6509 = vmatpush3.bf16.msra.mxu0 %v7174_v54  ;;  %v7223_v54 = vld [vmem:[%s9198_s1 + $0x7b8] sm:$0xff]  }
  0xd5   :  { %6531 = vmatpush3.bf16.msra.mxu1 %v7175_v55  ;;  %6510 = vmatprep.subr.bf16.mxu0 %v7176_v56  ;;  %v29_v55 = vld [vmem:[%s9199_s0 + $0x70] sm:$0xff]  ;;  %v30_v56 = vld [vmem:[%s9199_s0 + $0x78] sm:$0xff] }
  0xd6   :  { %6532 = vmatprep.subr.bf16.mxu1 %v7177_v57  ;;  %v5688_v57 = vcombine.low %v29_v55, %v29_v55 }
  0xd8   :  { %6511 = vmatpush3.bf16.msra.mxu0 %v7178_v58  ;;  %v5689_v58 = vcombine.high %v29_v55, %v29_v55  ;;  %v7272_v55 = vld [vmem:[%s9198_s1 + $0x950] sm:$0xff]  }
  0xd9   :  { %6533 = vmatpush3.bf16.msra.mxu1 %v7179_v59  ;;  %6512 = vmatprep.subr.bf16.mxu0 %v7180_v60  ;;  %v5690_v59 = vcombine.low %v30_v56, %v30_v56  ;;  %v5691_v60 = vcombine.high %v30_v56, %v30_v56  ;;  %v7273_v56 = vld [vmem:[%s9198_s1 + $0x9d0] sm:$0xff]  }
  0xda   :  { %6534 = vmatprep.subr.bf16.mxu1 %v7181_v61  ;;  %v7228_v61 = vld [vmem:[%s9198_s1 + $0x840] sm:$0xff]  }
  0xdc   :  { %6513 = vmatpush3.bf16.msra.mxu0 %v7182_v62  ;;  %v7229_v62 = vld [vmem:[%s9198_s1 + $0x8c0] sm:$0xff]  }
  0xdd   :  { %6535 = vmatpush3.bf16.msra.mxu1 %v7183_v63  ;;  %6514 = vmatprep.subr.bf16.mxu0 %v7184_v0  ;;  %v7230_v63 = vld [vmem:[%s9198_s1 + $0x800] sm:$0xff]  }
  0xde   :  { %6536 = vmatprep.subr.bf16.mxu1 %v7185_v1  ;;  %v7231_v0 = vld [vmem:[%s9198_s1 + $0x880] sm:$0xff]   ;;  %v7232_v1 = vld [vmem:[%s9198_s1 + $0x848] sm:$0xff]  }
  0xe0   :  { %6515 = vmatpush3.bf16.msra.mxu0 %v7186_v2  ;;  %v7233_v2 = vld [vmem:[%s9198_s1 + $0x8c8] sm:$0xff]  }
  0xe1   :  { %6537 = vmatpush3.bf16.msra.mxu1 %v7187_v3  ;;  %6544 = vmatprep.subr.bf16.mxu0 %v7192_v9  ;;  %v7234_v3 = vld [vmem:[%s9198_s1 + $0x808] sm:$0xff]   ;;  %v7240_v9 = vld [vmem:[%s9198_s1 + $0x858] sm:$0xff]  }
  0xe2   :  { %6566 = vmatprep.subr.bf16.mxu1 %v7193_v11  ;;  %v7242_v11 = vld [vmem:[%s9198_s1 + $0x818] sm:$0xff]  }
  0xe3   :  { %4887 = vmatmul.mubr.bf16.vlgmr.msra.gmra.mrb[24].mxu0 %v5684_v6  ;;  %v7237_v6 = vld [vmem:[%s9198_s1 + $0x8d0] sm:$0xff]  }
  0xe4   :  { %4927 = vmatmul.mubr.bf16.vlgmr.msra.gmra.mrb[24].mxu1 %v5686_v8  ;;  %6545 = vmatpush3.bf16.msra.mxu0 %v7194_v12  ;;  %v7239_v8 = vld [vmem:[%s9198_s1 + $0x890] sm:$0xff]   ;;  %v7243_v12 = vld [vmem:[%s9198_s1 + $0x898] sm:$0xff]  }
  0xe5   :  { %6567 = vmatpush3.bf16.msra.mxu1 %v7195_v13  ;;  %6546 = vmatprep.subr.bf16.mxu0 %v7196_v14  ;;  %v7244_v13 = vld [vmem:[%s9198_s1 + $0x860] sm:$0xff]  }
  0xe6   :  { %6568 = vmatprep.subr.bf16.mxu1 %v7197_v15  ;;  %4966 = vmatprep.mubr.bf16.mxu0 %v5689_v58  ;;  %v7245_v14 = vld [vmem:[%s9198_s1 + $0x8e0] sm:$0xff]   ;;  %v7275_v58 = vld [vmem:[%s9198_s1 + $0x990] sm:$0xff]  }
  0xe7   :  { %5006 = vmatprep.mubr.bf16.mxu1 %v5691_v60  ;;  %v7246_v15 = vld [vmem:[%s9198_s1 + $0x820] sm:$0xff]   ;;  %v7277_v60 = vld [vmem:[%s9198_s1 + $0x9d8] sm:$0xff]  }
  0xe8   :  { %6547 = vmatpush3.bf16.msra.mxu0 %v7198_v16 }
  0xe9   :  { %6569 = vmatpush3.bf16.msra.mxu1 %v7199_v17  ;;  %6548 = vmatprep.subr.bf16.mxu0 %v7200_v18  ;;  %v7247_v17 = vld [vmem:[%s9198_s1 + $0x8a0] sm:$0xff]  }
  0xea   :  { %6570 = vmatprep.subr.bf16.mxu1 %v7201_v19 }
  0xec   :  { %6549 = vmatpush3.bf16.msra.mxu0 %v7202_v20 }
  0xed   :  { %6571 = vmatpush3.bf16.msra.mxu1 %v7203_v21  ;;  %6550 = vmatprep.subr.bf16.mxu0 %v7204_v22 }
  0xee   :  { %6572 = vmatprep.subr.bf16.mxu1 %v7205_v23  ;;  %v7248_v23 = vld [vmem:[%s9198_s1 + $0x868] sm:$0xff]  }
  0xf0   :  { %6551 = vmatpush3.bf16.msra.mxu0 %v7206_v24 }
  0xf1   :  { %6573 = vmatpush3.bf16.msra.mxu1 %v7207_v25  ;;  %6552 = vmatprep.subr.bf16.mxu0 %v7208_v26  ;;  %v7249_v25 = vld [vmem:[%s9198_s1 + $0x8e8] sm:$0xff]  }
  0xf2   :  { %6574 = vmatprep.subr.bf16.mxu1 %v7209_v27 }
  0xf4   :  { %6553 = vmatpush3.bf16.msra.mxu0 %v7210_v28  ;;  %v7250_v28 = vld [vmem:[%s9198_s1 + $0x828] sm:$0xff]  }
  0xf5   :  { %6575 = vmatpush3.bf16.msra.mxu1 %v7211_v30  ;;  %6554 = vmatprep.subr.bf16.mxu0 %v7212_v37  ;;  %v7251_v30 = vld [vmem:[%s9198_s1 + $0x8a8] sm:$0xff]   ;;  %v7256_v37 = vld [vmem:[%s9198_s1 + $0x878] sm:$0xff]  }
  0xf6   :  { %v6252_v29 = vpop.f32.mrb[0].mxu0  ;;  %6576 = vmatprep.subr.bf16.mxu1 %v7213_v39  ;;  %v7258_v39 = vld [vmem:[%s9198_s1 + $0x838] sm:$0xff]  }
  0xf7   :  { %v6274_v31 = vpop.f32.mrb[0].mxu1  ;;  %v6253_v33 = vpop.f32.mrb[1].mxu0 }
  0xf8   :  { %v6275_v34 = vpop.f32.mrb[1].mxu1  ;;  %v6254_v35 = vadd.f32 %v6253_v33, %v6252_v29  ;;  %v6255_v38 = vpop.f32.mrb[2].mxu0  ;;  %6555 = vmatpush3.bf16.msra.mxu0 %v7214_v42  ;;  %v7252_v33 = vld [vmem:[%s9198_s1 + $0x870] sm:$0xff]   ;;  %v32_v42 = vld [vmem:[%s9199_s0 + $0x88] sm:$0xff] }
  0xf9   :  { %v6276_v36 = vadd.f32 %v6275_v34, %v6274_v31  ;;  %v6277_v40 = vpop.f32.mrb[2].mxu1  ;;  %v6256_v43 = vpop.f32.mrb[3].mxu0  ;;  %6577 = vmatpush3.bf16.msra.mxu1 %v7215_v44  ;;  %6556 = vmatprep.subr.bf16.mxu0 %v7216_v47  ;;  %v7253_v34 = vld [vmem:[%s9198_s1 + $0x8f0] sm:$0xff]   ;;  %v7257_v38 = vld [vmem:[%s9198_s1 + $0x8f8] sm:$0xff]   ;;  %v7264_v47 = vld [vmem:[%s9198_s1 + $0x940] sm:$0xff]  }
  0xfa   :  { %v4409_v41 = vadd.f32 %v6254_v35, %v5659_v32  ;;  %v6278_v45 = vpop.f32.mrb[3].mxu1  ;;  %6578 = vmatprep.subr.bf16.mxu1 %v7217_v48  ;;  %v7254_v35 = vld [vmem:[%s9198_s1 + $0x830] sm:$0xff]   ;;  %v7259_v40 = vld [vmem:[%s9198_s1 + $0x8b8] sm:$0xff]   ;;  %v7265_v48 = vld [vmem:[%s9198_s1 + $0x9c0] sm:$0xff]  }
  0xfb   :  { %v5694_v45 = vcombine.low %v32_v42, %v32_v42 }
  0xfc   :  { %v8325_v46 = vadd.f32 %v6276_v36, %v4409_v41  ;;  %6557 = vmatpush3.bf16.msra.mxu0 %v7218_v49  ;;  %v7255_v36 = vld [vmem:[%s9198_s1 + $0x8b0] sm:$0xff]   ;;  %v31_v41 = vld [vmem:[%s9199_s0 + $0x80] sm:$0xff] }
  0xfd   :  { %6579 = vmatpush3.bf16.msra.mxu1 %v7219_v50  ;;  %6558 = vmatprep.subr.bf16.mxu0 %v7220_v51  ;;  %v5692_v43 = vcombine.low %v31_v41, %v31_v41  ;;  %v5693_v44 = vcombine.high %v31_v41, %v31_v41  ;;  %v7266_v49 = vld [vmem:[%s9198_s1 + $0x900] sm:$0xff]   ;;  %v7268_v51 = vld [vmem:[%s9198_s1 + $0x948] sm:$0xff]   ;;  %v7308_v41 = vld [vmem:[%s9198_s1 + $0xa50] sm:$0xff]  }
  0xfe   :  { %6580 = vmatprep.subr.bf16.mxu1 %v7221_v52  ;;  %v7267_v50 = vld [vmem:[%s9198_s1 + $0x980] sm:$0xff]   ;;  %v7269_v52 = vld [vmem:[%s9198_s1 + $0x9c8] sm:$0xff]  }
 0x100   :  { %6559 = vmatpush3.bf16.msra.mxu0 %v7222_v53  ;;  %v7270_v53 = vld [vmem:[%s9198_s1 + $0x908] sm:$0xff]  }
 0x101   :  { %6581 = vmatpush3.bf16.msra.mxu1 %v7223_v54  ;;  %6588 = vmatprep.subr.bf16.mxu0 %v7228_v61  ;;  %v7271_v54 = vld [vmem:[%s9198_s1 + $0x988] sm:$0xff]   ;;  %v7278_v61 = vld [vmem:[%s9198_s1 + $0x918] sm:$0xff]  }
 0x102   :  { %6610 = vmatprep.subr.bf16.mxu1 %v7229_v62  ;;  %v7279_v62 = vld [vmem:[%s9198_s1 + $0x998] sm:$0xff]  }
 0x103   :  { %4967 = vmatmul.mubr.bf16.vlgmr.msra.gmra.mrb[28].mxu0 %v5688_v57  ;;  %v7274_v57 = vld [vmem:[%s9198_s1 + $0x910] sm:$0xff]  }
 0x104   :  { %5007 = vmatmul.mubr.bf16.vlgmr.msra.gmra.mrb[28].mxu1 %v5690_v59  ;;  %6589 = vmatpush3.bf16.msra.mxu0 %v7230_v63  ;;  %v7276_v59 = vld [vmem:[%s9198_s1 + $0x958] sm:$0xff]   ;;  %v7280_v63 = vld [vmem:[%s9198_s1 + $0x960] sm:$0xff]  }
 0x105   :  { %6611 = vmatpush3.bf16.msra.mxu1 %v7231_v0  ;;  %6590 = vmatprep.subr.bf16.mxu0 %v7232_v1  ;;  %v7281_v0 = vld [vmem:[%s9198_s1 + $0x9e0] sm:$0xff]  }
 0x106   :  { %6612 = vmatprep.subr.bf16.mxu1 %v7233_v2  ;;  %5046 = vmatprep.mubr.bf16.mxu0 %v5693_v44  ;;  %v7282_v2 = vld [vmem:[%s9198_s1 + $0x920] sm:$0xff]   ;;  %v7311_v44 = vld [vmem:[%s9198_s1 + $0xa90] sm:$0xff]  }
 0x108   :  { %6591 = vmatpush3.bf16.msra.mxu0 %v7234_v3 }
 0x109   :  { %6613 = vmatpush3.bf16.msra.mxu1 %v7235_v4  ;;  %6592 = vmatprep.subr.bf16.mxu0 %v7236_v5  ;;  %v7283_v4 = vld [vmem:[%s9198_s1 + $0x9a0] sm:$0xff]  }
 0x10a   :  { %6614 = vmatprep.subr.bf16.mxu1 %v7237_v6 }
 0x10c   :  { %6593 = vmatpush3.bf16.msra.mxu0 %v7238_v7 }
 0x10d   :  { %6615 = vmatpush3.bf16.msra.mxu1 %v7239_v8  ;;  %6594 = vmatprep.subr.bf16.mxu0 %v7240_v9  ;;  %v7284_v8 = vld [vmem:[%s9198_s1 + $0x968] sm:$0xff]  }
 0x10e   :  { %6616 = vmatprep.subr.bf16.mxu1 %v7241_v10  ;;  %v7285_v10 = vld [vmem:[%s9198_s1 + $0x9e8] sm:$0xff]  }
 0x110   :  { %6595 = vmatpush3.bf16.msra.mxu0 %v7242_v11 }
 0x111   :  { %6617 = vmatpush3.bf16.msra.mxu1 %v7243_v12  ;;  %6596 = vmatprep.subr.bf16.mxu0 %v7244_v13 }
 0x112   :  { %6618 = vmatprep.subr.bf16.mxu1 %v7245_v14  ;;  %v7286_v14 = vld [vmem:[%s9198_s1 + $0x928] sm:$0xff]  }
 0x114   :  { %6597 = vmatpush3.bf16.msra.mxu0 %v7246_v15  ;;  %v7287_v15 = vld [vmem:[%s9198_s1 + $0x9a8] sm:$0xff]  }
 0x115   :  { %6619 = vmatpush3.bf16.msra.mxu1 %v7247_v17  ;;  %6598 = vmatprep.subr.bf16.mxu0 %v7248_v23  ;;  %v7292_v23 = vld [vmem:[%s9198_s1 + $0x978] sm:$0xff]  }
 0x116   :  { %v6296_v16 = vpop.f32.mrb[4].mxu0  ;;  %6620 = vmatprep.subr.bf16.mxu1 %v7249_v25  ;;  %v7294_v25 = vld [vmem:[%s9198_s1 + $0x938] sm:$0xff]  }
 0x117   :  { %v6318_v18 = vpop.f32.mrb[4].mxu1  ;;  %v6297_v19 = vpop.f32.mrb[5].mxu0 }
 0x118   :  { %v6319_v20 = vpop.f32.mrb[5].mxu1  ;;  %v6298_v21 = vadd.f32 %v6297_v19, %v6296_v16  ;;  %v6299_v24 = vpop.f32.mrb[6].mxu0  ;;  %6599 = vmatpush3.bf16.msra.mxu0 %v7250_v28  ;;  %v7288_v19 = vld [vmem:[%s9198_s1 + $0x970] sm:$0xff]   ;;  %v34_v28 = vld [vmem:[%s9199_s0 + $0x98] sm:$0xff] }
 0x119   :  { %v6320_v22 = vadd.f32 %v6319_v20, %v6318_v18  ;;  %v6321_v26 = vpop.f32.mrb[6].mxu1  ;;  %v6300_v29 = vpop.f32.mrb[7].mxu0  ;;  %6621 = vmatpush3.bf16.msra.mxu1 %v7251_v30  ;;  %6600 = vmatprep.subr.bf16.mxu0 %v7252_v33  ;;  %v7289_v20 = vld [vmem:[%s9198_s1 + $0x9f0] sm:$0xff]   ;;  %v7293_v24 = vld [vmem:[%s9198_s1 + $0x9f8] sm:$0xff]   ;;  %v5699_v33 = vcombine.high %v34_v28, %v34_v28 }
 0x11a   :  { %v4489_v27 = vadd.f32 %v6298_v21, %v8325_v46  ;;  %v6322_v31 = vpop.f32.mrb[7].mxu1  ;;  %6622 = vmatprep.subr.bf16.mxu1 %v7253_v34  ;;  %v5695_v46 = vcombine.high %v32_v42, %v32_v42  ;;  %v7290_v21 = vld [vmem:[%s9198_s1 + $0x930] sm:$0xff]   ;;  %v7295_v26 = vld [vmem:[%s9198_s1 + $0x9b8] sm:$0xff]   ;;  %v7301_v34 = vld [vmem:[%s9198_s1 + $0xac0] sm:$0xff]  }
 0x11b   :  { %v5698_v31 = vcombine.low %v34_v28, %v34_v28  ;;  %v7309_v42 = vld [vmem:[%s9198_s1 + $0xad0] sm:$0xff]  }
 0x11c   :  { %v8430_v32 = vadd.f32 %v6320_v22, %v4489_v27  ;;  %6601 = vmatpush3.bf16.msra.mxu0 %v7254_v35  ;;  %5086 = vmatprep.mubr.bf16.mxu1 %v5695_v46  ;;  %v7291_v22 = vld [vmem:[%s9198_s1 + $0x9b0] sm:$0xff]   ;;  %v7302_v35 = vld [vmem:[%s9198_s1 + $0xa00] sm:$0xff]   ;;  %v7313_v46 = vld [vmem:[%s9198_s1 + $0xad8] sm:$0xff]  }
 0x11d   :  { %6623 = vmatpush3.bf16.msra.mxu1 %v7255_v36  ;;  %6602 = vmatprep.subr.bf16.mxu0 %v7256_v37  ;;  %v33_v27 = vld [vmem:[%s9199_s0 + $0x90] sm:$0xff]  ;;  %v7303_v36 = vld [vmem:[%s9198_s1 + $0xa80] sm:$0xff]   ;;  %v7304_v37 = vld [vmem:[%s9198_s1 + $0xa48] sm:$0xff]  }
 0x11e   :  { %6624 = vmatprep.subr.bf16.mxu1 %v7257_v38  ;;  %v5696_v29 = vcombine.low %v33_v27, %v33_v27  ;;  %v5697_v30 = vcombine.high %v33_v27, %v33_v27  ;;  %v7305_v38 = vld [vmem:[%s9198_s1 + $0xac8] sm:$0xff]   ;;  %v7344_v27 = vld [vmem:[%s9198_s1 + $0xb50] sm:$0xff]  }
 0x11f   :  { %v7345_v28 = vld [vmem:[%s9198_s1 + $0xbd0] sm:$0xff]  }
 0x120   :  { %6603 = vmatpush3.bf16.msra.mxu0 %v7258_v39  ;;  %v7306_v39 = vld [vmem:[%s9198_s1 + $0xa08] sm:$0xff]  }
 0x121   :  { %6625 = vmatpush3.bf16.msra.mxu1 %v7259_v40  ;;  %6632 = vmatprep.subr.bf16.mxu0 %v7264_v47  ;;  %v7307_v40 = vld [vmem:[%s9198_s1 + $0xa88] sm:$0xff]   ;;  %v7314_v47 = vld [vmem:[%s9198_s1 + $0xa18] sm:$0xff]  }
 0x122   :  { %6654 = vmatprep.subr.bf16.mxu1 %v7265_v48  ;;  %v7315_v48 = vld [vmem:[%s9198_s1 + $0xa98] sm:$0xff]  }
 0x123   :  { %5047 = vmatmul.mubr.bf16.vlgmr.msra.gmra.mrb[32].mxu0 %v5692_v43  ;;  %v7310_v43 = vld [vmem:[%s9198_s1 + $0xa10] sm:$0xff]  }
 0x124   :  { %5087 = vmatmul.mubr.bf16.vlgmr.msra.gmra.mrb[32].mxu1 %v5694_v45  ;;  %6633 = vmatpush3.bf16.msra.mxu0 %v7266_v49  ;;  %v7312_v45 = vld [vmem:[%s9198_s1 + $0xa58] sm:$0xff]   ;;  %v7316_v49 = vld [vmem:[%s9198_s1 + $0xa60] sm:$0xff]  }
 0x125   :  { %6655 = vmatpush3.bf16.msra.mxu1 %v7267_v50  ;;  %6634 = vmatprep.subr.bf16.mxu0 %v7268_v51  ;;  %v7317_v50 = vld [vmem:[%s9198_s1 + $0xae0] sm:$0xff]  }
 0x126   :  { %6656 = vmatprep.subr.bf16.mxu1 %v7269_v52  ;;  %5126 = vmatprep.mubr.bf16.mxu0 %v5697_v30  ;;  %v7318_v52 = vld [vmem:[%s9198_s1 + $0xa20] sm:$0xff]   ;;  %v7347_v30 = vld [vmem:[%s9198_s1 + $0xb90] sm:$0xff]  }
 0x127   :  { %5166 = vmatprep.mubr.bf16.mxu1 %v5699_v33  ;;  %v7350_v33 = vld [vmem:[%s9198_s1 + $0xb18] sm:$0xff]  }
 0x128   :  { %6635 = vmatpush3.bf16.msra.mxu0 %v7270_v53 }
 0x129   :  { %6657 = vmatpush3.bf16.msra.mxu1 %v7271_v54  ;;  %6636 = vmatprep.subr.bf16.mxu0 %v7272_v55  ;;  %v7319_v54 = vld [vmem:[%s9198_s1 + $0xaa0] sm:$0xff]  }
 0x12a   :  { %6658 = vmatprep.subr.bf16.mxu1 %v7273_v56 }
 0x12c   :  { %6637 = vmatpush3.bf16.msra.mxu0 %v7274_v57  ;;  %v7320_v57 = vld [vmem:[%s9198_s1 + $0xa68] sm:$0xff]  }
 0x12d   :  { %6659 = vmatpush3.bf16.msra.mxu1 %v7275_v58  ;;  %6638 = vmatprep.subr.bf16.mxu0 %v7276_v59 }
 0x12e   :  { %6660 = vmatprep.subr.bf16.mxu1 %v7277_v60  ;;  %v7321_v60 = vld [vmem:[%s9198_s1 + $0xae8] sm:$0xff]  }
 0x130   :  { %6639 = vmatpush3.bf16.msra.mxu0 %v7278_v61 }
 0x131   :  { %6661 = vmatpush3.bf16.msra.mxu1 %v7279_v62  ;;  %6640 = vmatprep.subr.bf16.mxu0 %v7280_v63  ;;  %v7322_v63 = vld [vmem:[%s9198_s1 + $0xa28] sm:$0xff]  }
 0x132   :  { %6662 = vmatprep.subr.bf16.mxu1 %v7281_v0 }
 0x134   :  { %6641 = vmatpush3.bf16.msra.mxu0 %v7282_v2 }
 0x135   :  { %6663 = vmatpush3.bf16.msra.mxu1 %v7283_v4  ;;  %6642 = vmatprep.subr.bf16.mxu0 %v7284_v8  ;;  %v7324_v4 = vld [vmem:[%s9198_s1 + $0xa70] sm:$0xff]  }
 0x136   :  { %v6340_v1 = vpop.f32.mrb[8].mxu0  ;;  %6664 = vmatprep.subr.bf16.mxu1 %v7285_v10  ;;  %v7327_v8 = vld [vmem:[%s9198_s1 + $0xab0] sm:$0xff]   ;;  %v7329_v10 = vld [vmem:[%s9198_s1 + $0xaf8] sm:$0xff]  }
 0x137   :  { %v6362_v3 = vpop.f32.mrb[8].mxu1  ;;  %v6341_v5 = vpop.f32.mrb[9].mxu0 }
 0x138   :  { %v6342_v6 = vadd.f32 %v6341_v5, %v6340_v1  ;;  %v6363_v7 = vpop.f32.mrb[9].mxu1  ;;  %v6343_v11 = vpop.f32.mrb[10].mxu0  ;;  %6643 = vmatpush3.bf16.msra.mxu0 %v7286_v14  ;;  %v7323_v1 = vld [vmem:[%s9198_s1 + $0xaa8] sm:$0xff]  }
 0x139   :  { %v6364_v9 = vadd.f32 %v6363_v7, %v6362_v3  ;;  %v6365_v13 = vpop.f32.mrb[10].mxu1  ;;  %v6344_v16 = vpop.f32.mrb[11].mxu0  ;;  %6665 = vmatpush3.bf16.msra.mxu1 %v7287_v15  ;;  %6644 = vmatprep.subr.bf16.mxu0 %v7288_v19  ;;  %v7326_v7 = vld [vmem:[%s9198_s1 + $0xa30] sm:$0xff]   ;;  %v7330_v11 = vld [vmem:[%s9198_s1 + $0xa38] sm:$0xff]   ;;  %v7336_v19 = vld [vmem:[%s9198_s1 + $0xb40] sm:$0xff]  }
 0x13a   :  { %v4569_v12 = vadd.f32 %v6342_v6, %v8430_v32  ;;  %v6366_v18 = vpop.f32.mrb[11].mxu1  ;;  %6666 = vmatprep.subr.bf16.mxu1 %v7289_v20  ;;  %v7300_v32 = vld [vmem:[%s9198_s1 + $0xa40] sm:$0xff]   ;;  %v7325_v6 = vld [vmem:[%s9198_s1 + $0xaf0] sm:$0xff]   ;;  %v36_v16 = vld [vmem:[%s9199_s0 + $0xa8] sm:$0xff] }
 0x13b   :  { %v35_v13 = vld [vmem:[%s9199_s0 + $0xa0] sm:$0xff]  ;;  %v5703_v18 = vcombine.high %v36_v16, %v36_v16 }
 0x13c   :  { %v8535_v17 = vadd.f32 %v6364_v9, %v4569_v12  ;;  %6645 = vmatpush3.bf16.msra.mxu0 %v7290_v21  ;;  %v7328_v9 = vld [vmem:[%s9198_s1 + $0xa78] sm:$0xff]   ;;  %v5700_v14 = vcombine.low %v35_v13, %v35_v13  ;;  %v5701_v15 = vcombine.high %v35_v13, %v35_v13  ;;  %v7337_v20 = vld [vmem:[%s9198_s1 + $0xbc0] sm:$0xff]   ;;  %v7380_v13 = vld [vmem:[%s9198_s1 + $0xc50] sm:$0xff]  }
 0x13d   :  { %6667 = vmatpush3.bf16.msra.mxu1 %v7291_v22  ;;  %6646 = vmatprep.subr.bf16.mxu0 %v7292_v23  ;;  %v7331_v12 = vld [vmem:[%s9198_s1 + $0xab8] sm:$0xff]   ;;  %v7338_v21 = vld [vmem:[%s9198_s1 + $0xb00] sm:$0xff]   ;;  %v7340_v23 = vld [vmem:[%s9198_s1 + $0xb48] sm:$0xff]  }
 0x13e   :  { %6668 = vmatprep.subr.bf16.mxu1 %v7293_v24  ;;  %v7339_v22 = vld [vmem:[%s9198_s1 + $0xb80] sm:$0xff]   ;;  %v7341_v24 = vld [vmem:[%s9198_s1 + $0xbc8] sm:$0xff]  }
 0x140   :  { %6647 = vmatpush3.bf16.msra.mxu0 %v7294_v25  ;;  %v7342_v25 = vld [vmem:[%s9198_s1 + $0xb08] sm:$0xff]  }
 0x141   :  { %6669 = vmatpush3.bf16.msra.mxu1 %v7295_v26  ;;  %6676 = vmatprep.subr.bf16.mxu0 %v7300_v32  ;;  %v7343_v26 = vld [vmem:[%s9198_s1 + $0xb88] sm:$0xff]   ;;  %v7349_v32 = vld [vmem:[%s9198_s1 + $0xbd8] sm:$0xff]  }
 0x142   :  { %6698 = vmatprep.subr.bf16.mxu1 %v7301_v34  ;;  %v7351_v34 = vld [vmem:[%s9198_s1 + $0xb98] sm:$0xff]  }
 0x143   :  { %5127 = vmatmul.mubr.bf16.vlgmr.msra.gmra.mrb[36].mxu0 %v5696_v29  ;;  %v7346_v29 = vld [vmem:[%s9198_s1 + $0xb10] sm:$0xff]  }
 0x144   :  { %5167 = vmatmul.mubr.bf16.vlgmr.msra.gmra.mrb[36].mxu1 %v5698_v31  ;;  %6677 = vmatpush3.bf16.msra.mxu0 %v7302_v35  ;;  %v7348_v31 = vld [vmem:[%s9198_s1 + $0xb58] sm:$0xff]   ;;  %v7352_v35 = vld [vmem:[%s9198_s1 + $0xb60] sm:$0xff]  }
 0x145   :  { %6699 = vmatpush3.bf16.msra.mxu1 %v7303_v36  ;;  %6678 = vmatprep.subr.bf16.mxu0 %v7304_v37  ;;  %v7353_v36 = vld [vmem:[%s9198_s1 + $0xbe0] sm:$0xff]  }
 0x146   :  { %6700 = vmatprep.subr.bf16.mxu1 %v7305_v38  ;;  %5206 = vmatprep.mubr.bf16.mxu0 %v5701_v15  ;;  %v7354_v38 = vld [vmem:[%s9198_s1 + $0xb20] sm:$0xff]   ;;  %v7382_v15 = vld [vmem:[%s9198_s1 + $0xc10] sm:$0xff]  }
 0x147   :  { %5246 = vmatprep.mubr.bf16.mxu1 %v5703_v18  ;;  %v7385_v18 = vld [vmem:[%s9198_s1 + $0xcd8] sm:$0xff]  }
 0x148   :  { %6679 = vmatpush3.bf16.msra.mxu0 %v7306_v39 }
 0x149   :  { %6701 = vmatpush3.bf16.msra.mxu1 %v7307_v40  ;;  %6680 = vmatprep.subr.bf16.mxu0 %v7308_v41  ;;  %v7355_v40 = vld [vmem:[%s9198_s1 + $0xba0] sm:$0xff]  }
 0x14a   :  { %6702 = vmatprep.subr.bf16.mxu1 %v7309_v42 }
 0x14c   :  { %6681 = vmatpush3.bf16.msra.mxu0 %v7310_v43  ;;  %v7356_v43 = vld [vmem:[%s9198_s1 + $0xb68] sm:$0xff]  }
 0x14d   :  { %6703 = vmatpush3.bf16.msra.mxu1 %v7311_v44  ;;  %6682 = vmatprep.subr.bf16.mxu0 %v7312_v45 }
 0x14e   :  { %6704 = vmatprep.subr.bf16.mxu1 %v7313_v46  ;;  %v7357_v46 = vld [vmem:[%s9198_s1 + $0xbe8] sm:$0xff]  }
 0x150   :  { %6683 = vmatpush3.bf16.msra.mxu0 %v7314_v47 }
 0x151   :  { %6705 = vmatpush3.bf16.msra.mxu1 %v7315_v48  ;;  %6684 = vmatprep.subr.bf16.mxu0 %v7316_v49  ;;  %v7358_v49 = vld [vmem:[%s9198_s1 + $0xb28] sm:$0xff]  }
 0x152   :  { %6706 = vmatprep.subr.bf16.mxu1 %v7317_v50 }
 0x154   :  { %6685 = vmatpush3.bf16.msra.mxu0 %v7318_v52 }
 0x155   :  { %6707 = vmatpush3.bf16.msra.mxu1 %v7319_v54  ;;  %6686 = vmatprep.subr.bf16.mxu0 %v7320_v57  ;;  %v7360_v54 = vld [vmem:[%s9198_s1 + $0xb70] sm:$0xff]  }
 0x156   :  { %v6384_v51 = vpop.f32.mrb[12].mxu0  ;;  %6708 = vmatprep.subr.bf16.mxu1 %v7321_v60  ;;  %v7362_v57 = vld [vmem:[%s9198_s1 + $0xb30] sm:$0xff]   ;;  %v7365_v60 = vld [vmem:[%s9198_s1 + $0xbf8] sm:$0xff]  }
 0x157   :  { %v6406_v53 = vpop.f32.mrb[12].mxu1  ;;  %v6385_v55 = vpop.f32.mrb[13].mxu0 }
 0x158   :  { %v6407_v56 = vpop.f32.mrb[13].mxu1  ;;  %v6386_v58 = vadd.f32 %v6385_v55, %v6384_v51  ;;  %v6387_v61 = vpop.f32.mrb[14].mxu0  ;;  %6687 = vmatpush3.bf16.msra.mxu0 %v7322_v63  ;;  %v7359_v51 = vld [vmem:[%s9198_s1 + $0xba8] sm:$0xff]   ;;  %v37_v63 = vld [vmem:[%s9199_s0 + $0xb0] sm:$0xff] }
 0x159   :  { %v6408_v59 = vadd.f32 %v6407_v56, %v6406_v53  ;;  %v6409_v62 = vpop.f32.mrb[14].mxu1  ;;  %v6388_v2 = vpop.f32.mrb[15].mxu0  ;;  %6709 = vmatpush3.bf16.msra.mxu1 %v7323_v1  ;;  %6688 = vmatprep.subr.bf16.mxu0 %v7324_v4  ;;  %v7361_v56 = vld [vmem:[%s9198_s1 + $0xbf0] sm:$0xff]   ;;  %v7366_v61 = vld [vmem:[%s9198_s1 + $0xb38] sm:$0xff]   ;;  %v5704_v1 = vcombine.low %v37_v63, %v37_v63 }
 0x15a   :  { %v4649_v0 = vadd.f32 %v6386_v58, %v8535_v17  ;;  %v6410_v3 = vpop.f32.mrb[15].mxu1  ;;  %6710 = vmatprep.subr.bf16.mxu1 %v7325_v6  ;;  %v5702_v17 = vcombine.low %v36_v16, %v36_v16  ;;  %v7363_v58 = vld [vmem:[%s9198_s1 + $0xbb0] sm:$0xff]   ;;  %v7367_v62 = vld [vmem:[%s9198_s1 + $0xbb8] sm:$0xff]   ;;  %v5705_v2 = vcombine.high %v37_v63, %v37_v63  ;;  %v7373_v6 = vld [vmem:[%s9198_s1 + $0xcc0] sm:$0xff]  }
 0x15b   :  { %v7383_v16 = vld [vmem:[%s9198_s1 + $0xc90] sm:$0xff]  }
 0x15c   :  { %v8643_v5 = vadd.f32 %v6408_v59, %v4649_v0  ;;  %6689 = vmatpush3.bf16.msra.mxu0 %v7326_v7  ;;  %v7364_v59 = vld [vmem:[%s9198_s1 + $0xb78] sm:$0xff]   ;;  %v7374_v7 = vld [vmem:[%s9198_s1 + $0xc00] sm:$0xff]   ;;  %v7416_v63 = vld [vmem:[%s9198_s1 + $0xd50] sm:$0xff]  }
 0x15d   :  { %6711 = vmatpush3.bf16.msra.mxu1 %v7327_v8  ;;  %6690 = vmatprep.subr.bf16.mxu0 %v7328_v9  ;;  %v38_v0 = vld [vmem:[%s9199_s0 + $0xb8] sm:$0xff]  ;;  %v7375_v8 = vld [vmem:[%s9198_s1 + $0xc80] sm:$0xff]   ;;  %v7376_v9 = vld [vmem:[%s9198_s1 + $0xc48] sm:$0xff]  }
 0x15e   :  { %6712 = vmatprep.subr.bf16.mxu1 %v7329_v10  ;;  %v5706_v3 = vcombine.low %v38_v0, %v38_v0  ;;  %v5707_v4 = vcombine.high %v38_v0, %v38_v0  ;;  %v7377_v10 = vld [vmem:[%s9198_s1 + $0xcc8] sm:$0xff]   ;;  %v7417_v0 = vld [vmem:[%s9198_s1 + $0xdd0] sm:$0xff]  }
 0x160   :  { %6691 = vmatpush3.bf16.msra.mxu0 %v7330_v11  ;;  %v7378_v11 = vld [vmem:[%s9198_s1 + $0xc08] sm:$0xff]  }
 0x161   :  { %6713 = vmatpush3.bf16.msra.mxu1 %v7331_v12  ;;  %6720 = vmatprep.subr.bf16.mxu0 %v7336_v19  ;;  %v7379_v12 = vld [vmem:[%s9198_s1 + $0xc88] sm:$0xff]   ;;  %v7386_v19 = vld [vmem:[%s9198_s1 + $0xc18] sm:$0xff]  }
 0x162   :  { %6742 = vmatprep.subr.bf16.mxu1 %v7337_v20  ;;  %v7387_v20 = vld [vmem:[%s9198_s1 + $0xc98] sm:$0xff]  }
 0x163   :  { %5207 = vmatmul.mubr.bf16.vlgmr.msra.gmra.mrb[40].mxu0 %v5700_v14  ;;  %v7381_v14 = vld [vmem:[%s9198_s1 + $0xcd0] sm:$0xff]  }
 0x164   :  { %5247 = vmatmul.mubr.bf16.vlgmr.msra.gmra.mrb[40].mxu1 %v5702_v17  ;;  %6721 = vmatpush3.bf16.msra.mxu0 %v7338_v21  ;;  %v7384_v17 = vld [vmem:[%s9198_s1 + $0xc58] sm:$0xff]   ;;  %v7388_v21 = vld [vmem:[%s9198_s1 + $0xc60] sm:$0xff]  }
 0x165   :  { %6743 = vmatpush3.bf16.msra.mxu1 %v7339_v22  ;;  %6722 = vmatprep.subr.bf16.mxu0 %v7340_v23  ;;  %v7389_v22 = vld [vmem:[%s9198_s1 + $0xce0] sm:$0xff]  }
 0x166   :  { %6744 = vmatprep.subr.bf16.mxu1 %v7341_v24  ;;  %5286 = vmatprep.mubr.bf16.mxu0 %v5705_v2  ;;  %v7390_v24 = vld [vmem:[%s9198_s1 + $0xc20] sm:$0xff]   ;;  %v7419_v2 = vld [vmem:[%s9198_s1 + $0xd90] sm:$0xff]  }
 0x167   :  { %5326 = vmatprep.mubr.bf16.mxu1 %v5707_v4  ;;  %v7421_v4 = vld [vmem:[%s9198_s1 + $0xdd8] sm:$0xff]  }
 0x168   :  { %6723 = vmatpush3.bf16.msra.mxu0 %v7342_v25 }
 0x169   :  { %6745 = vmatpush3.bf16.msra.mxu1 %v7343_v26  ;;  %6724 = vmatprep.subr.bf16.mxu0 %v7344_v27  ;;  %v7391_v26 = vld [vmem:[%s9198_s1 + $0xca0] sm:$0xff]  }
 0x16a   :  { %6746 = vmatprep.subr.bf16.mxu1 %v7345_v28 }
 0x16c   :  { %6725 = vmatpush3.bf16.msra.mxu0 %v7346_v29 }
 0x16d   :  { %6747 = vmatpush3.bf16.msra.mxu1 %v7347_v30  ;;  %6726 = vmatprep.subr.bf16.mxu0 %v7348_v31  ;;  %v7392_v30 = vld [vmem:[%s9198_s1 + $0xc68] sm:$0xff]  }
 0x16e   :  { %6748 = vmatprep.subr.bf16.mxu1 %v7349_v32  ;;  %v7393_v32 = vld [vmem:[%s9198_s1 + $0xce8] sm:$0xff]  }
 0x170   :  { %6727 = vmatpush3.bf16.msra.mxu0 %v7350_v33 }
 0x171   :  { %6749 = vmatpush3.bf16.msra.mxu1 %v7351_v34  ;;  %6728 = vmatprep.subr.bf16.mxu0 %v7352_v35 }
 0x172   :  { %6750 = vmatprep.subr.bf16.mxu1 %v7353_v36  ;;  %v7394_v36 = vld [vmem:[%s9198_s1 + $0xc28] sm:$0xff]  }
 0x174   :  { %6729 = vmatpush3.bf16.msra.mxu0 %v7354_v38 }
 0x175   :  { %6751 = vmatpush3.bf16.msra.mxu1 %v7355_v40  ;;  %6730 = vmatprep.subr.bf16.mxu0 %v7356_v43  ;;  %v7398_v43 = vld [vmem:[%s9198_s1 + $0xc30] sm:$0xff]  }
 0x176   :  { %v6428_v37 = vpop.f32.mrb[16].mxu0  ;;  %6752 = vmatprep.subr.bf16.mxu1 %v7357_v46  ;;  %v7401_v46 = vld [vmem:[%s9198_s1 + $0xcf8] sm:$0xff]  }
 0x177   :  { %v6450_v39 = vpop.f32.mrb[16].mxu1  ;;  %v6429_v41 = vpop.f32.mrb[17].mxu0 }
 0x178   :  { %v6451_v42 = vpop.f32.mrb[17].mxu1  ;;  %v6430_v44 = vadd.f32 %v6429_v41, %v6428_v37  ;;  %v6431_v47 = vpop.f32.mrb[18].mxu0  ;;  %6731 = vmatpush3.bf16.msra.mxu0 %v7358_v49  ;;  %v7395_v37 = vld [vmem:[%s9198_s1 + $0xca8] sm:$0xff]   ;;  %v7396_v41 = vld [vmem:[%s9198_s1 + $0xc70] sm:$0xff]   ;;  %v39_v49 = vld [vmem:[%s9199_s0 + $0xc0] sm:$0xff] }
 0x179   :  { %v6452_v45 = vadd.f32 %v6451_v42, %v6450_v39  ;;  %v6453_v48 = vpop.f32.mrb[18].mxu1  ;;  %v6432_v52 = vpop.f32.mrb[19].mxu0  ;;  %6753 = vmatpush3.bf16.msra.mxu1 %v7359_v51  ;;  %6732 = vmatprep.subr.bf16.mxu0 %v7360_v54  ;;  %v7397_v42 = vld [vmem:[%s9198_s1 + $0xcf0] sm:$0xff]   ;;  %v7402_v47 = vld [vmem:[%s9198_s1 + $0xc38] sm:$0xff]   ;;  %v5708_v51 = vcombine.low %v39_v49, %v39_v49  ;;  %v7408_v54 = vld [vmem:[%s9198_s1 + $0xd40] sm:$0xff]  }
 0x17a   :  { %v4729_v50 = vadd.f32 %v6430_v44, %v8643_v5  ;;  %v6454_v53 = vpop.f32.mrb[19].mxu1  ;;  %6754 = vmatprep.subr.bf16.mxu1 %v7361_v56  ;;  %v7372_v5 = vld [vmem:[%s9198_s1 + $0xc40] sm:$0xff]   ;;  %v7399_v44 = vld [vmem:[%s9198_s1 + $0xcb0] sm:$0xff]   ;;  %v7403_v48 = vld [vmem:[%s9198_s1 + $0xcb8] sm:$0xff]   ;;  %v5709_v52 = vcombine.high %v39_v49, %v39_v49 }
 0x17b   :  { %v7409_v56 = vld [vmem:[%s9198_s1 + $0xdc0] sm:$0xff]   ;;  %v7452_v49 = vld [vmem:[%s9198_s1 + $0xe50] sm:$0xff]  }
 0x17c   :  { %v8748_v55 = vadd.f32 %v6452_v45, %v4729_v50  ;;  %6733 = vmatpush3.bf16.msra.mxu0 %v7362_v57  ;;  %v7400_v45 = vld [vmem:[%s9198_s1 + $0xc78] sm:$0xff]   ;;  %v40_v50 = vld [vmem:[%s9199_s0 + $0xc8] sm:$0xff]  ;;  %v7410_v57 = vld [vmem:[%s9198_s1 + $0xd00] sm:$0xff]  }
 0x17d   :  { %6755 = vmatpush3.bf16.msra.mxu1 %v7363_v58  ;;  %6734 = vmatprep.subr.bf16.mxu0 %v7364_v59  ;;  %v5710_v53 = vcombine.low %v40_v50, %v40_v50  ;;  %v7411_v58 = vld [vmem:[%s9198_s1 + $0xd80] sm:$0xff]   ;;  %v7412_v59 = vld [vmem:[%s9198_s1 + $0xd48] sm:$0xff]  }
 0x17e   :  { %6756 = vmatprep.subr.bf16.mxu1 %v7365_v60  ;;  %v7413_v60 = vld [vmem:[%s9198_s1 + $0xdc8] sm:$0xff]  }
 0x180   :  { %6735 = vmatpush3.bf16.msra.mxu0 %v7366_v61  ;;  %v7414_v61 = vld [vmem:[%s9198_s1 + $0xd08] sm:$0xff]  }
 0x181   :  { %6757 = vmatpush3.bf16.msra.mxu1 %v7367_v62  ;;  %6764 = vmatprep.subr.bf16.mxu0 %v7372_v5  ;;  %v7415_v62 = vld [vmem:[%s9198_s1 + $0xd88] sm:$0xff]   ;;  %v7422_v5 = vld [vmem:[%s9198_s1 + $0xd18] sm:$0xff]  }
 0x182   :  { %6786 = vmatprep.subr.bf16.mxu1 %v7373_v6  ;;  %v7423_v6 = vld [vmem:[%s9198_s1 + $0xd98] sm:$0xff]  }
 0x183   :  { %5287 = vmatmul.mubr.bf16.vlgmr.msra.gmra.mrb[44].mxu0 %v5704_v1  ;;  %v7418_v1 = vld [vmem:[%s9198_s1 + $0xd10] sm:$0xff]  }
 0x184   :  { %5327 = vmatmul.mubr.bf16.vlgmr.msra.gmra.mrb[44].mxu1 %v5706_v3  ;;  %6765 = vmatpush3.bf16.msra.mxu0 %v7374_v7  ;;  %v7420_v3 = vld [vmem:[%s9198_s1 + $0xd58] sm:$0xff]   ;;  %v7424_v7 = vld [vmem:[%s9198_s1 + $0xd60] sm:$0xff]  }
 0x185   :  { %6787 = vmatpush3.bf16.msra.mxu1 %v7375_v8  ;;  %6766 = vmatprep.subr.bf16.mxu0 %v7376_v9  ;;  %v7425_v8 = vld [vmem:[%s9198_s1 + $0xde0] sm:$0xff]  }
 0x186   :  { %6788 = vmatprep.subr.bf16.mxu1 %v7377_v10  ;;  %5366 = vmatprep.mubr.bf16.mxu0 %v5709_v52  ;;  %v7426_v10 = vld [vmem:[%s9198_s1 + $0xd20] sm:$0xff]   ;;  %v7455_v52 = vld [vmem:[%s9198_s1 + $0xe90] sm:$0xff]  }
 0x188   :  { %6767 = vmatpush3.bf16.msra.mxu0 %v7378_v11 }
 0x189   :  { %6789 = vmatpush3.bf16.msra.mxu1 %v7379_v12  ;;  %6768 = vmatprep.subr.bf16.mxu0 %v7380_v13  ;;  %v7427_v12 = vld [vmem:[%s9198_s1 + $0xda0] sm:$0xff]  }
 0x18a   :  { %6790 = vmatprep.subr.bf16.mxu1 %v7381_v14 }
 0x18c   :  { %6769 = vmatpush3.bf16.msra.mxu0 %v7382_v15  ;;  %v7428_v15 = vld [vmem:[%s9198_s1 + $0xd68] sm:$0xff]  }
 0x18d   :  { %6791 = vmatpush3.bf16.msra.mxu1 %v7383_v16  ;;  %6770 = vmatprep.subr.bf16.mxu0 %v7384_v17 }
 0x18e   :  { %6792 = vmatprep.subr.bf16.mxu1 %v7385_v18  ;;  %v7429_v18 = vld [vmem:[%s9198_s1 + $0xde8] sm:$0xff]  }
 0x190   :  { %6771 = vmatpush3.bf16.msra.mxu0 %v7386_v19 }
 0x191   :  { %6793 = vmatpush3.bf16.msra.mxu1 %v7387_v20  ;;  %6772 = vmatprep.subr.bf16.mxu0 %v7388_v21  ;;  %v7430_v21 = vld [vmem:[%s9198_s1 + $0xd28] sm:$0xff]  }
 0x192   :  { %6794 = vmatprep.subr.bf16.mxu1 %v7389_v22 }
 0x194   :  { %6773 = vmatpush3.bf16.msra.mxu0 %v7390_v24 }
 0x195   :  { %6795 = vmatpush3.bf16.msra.mxu1 %v7391_v26  ;;  %6774 = vmatprep.subr.bf16.mxu0 %v7392_v30  ;;  %v7432_v26 = vld [vmem:[%s9198_s1 + $0xd70] sm:$0xff]  }
 0x196   :  { %v6472_v23 = vpop.f32.mrb[20].mxu0  ;;  %6796 = vmatprep.subr.bf16.mxu1 %v7393_v32  ;;  %v7435_v30 = vld [vmem:[%s9198_s1 + $0xdb0] sm:$0xff]   ;;  %v7437_v32 = vld [vmem:[%s9198_s1 + $0xdf8] sm:$0xff]  }
 0x197   :  { %v6494_v25 = vpop.f32.mrb[20].mxu1  ;;  %v6473_v27 = vpop.f32.mrb[21].mxu0 }
 0x198   :  { %v6474_v28 = vadd.f32 %v6473_v27, %v6472_v23  ;;  %v6495_v29 = vpop.f32.mrb[21].mxu1  ;;  %v6475_v33 = vpop.f32.mrb[22].mxu0  ;;  %6775 = vmatpush3.bf16.msra.mxu0 %v7394_v36  ;;  %v7431_v23 = vld [vmem:[%s9198_s1 + $0xda8] sm:$0xff]  }
 0x199   :  { %v6496_v31 = vadd.f32 %v6495_v29, %v6494_v25  ;;  %v6497_v35 = vpop.f32.mrb[22].mxu1  ;;  %v6476_v38 = vpop.f32.mrb[23].mxu0  ;;  %6797 = vmatpush3.bf16.msra.mxu1 %v7395_v37  ;;  %6776 = vmatprep.subr.bf16.mxu0 %v7396_v41  ;;  %v7434_v29 = vld [vmem:[%s9198_s1 + $0xd30] sm:$0xff]   ;;  %v7438_v33 = vld [vmem:[%s9198_s1 + $0xd38] sm:$0xff]   ;;  %v7444_v41 = vld [vmem:[%s9198_s1 + $0xe40] sm:$0xff]  }
 0x19a   :  { %v4809_v34 = vadd.f32 %v6474_v28, %v8748_v55  ;;  %v6498_v40 = vpop.f32.mrb[23].mxu1  ;;  %6798 = vmatprep.subr.bf16.mxu1 %v7397_v42  ;;  %v5711_v55 = vcombine.high %v40_v50, %v40_v50  ;;  %v7433_v28 = vld [vmem:[%s9198_s1 + $0xdf0] sm:$0xff]   ;;  %v42_v38 = vld [vmem:[%s9199_s0 + $0xd8] sm:$0xff]  ;;  %v7445_v42 = vld [vmem:[%s9198_s1 + $0xec0] sm:$0xff]  }
 0x19b   :  { %v41_v35 = vld [vmem:[%s9199_s0 + $0xd0] sm:$0xff]  ;;  %v5715_v40 = vcombine.high %v42_v38, %v42_v38 }
 0x19c   :  { %v8850_v39 = vadd.f32 %v6496_v31, %v4809_v34  ;;  %6777 = vmatpush3.bf16.msra.mxu0 %v7398_v43  ;;  %5406 = vmatprep.mubr.bf16.mxu1 %v5711_v55  ;;  %v7436_v31 = vld [vmem:[%s9198_s1 + $0xd78] sm:$0xff]   ;;  %v5712_v36 = vcombine.low %v41_v35, %v41_v35  ;;  %v5713_v37 = vcombine.high %v41_v35, %v41_v35  ;;  %v7446_v43 = vld [vmem:[%s9198_s1 + $0xe00] sm:$0xff]   ;;  %v7453_v50 = vld [vmem:[%s9198_s1 + $0xed0] sm:$0xff]  }
 0x19d   :  { %6799 = vmatpush3.bf16.msra.mxu1 %v7399_v44  ;;  %6778 = vmatprep.subr.bf16.mxu0 %v7400_v45  ;;  %v7439_v34 = vld [vmem:[%s9198_s1 + $0xdb8] sm:$0xff]   ;;  %v7447_v44 = vld [vmem:[%s9198_s1 + $0xe80] sm:$0xff]   ;;  %v7448_v45 = vld [vmem:[%s9198_s1 + $0xe48] sm:$0xff]  }
 0x19e   :  { %6800 = vmatprep.subr.bf16.mxu1 %v7401_v46  ;;  %v7449_v46 = vld [vmem:[%s9198_s1 + $0xec8] sm:$0xff]   ;;  %v7458_v55 = vld [vmem:[%s9198_s1 + $0xe18] sm:$0xff]   ;;  %v7488_v35 = vld [vmem:[%s9198_s1 + $0xf50] sm:$0xff]  }
 0x1a0   :  { %6779 = vmatpush3.bf16.msra.mxu0 %v7402_v47  ;;  %v7450_v47 = vld [vmem:[%s9198_s1 + $0xe08] sm:$0xff]  }
 0x1a1   :  { %6801 = vmatpush3.bf16.msra.mxu1 %v7403_v48  ;;  %6808 = vmatprep.subr.bf16.mxu0 %v7408_v54  ;;  %v7451_v48 = vld [vmem:[%s9198_s1 + $0xe88] sm:$0xff]   ;;  %v7457_v54 = vld [vmem:[%s9198_s1 + $0xed8] sm:$0xff]  }
 0x1a2   :  { %6830 = vmatprep.subr.bf16.mxu1 %v7409_v56  ;;  %v7459_v56 = vld [vmem:[%s9198_s1 + $0xe98] sm:$0xff]  }
 0x1a3   :  { %5367 = vmatmul.mubr.bf16.vlgmr.msra.gmra.mrb[48].mxu0 %v5708_v51  ;;  %v7454_v51 = vld [vmem:[%s9198_s1 + $0xe10] sm:$0xff]  }
 0x1a4   :  { %5407 = vmatmul.mubr.bf16.vlgmr.msra.gmra.mrb[48].mxu1 %v5710_v53  ;;  %6809 = vmatpush3.bf16.msra.mxu0 %v7410_v57  ;;  %v7456_v53 = vld [vmem:[%s9198_s1 + $0xe58] sm:$0xff]   ;;  %v7460_v57 = vld [vmem:[%s9198_s1 + $0xe60] sm:$0xff]  }
 0x1a5   :  { %6831 = vmatpush3.bf16.msra.mxu1 %v7411_v58  ;;  %6810 = vmatprep.subr.bf16.mxu0 %v7412_v59  ;;  %v7461_v58 = vld [vmem:[%s9198_s1 + $0xee0] sm:$0xff]  }
 0x1a6   :  { %6832 = vmatprep.subr.bf16.mxu1 %v7413_v60  ;;  %5446 = vmatprep.mubr.bf16.mxu0 %v5713_v37  ;;  %v7462_v60 = vld [vmem:[%s9198_s1 + $0xe20] sm:$0xff]   ;;  %v7490_v37 = vld [vmem:[%s9198_s1 + $0xf10] sm:$0xff]  }
 0x1a7   :  { %5486 = vmatprep.mubr.bf16.mxu1 %v5715_v40  ;;  %v7493_v40 = vld [vmem:[%s9198_s1 + $0xfd8] sm:$0xff]  }
 0x1a8   :  { %6811 = vmatpush3.bf16.msra.mxu0 %v7414_v61 }
 0x1a9   :  { %6833 = vmatpush3.bf16.msra.mxu1 %v7415_v62  ;;  %6812 = vmatprep.subr.bf16.mxu0 %v7416_v63  ;;  %v7463_v62 = vld [vmem:[%s9198_s1 + $0xea0] sm:$0xff]  }
 0x1aa   :  { %6834 = vmatprep.subr.bf16.mxu1 %v7417_v0 }
 0x1ac   :  { %6813 = vmatpush3.bf16.msra.mxu0 %v7418_v1  ;;  %v7464_v1 = vld [vmem:[%s9198_s1 + $0xe68] sm:$0xff]  }
 0x1ad   :  { %6835 = vmatpush3.bf16.msra.mxu1 %v7419_v2  ;;  %6814 = vmatprep.subr.bf16.mxu0 %v7420_v3 }
 0x1ae   :  { %6836 = vmatprep.subr.bf16.mxu1 %v7421_v4  ;;  %v7465_v4 = vld [vmem:[%s9198_s1 + $0xee8] sm:$0xff]  }
 0x1b0   :  { %6815 = vmatpush3.bf16.msra.mxu0 %v7422_v5 }
 0x1b1   :  { %6837 = vmatpush3.bf16.msra.mxu1 %v7423_v6  ;;  %6816 = vmatprep.subr.bf16.mxu0 %v7424_v7  ;;  %v7466_v7 = vld [vmem:[%s9198_s1 + $0xe28] sm:$0xff]  }
 0x1b2   :  { %6838 = vmatprep.subr.bf16.mxu1 %v7425_v8 }
 0x1b4   :  { %6817 = vmatpush3.bf16.msra.mxu0 %v7426_v10 }
 0x1b5   :  { %6839 = vmatpush3.bf16.msra.mxu1 %v7427_v12  ;;  %6818 = vmatprep.subr.bf16.mxu0 %v7428_v15  ;;  %v7468_v12 = vld [vmem:[%s9198_s1 + $0xe70] sm:$0xff]  }
 0x1b6   :  { %v6516_v9 = vpop.f32.mrb[24].mxu0  ;;  %6840 = vmatprep.subr.bf16.mxu1 %v7429_v18  ;;  %v7470_v15 = vld [vmem:[%s9198_s1 + $0xe30] sm:$0xff]   ;;  %v7473_v18 = vld [vmem:[%s9198_s1 + $0xef8] sm:$0xff]  }
 0x1b7   :  { %v6538_v11 = vpop.f32.mrb[24].mxu1  ;;  %v6517_v13 = vpop.f32.mrb[25].mxu0 }
 0x1b8   :  { %v6539_v14 = vpop.f32.mrb[25].mxu1  ;;  %v6518_v16 = vadd.f32 %v6517_v13, %v6516_v9  ;;  %v6519_v19 = vpop.f32.mrb[26].mxu0  ;;  %6819 = vmatpush3.bf16.msra.mxu0 %v7430_v21  ;;  %v7467_v9 = vld [vmem:[%s9198_s1 + $0xea8] sm:$0xff]   ;;  %v43_v21 = vld [vmem:[%s9199_s0 + $0xe0] sm:$0xff] }
 0x1b9   :  { %v6540_v17 = vadd.f32 %v6539_v14, %v6538_v11  ;;  %v6541_v20 = vpop.f32.mrb[26].mxu1  ;;  %v6520_v24 = vpop.f32.mrb[27].mxu0  ;;  %6841 = vmatpush3.bf16.msra.mxu1 %v7431_v23  ;;  %6820 = vmatprep.subr.bf16.mxu0 %v7432_v26  ;;  %v7469_v14 = vld [vmem:[%s9198_s1 + $0xef0] sm:$0xff]   ;;  %v7474_v19 = vld [vmem:[%s9198_s1 + $0xe38] sm:$0xff]   ;;  %v5716_v23 = vcombine.low %v43_v21, %v43_v21 }
 0x1ba   :  { %v4889_v22 = vadd.f32 %v6518_v16, %v8850_v39  ;;  %v6542_v25 = vpop.f32.mrb[27].mxu1  ;;  %6842 = vmatprep.subr.bf16.mxu1 %v7433_v28  ;;  %v5714_v39 = vcombine.low %v42_v38, %v42_v38  ;;  %v7471_v16 = vld [vmem:[%s9198_s1 + $0xeb0] sm:$0xff]   ;;  %v7475_v20 = vld [vmem:[%s9198_s1 + $0xeb8] sm:$0xff]   ;;  %v5717_v24 = vcombine.high %v43_v21, %v43_v21  ;;  %v7481_v28 = vld [vmem:[%s9198_s1 + $0xfc0] sm:$0xff]  }
 0x1bb   :  { %v7491_v38 = vld [vmem:[%s9198_s1 + $0xf90] sm:$0xff]  }
 0x1bc   :  { %v8958_v27 = vadd.f32 %v6540_v17, %v4889_v22  ;;  %6821 = vmatpush3.bf16.msra.mxu0 %v7434_v29  ;;  %v7472_v17 = vld [vmem:[%s9198_s1 + $0xe78] sm:$0xff]   ;;  %v44_v22 = vld [vmem:[%s9199_s0 + $0xe8] sm:$0xff]  ;;  %v7482_v29 = vld [vmem:[%s9198_s1 + $0xf00] sm:$0xff]  }
 0x1bd   :  { %6843 = vmatpush3.bf16.msra.mxu1 %v7435_v30  ;;  %6822 = vmatprep.subr.bf16.mxu0 %v7436_v31  ;;  %v5718_v25 = vcombine.low %v44_v22, %v44_v22  ;;  %v5719_v26 = vcombine.high %v44_v22, %v44_v22  ;;  %v7483_v30 = vld [vmem:[%s9198_s1 + $0xf80] sm:$0xff]   ;;  %v7484_v31 = vld [vmem:[%s9198_s1 + $0xf48] sm:$0xff]  }
 0x1be   :  { %6844 = vmatprep.subr.bf16.mxu1 %v7437_v32  ;;  %v7485_v32 = vld [vmem:[%s9198_s1 + $0xfc8] sm:$0xff]  }
 0x1c0   :  { %6823 = vmatpush3.bf16.msra.mxu0 %v7438_v33  ;;  %v7486_v33 = vld [vmem:[%s9198_s1 + $0xf08] sm:$0xff]  }
 0x1c1   :  { %6845 = vmatpush3.bf16.msra.mxu1 %v7439_v34  ;;  %6852 = vmatprep.subr.bf16.mxu0 %v7444_v41  ;;  %v7487_v34 = vld [vmem:[%s9198_s1 + $0xf88] sm:$0xff]   ;;  %v7494_v41 = vld [vmem:[%s9198_s1 + $0xf18] sm:$0xff]  }
 0x1c2   :  { %6874 = vmatprep.subr.bf16.mxu1 %v7445_v42  ;;  %v7495_v42 = vld [vmem:[%s9198_s1 + $0xf98] sm:$0xff]  }
 0x1c3   :  { %5447 = vmatmul.mubr.bf16.vlgmr.msra.gmra.mrb[52].mxu0 %v5712_v36  ;;  %v7489_v36 = vld [vmem:[%s9198_s1 + $0xfd0] sm:$0xff]  }
 0x1c4   :  { %5487 = vmatmul.mubr.bf16.vlgmr.msra.gmra.mrb[52].mxu1 %v5714_v39  ;;  %6853 = vmatpush3.bf16.msra.mxu0 %v7446_v43  ;;  %v7492_v39 = vld [vmem:[%s9198_s1 + $0xf58] sm:$0xff]   ;;  %v7496_v43 = vld [vmem:[%s9198_s1 + $0xf60] sm:$0xff]  }
 0x1c5   :  { %6875 = vmatpush3.bf16.msra.mxu1 %v7447_v44  ;;  %6854 = vmatprep.subr.bf16.mxu0 %v7448_v45  ;;  %v7497_v44 = vld [vmem:[%s9198_s1 + $0xfe0] sm:$0xff]  }
 0x1c6   :  { %6876 = vmatprep.subr.bf16.mxu1 %v7449_v46  ;;  %5526 = vmatprep.mubr.bf16.mxu0 %v5717_v24  ;;  %v7498_v45 = vld [vmem:[%s9198_s1 + $0xf20] sm:$0xff]  }
 0x1c7   :  { %5566 = vmatprep.mubr.bf16.mxu1 %v5719_v26 }
 0x1c8   :  { %6855 = vmatpush3.bf16.msra.mxu0 %v7450_v47  ;;  %v7499_v47 = vld [vmem:[%s9198_s1 + $0xfa0] sm:$0xff]  }
 0x1c9   :  { %6877 = vmatpush3.bf16.msra.mxu1 %v7451_v48  ;;  %6856 = vmatprep.subr.bf16.mxu0 %v7452_v49 }
 0x1ca   :  { %6878 = vmatprep.subr.bf16.mxu1 %v7453_v50 }
 0x1cc   :  { %6857 = vmatpush3.bf16.msra.mxu0 %v7454_v51 }
 0x1cd   :  { %6879 = vmatpush3.bf16.msra.mxu1 %v7455_v52  ;;  %6858 = vmatprep.subr.bf16.mxu0 %v7456_v53  ;;  %v7500_v53 = vld [vmem:[%s9198_s1 + $0xf68] sm:$0xff]  }
 0x1ce   :  { %6880 = vmatprep.subr.bf16.mxu1 %v7457_v54 }
 0x1d0   :  { %6859 = vmatpush3.bf16.msra.mxu0 %v7458_v55  ;;  %v7501_v55 = vld [vmem:[%s9198_s1 + $0xfe8] sm:$0xff]  }
 0x1d1   :  { %6881 = vmatpush3.bf16.msra.mxu1 %v7459_v56  ;;  %6860 = vmatprep.subr.bf16.mxu0 %v7460_v57 }
 0x1d2   :  { %6882 = vmatprep.subr.bf16.mxu1 %v7461_v58  ;;  %v7502_v58 = vld [vmem:[%s9198_s1 + $0xf28] sm:$0xff]  }
 0x1d4   :  { %6861 = vmatpush3.bf16.msra.mxu0 %v7462_v60  ;;  %v7503_v60 = vld [vmem:[%s9198_s1 + $0xfa8] sm:$0xff]  }
 0x1d5   :  { %6883 = vmatpush3.bf16.msra.mxu1 %v7463_v62  ;;  %6862 = vmatprep.subr.bf16.mxu0 %v7464_v1  ;;  %v7506_v1 = vld [vmem:[%s9198_s1 + $0xf30] sm:$0xff]  }
 0x1d6   :  { %v6560_v59 = vpop.f32.mrb[28].mxu0  ;;  %6884 = vmatprep.subr.bf16.mxu1 %v7465_v4  ;;  %v7509_v4 = vld [vmem:[%s9198_s1 + $0xff8] sm:$0xff]  }
 0x1d7   :  { %v6582_v61 = vpop.f32.mrb[28].mxu1  ;;  %v6561_v63 = vpop.f32.mrb[29].mxu0 }
 0x1d8   :  { %v6583_v0 = vpop.f32.mrb[29].mxu1  ;;  %v6562_v2 = vadd.f32 %v6561_v63, %v6560_v59  ;;  %v6563_v5 = vpop.f32.mrb[30].mxu0  ;;  %6863 = vmatpush3.bf16.msra.mxu0 %v7466_v7  ;;  %v7504_v63 = vld [vmem:[%s9198_s1 + $0xf70] sm:$0xff]  }
 0x1d9   :  { %v6584_v3 = vadd.f32 %v6583_v0, %v6582_v61  ;;  %v6585_v6 = vpop.f32.mrb[30].mxu1  ;;  %v6564_v10 = vpop.f32.mrb[31].mxu0  ;;  %6885 = vmatpush3.bf16.msra.mxu1 %v7467_v9  ;;  %6864 = vmatprep.subr.bf16.mxu0 %v7468_v12  ;;  %v7505_v0 = vld [vmem:[%s9198_s1 + $0xff0] sm:$0xff]   ;;  %v7510_v5 = vld [vmem:[%s9198_s1 + $0xf38] sm:$0xff]  }
 0x1da   :  { %v4969_v8 = vadd.f32 %v6562_v2, %v8958_v27  ;;  %v6586_v11 = vpop.f32.mrb[31].mxu1  ;;  %6886 = vmatprep.subr.bf16.mxu1 %v7469_v14  ;;  %v7480_v27 = vld [vmem:[%s9198_s1 + $0xf40] sm:$0xff]   ;;  %v7507_v2 = vld [vmem:[%s9198_s1 + $0xfb0] sm:$0xff]   ;;  %v7511_v6 = vld [vmem:[%s9198_s1 + $0xfb8] sm:$0xff]  }
 0x1db   :  { %v45_v7 = vld [vmem:[%s9199_s0 + $0xf0] sm:$0xff] }
 0x1dc   :  { %v9063_v13 = vadd.f32 %v6584_v3, %v4969_v8  ;;  %6865 = vmatpush3.bf16.msra.mxu0 %v7470_v15  ;;  %v7508_v3 = vld [vmem:[%s9198_s1 + $0xf78] sm:$0xff]   ;;  %v5720_v9 = vcombine.low %v45_v7, %v45_v7  ;;  %v5721_v10 = vcombine.high %v45_v7, %v45_v7 }
 0x1dd   :  { %6887 = vmatpush3.bf16.msra.mxu1 %v7471_v16  ;;  %6866 = vmatprep.subr.bf16.mxu0 %v7472_v17  ;;  %v46_v8 = vld [vmem:[%s9199_s0 + $0xf8] sm:$0xff] }
 0x1de   :  { %6888 = vmatprep.subr.bf16.mxu1 %v7473_v18  ;;  %v5722_v11 = vcombine.low %v46_v8, %v46_v8  ;;  %v5723_v12 = vcombine.high %v46_v8, %v46_v8 }
 0x1e0   :  { %6867 = vmatpush3.bf16.msra.mxu0 %v7474_v19 }
 0x1e1   :  { %6889 = vmatpush3.bf16.msra.mxu1 %v7475_v20  ;;  %6896 = vmatprep.subr.bf16.mxu0 %v7480_v27 }
 0x1e2   :  { %6918 = vmatprep.subr.bf16.mxu1 %v7481_v28 }
 0x1e3   :  { %5527 = vmatmul.mubr.bf16.vlgmr.msra.gmra.mrb[56].mxu0 %v5716_v23 }
 0x1e4   :  { %5567 = vmatmul.mubr.bf16.vlgmr.msra.gmra.mrb[56].mxu1 %v5718_v25  ;;  %6897 = vmatpush3.bf16.msra.mxu0 %v7482_v29 }
 0x1e5   :  { %6919 = vmatpush3.bf16.msra.mxu1 %v7483_v30  ;;  %6898 = vmatprep.subr.bf16.mxu0 %v7484_v31 }
 0x1e6   :  { %6920 = vmatprep.subr.bf16.mxu1 %v7485_v32  ;;  %5606 = vmatprep.mubr.bf16.mxu0 %v5721_v10 }
 0x1e7   :  { %5646 = vmatprep.mubr.bf16.mxu1 %v5723_v12 }
 0x1e8   :  { %6899 = vmatpush3.bf16.msra.mxu0 %v7486_v33 }
 0x1e9   :  { %6921 = vmatpush3.bf16.msra.mxu1 %v7487_v34  ;;  %6900 = vmatprep.subr.bf16.mxu0 %v7488_v35 }
 0x1ea   :  { %6922 = vmatprep.subr.bf16.mxu1 %v7489_v36 }
 0x1ec   :  { %6901 = vmatpush3.bf16.msra.mxu0 %v7490_v37 }
 0x1ed   :  { %6923 = vmatpush3.bf16.msra.mxu1 %v7491_v38  ;;  %6902 = vmatprep.subr.bf16.mxu0 %v7492_v39 }
 0x1ee   :  { %6924 = vmatprep.subr.bf16.mxu1 %v7493_v40 }
 0x1f0   :  { %6903 = vmatpush3.bf16.msra.mxu0 %v7494_v41 }
 0x1f1   :  { %6925 = vmatpush3.bf16.msra.mxu1 %v7495_v42  ;;  %6904 = vmatprep.subr.bf16.mxu0 %v7496_v43 }
 0x1f2   :  { %6926 = vmatprep.subr.bf16.mxu1 %v7497_v44 }
 0x1f4   :  { %6905 = vmatpush3.bf16.msra.mxu0 %v7498_v45 }
 0x1f5   :  { %6927 = vmatpush3.bf16.msra.mxu1 %v7499_v47  ;;  %6906 = vmatprep.subr.bf16.mxu0 %v7500_v53 }
 0x1f6   :  { %v6604_v46 = vpop.f32.mrb[32].mxu0  ;;  %6928 = vmatprep.subr.bf16.mxu1 %v7501_v55 }
 0x1f7   :  { %v6626_v48 = vpop.f32.mrb[32].mxu1  ;;  %v6605_v49 = vpop.f32.mrb[33].mxu0 }
 0x1f8   :  { %v6627_v50 = vpop.f32.mrb[33].mxu1  ;;  %v6606_v51 = vadd.f32 %v6605_v49, %v6604_v46  ;;  %v6607_v54 = vpop.f32.mrb[34].mxu0  ;;  %6907 = vmatpush3.bf16.msra.mxu0 %v7502_v58 }
 0x1f9   :  { %v6628_v52 = vadd.f32 %v6627_v50, %v6626_v48  ;;  %v6629_v56 = vpop.f32.mrb[34].mxu1  ;;  %v6608_v59 = vpop.f32.mrb[35].mxu0  ;;  %6929 = vmatpush3.bf16.msra.mxu1 %v7503_v60  ;;  %6908 = vmatprep.subr.bf16.mxu0 %v7504_v63 }
 0x1fa   :  { %v5049_v57 = vadd.f32 %v6606_v51, %v9063_v13  ;;  %v6630_v61 = vpop.f32.mrb[35].mxu1  ;;  %6930 = vmatprep.subr.bf16.mxu1 %v7505_v0 }
 0x1fc   :  { %v5089_v62 = vadd.f32 %v6628_v52, %v5049_v57  ;;  %6909 = vmatpush3.bf16.msra.mxu0 %v7506_v1 }
 0x1fd   :  { %6931 = vmatpush3.bf16.msra.mxu1 %v7507_v2  ;;  %6910 = vmatprep.subr.bf16.mxu0 %v7508_v3 }
 0x1fe   :  { %6932 = vmatprep.subr.bf16.mxu1 %v7509_v4 }
 0x200   :  { %6911 = vmatpush3.bf16.msra.mxu0 %v7510_v5 }
 0x201   :  { %6933 = vmatpush3.bf16.msra.mxu1 %v7511_v6 }
 0x203   :  { %5607 = vmatmul.mubr.bf16.vlgmr.msra.gmra.mrb[60].mxu0 %v5720_v9 }
 0x204   :  { %5647 = vmatmul.mubr.bf16.vlgmr.msra.gmra.mrb[60].mxu1 %v5722_v11 }
 0x216   :  { %v6648_v13 = vpop.f32.mrb[36].mxu0 }
 0x217   :  { %v6670_v14 = vpop.f32.mrb[36].mxu1  ;;  %v6649_v15 = vpop.f32.mrb[37].mxu0 }
 0x218   :  { %v6650_v16 = vadd.f32 %v6649_v15, %v6648_v13  ;;  %v6671_v17 = vpop.f32.mrb[37].mxu1  ;;  %v6651_v18 = vpop.f32.mrb[38].mxu0 }
 0x219   :  { %v6672_v19 = vadd.f32 %v6671_v17, %v6670_v14  ;;  %v6673_v20 = vpop.f32.mrb[38].mxu1  ;;  %v6652_v21 = vpop.f32.mrb[39].mxu0 }
 0x21a   :  { %v5129_v22 = vadd.f32 %v6650_v16, %v5089_v62  ;;  %v6674_v23 = vpop.f32.mrb[39].mxu1 }
 0x21c   :  { %v5169_v24 = vadd.f32 %v6672_v19, %v5129_v22 }
 0x236   :  { %v6692_v25 = vpop.f32.mrb[40].mxu0 }
 0x237   :  { %v6714_v26 = vpop.f32.mrb[40].mxu1  ;;  %v6693_v27 = vpop.f32.mrb[41].mxu0 }
 0x238   :  { %v6715_v28 = vpop.f32.mrb[41].mxu1  ;;  %v6694_v29 = vadd.f32 %v6693_v27, %v6692_v25  ;;  %v6695_v31 = vpop.f32.mrb[42].mxu0 }
 0x239   :  { %v6716_v30 = vadd.f32 %v6715_v28, %v6714_v26  ;;  %v6717_v32 = vpop.f32.mrb[42].mxu1  ;;  %v6696_v33 = vpop.f32.mrb[43].mxu0 }
 0x23a   :  { %v6718_v34 = vpop.f32.mrb[43].mxu1  ;;  %v5209_v35 = vadd.f32 %v6694_v29, %v5169_v24 }
 0x23c   :  { %v5249_v36 = vadd.f32 %v6716_v30, %v5209_v35 }
 0x256   :  { %v6736_v37 = vpop.f32.mrb[44].mxu0 }
 0x257   :  { %v6758_v38 = vpop.f32.mrb[44].mxu1  ;;  %v6737_v39 = vpop.f32.mrb[45].mxu0 }
 0x258   :  { %v6738_v40 = vadd.f32 %v6737_v39, %v6736_v37  ;;  %v6759_v41 = vpop.f32.mrb[45].mxu1  ;;  %v6739_v42 = vpop.f32.mrb[46].mxu0 }
 0x259   :  { %v6760_v43 = vadd.f32 %v6759_v41, %v6758_v38  ;;  %v6761_v44 = vpop.f32.mrb[46].mxu1  ;;  %v6740_v45 = vpop.f32.mrb[47].mxu0 }
 0x25a   :  { %v5289_v46 = vadd.f32 %v6738_v40, %v5249_v36  ;;  %v6762_v47 = vpop.f32.mrb[47].mxu1 }
 0x25c   :  { %v5329_v48 = vadd.f32 %v6760_v43, %v5289_v46 }
 0x276   :  { %v6780_v49 = vpop.f32.mrb[48].mxu0 }
 0x277   :  { %v6802_v50 = vpop.f32.mrb[48].mxu1  ;;  %v6781_v51 = vpop.f32.mrb[49].mxu0 }
 0x278   :  { %v6782_v52 = vadd.f32 %v6781_v51, %v6780_v49  ;;  %v6803_v53 = vpop.f32.mrb[49].mxu1  ;;  %v6783_v54 = vpop.f32.mrb[50].mxu0 }
 0x279   :  { %v6804_v55 = vadd.f32 %v6803_v53, %v6802_v50  ;;  %v6805_v56 = vpop.f32.mrb[50].mxu1  ;;  %v6784_v57 = vpop.f32.mrb[51].mxu0 }
 0x27a   :  { %v5369_v58 = vadd.f32 %v6782_v52, %v5329_v48  ;;  %v6806_v59 = vpop.f32.mrb[51].mxu1 }
 0x27c   :  { %v5409_v60 = vadd.f32 %v6804_v55, %v5369_v58 }
 0x296   :  { %v6824_v61 = vpop.f32.mrb[52].mxu0 }
 0x297   :  { %v6846_v62 = vpop.f32.mrb[52].mxu1  ;;  %v6825_v63 = vpop.f32.mrb[53].mxu0 }
 0x298   :  { %v6847_v0 = vpop.f32.mrb[53].mxu1  ;;  %v6826_v1 = vadd.f32 %v6825_v63, %v6824_v61  ;;  %v6827_v3 = vpop.f32.mrb[54].mxu0 }
 0x299   :  { %v6848_v2 = vadd.f32 %v6847_v0, %v6846_v62  ;;  %v6849_v4 = vpop.f32.mrb[54].mxu1  ;;  %v6828_v5 = vpop.f32.mrb[55].mxu0 }
 0x29a   :  { %v6850_v6 = vpop.f32.mrb[55].mxu1  ;;  %v5449_v7 = vadd.f32 %v6826_v1, %v5409_v60 }
 0x29c   :  { %v5489_v8 = vadd.f32 %v6848_v2, %v5449_v7 }
 0x2b6   :  { %v6868_v9 = vpop.f32.mrb[56].mxu0 }
 0x2b7   :  { %v6890_v10 = vpop.f32.mrb[56].mxu1  ;;  %v6869_v11 = vpop.f32.mrb[57].mxu0 }
 0x2b8   :  { %v6870_v12 = vadd.f32 %v6869_v11, %v6868_v9  ;;  %v6891_v13 = vpop.f32.mrb[57].mxu1  ;;  %v6871_v14 = vpop.f32.mrb[58].mxu0 }
 0x2b9   :  { %v6892_v15 = vadd.f32 %v6891_v13, %v6890_v10  ;;  %v6893_v16 = vpop.f32.mrb[58].mxu1  ;;  %v6872_v17 = vpop.f32.mrb[59].mxu0 }
 0x2ba   :  { %v5529_v18 = vadd.f32 %v6870_v12, %v5489_v8  ;;  %v6894_v19 = vpop.f32.mrb[59].mxu1 }
 0x2bc   :  { %v5569_v20 = vadd.f32 %v6892_v15, %v5529_v18 }
 0x2d6   :  { %v6912_v21 = vpop.f32.mrb[60].mxu0 }
 0x2d7   :  { %v6934_v22 = vpop.f32.mrb[60].mxu1  ;;  %v6913_v23 = vpop.f32.mrb[61].mxu0 }
 0x2d8   :  { %v6914_v24 = vadd.f32 %v6913_v23, %v6912_v21  ;;  %v6935_v25 = vpop.f32.mrb[61].mxu1  ;;  %v6915_v26 = vpop.f32.mrb[62].mxu0 }
 0x2d9   :  { %v6936_v27 = vadd.f32 %v6935_v25, %v6934_v22  ;;  %v6937_v28 = vpop.f32.mrb[62].mxu1  ;;  %v6916_v29 = vpop.f32.mrb[63].mxu0 }
 0x2da   :  { %v5609_v30 = vadd.f32 %v6914_v24, %v5569_v20  ;;  %v6938_v31 = vpop.f32.mrb[63].mxu1 }
 0x2dc   :  { %v5649_v32 = vadd.f32 %v6936_v27, %v5609_v30 }
 0x2de   :  { %5654 = vst [vmem:[%s9201_s3] sm:$0xff] %v5649_v32 }

</bundles_post_ra>
